<compile_context>
chip_gen: v6e
topology: v6e:2x2x1
jax: 0.10.0
libtpu: 0.0.40
codegen_flags: <defaults>
</compile_context>

<pallas_src>
import functools

import jax
import jax.numpy as jnp
from jax.experimental import pallas as pl
from jax.experimental.pallas import tpu as pltpu

# ------------------------------ configuration ------------------------------
B_DEF = 2
C_IN = 4          # input channels
SMAP = 8          # sensor axis (W), never downsampled
TMAP = 8          # time feature-map size at the deepest stage
DOWN = 4          # temporal downsample ratio of the encoder (2 stages x 2)
T_FULL = TMAP * DOWN            # padded time length (raw input is T_FULL - 2, replicate-padded)
MASK_RATIO = 0.6
LEN_KEEP = round(TMAP * SMAP * (1.0 - MASK_RATIO))   # = 26

E1 = 32           # encoder stage-1 channels
E2 = 64           # encoder stage-2 channels (== decoder width -> densify_proj[0] is Identity)
E3 = 16           # decoder mid channels

L_FULL = T_FULL * SMAP          # 256 flattened rows at full resolution
L_MID = (T_FULL // 2) * SMAP    # 128
L_DEEP = TMAP * SMAP            # 64
PATCH = DOWN * C_IN             # 16 = patch size of patchify (p * q * C)


# ------------------------------ in-kernel helpers (flat (B*L, C) layout) ------------------------------
def _conv_t(x_flat, w_ref, b_ref, *, bsz, taps, relu):
    """Temporal (taps,1) zero-padded conv on a flat (B*L, Cin) slab.

    Per-sample zero padding along the flattened time axis, one MXU matmul per tap with
    M = B*L (batch folded into the matmul M axis), f32 accumulation, f32 epilogue.
    """
    m_rows, cin = x_flat.shape
    cout = w_ref.shape[-1]
    if taps == 1:
        acc = jnp.dot(x_flat.astype(jnp.bfloat16), w_ref[0],
                      preferred_element_type=jnp.float32)
    else:
        pad = (taps - 1) // 2
        seq = m_rows // bsz
        x3 = x_flat.reshape(bsz, seq, cin)
        zp = jnp.zeros((bsz, pad * SMAP, cin), jnp.float32)
        xp = jnp.concatenate([zp, x3, zp], axis=1)           # per-sample zero padding
        acc = jnp.zeros((m_rows, cout), jnp.float32)
        for d in range(taps):                                 # sublane-aligned shifted views
            sl = xp[:, d * SMAP:d * SMAP + seq, :].reshape(m_rows, cin)
            acc = acc + jnp.dot(sl.astype(jnp.bfloat16), w_ref[d],
                                preferred_element_type=jnp.float32)
    acc = acc + b_ref[...]
    if relu:
        acc = jnp.maximum(acc, 0.0)
    return acc


def _time_avgpool2(x_flat):
    """Average adjacent time rows (each time row = SMAP flattened rows); batch-safe since
    every per-sample row count is a multiple of 2*SMAP."""
    m_rows, c = x_flat.shape
    v = x_flat.reshape(m_rows // (2 * SMAP), 2 * SMAP, c)
    return ((v[:, :SMAP, :] + v[:, SMAP:, :]) * 0.5).reshape(m_rows // 2, c)


def _time_repeat2(x_flat):
    """Repeat each time row (group of SMAP flattened rows) twice (nearest upsample)."""
    m_rows, c = x_flat.shape
    v = x_flat.reshape(m_rows // SMAP, SMAP, c)
    return jnp.concatenate([v, v], axis=1).reshape(2 * m_rows, c)


def _masked_bn_affine(y, m, gbt):
    """SparseBatchNorm2d over the active positions of the WHOLE batch -> (scale, shift, token)."""
    ym = y * m
    s1 = jnp.sum(ym, axis=0, keepdims=True)                  # (1, C)
    s2 = jnp.sum(ym * y, axis=0, keepdims=True)              # (1, C)
    cnt = jnp.sum(m, axis=0, keepdims=True)                  # (1, 1)
    mean = s1 / cnt
    var = jnp.maximum(s2 / cnt - mean * mean, 0.0)            # biased stats, clamped >= 0
    scale = gbt[0:1, :] * jax.lax.rsqrt(var + 1e-5)
    shift = gbt[1:2, :] - mean * scale
    return scale, shift, gbt[2:3, :]


# ------------------------------ the single fused Pallas kernel ------------------------------
def _maskcae_kernel(x_ref, ad_ref, w1_ref, b1_ref, w2_ref, b2_ref,
                    gbt0_ref, gbt1_ref, p1w_ref, p1b_ref,
                    d1w_ref, d1b_ref, d2w_ref, d2b_ref, dpw_ref, dpb_ref,
                    loss_ref, *, bsz):
    x = x_ref[...]                        # (B*L_FULL, C_IN) f32, padded input
    ad = ad_ref[...]                      # (B*L_DEEP, 1)   f32 deep keep-mask
    am = _time_repeat2(ad)                # (B*L_MID, 1)    mid-res mask (derived in-kernel)
    af = _time_repeat2(am)                # (B*L_FULL, 1)   full-res mask

    # ---- sparse encoder (2 stages): mask -> conv(3,1)+ReLU -> re-mask -> temporal avg-pool
    h = _conv_t(x * af, w1_ref, b1_ref, bsz=bsz, taps=3, relu=True) * af
    y1 = _time_avgpool2(h)                                   # (B*L_MID, E1)
    h = _conv_t(y1 * am, w2_ref, b2_ref, bsz=bsz, taps=3, relu=True) * am
    y2 = _time_avgpool2(h)                                    # (B*L_DEEP, E2)

    # ---- densify: in-kernel SparseBatchNorm (batch stats over active cells) + mask tokens
    sc0, sh0, tk0 = _masked_bn_affine(y2, ad, gbt0_ref[...])
    d0 = ad * (y2 * sc0 + sh0) + (1.0 - ad) * tk0             # densify_proj[0] == nn.Identity
    sc1, sh1, tk1 = _masked_bn_affine(y1, am, gbt1_ref[...])
    f1 = am * (y1 * sc1 + sh1) + (1.0 - am) * tk1
    d1 = _conv_t(f1, p1w_ref, p1b_ref, bsz=bsz, taps=5, relu=False)   # (5,1) densify proj

    # ---- light decoder: up(x2) -> conv+ReLU -> +skip -> up(x2) -> conv+ReLU -> 1x1 proj
    z = _time_repeat2(d0)                                      # (B*L_MID, E2)
    z = _conv_t(z, d1w_ref, d1b_ref, bsz=bsz, taps=3, relu=True)
    z = z + d1
    z = _time_repeat2(z)                                       # (B*L_FULL, E1)
    z = _conv_t(z, d2w_ref, d2b_ref, bsz=bsz, taps=3, relu=True)
    rec = _conv_t(z, dpw_ref, dpb_ref, bsz=bsz, taps=1, relu=False)   # (B*L_FULL, C_IN)

    # ---- normalized-patch L2 loss (patch = DOWN time rows x C_IN channels of one deep cell)
    row_sum = jnp.sum(x, axis=-1, keepdims=True)               # (B*L_FULL, 1)
    patch_mean = _time_avgpool2(_time_avgpool2(row_sum)) * (1.0 / C_IN)
    pm_full = _time_repeat2(_time_repeat2(patch_mean))
    diff = x - pm_full
    sq_row = jnp.sum(diff * diff, axis=-1, keepdims=True)
    pvar = _time_avgpool2(_time_avgpool2(sq_row)) * (DOWN / (PATCH - 1.0))   # unbiased, as torch.var
    inv_full = _time_repeat2(_time_repeat2(jax.lax.rsqrt(pvar + 1e-6)))
    x_n = diff * inv_full

    err = rec - x_n
    werr = (1.0 - af) * err * err          # mask is constant within a patch
    ws = jnp.sum(jnp.sum(werr, axis=1, keepdims=True), axis=0, keepdims=True)      # (1, 1)
    nna = jnp.sum(1.0 - ad, axis=0, keepdims=True)                                  # (1, 1)
    loss_ref[...] = ws / (PATCH * (nna + 1e-8))


# ------------------------------ pallas_call wrapper ------------------------------
def maskcae_fused_call(x_flat, ad_flat, params):
    bsz = x_flat.shape[0] // L_FULL
    bf = lambda a: a.astype(jnp.bfloat16)
    # pack [gamma; beta; mask-token] per densify stage
    gbt0 = jnp.concatenate([params['bn0_g'], params['bn0_b'], params['tok0']], axis=0)   # (3, E2)
    gbt1 = jnp.concatenate([params['bn1_g'], params['bn1_b'], params['tok1']], axis=0)   # (3, E1)

    args = [
        x_flat, ad_flat,
        bf(params['enc1_w']), params['enc1_b'],
        bf(params['enc2_w']), params['enc2_b'],
        gbt0, gbt1,
        bf(params['proj1_w']), params['proj1_b'],
        bf(params['dec1_w']), params['dec1_b'],
        bf(params['dec2_w']), params['dec2_b'],
        bf(params['decp_w']), params['decp_b'],
    ]

    def full_spec(shape):
        n = len(shape)
        return pl.BlockSpec(shape, lambda i, _n=n: (0,) * _n)

    return pl.pallas_call(
        functools.partial(_maskcae_kernel, bsz=bsz),
        out_shape=jax.ShapeDtypeStruct((1, 1), jnp.float32),
        grid=(1,),
        in_specs=[full_spec(a.shape) for a in args],
        out_specs=pl.BlockSpec((1, 1), lambda i: (0, 0)),
        compiler_params=pltpu.CompilerParams(dimension_semantics=("arbitrary",)),
    )(*args)


# ------------------------------ plain-JAX glue ------------------------------
def make_mask(key, batch):
    """Random keep-mask: exactly LEN_KEEP active cells per sample on the (TMAP, SMAP) grid."""
    def one(k):
        perm = jax.random.permutation(k, TMAP * SMAP)
        return jnp.zeros((TMAP * SMAP,), jnp.bool_).at[perm[:LEN_KEEP]].set(True)
    return jax.vmap(one)(jax.random.split(key, batch)).reshape(batch, TMAP, SMAP)


def init_params(key):
    ks = jax.random.split(key, 12)
    rnd = lambda k, shape, s=0.1: jax.random.normal(k, shape, jnp.float32) * s
    p = {}
    # sparse encoder: 2 stages of temporal (3,1) conv, weights stored as (taps, Cin, Cout)
    p['enc1_w'] = rnd(ks[0], (3, C_IN, E1)); p['enc1_b'] = rnd(ks[1], (1, E1), 0.01)
    p['enc2_w'] = rnd(ks[2], (3, E1, E2));   p['enc2_b'] = rnd(ks[3], (1, E2), 0.01)
    # mask tokens (trunc_normal std=0.02, clipped to +-0.02)
    p['tok0'] = jnp.clip(rnd(ks[4], (1, E2), 0.02), -0.02, 0.02)
    p['tok1'] = jnp.clip(rnd(ks[5], (1, E1), 0.02), -0.02, 0.02)
    # densify norms (SparseBatchNorm2d affine params, default init)
    p['bn0_g'] = jnp.ones((1, E2)); p['bn0_b'] = jnp.zeros((1, E2))
    p['bn1_g'] = jnp.ones((1, E1)); p['bn1_b'] = jnp.zeros((1, E1))
    # densify projs: i=0 is nn.Identity (e_width == d_width); i=1 is Conv2d k=(5,1)
    p['proj1_w'] = rnd(ks[6], (5, E1, E1)); p['proj1_b'] = rnd(ks[7], (1, E1), 0.01)
    # light decoder
    p['dec1_w'] = rnd(ks[8], (3, E2, E1));  p['dec1_b'] = jnp.zeros((1, E1))
    p['dec2_w'] = rnd(ks[9], (3, E1, E3));  p['dec2_b'] = jnp.zeros((1, E3))
    p['decp_w'] = rnd(ks[10], (1, E3, C_IN)); p['decp_b'] = jnp.zeros((1, C_IN))
    return p


def maskcae_forward(x_nchw, params, mask_key):
    batch = x_nchw.shape[0]
    # sup_window_length == False  ->  replicate-pad the time axis by 1 on each side
    x_pad = jnp.pad(x_nchw, ((0, 0), (0, 0), (1, 1), (0, 0)), mode='edge')

    # random keep-mask at the deepest resolution only; mid/full-res versions derived in-kernel
    active = make_mask(mask_key, batch)                                   # (B, TMAP, SMAP) bool
    ad_flat = active.astype(jnp.float32).reshape(batch * L_DEEP, 1)

    # NCHW -> flat (B*L, C): time-major, sensor-minor rows; channels on lanes
    x_flat = jnp.transpose(x_pad, (0, 2, 3, 1)).reshape(batch * L_FULL, C_IN)

    loss = maskcae_fused_call(x_flat, ad_flat, params)                    # (1, 1)
    return loss[0, 0]


# ------------------------------ demo ------------------------------
if __name__ == "__main__":
    key = jax.random.PRNGKey(0)
    k_x, k_mask, k_par = jax.random.split(key, 3)
    batch, t_raw = B_DEF, T_FULL - 2                   # raw (un-padded) time length
    x = jax.random.normal(k_x, (batch, C_IN, t_raw, SMAP), jnp.float32)   # NCHW, like the PyTorch module
    params = init_params(k_par)

    loss = jax.jit(maskcae_forward)(x, params, k_mask)
    loss = jax.block_until_ready(loss)
    assert bool(jnp.isfinite(loss))
    print("KERNEL_OK")
</pallas_src>

<mosaic_0001>
module attributes {stable_mosaic.version = 11 : i64} {
  func.func @_maskcae_kernel(%arg0: i32, %arg1: memref<512x4xf32, #tpu.memory_space<vmem>>, %arg2: memref<128x1xf32, #tpu.memory_space<vmem>>, %arg3: memref<3x4x32xbf16, #tpu.memory_space<vmem>>, %arg4: memref<1x32xf32, #tpu.memory_space<vmem>>, %arg5: memref<3x32x64xbf16, #tpu.memory_space<vmem>>, %arg6: memref<1x64xf32, #tpu.memory_space<vmem>>, %arg7: memref<3x64xf32, #tpu.memory_space<vmem>>, %arg8: memref<3x32xf32, #tpu.memory_space<vmem>>, %arg9: memref<5x32x32xbf16, #tpu.memory_space<vmem>>, %arg10: memref<1x32xf32, #tpu.memory_space<vmem>>, %arg11: memref<3x64x32xbf16, #tpu.memory_space<vmem>>, %arg12: memref<1x32xf32, #tpu.memory_space<vmem>>, %arg13: memref<3x32x16xbf16, #tpu.memory_space<vmem>>, %arg14: memref<1x16xf32, #tpu.memory_space<vmem>>, %arg15: memref<1x16x4xbf16, #tpu.memory_space<vmem>>, %arg16: memref<1x4xf32, #tpu.memory_space<vmem>>, %arg17: memref<1x1xf32, #tpu.memory_space<vmem>>) attributes {dimension_semantics = [#tpu.dimension_semantics<arbitrary>], iteration_bounds = array<i64: 1>, scalar_prefetch = 0 : i64, scratch_operands = 0 : i64, tpu.core_type = #tpu.core_type<tc>, window_params = [{pipeline_mode = #tpu.pipeline_mode<synchronous>, transform_indices = @transform_0, window_bounds = array<i64: 512, 4>}, {pipeline_mode = #tpu.pipeline_mode<synchronous>, transform_indices = @transform_1, window_bounds = array<i64: 128, 1>}, {pipeline_mode = #tpu.pipeline_mode<synchronous>, transform_indices = @transform_2, window_bounds = array<i64: 3, 4, 32>}, {pipeline_mode = #tpu.pipeline_mode<synchronous>, transform_indices = @transform_3, window_bounds = array<i64: 1, 32>}, {pipeline_mode = #tpu.pipeline_mode<synchronous>, transform_indices = @transform_4, window_bounds = array<i64: 3, 32, 64>}, {pipeline_mode = #tpu.pipeline_mode<synchronous>, transform_indices = @transform_5, window_bounds = array<i64: 1, 64>}, {pipeline_mode = #tpu.pipeline_mode<synchronous>, transform_indices = @transform_6, window_bounds = array<i64: 3, 64>}, {pipeline_mode = #tpu.pipeline_mode<synchronous>, transform_indices = @transform_7, window_bounds = array<i64: 3, 32>}, {pipeline_mode = #tpu.pipeline_mode<synchronous>, transform_indices = @transform_8, window_bounds = array<i64: 5, 32, 32>}, {pipeline_mode = #tpu.pipeline_mode<synchronous>, transform_indices = @transform_9, window_bounds = array<i64: 1, 32>}, {pipeline_mode = #tpu.pipeline_mode<synchronous>, transform_indices = @transform_10, window_bounds = array<i64: 3, 64, 32>}, {pipeline_mode = #tpu.pipeline_mode<synchronous>, transform_indices = @transform_11, window_bounds = array<i64: 1, 32>}, {pipeline_mode = #tpu.pipeline_mode<synchronous>, transform_indices = @transform_12, window_bounds = array<i64: 3, 32, 16>}, {pipeline_mode = #tpu.pipeline_mode<synchronous>, transform_indices = @transform_13, window_bounds = array<i64: 1, 16>}, {pipeline_mode = #tpu.pipeline_mode<synchronous>, transform_indices = @transform_14, window_bounds = array<i64: 1, 16, 4>}, {pipeline_mode = #tpu.pipeline_mode<synchronous>, transform_indices = @transform_15, window_bounds = array<i64: 1, 4>}, {pipeline_mode = #tpu.pipeline_mode<synchronous>, transform_indices = @transform_16, window_bounds = array<i64: 1, 1>}]} {
    %c0 = arith.constant 0 : index
    %c0_0 = arith.constant 0 : index
    %0 = vector.load %arg1[%c0, %c0_0] : memref<512x4xf32, #tpu.memory_space<vmem>>, vector<512x4xf32>
    %c0_1 = arith.constant 0 : index
    %c0_2 = arith.constant 0 : index
    %1 = vector.load %arg2[%c0_1, %c0_2] : memref<128x1xf32, #tpu.memory_space<vmem>>, vector<128x1xf32>
    %2 = vector.shape_cast %1 : vector<128x1xf32> to vector<16x8x1xf32>
    %3 = tpu.concatenate %2, %2 in 1 : vector<16x8x1xf32>, vector<16x8x1xf32> -> vector<16x16x1xf32>
    %4 = vector.shape_cast %3 : vector<16x16x1xf32> to vector<256x1xf32>
    %5 = vector.shape_cast %4 : vector<256x1xf32> to vector<32x8x1xf32>
    %6 = tpu.concatenate %5, %5 in 1 : vector<32x8x1xf32>, vector<32x8x1xf32> -> vector<32x16x1xf32>
    %7 = vector.shape_cast %6 : vector<32x16x1xf32> to vector<512x1xf32>
    %8 = vector.broadcast %7 : vector<512x1xf32> to vector<512x4xf32>
    %9 = arith.mulf %0, %8 : vector<512x4xf32>
    %10 = vector.shape_cast %9 : vector<512x4xf32> to vector<2x256x4xf32>
    %cst = arith.constant 0.000000e+00 : f32
    %11 = vector.broadcast %cst : f32 to vector<2x8x4xf32>
    %12 = tpu.concatenate %11, %10, %11 in 1 : vector<2x8x4xf32>, vector<2x256x4xf32>, vector<2x8x4xf32> -> vector<2x272x4xf32>
    %cst_3 = arith.constant 0.000000e+00 : f32
    %13 = vector.broadcast %cst_3 : f32 to vector<512x32xf32>
    %14 = vector.extract_strided_slice %12 {offsets = [0, 0, 0], sizes = [2, 256, 4], strides = [1, 1, 1]} : vector<2x272x4xf32> to vector<2x256x4xf32>
    %15 = vector.shape_cast %14 : vector<2x256x4xf32> to vector<512x4xf32>
    %16 = arith.truncf %15 : vector<512x4xf32> to vector<512x4xbf16>
    %c0_4 = arith.constant 0 : index
    %c0_5 = arith.constant 0 : index
    %c0_6 = arith.constant 0 : index
    %17 = vector.load %arg3[%c0_4, %c0_5, %c0_6] : memref<3x4x32xbf16, #tpu.memory_space<vmem>>, vector<1x4x32xbf16>
    %18 = vector.shape_cast %17 : vector<1x4x32xbf16> to vector<4x32xbf16>
    %cst_7 = arith.constant dense<0.000000e+00> : vector<512x32xf32>
    %19 = tpu.matmul %16, %18, %cst_7 {dimension_numbers = #tpu.dot_dimension_numbers<[1], [0], [0], [1], [0, 0, 1, 1], [], []>} : vector<512x4xbf16>, vector<4x32xbf16>, vector<512x32xf32> -> vector<512x32xf32>
    %20 = arith.addf %13, %19 : vector<512x32xf32>
    %21 = vector.extract_strided_slice %12 {offsets = [0, 8, 0], sizes = [2, 256, 4], strides = [1, 1, 1]} : vector<2x272x4xf32> to vector<2x256x4xf32>
    %22 = vector.shape_cast %21 : vector<2x256x4xf32> to vector<512x4xf32>
    %23 = arith.truncf %22 : vector<512x4xf32> to vector<512x4xbf16>
    %c1 = arith.constant 1 : index
    %c0_8 = arith.constant 0 : index
    %c0_9 = arith.constant 0 : index
    %24 = vector.load %arg3[%c1, %c0_8, %c0_9] : memref<3x4x32xbf16, #tpu.memory_space<vmem>>, vector<1x4x32xbf16>
    %25 = vector.shape_cast %24 : vector<1x4x32xbf16> to vector<4x32xbf16>
    %cst_10 = arith.constant dense<0.000000e+00> : vector<512x32xf32>
    %26 = tpu.matmul %23, %25, %cst_10 {dimension_numbers = #tpu.dot_dimension_numbers<[1], [0], [0], [1], [0, 0, 1, 1], [], []>} : vector<512x4xbf16>, vector<4x32xbf16>, vector<512x32xf32> -> vector<512x32xf32>
    %27 = arith.addf %20, %26 : vector<512x32xf32>
    %28 = vector.extract_strided_slice %12 {offsets = [0, 16, 0], sizes = [2, 256, 4], strides = [1, 1, 1]} : vector<2x272x4xf32> to vector<2x256x4xf32>
    %29 = vector.shape_cast %28 : vector<2x256x4xf32> to vector<512x4xf32>
    %30 = arith.truncf %29 : vector<512x4xf32> to vector<512x4xbf16>
    %c2 = arith.constant 2 : index
    %c0_11 = arith.constant 0 : index
    %c0_12 = arith.constant 0 : index
    %31 = vector.load %arg3[%c2, %c0_11, %c0_12] : memref<3x4x32xbf16, #tpu.memory_space<vmem>>, vector<1x4x32xbf16>
    %32 = vector.shape_cast %31 : vector<1x4x32xbf16> to vector<4x32xbf16>
    %cst_13 = arith.constant dense<0.000000e+00> : vector<512x32xf32>
    %33 = tpu.matmul %30, %32, %cst_13 {dimension_numbers = #tpu.dot_dimension_numbers<[1], [0], [0], [1], [0, 0, 1, 1], [], []>} : vector<512x4xbf16>, vector<4x32xbf16>, vector<512x32xf32> -> vector<512x32xf32>
    %34 = arith.addf %27, %33 : vector<512x32xf32>
    %c0_14 = arith.constant 0 : index
    %c0_15 = arith.constant 0 : index
    %35 = vector.load %arg4[%c0_14, %c0_15] : memref<1x32xf32, #tpu.memory_space<vmem>>, vector<1x32xf32>
    %36 = vector.broadcast %35 : vector<1x32xf32> to vector<512x32xf32>
    %37 = arith.addf %34, %36 : vector<512x32xf32>
    %cst_16 = arith.constant 0.000000e+00 : f32
    %38 = vector.broadcast %cst_16 : f32 to vector<512x32xf32>
    %39 = arith.maximumf %37, %38 : vector<512x32xf32>
    %40 = vector.broadcast %7 : vector<512x1xf32> to vector<512x32xf32>
    %41 = arith.mulf %39, %40 : vector<512x32xf32>
    %42 = vector.shape_cast %41 : vector<512x32xf32> to vector<32x16x32xf32>
    %43 = vector.extract_strided_slice %42 {offsets = [0, 0, 0], sizes = [32, 8, 32], strides = [1, 1, 1]} : vector<32x16x32xf32> to vector<32x8x32xf32>
    %44 = vector.extract_strided_slice %42 {offsets = [0, 8, 0], sizes = [32, 8, 32], strides = [1, 1, 1]} : vector<32x16x32xf32> to vector<32x8x32xf32>
    %45 = arith.addf %43, %44 : vector<32x8x32xf32>
    %cst_17 = arith.constant 5.000000e-01 : f32
    %46 = vector.broadcast %cst_17 : f32 to vector<32x8x32xf32>
    %47 = arith.mulf %45, %46 : vector<32x8x32xf32>
    %48 = vector.shape_cast %47 : vector<32x8x32xf32> to vector<256x32xf32>
    %49 = vector.broadcast %4 : vector<256x1xf32> to vector<256x32xf32>
    %50 = arith.mulf %48, %49 : vector<256x32xf32>
    %51 = vector.shape_cast %50 : vector<256x32xf32> to vector<2x128x32xf32>
    %cst_18 = arith.constant 0.000000e+00 : f32
    %52 = vector.broadcast %cst_18 : f32 to vector<2x8x32xf32>
    %53 = tpu.concatenate %52, %51, %52 in 1 : vector<2x8x32xf32>, vector<2x128x32xf32>, vector<2x8x32xf32> -> vector<2x144x32xf32>
    %cst_19 = arith.constant 0.000000e+00 : f32
    %54 = vector.broadcast %cst_19 : f32 to vector<256x64xf32>
    %55 = vector.extract_strided_slice %53 {offsets = [0, 0, 0], sizes = [2, 128, 32], strides = [1, 1, 1]} : vector<2x144x32xf32> to vector<2x128x32xf32>
    %56 = vector.shape_cast %55 : vector<2x128x32xf32> to vector<256x32xf32>
    %57 = arith.truncf %56 : vector<256x32xf32> to vector<256x32xbf16>
    %c0_20 = arith.constant 0 : index
    %c0_21 = arith.constant 0 : index
    %c0_22 = arith.constant 0 : index
    %58 = vector.load %arg5[%c0_20, %c0_21, %c0_22] : memref<3x32x64xbf16, #tpu.memory_space<vmem>>, vector<1x32x64xbf16>
    %59 = vector.shape_cast %58 : vector<1x32x64xbf16> to vector<32x64xbf16>
    %cst_23 = arith.constant dense<0.000000e+00> : vector<256x64xf32>
    %60 = tpu.matmul %57, %59, %cst_23 {dimension_numbers = #tpu.dot_dimension_numbers<[1], [0], [0], [1], [0, 0, 1, 1], [], []>} : vector<256x32xbf16>, vector<32x64xbf16>, vector<256x64xf32> -> vector<256x64xf32>
    %61 = arith.addf %54, %60 : vector<256x64xf32>
    %62 = vector.extract_strided_slice %53 {offsets = [0, 8, 0], sizes = [2, 128, 32], strides = [1, 1, 1]} : vector<2x144x32xf32> to vector<2x128x32xf32>
    %63 = vector.shape_cast %62 : vector<2x128x32xf32> to vector<256x32xf32>
    %64 = arith.truncf %63 : vector<256x32xf32> to vector<256x32xbf16>
    %c1_24 = arith.constant 1 : index
    %c0_25 = arith.constant 0 : index
    %c0_26 = arith.constant 0 : index
    %65 = vector.load %arg5[%c1_24, %c0_25, %c0_26] : memref<3x32x64xbf16, #tpu.memory_space<vmem>>, vector<1x32x64xbf16>
    %66 = vector.shape_cast %65 : vector<1x32x64xbf16> to vector<32x64xbf16>
    %cst_27 = arith.constant dense<0.000000e+00> : vector<256x64xf32>
    %67 = tpu.matmul %64, %66, %cst_27 {dimension_numbers = #tpu.dot_dimension_numbers<[1], [0], [0], [1], [0, 0, 1, 1], [], []>} : vector<256x32xbf16>, vector<32x64xbf16>, vector<256x64xf32> -> vector<256x64xf32>
    %68 = arith.addf %61, %67 : vector<256x64xf32>
    %69 = vector.extract_strided_slice %53 {offsets = [0, 16, 0], sizes = [2, 128, 32], strides = [1, 1, 1]} : vector<2x144x32xf32> to vector<2x128x32xf32>
    %70 = vector.shape_cast %69 : vector<2x128x32xf32> to vector<256x32xf32>
    %71 = arith.truncf %70 : vector<256x32xf32> to vector<256x32xbf16>
    %c2_28 = arith.constant 2 : index
    %c0_29 = arith.constant 0 : index
    %c0_30 = arith.constant 0 : index
    %72 = vector.load %arg5[%c2_28, %c0_29, %c0_30] : memref<3x32x64xbf16, #tpu.memory_space<vmem>>, vector<1x32x64xbf16>
    %73 = vector.shape_cast %72 : vector<1x32x64xbf16> to vector<32x64xbf16>
    %cst_31 = arith.constant dense<0.000000e+00> : vector<256x64xf32>
    %74 = tpu.matmul %71, %73, %cst_31 {dimension_numbers = #tpu.dot_dimension_numbers<[1], [0], [0], [1], [0, 0, 1, 1], [], []>} : vector<256x32xbf16>, vector<32x64xbf16>, vector<256x64xf32> -> vector<256x64xf32>
    %75 = arith.addf %68, %74 : vector<256x64xf32>
    %c0_32 = arith.constant 0 : index
    %c0_33 = arith.constant 0 : index
    %76 = vector.load %arg6[%c0_32, %c0_33] : memref<1x64xf32, #tpu.memory_space<vmem>>, vector<1x64xf32>
    %77 = vector.broadcast %76 : vector<1x64xf32> to vector<256x64xf32>
    %78 = arith.addf %75, %77 : vector<256x64xf32>
    %cst_34 = arith.constant 0.000000e+00 : f32
    %79 = vector.broadcast %cst_34 : f32 to vector<256x64xf32>
    %80 = arith.maximumf %78, %79 : vector<256x64xf32>
    %81 = vector.broadcast %4 : vector<256x1xf32> to vector<256x64xf32>
    %82 = arith.mulf %80, %81 : vector<256x64xf32>
    %83 = vector.shape_cast %82 : vector<256x64xf32> to vector<16x16x64xf32>
    %84 = vector.extract_strided_slice %83 {offsets = [0, 0, 0], sizes = [16, 8, 64], strides = [1, 1, 1]} : vector<16x16x64xf32> to vector<16x8x64xf32>
    %85 = vector.extract_strided_slice %83 {offsets = [0, 8, 0], sizes = [16, 8, 64], strides = [1, 1, 1]} : vector<16x16x64xf32> to vector<16x8x64xf32>
    %86 = arith.addf %84, %85 : vector<16x8x64xf32>
    %cst_35 = arith.constant 5.000000e-01 : f32
    %87 = vector.broadcast %cst_35 : f32 to vector<16x8x64xf32>
    %88 = arith.mulf %86, %87 : vector<16x8x64xf32>
    %89 = vector.shape_cast %88 : vector<16x8x64xf32> to vector<128x64xf32>
    %c0_36 = arith.constant 0 : index
    %c0_37 = arith.constant 0 : index
    %90 = vector.load %arg7[%c0_36, %c0_37] : memref<3x64xf32, #tpu.memory_space<vmem>>, vector<3x64xf32>
    %91 = vector.broadcast %1 : vector<128x1xf32> to vector<128x64xf32>
    %92 = arith.mulf %89, %91 : vector<128x64xf32>
    %cst_38 = arith.constant dense<0.000000e+00> : vector<64xf32>
    %93 = vector.multi_reduction <add>, %92, %cst_38 [0] : vector<128x64xf32> to vector<64xf32>
    %94 = vector.shape_cast %93 : vector<64xf32> to vector<1x64xf32>
    %95 = arith.mulf %92, %89 : vector<128x64xf32>
    %cst_39 = arith.constant dense<0.000000e+00> : vector<64xf32>
    %96 = vector.multi_reduction <add>, %95, %cst_39 [0] : vector<128x64xf32> to vector<64xf32>
    %97 = vector.shape_cast %96 : vector<64xf32> to vector<1x64xf32>
    %cst_40 = arith.constant dense<0.000000e+00> : vector<1xf32>
    %98 = vector.multi_reduction <add>, %1, %cst_40 [0] : vector<128x1xf32> to vector<1xf32>
    %99 = vector.shape_cast %98 : vector<1xf32> to vector<1x1xf32>
    %100 = vector.broadcast %99 : vector<1x1xf32> to vector<1x64xf32>
    %101 = arith.divf %94, %100 : vector<1x64xf32>
    %102 = vector.broadcast %99 : vector<1x1xf32> to vector<1x64xf32>
    %103 = arith.divf %97, %102 : vector<1x64xf32>
    %104 = arith.mulf %101, %101 : vector<1x64xf32>
    %105 = arith.subf %103, %104 : vector<1x64xf32>
    %cst_41 = arith.constant 0.000000e+00 : f32
    %106 = vector.broadcast %cst_41 : f32 to vector<1x64xf32>
    %107 = arith.maximumf %105, %106 : vector<1x64xf32>
    %108 = vector.extract_strided_slice %90 {offsets = [0, 0], sizes = [1, 64], strides = [1, 1]} : vector<3x64xf32> to vector<1x64xf32>
    %cst_42 = arith.constant 9.99999974E-6 : f32
    %109 = vector.broadcast %cst_42 : f32 to vector<1x64xf32>
    %110 = arith.addf %107, %109 : vector<1x64xf32>
    %111 = math.rsqrt %110 : vector<1x64xf32>
    %112 = arith.mulf %108, %111 : vector<1x64xf32>
    %113 = vector.extract_strided_slice %90 {offsets = [1, 0], sizes = [1, 64], strides = [1, 1]} : vector<3x64xf32> to vector<1x64xf32>
    %114 = arith.mulf %101, %112 : vector<1x64xf32>
    %115 = arith.subf %113, %114 : vector<1x64xf32>
    %116 = vector.extract_strided_slice %90 {offsets = [2, 0], sizes = [1, 64], strides = [1, 1]} : vector<3x64xf32> to vector<1x64xf32>
    %117 = vector.broadcast %112 : vector<1x64xf32> to vector<128x64xf32>
    %118 = arith.mulf %89, %117 : vector<128x64xf32>
    %119 = vector.broadcast %115 : vector<1x64xf32> to vector<128x64xf32>
    %120 = arith.addf %118, %119 : vector<128x64xf32>
    %121 = vector.broadcast %1 : vector<128x1xf32> to vector<128x64xf32>
    %122 = arith.mulf %121, %120 : vector<128x64xf32>
    %cst_43 = arith.constant 1.000000e+00 : f32
    %123 = vector.broadcast %cst_43 : f32 to vector<128x1xf32>
    %124 = arith.subf %123, %1 : vector<128x1xf32>
    %125 = vector.broadcast %124 : vector<128x1xf32> to vector<128x64xf32>
    %126 = vector.broadcast %116 : vector<1x64xf32> to vector<128x64xf32>
    %127 = arith.mulf %125, %126 : vector<128x64xf32>
    %128 = arith.addf %122, %127 : vector<128x64xf32>
    %c0_44 = arith.constant 0 : index
    %c0_45 = arith.constant 0 : index
    %129 = vector.load %arg8[%c0_44, %c0_45] : memref<3x32xf32, #tpu.memory_space<vmem>>, vector<3x32xf32>
    %130 = vector.broadcast %4 : vector<256x1xf32> to vector<256x32xf32>
    %131 = arith.mulf %48, %130 : vector<256x32xf32>
    %cst_46 = arith.constant dense<0.000000e+00> : vector<32xf32>
    %132 = vector.multi_reduction <add>, %131, %cst_46 [0] : vector<256x32xf32> to vector<32xf32>
    %133 = vector.shape_cast %132 : vector<32xf32> to vector<1x32xf32>
    %134 = arith.mulf %131, %48 : vector<256x32xf32>
    %cst_47 = arith.constant dense<0.000000e+00> : vector<32xf32>
    %135 = vector.multi_reduction <add>, %134, %cst_47 [0] : vector<256x32xf32> to vector<32xf32>
    %136 = vector.shape_cast %135 : vector<32xf32> to vector<1x32xf32>
    %cst_48 = arith.constant dense<0.000000e+00> : vector<1xf32>
    %137 = vector.multi_reduction <add>, %4, %cst_48 [0] : vector<256x1xf32> to vector<1xf32>
    %138 = vector.shape_cast %137 : vector<1xf32> to vector<1x1xf32>
    %139 = vector.broadcast %138 : vector<1x1xf32> to vector<1x32xf32>
    %140 = arith.divf %133, %139 : vector<1x32xf32>
    %141 = vector.broadcast %138 : vector<1x1xf32> to vector<1x32xf32>
    %142 = arith.divf %136, %141 : vector<1x32xf32>
    %143 = arith.mulf %140, %140 : vector<1x32xf32>
    %144 = arith.subf %142, %143 : vector<1x32xf32>
    %cst_49 = arith.constant 0.000000e+00 : f32
    %145 = vector.broadcast %cst_49 : f32 to vector<1x32xf32>
    %146 = arith.maximumf %144, %145 : vector<1x32xf32>
    %147 = vector.extract_strided_slice %129 {offsets = [0, 0], sizes = [1, 32], strides = [1, 1]} : vector<3x32xf32> to vector<1x32xf32>
    %cst_50 = arith.constant 9.99999974E-6 : f32
    %148 = vector.broadcast %cst_50 : f32 to vector<1x32xf32>
    %149 = arith.addf %146, %148 : vector<1x32xf32>
    %150 = math.rsqrt %149 : vector<1x32xf32>
    %151 = arith.mulf %147, %150 : vector<1x32xf32>
    %152 = vector.extract_strided_slice %129 {offsets = [1, 0], sizes = [1, 32], strides = [1, 1]} : vector<3x32xf32> to vector<1x32xf32>
    %153 = arith.mulf %140, %151 : vector<1x32xf32>
    %154 = arith.subf %152, %153 : vector<1x32xf32>
    %155 = vector.extract_strided_slice %129 {offsets = [2, 0], sizes = [1, 32], strides = [1, 1]} : vector<3x32xf32> to vector<1x32xf32>
    %156 = vector.broadcast %151 : vector<1x32xf32> to vector<256x32xf32>
    %157 = arith.mulf %48, %156 : vector<256x32xf32>
    %158 = vector.broadcast %154 : vector<1x32xf32> to vector<256x32xf32>
    %159 = arith.addf %157, %158 : vector<256x32xf32>
    %160 = vector.broadcast %4 : vector<256x1xf32> to vector<256x32xf32>
    %161 = arith.mulf %160, %159 : vector<256x32xf32>
    %cst_51 = arith.constant 1.000000e+00 : f32
    %162 = vector.broadcast %cst_51 : f32 to vector<256x1xf32>
    %163 = arith.subf %162, %4 : vector<256x1xf32>
    %164 = vector.broadcast %163 : vector<256x1xf32> to vector<256x32xf32>
    %165 = vector.broadcast %155 : vector<1x32xf32> to vector<256x32xf32>
    %166 = arith.mulf %164, %165 : vector<256x32xf32>
    %167 = arith.addf %161, %166 : vector<256x32xf32>
    %168 = vector.shape_cast %167 : vector<256x32xf32> to vector<2x128x32xf32>
    %cst_52 = arith.constant 0.000000e+00 : f32
    %169 = vector.broadcast %cst_52 : f32 to vector<2x16x32xf32>
    %170 = tpu.concatenate %169, %168, %169 in 1 : vector<2x16x32xf32>, vector<2x128x32xf32>, vector<2x16x32xf32> -> vector<2x160x32xf32>
    %cst_53 = arith.constant 0.000000e+00 : f32
    %171 = vector.broadcast %cst_53 : f32 to vector<256x32xf32>
    %172 = vector.extract_strided_slice %170 {offsets = [0, 0, 0], sizes = [2, 128, 32], strides = [1, 1, 1]} : vector<2x160x32xf32> to vector<2x128x32xf32>
    %173 = vector.shape_cast %172 : vector<2x128x32xf32> to vector<256x32xf32>
    %174 = arith.truncf %173 : vector<256x32xf32> to vector<256x32xbf16>
    %c0_54 = arith.constant 0 : index
    %c0_55 = arith.constant 0 : index
    %c0_56 = arith.constant 0 : index
    %175 = vector.load %arg9[%c0_54, %c0_55, %c0_56] : memref<5x32x32xbf16, #tpu.memory_space<vmem>>, vector<1x32x32xbf16>
    %176 = vector.shape_cast %175 : vector<1x32x32xbf16> to vector<32x32xbf16>
    %cst_57 = arith.constant dense<0.000000e+00> : vector<256x32xf32>
    %177 = tpu.matmul %174, %176, %cst_57 {dimension_numbers = #tpu.dot_dimension_numbers<[1], [0], [0], [1], [0, 0, 1, 1], [], []>} : vector<256x32xbf16>, vector<32x32xbf16>, vector<256x32xf32> -> vector<256x32xf32>
    %178 = arith.addf %171, %177 : vector<256x32xf32>
    %179 = vector.extract_strided_slice %170 {offsets = [0, 8, 0], sizes = [2, 128, 32], strides = [1, 1, 1]} : vector<2x160x32xf32> to vector<2x128x32xf32>
    %180 = vector.shape_cast %179 : vector<2x128x32xf32> to vector<256x32xf32>
    %181 = arith.truncf %180 : vector<256x32xf32> to vector<256x32xbf16>
    %c1_58 = arith.constant 1 : index
    %c0_59 = arith.constant 0 : index
    %c0_60 = arith.constant 0 : index
    %182 = vector.load %arg9[%c1_58, %c0_59, %c0_60] : memref<5x32x32xbf16, #tpu.memory_space<vmem>>, vector<1x32x32xbf16>
    %183 = vector.shape_cast %182 : vector<1x32x32xbf16> to vector<32x32xbf16>
    %cst_61 = arith.constant dense<0.000000e+00> : vector<256x32xf32>
    %184 = tpu.matmul %181, %183, %cst_61 {dimension_numbers = #tpu.dot_dimension_numbers<[1], [0], [0], [1], [0, 0, 1, 1], [], []>} : vector<256x32xbf16>, vector<32x32xbf16>, vector<256x32xf32> -> vector<256x32xf32>
    %185 = arith.addf %178, %184 : vector<256x32xf32>
    %186 = vector.extract_strided_slice %170 {offsets = [0, 16, 0], sizes = [2, 128, 32], strides = [1, 1, 1]} : vector<2x160x32xf32> to vector<2x128x32xf32>
    %187 = vector.shape_cast %186 : vector<2x128x32xf32> to vector<256x32xf32>
    %188 = arith.truncf %187 : vector<256x32xf32> to vector<256x32xbf16>
    %c2_62 = arith.constant 2 : index
    %c0_63 = arith.constant 0 : index
    %c0_64 = arith.constant 0 : index
    %189 = vector.load %arg9[%c2_62, %c0_63, %c0_64] : memref<5x32x32xbf16, #tpu.memory_space<vmem>>, vector<1x32x32xbf16>
    %190 = vector.shape_cast %189 : vector<1x32x32xbf16> to vector<32x32xbf16>
    %cst_65 = arith.constant dense<0.000000e+00> : vector<256x32xf32>
    %191 = tpu.matmul %188, %190, %cst_65 {dimension_numbers = #tpu.dot_dimension_numbers<[1], [0], [0], [1], [0, 0, 1, 1], [], []>} : vector<256x32xbf16>, vector<32x32xbf16>, vector<256x32xf32> -> vector<256x32xf32>
    %192 = arith.addf %185, %191 : vector<256x32xf32>
    %193 = vector.extract_strided_slice %170 {offsets = [0, 24, 0], sizes = [2, 128, 32], strides = [1, 1, 1]} : vector<2x160x32xf32> to vector<2x128x32xf32>
    %194 = vector.shape_cast %193 : vector<2x128x32xf32> to vector<256x32xf32>
    %195 = arith.truncf %194 : vector<256x32xf32> to vector<256x32xbf16>
    %c3 = arith.constant 3 : index
    %c0_66 = arith.constant 0 : index
    %c0_67 = arith.constant 0 : index
    %196 = vector.load %arg9[%c3, %c0_66, %c0_67] : memref<5x32x32xbf16, #tpu.memory_space<vmem>>, vector<1x32x32xbf16>
    %197 = vector.shape_cast %196 : vector<1x32x32xbf16> to vector<32x32xbf16>
    %cst_68 = arith.constant dense<0.000000e+00> : vector<256x32xf32>
    %198 = tpu.matmul %195, %197, %cst_68 {dimension_numbers = #tpu.dot_dimension_numbers<[1], [0], [0], [1], [0, 0, 1, 1], [], []>} : vector<256x32xbf16>, vector<32x32xbf16>, vector<256x32xf32> -> vector<256x32xf32>
    %199 = arith.addf %192, %198 : vector<256x32xf32>
    %200 = vector.extract_strided_slice %170 {offsets = [0, 32, 0], sizes = [2, 128, 32], strides = [1, 1, 1]} : vector<2x160x32xf32> to vector<2x128x32xf32>
    %201 = vector.shape_cast %200 : vector<2x128x32xf32> to vector<256x32xf32>
    %202 = arith.truncf %201 : vector<256x32xf32> to vector<256x32xbf16>
    %c4 = arith.constant 4 : index
    %c0_69 = arith.constant 0 : index
    %c0_70 = arith.constant 0 : index
    %203 = vector.load %arg9[%c4, %c0_69, %c0_70] : memref<5x32x32xbf16, #tpu.memory_space<vmem>>, vector<1x32x32xbf16>
    %204 = vector.shape_cast %203 : vector<1x32x32xbf16> to vector<32x32xbf16>
    %cst_71 = arith.constant dense<0.000000e+00> : vector<256x32xf32>
    %205 = tpu.matmul %202, %204, %cst_71 {dimension_numbers = #tpu.dot_dimension_numbers<[1], [0], [0], [1], [0, 0, 1, 1], [], []>} : vector<256x32xbf16>, vector<32x32xbf16>, vector<256x32xf32> -> vector<256x32xf32>
    %206 = arith.addf %199, %205 : vector<256x32xf32>
    %c0_72 = arith.constant 0 : index
    %c0_73 = arith.constant 0 : index
    %207 = vector.load %arg10[%c0_72, %c0_73] : memref<1x32xf32, #tpu.memory_space<vmem>>, vector<1x32xf32>
    %208 = vector.broadcast %207 : vector<1x32xf32> to vector<256x32xf32>
    %209 = arith.addf %206, %208 : vector<256x32xf32>
    %210 = vector.shape_cast %128 : vector<128x64xf32> to vector<16x8x64xf32>
    %211 = tpu.concatenate %210, %210 in 1 : vector<16x8x64xf32>, vector<16x8x64xf32> -> vector<16x16x64xf32>
    %212 = vector.shape_cast %211 : vector<16x16x64xf32> to vector<256x64xf32>
    %213 = vector.shape_cast %212 : vector<256x64xf32> to vector<2x128x64xf32>
    %cst_74 = arith.constant 0.000000e+00 : f32
    %214 = vector.broadcast %cst_74 : f32 to vector<2x8x64xf32>
    %215 = tpu.concatenate %214, %213, %214 in 1 : vector<2x8x64xf32>, vector<2x128x64xf32>, vector<2x8x64xf32> -> vector<2x144x64xf32>
    %cst_75 = arith.constant 0.000000e+00 : f32
    %216 = vector.broadcast %cst_75 : f32 to vector<256x32xf32>
    %217 = vector.extract_strided_slice %215 {offsets = [0, 0, 0], sizes = [2, 128, 64], strides = [1, 1, 1]} : vector<2x144x64xf32> to vector<2x128x64xf32>
    %218 = vector.shape_cast %217 : vector<2x128x64xf32> to vector<256x64xf32>
    %219 = arith.truncf %218 : vector<256x64xf32> to vector<256x64xbf16>
    %c0_76 = arith.constant 0 : index
    %c0_77 = arith.constant 0 : index
    %c0_78 = arith.constant 0 : index
    %220 = vector.load %arg11[%c0_76, %c0_77, %c0_78] : memref<3x64x32xbf16, #tpu.memory_space<vmem>>, vector<1x64x32xbf16>
    %221 = vector.shape_cast %220 : vector<1x64x32xbf16> to vector<64x32xbf16>
    %cst_79 = arith.constant dense<0.000000e+00> : vector<256x32xf32>
    %222 = tpu.matmul %219, %221, %cst_79 {dimension_numbers = #tpu.dot_dimension_numbers<[1], [0], [0], [1], [0, 0, 1, 1], [], []>} : vector<256x64xbf16>, vector<64x32xbf16>, vector<256x32xf32> -> vector<256x32xf32>
    %223 = arith.addf %216, %222 : vector<256x32xf32>
    %224 = vector.extract_strided_slice %215 {offsets = [0, 8, 0], sizes = [2, 128, 64], strides = [1, 1, 1]} : vector<2x144x64xf32> to vector<2x128x64xf32>
    %225 = vector.shape_cast %224 : vector<2x128x64xf32> to vector<256x64xf32>
    %226 = arith.truncf %225 : vector<256x64xf32> to vector<256x64xbf16>
    %c1_80 = arith.constant 1 : index
    %c0_81 = arith.constant 0 : index
    %c0_82 = arith.constant 0 : index
    %227 = vector.load %arg11[%c1_80, %c0_81, %c0_82] : memref<3x64x32xbf16, #tpu.memory_space<vmem>>, vector<1x64x32xbf16>
    %228 = vector.shape_cast %227 : vector<1x64x32xbf16> to vector<64x32xbf16>
    %cst_83 = arith.constant dense<0.000000e+00> : vector<256x32xf32>
    %229 = tpu.matmul %226, %228, %cst_83 {dimension_numbers = #tpu.dot_dimension_numbers<[1], [0], [0], [1], [0, 0, 1, 1], [], []>} : vector<256x64xbf16>, vector<64x32xbf16>, vector<256x32xf32> -> vector<256x32xf32>
    %230 = arith.addf %223, %229 : vector<256x32xf32>
    %231 = vector.extract_strided_slice %215 {offsets = [0, 16, 0], sizes = [2, 128, 64], strides = [1, 1, 1]} : vector<2x144x64xf32> to vector<2x128x64xf32>
    %232 = vector.shape_cast %231 : vector<2x128x64xf32> to vector<256x64xf32>
    %233 = arith.truncf %232 : vector<256x64xf32> to vector<256x64xbf16>
    %c2_84 = arith.constant 2 : index
    %c0_85 = arith.constant 0 : index
    %c0_86 = arith.constant 0 : index
    %234 = vector.load %arg11[%c2_84, %c0_85, %c0_86] : memref<3x64x32xbf16, #tpu.memory_space<vmem>>, vector<1x64x32xbf16>
    %235 = vector.shape_cast %234 : vector<1x64x32xbf16> to vector<64x32xbf16>
    %cst_87 = arith.constant dense<0.000000e+00> : vector<256x32xf32>
    %236 = tpu.matmul %233, %235, %cst_87 {dimension_numbers = #tpu.dot_dimension_numbers<[1], [0], [0], [1], [0, 0, 1, 1], [], []>} : vector<256x64xbf16>, vector<64x32xbf16>, vector<256x32xf32> -> vector<256x32xf32>
    %237 = arith.addf %230, %236 : vector<256x32xf32>
    %c0_88 = arith.constant 0 : index
    %c0_89 = arith.constant 0 : index
    %238 = vector.load %arg12[%c0_88, %c0_89] : memref<1x32xf32, #tpu.memory_space<vmem>>, vector<1x32xf32>
    %239 = vector.broadcast %238 : vector<1x32xf32> to vector<256x32xf32>
    %240 = arith.addf %237, %239 : vector<256x32xf32>
    %cst_90 = arith.constant 0.000000e+00 : f32
    %241 = vector.broadcast %cst_90 : f32 to vector<256x32xf32>
    %242 = arith.maximumf %240, %241 : vector<256x32xf32>
    %243 = arith.addf %242, %209 : vector<256x32xf32>
    %244 = vector.shape_cast %243 : vector<256x32xf32> to vector<32x8x32xf32>
    %245 = tpu.concatenate %244, %244 in 1 : vector<32x8x32xf32>, vector<32x8x32xf32> -> vector<32x16x32xf32>
    %246 = vector.shape_cast %245 : vector<32x16x32xf32> to vector<512x32xf32>
    %247 = vector.shape_cast %246 : vector<512x32xf32> to vector<2x256x32xf32>
    %cst_91 = arith.constant 0.000000e+00 : f32
    %248 = vector.broadcast %cst_91 : f32 to vector<2x8x32xf32>
    %249 = tpu.concatenate %248, %247, %248 in 1 : vector<2x8x32xf32>, vector<2x256x32xf32>, vector<2x8x32xf32> -> vector<2x272x32xf32>
    %cst_92 = arith.constant 0.000000e+00 : f32
    %250 = vector.broadcast %cst_92 : f32 to vector<512x16xf32>
    %251 = vector.extract_strided_slice %249 {offsets = [0, 0, 0], sizes = [2, 256, 32], strides = [1, 1, 1]} : vector<2x272x32xf32> to vector<2x256x32xf32>
    %252 = vector.shape_cast %251 : vector<2x256x32xf32> to vector<512x32xf32>
    %253 = arith.truncf %252 : vector<512x32xf32> to vector<512x32xbf16>
    %c0_93 = arith.constant 0 : index
    %c0_94 = arith.constant 0 : index
    %c0_95 = arith.constant 0 : index
    %254 = vector.load %arg13[%c0_93, %c0_94, %c0_95] : memref<3x32x16xbf16, #tpu.memory_space<vmem>>, vector<1x32x16xbf16>
    %255 = vector.shape_cast %254 : vector<1x32x16xbf16> to vector<32x16xbf16>
    %cst_96 = arith.constant dense<0.000000e+00> : vector<512x16xf32>
    %256 = tpu.matmul %253, %255, %cst_96 {dimension_numbers = #tpu.dot_dimension_numbers<[1], [0], [0], [1], [0, 0, 1, 1], [], []>} : vector<512x32xbf16>, vector<32x16xbf16>, vector<512x16xf32> -> vector<512x16xf32>
    %257 = arith.addf %250, %256 : vector<512x16xf32>
    %258 = vector.extract_strided_slice %249 {offsets = [0, 8, 0], sizes = [2, 256, 32], strides = [1, 1, 1]} : vector<2x272x32xf32> to vector<2x256x32xf32>
    %259 = vector.shape_cast %258 : vector<2x256x32xf32> to vector<512x32xf32>
    %260 = arith.truncf %259 : vector<512x32xf32> to vector<512x32xbf16>
    %c1_97 = arith.constant 1 : index
    %c0_98 = arith.constant 0 : index
    %c0_99 = arith.constant 0 : index
    %261 = vector.load %arg13[%c1_97, %c0_98, %c0_99] : memref<3x32x16xbf16, #tpu.memory_space<vmem>>, vector<1x32x16xbf16>
    %262 = vector.shape_cast %261 : vector<1x32x16xbf16> to vector<32x16xbf16>
    %cst_100 = arith.constant dense<0.000000e+00> : vector<512x16xf32>
    %263 = tpu.matmul %260, %262, %cst_100 {dimension_numbers = #tpu.dot_dimension_numbers<[1], [0], [0], [1], [0, 0, 1, 1], [], []>} : vector<512x32xbf16>, vector<32x16xbf16>, vector<512x16xf32> -> vector<512x16xf32>
    %264 = arith.addf %257, %263 : vector<512x16xf32>
    %265 = vector.extract_strided_slice %249 {offsets = [0, 16, 0], sizes = [2, 256, 32], strides = [1, 1, 1]} : vector<2x272x32xf32> to vector<2x256x32xf32>
    %266 = vector.shape_cast %265 : vector<2x256x32xf32> to vector<512x32xf32>
    %267 = arith.truncf %266 : vector<512x32xf32> to vector<512x32xbf16>
    %c2_101 = arith.constant 2 : index
    %c0_102 = arith.constant 0 : index
    %c0_103 = arith.constant 0 : index
    %268 = vector.load %arg13[%c2_101, %c0_102, %c0_103] : memref<3x32x16xbf16, #tpu.memory_space<vmem>>, vector<1x32x16xbf16>
    %269 = vector.shape_cast %268 : vector<1x32x16xbf16> to vector<32x16xbf16>
    %cst_104 = arith.constant dense<0.000000e+00> : vector<512x16xf32>
    %270 = tpu.matmul %267, %269, %cst_104 {dimension_numbers = #tpu.dot_dimension_numbers<[1], [0], [0], [1], [0, 0, 1, 1], [], []>} : vector<512x32xbf16>, vector<32x16xbf16>, vector<512x16xf32> -> vector<512x16xf32>
    %271 = arith.addf %264, %270 : vector<512x16xf32>
    %c0_105 = arith.constant 0 : index
    %c0_106 = arith.constant 0 : index
    %272 = vector.load %arg14[%c0_105, %c0_106] : memref<1x16xf32, #tpu.memory_space<vmem>>, vector<1x16xf32>
    %273 = vector.broadcast %272 : vector<1x16xf32> to vector<512x16xf32>
    %274 = arith.addf %271, %273 : vector<512x16xf32>
    %cst_107 = arith.constant 0.000000e+00 : f32
    %275 = vector.broadcast %cst_107 : f32 to vector<512x16xf32>
    %276 = arith.maximumf %274, %275 : vector<512x16xf32>
    %277 = arith.truncf %276 : vector<512x16xf32> to vector<512x16xbf16>
    %c0_108 = arith.constant 0 : index
    %c0_109 = arith.constant 0 : index
    %c0_110 = arith.constant 0 : index
    %278 = vector.load %arg15[%c0_108, %c0_109, %c0_110] : memref<1x16x4xbf16, #tpu.memory_space<vmem>>, vector<1x16x4xbf16>
    %279 = vector.shape_cast %278 : vector<1x16x4xbf16> to vector<16x4xbf16>
    %cst_111 = arith.constant dense<0.000000e+00> : vector<512x4xf32>
    %280 = tpu.matmul %277, %279, %cst_111 {dimension_numbers = #tpu.dot_dimension_numbers<[1], [0], [0], [1], [0, 0, 1, 1], [], []>} : vector<512x16xbf16>, vector<16x4xbf16>, vector<512x4xf32> -> vector<512x4xf32>
    %c0_112 = arith.constant 0 : index
    %c0_113 = arith.constant 0 : index
    %281 = vector.load %arg16[%c0_112, %c0_113] : memref<1x4xf32, #tpu.memory_space<vmem>>, vector<1x4xf32>
    %282 = vector.broadcast %281 : vector<1x4xf32> to vector<512x4xf32>
    %283 = arith.addf %280, %282 : vector<512x4xf32>
    %cst_114 = arith.constant dense<0.000000e+00> : vector<512xf32>
    %284 = vector.multi_reduction <add>, %0, %cst_114 [1] : vector<512x4xf32> to vector<512xf32>
    %285 = vector.shape_cast %284 : vector<512xf32> to vector<512x1xf32>
    %286 = vector.shape_cast %285 : vector<512x1xf32> to vector<32x16x1xf32>
    %287 = vector.extract_strided_slice %286 {offsets = [0, 0, 0], sizes = [32, 8, 1], strides = [1, 1, 1]} : vector<32x16x1xf32> to vector<32x8x1xf32>
    %288 = vector.extract_strided_slice %286 {offsets = [0, 8, 0], sizes = [32, 8, 1], strides = [1, 1, 1]} : vector<32x16x1xf32> to vector<32x8x1xf32>
    %289 = arith.addf %287, %288 : vector<32x8x1xf32>
    %cst_115 = arith.constant 5.000000e-01 : f32
    %290 = vector.broadcast %cst_115 : f32 to vector<32x8x1xf32>
    %291 = arith.mulf %289, %290 : vector<32x8x1xf32>
    %292 = vector.shape_cast %291 : vector<32x8x1xf32> to vector<256x1xf32>
    %293 = vector.shape_cast %292 : vector<256x1xf32> to vector<16x16x1xf32>
    %294 = vector.extract_strided_slice %293 {offsets = [0, 0, 0], sizes = [16, 8, 1], strides = [1, 1, 1]} : vector<16x16x1xf32> to vector<16x8x1xf32>
    %295 = vector.extract_strided_slice %293 {offsets = [0, 8, 0], sizes = [16, 8, 1], strides = [1, 1, 1]} : vector<16x16x1xf32> to vector<16x8x1xf32>
    %296 = arith.addf %294, %295 : vector<16x8x1xf32>
    %cst_116 = arith.constant 5.000000e-01 : f32
    %297 = vector.broadcast %cst_116 : f32 to vector<16x8x1xf32>
    %298 = arith.mulf %296, %297 : vector<16x8x1xf32>
    %299 = vector.shape_cast %298 : vector<16x8x1xf32> to vector<128x1xf32>
    %cst_117 = arith.constant 2.500000e-01 : f32
    %300 = vector.broadcast %cst_117 : f32 to vector<128x1xf32>
    %301 = arith.mulf %299, %300 : vector<128x1xf32>
    %302 = vector.shape_cast %301 : vector<128x1xf32> to vector<16x8x1xf32>
    %303 = tpu.concatenate %302, %302 in 1 : vector<16x8x1xf32>, vector<16x8x1xf32> -> vector<16x16x1xf32>
    %304 = vector.shape_cast %303 : vector<16x16x1xf32> to vector<256x1xf32>
    %305 = vector.shape_cast %304 : vector<256x1xf32> to vector<32x8x1xf32>
    %306 = tpu.concatenate %305, %305 in 1 : vector<32x8x1xf32>, vector<32x8x1xf32> -> vector<32x16x1xf32>
    %307 = vector.shape_cast %306 : vector<32x16x1xf32> to vector<512x1xf32>
    %308 = vector.broadcast %307 : vector<512x1xf32> to vector<512x4xf32>
    %309 = arith.subf %0, %308 : vector<512x4xf32>
    %310 = arith.mulf %309, %309 : vector<512x4xf32>
    %cst_118 = arith.constant dense<0.000000e+00> : vector<512xf32>
    %311 = vector.multi_reduction <add>, %310, %cst_118 [1] : vector<512x4xf32> to vector<512xf32>
    %312 = vector.shape_cast %311 : vector<512xf32> to vector<512x1xf32>
    %313 = vector.shape_cast %312 : vector<512x1xf32> to vector<32x16x1xf32>
    %314 = vector.extract_strided_slice %313 {offsets = [0, 0, 0], sizes = [32, 8, 1], strides = [1, 1, 1]} : vector<32x16x1xf32> to vector<32x8x1xf32>
    %315 = vector.extract_strided_slice %313 {offsets = [0, 8, 0], sizes = [32, 8, 1], strides = [1, 1, 1]} : vector<32x16x1xf32> to vector<32x8x1xf32>
    %316 = arith.addf %314, %315 : vector<32x8x1xf32>
    %cst_119 = arith.constant 5.000000e-01 : f32
    %317 = vector.broadcast %cst_119 : f32 to vector<32x8x1xf32>
    %318 = arith.mulf %316, %317 : vector<32x8x1xf32>
    %319 = vector.shape_cast %318 : vector<32x8x1xf32> to vector<256x1xf32>
    %320 = vector.shape_cast %319 : vector<256x1xf32> to vector<16x16x1xf32>
    %321 = vector.extract_strided_slice %320 {offsets = [0, 0, 0], sizes = [16, 8, 1], strides = [1, 1, 1]} : vector<16x16x1xf32> to vector<16x8x1xf32>
    %322 = vector.extract_strided_slice %320 {offsets = [0, 8, 0], sizes = [16, 8, 1], strides = [1, 1, 1]} : vector<16x16x1xf32> to vector<16x8x1xf32>
    %323 = arith.addf %321, %322 : vector<16x8x1xf32>
    %cst_120 = arith.constant 5.000000e-01 : f32
    %324 = vector.broadcast %cst_120 : f32 to vector<16x8x1xf32>
    %325 = arith.mulf %323, %324 : vector<16x8x1xf32>
    %326 = vector.shape_cast %325 : vector<16x8x1xf32> to vector<128x1xf32>
    %cst_121 = arith.constant 0.266666681 : f32
    %327 = vector.broadcast %cst_121 : f32 to vector<128x1xf32>
    %328 = arith.mulf %326, %327 : vector<128x1xf32>
    %cst_122 = arith.constant 9.99999997E-7 : f32
    %329 = vector.broadcast %cst_122 : f32 to vector<128x1xf32>
    %330 = arith.addf %328, %329 : vector<128x1xf32>
    %331 = math.rsqrt %330 : vector<128x1xf32>
    %332 = vector.shape_cast %331 : vector<128x1xf32> to vector<16x8x1xf32>
    %333 = tpu.concatenate %332, %332 in 1 : vector<16x8x1xf32>, vector<16x8x1xf32> -> vector<16x16x1xf32>
    %334 = vector.shape_cast %333 : vector<16x16x1xf32> to vector<256x1xf32>
    %335 = vector.shape_cast %334 : vector<256x1xf32> to vector<32x8x1xf32>
    %336 = tpu.concatenate %335, %335 in 1 : vector<32x8x1xf32>, vector<32x8x1xf32> -> vector<32x16x1xf32>
    %337 = vector.shape_cast %336 : vector<32x16x1xf32> to vector<512x1xf32>
    %338 = vector.broadcast %337 : vector<512x1xf32> to vector<512x4xf32>
    %339 = arith.mulf %309, %338 : vector<512x4xf32>
    %340 = arith.subf %283, %339 : vector<512x4xf32>
    %cst_123 = arith.constant 1.000000e+00 : f32
    %341 = vector.broadcast %cst_123 : f32 to vector<512x1xf32>
    %342 = arith.subf %341, %7 : vector<512x1xf32>
    %343 = vector.broadcast %342 : vector<512x1xf32> to vector<512x4xf32>
    %344 = arith.mulf %343, %340 : vector<512x4xf32>
    %345 = arith.mulf %344, %340 : vector<512x4xf32>
    %cst_124 = arith.constant dense<0.000000e+00> : vector<512xf32>
    %346 = vector.multi_reduction <add>, %345, %cst_124 [1] : vector<512x4xf32> to vector<512xf32>
    %347 = vector.shape_cast %346 : vector<512xf32> to vector<512x1xf32>
    %cst_125 = arith.constant dense<0.000000e+00> : vector<1xf32>
    %348 = vector.multi_reduction <add>, %347, %cst_125 [0] : vector<512x1xf32> to vector<1xf32>
    %349 = vector.shape_cast %348 : vector<1xf32> to vector<1x1xf32>
    %cst_126 = arith.constant 1.000000e+00 : f32
    %350 = vector.broadcast %cst_126 : f32 to vector<128x1xf32>
    %351 = arith.subf %350, %1 : vector<128x1xf32>
    %cst_127 = arith.constant dense<0.000000e+00> : vector<1xf32>
    %352 = vector.multi_reduction <add>, %351, %cst_127 [0] : vector<128x1xf32> to vector<1xf32>
    %353 = vector.shape_cast %352 : vector<1xf32> to vector<1x1xf32>
    %cst_128 = arith.constant 9.99999993E-9 : f32
    %354 = vector.broadcast %cst_128 : f32 to vector<1x1xf32>
    %355 = arith.addf %353, %354 : vector<1x1xf32>
    %cst_129 = arith.constant 1.600000e+01 : f32
    %356 = vector.broadcast %cst_129 : f32 to vector<1x1xf32>
    %357 = arith.mulf %356, %355 : vector<1x1xf32>
    %358 = arith.divf %349, %357 : vector<1x1xf32>
    %c0_130 = arith.constant 0 : index
    %c0_131 = arith.constant 0 : index
    %359 = vector.load %arg17[%c0_130, %c0_131] : memref<1x1xf32, #tpu.memory_space<vmem>>, vector<1x1xf32>
    tpu.vector_store %arg17[%c0_130, %c0_131], %358 {strides = array<i32>} : memref<1x1xf32, #tpu.memory_space<vmem>>, vector<1x1xf32>,
    return
  }
  func.func @transform_0(%arg0: i32) -> (i32, i32) {
    %c0_i32 = arith.constant 0 : i32
    %c0_i32_0 = arith.constant 0 : i32
    %c0_i32_1 = arith.constant 0 : i32
    return %c0_i32, %c0_i32_0 : i32, i32
  }
  func.func @transform_1(%arg0: i32) -> (i32, i32) {
    %c0_i32 = arith.constant 0 : i32
    %c0_i32_0 = arith.constant 0 : i32
    %c0_i32_1 = arith.constant 0 : i32
    return %c0_i32, %c0_i32_0 : i32, i32
  }
  func.func @transform_2(%arg0: i32) -> (i32, i32, i32) {
    %c0_i32 = arith.constant 0 : i32
    %c0_i32_0 = arith.constant 0 : i32
    %c0_i32_1 = arith.constant 0 : i32
    %c0_i32_2 = arith.constant 0 : i32
    return %c0_i32, %c0_i32_0, %c0_i32_1 : i32, i32, i32
  }
  func.func @transform_3(%arg0: i32) -> (i32, i32) {
    %c0_i32 = arith.constant 0 : i32
    %c0_i32_0 = arith.constant 0 : i32
    %c0_i32_1 = arith.constant 0 : i32
    return %c0_i32, %c0_i32_0 : i32, i32
  }
  func.func @transform_4(%arg0: i32) -> (i32, i32, i32) {
    %c0_i32 = arith.constant 0 : i32
    %c0_i32_0 = arith.constant 0 : i32
    %c0_i32_1 = arith.constant 0 : i32
    %c0_i32_2 = arith.constant 0 : i32
    return %c0_i32, %c0_i32_0, %c0_i32_1 : i32, i32, i32
  }
  func.func @transform_5(%arg0: i32) -> (i32, i32) {
    %c0_i32 = arith.constant 0 : i32
    %c0_i32_0 = arith.constant 0 : i32
    %c0_i32_1 = arith.constant 0 : i32
    return %c0_i32, %c0_i32_0 : i32, i32
  }
  func.func @transform_6(%arg0: i32) -> (i32, i32) {
    %c0_i32 = arith.constant 0 : i32
    %c0_i32_0 = arith.constant 0 : i32
    %c0_i32_1 = arith.constant 0 : i32
    return %c0_i32, %c0_i32_0 : i32, i32
  }
  func.func @transform_7(%arg0: i32) -> (i32, i32) {
    %c0_i32 = arith.constant 0 : i32
    %c0_i32_0 = arith.constant 0 : i32
    %c0_i32_1 = arith.constant 0 : i32
    return %c0_i32, %c0_i32_0 : i32, i32
  }
  func.func @transform_8(%arg0: i32) -> (i32, i32, i32) {
    %c0_i32 = arith.constant 0 : i32
    %c0_i32_0 = arith.constant 0 : i32
    %c0_i32_1 = arith.constant 0 : i32
    %c0_i32_2 = arith.constant 0 : i32
    return %c0_i32, %c0_i32_0, %c0_i32_1 : i32, i32, i32
  }
  func.func @transform_9(%arg0: i32) -> (i32, i32) {
    %c0_i32 = arith.constant 0 : i32
    %c0_i32_0 = arith.constant 0 : i32
    %c0_i32_1 = arith.constant 0 : i32
    return %c0_i32, %c0_i32_0 : i32, i32
  }
  func.func @transform_10(%arg0: i32) -> (i32, i32, i32) {
    %c0_i32 = arith.constant 0 : i32
    %c0_i32_0 = arith.constant 0 : i32
    %c0_i32_1 = arith.constant 0 : i32
    %c0_i32_2 = arith.constant 0 : i32
    return %c0_i32, %c0_i32_0, %c0_i32_1 : i32, i32, i32
  }
  func.func @transform_11(%arg0: i32) -> (i32, i32) {
    %c0_i32 = arith.constant 0 : i32
    %c0_i32_0 = arith.constant 0 : i32
    %c0_i32_1 = arith.constant 0 : i32
    return %c0_i32, %c0_i32_0 : i32, i32
  }
  func.func @transform_12(%arg0: i32) -> (i32, i32, i32) {
    %c0_i32 = arith.constant 0 : i32
    %c0_i32_0 = arith.constant 0 : i32
    %c0_i32_1 = arith.constant 0 : i32
    %c0_i32_2 = arith.constant 0 : i32
    return %c0_i32, %c0_i32_0, %c0_i32_1 : i32, i32, i32
  }
  func.func @transform_13(%arg0: i32) -> (i32, i32) {
    %c0_i32 = arith.constant 0 : i32
    %c0_i32_0 = arith.constant 0 : i32
    %c0_i32_1 = arith.constant 0 : i32
    return %c0_i32, %c0_i32_0 : i32, i32
  }
  func.func @transform_14(%arg0: i32) -> (i32, i32, i32) {
    %c0_i32 = arith.constant 0 : i32
    %c0_i32_0 = arith.constant 0 : i32
    %c0_i32_1 = arith.constant 0 : i32
    %c0_i32_2 = arith.constant 0 : i32
    return %c0_i32, %c0_i32_0, %c0_i32_1 : i32, i32, i32
  }
  func.func @transform_15(%arg0: i32) -> (i32, i32) {
    %c0_i32 = arith.constant 0 : i32
    %c0_i32_0 = arith.constant 0 : i32
    %c0_i32_1 = arith.constant 0 : i32
    return %c0_i32, %c0_i32_0 : i32, i32
  }
  func.func @transform_16(%arg0: i32) -> (i32, i32) {
    %c0_i32 = arith.constant 0 : i32
    %c0_i32_0 = arith.constant 0 : i32
    %c0_i32_1 = arith.constant 0 : i32
    return %c0_i32, %c0_i32_0 : i32, i32
  }
}

</mosaic_0001>

<bundles_post_ra>
// kernel: maskcae_forward.1
= control target key start
LH: loop header
LB: loop body
LE: loop exit
PB: predicated region body
PF: predicated region fallthrough
CT: control target
= control target key end

     0   :  { %s17447_s0 = inlined_call_operand.vmem [shape: f32[512,4], index: 0, kind: input, shape index: {}]   ;;  %s17448_s1 = inlined_call_operand.vmem [shape: f32[128,1], index: 1, kind: input, shape index: {}]   ;;  %s17449_s2 = inlined_call_operand.vmem [shape: bf16[3,4,32], index: 2, kind: input, shape index: {}]   ;;  %s17450_s3 = inlined_call_operand.vmem [shape: f32[1,32], index: 3, kind: input, shape index: {}]   ;;  %s17451_s4 = inlined_call_operand.vmem [shape: bf16[3,32,64], index: 4, kind: input, shape index: {}]   ;;  %s17452_s5 = inlined_call_operand.vmem [shape: f32[1,64], index: 5, kind: input, shape index: {}]   ;;  %s17453_s6 = inlined_call_operand.vmem [shape: f32[3,64], index: 6, kind: input, shape index: {}]   ;;  %s17454_s7 = inlined_call_operand.vmem [shape: f32[3,32], index: 7, kind: input, shape index: {}]   ;;  %s17455_s8 = inlined_call_operand.vmem [shape: bf16[5,32,32], index: 8, kind: input, shape index: {}]   ;;  %s17456_s9 = inlined_call_operand.vmem [shape: f32[1,32], index: 9, kind: input, shape index: {}]   ;;  %s17457_s10 = inlined_call_operand.vmem [shape: bf16[3,64,32], index: 10, kind: input, shape index: {}]   ;;  %s17458_s11 = inlined_call_operand.vmem [shape: f32[1,32], index: 11, kind: input, shape index: {}]   ;;  %s17459_s12 = inlined_call_operand.vmem [shape: bf16[3,32,16], index: 12, kind: input, shape index: {}]   ;;  %s17460_s13 = inlined_call_operand.vmem [shape: f32[1,16], index: 13, kind: input, shape index: {}]   ;;  %s17461_s14 = inlined_call_operand.vmem [shape: bf16[1,16,4], index: 14, kind: input, shape index: {}]   ;;  %s17462_s15 = inlined_call_operand.vmem [shape: f32[1,4], index: 15, kind: input, shape index: {}]   ;;  %s17463_s16 = inlined_call_operand.hbm [shape: f32[1,1], index: 16, kind: output, shape index: {}]  }
   0x1   :  { %17690 = sst [smem:[#allocation158_spill]] %s17447_s0 }
   0x2   :  { %v10760_v0 = vld [vmem:[%s17448_s1 + $0x10] sm:$0xff]  ;;  %vm2730_vm0 = vcmask 7168   ;;  %v10765_v1 = vld [vmem:[%s17448_s1] sm:$0xff]  ;;  %v10668_v2 = vmov 0   ;;  %v10772_v4 = vld [vmem:[%s17448_s1 + $0x8] sm:$0xff]  ;;  %vm443_vm1 = vcmask 1041408  }
   0x3   :  { %10501 = vset.pattern.permute.xlu1 %v10668_v2  ;;  %10500 = vset.pattern.permute.xlu0 %v10668_v2  ;;  %v2731_v3 = vsel %vm2730_vm0, %v10765_v1, 0.0  ;;  %v2732_v6 = vsel %vm2730_vm0, %v10772_v4, 0.0  ;;  %v10781_v7 = vld [vmem:[%s17448_s1 + $0x18] sm:$0xff]  ;;  %v2734_v9 = vsel %vm2730_vm0, %v10760_v0, 0.0  ;;  %v10788_v11 = vld [vmem:[%s17448_s1 + $0x28] sm:$0xff]  ;;  %v10799_v15 = vld [vmem:[%s17448_s1 + $0x20] sm:$0xff] }
   0x4   :  { %147 = vperm.xlu1 %10501, %v10760_v0   ;;  %137 = vperm.xlu0 %10500, %v10765_v1   ;;  %v3146_v5 = vadd.f32 %v2731_v3, %v2731_v3  ;;  %v2733_v8 = vadd.f32 %v2732_v6, %v2731_v3  ;;  %v2736_v12 = vsel %vm2730_vm0, %v10781_v7, 0.0  ;;  %v10794_v14 = vsel %vm2730_vm0, %v10788_v11, 0.0  ;;  %v8689_v16 = vld [vmem:[%s17449_s2 + $0x2] sm:$0x3]  ;;  %v10811_v19 = vld [vmem:[%s17448_s1 + $0x30] sm:$0xff]  ;;  %v10870_v42 = vld [vmem:[%s17448_s1 + $0x38] sm:$0xff] }
   0x5   :  { %v2738_v18 = vsel %vm2730_vm0, %v10799_v15, 0.0  ;;  %v10816_v20 = vld [vmem:[%s17448_s1 + $0x40] sm:$0xff]  ;;  %v2843_v21 = vsub.f32 1.0, %v10765_v1  ;;  %v2845_v22 = vsub.f32 1.0, %v10760_v0  ;;  %v10823_v24 = vld [vmem:[%s17448_s1 + $0x50] sm:$0xff]  ;;  %v2847_v25 = vsub.f32 1.0, %v10799_v15  ;;  %10492 = vmatprep.subr.msk.bf16.mxu0 %vm443_vm1, %v8689_v16  ;;  %10493 = vmatprep.subr.msk.bf16.mxu1 %vm443_vm1, %v8689_v16 }
   0x6   :  { %v3147_v10 = vadd.f32 %v3146_v5, %v2732_v6  ;;  %v2735_v13 = vadd.f32 %v2734_v9, %v2733_v8  ;;  %v2849_v26 = vsub.f32 1.0, %v10811_v19  ;;  %v2851_v27 = vsub.f32 1.0, %v10816_v20  ;;  %v10840_v33 = vld [vmem:[%s17448_s1 + $0x60] sm:$0xff]  ;;  %v10845_v34 = vld [vmem:[%s17448_s1 + $0x70] sm:$0xff]  ;;  %v10906_v63 = vld [vmem:[%s17448_s1 + $0x48] sm:$0xff] }
   0x7   :  { %v8632_v29 = vsel %vm2730_vm0, %v2843_v21, 0.0  ;;  %v8635_v30 = vsel %vm2730_vm0, %v2845_v22, 0.0  ;;  %v2853_v31 = vsub.f32 1.0, %v10823_v24  ;;  %v8639_v35 = vsel %vm2730_vm0, %v2847_v25, 0.0  ;;  %v8754_v61 = vld [vmem:[%s17449_s2 + $0x4] sm:$0x3] }
   0x8   :  { %152 = vperm.xlu1 %10501, %v10781_v7   ;;  %142 = vperm.xlu0 %10500, %v10772_v4   ;;  %v3148_v17 = vadd.f32 %v3147_v10, %v2732_v6  ;;  %v2737_v23 = vadd.f32 %v2736_v12, %v2735_v13  ;;  %v8643_v36 = vsel %vm2730_vm0, %v2849_v26, 0.0  ;;  %v10856_v37 = vsel %vm2730_vm0, %v2851_v27, 0.0  ;;  %v10921_v10 = vld [vmem:[%s17448_s1 + $0x58] sm:$0xff] }
   0x9   :  { %v10863_v39 = vsel %vm2730_vm0, %v2853_v31, 0.0  ;;  %v2855_v40 = vsub.f32 1.0, %v10840_v33  ;;  %v2857_v41 = vsub.f32 1.0, %v10845_v34  ;;  %v2844_v44 = vsub.f32 1.0, %v10772_v4 }
   0xa   :  { %v3149_v28 = vadd.f32 %v3148_v17, %v2734_v9  ;;  %v2739_v32 = vadd.f32 %v2738_v18, %v2737_v23  ;;  %v2742_v46 = vsel %vm2730_vm0, %v10811_v19, 0.0  ;;  %v2846_v51 = vsub.f32 1.0, %v10781_v7 }
   0xb   :  { %v10879_v47 = vsel %vm2730_vm0, %v2855_v40, 0.0  ;;  %v10884_v48 = vsel %vm2730_vm0, %v2857_v41, 0.0  ;;  %v8633_v50 = vsel %vm2730_vm0, %v2844_v44, 0.0  ;;  %v2744_v53 = vsel %vm2730_vm0, %v10870_v42, 0.0 }
   0xc   :  { %v3150_v38 = vadd.f32 %v3149_v28, %v2734_v9  ;;  %162 = vperm.xlu1 %10501, %v10788_v11   ;;  %157 = vperm.xlu0 %10500, %v10799_v15   ;;  %v2741_v43 = vadd.f32 %v10794_v14, %v2739_v32  ;;  %v8634_v54 = vadd.f32 %v8633_v50, %v8632_v29  ;;  %v8637_v56 = vsel %vm2730_vm0, %v2846_v51, 0.0  ;;  %v10916_v9 = vld [vmem:[%s17448_s1 + $0x68] sm:$0xff] }
   0xd   :  { %v2746_v58 = vsel %vm2730_vm0, %v10816_v20, 0.0  ;;  %v445_v60 = vsel %vm443_vm1, %v8689_v16, 0  ;;  %v2848_v2 = vsub.f32 1.0, %v10788_v11  ;;  %v2748_v5 = vsel %vm2730_vm0, %v10906_v63, 0.0 }
   0xe   :  { %v3151_v45 = vadd.f32 %v3150_v38, %v2736_v12  ;;  %v2743_v49 = vadd.f32 %v2742_v46, %v2741_v43  ;;  %v8636_v59 = vadd.f32 %v8635_v30, %v8634_v54  ;;  %9615 = vmatpush3.bf16.msra.mxu0 %v445_v60  ;;  %10491 = vmatpush3.bf16.msra.mxu1 %v445_v60  ;;  %v10928_v13 = vsel %vm443_vm1, %v8754_v61, 0 }
   0xf   :  { %10495 = vmatprep.subr.msk.bf16.mxu0 %vm443_vm1, %v8754_v61  ;;  %v2750_v17 = vsel %vm2730_vm0, %v10823_v24, 0.0  ;;  %v2850_v29 = vsub.f32 1.0, %v10870_v42  ;;  %v2754_v32 = vsel %vm2730_vm0, %v10840_v33, 0.0 }
  0x10   :  { %v3152_v52 = vadd.f32 %v3151_v45, %v2736_v12  ;;  %172 = vperm.xlu1 %10501, %v10870_v42   ;;  %167 = vperm.xlu0 %10500, %v10811_v19   ;;  %v2745_v55 = vadd.f32 %v2744_v53, %v2743_v49  ;;  %v8638_v6 = vadd.f32 %v8637_v56, %v8636_v59  ;;  %v8641_v12 = vsel %vm2730_vm0, %v2848_v2, 0.0  ;;  %v10952_v56 = vld [vmem:[%s17448_s1 + $0x78] sm:$0xff] }
  0x11   :  { %v8645_v45 = vsel %vm2730_vm0, %v2850_v29, 0.0  ;;  %v2854_v59 = vsub.f32 1.0, %v10921_v10 }
  0x12   :  { %v3153_v57 = vadd.f32 %v3152_v52, %v2738_v18  ;;  %v2747_v62 = vadd.f32 %v2746_v58, %v2745_v55  ;;  %v8640_v23 = vadd.f32 %v8639_v35, %v8638_v6  ;;  %v2852_v52 = vsub.f32 1.0, %v10906_v63 }
  0x13   :  { %v8653_v6 = vsel %vm2730_vm0, %v2854_v59, 0.0 }
  0x14   :  { %v3154_v3 = vadd.f32 %v3153_v57, %v2738_v18  ;;  %177 = vperm.xlu1 %10501, %v10816_v20   ;;  %197 = vperm.xlu0 %10500, %v10840_v33   ;;  %v2749_v8 = vadd.f32 %v2748_v5, %v2747_v62  ;;  %v2752_v18 = vsel %vm2730_vm0, %v10921_v10, 0.0  ;;  %v8642_v38 = vadd.f32 %v8641_v12, %v8640_v23 }
  0x15   :  { %v2758_v62 = vsel %vm2730_vm0, %v10845_v34, 0.0 }
  0x16   :  { %v3155_v16 = vadd.f32 %v3154_v3, %v10794_v14  ;;  %v2751_v28 = vadd.f32 %v2750_v17, %v2749_v8  ;;  %v8644_v35 = vadd.f32 %v8643_v36, %v8642_v38  ;;  %v8649_v36 = vsel %vm2730_vm0, %v2852_v52, 0.0 }
  0x17   :  { %v2858_v38 = vsub.f32 1.0, %v10952_v56 }
  0x18   :  { %v3156_v30 = vadd.f32 %v3155_v16, %v10794_v14  ;;  %182 = vperm.xlu1 %10501, %v10906_v63   ;;  %202 = vperm.xlu0 %10500, %v10916_v9   ;;  %v2753_v43 = vadd.f32 %v2752_v18, %v2751_v28  ;;  %v2756_v14 = vsel %vm2730_vm0, %v10916_v9, 0.0  ;;  %v8646_v55 = vadd.f32 %v8645_v45, %v8644_v35 }
  0x1a   :  { %v3157_v49 = vadd.f32 %v3156_v30, %v2742_v46  ;;  %v2755_v50 = vadd.f32 %v2754_v32, %v2753_v43 }
  0x1c   :  { %v3158_v54 = vadd.f32 %v3157_v49, %v2742_v46  ;;  %187 = vperm.xlu1 %10501, %v10823_v24   ;;  %207 = vperm.xlu0 %10500, %v10845_v34   ;;  %v8648_v46 = vadd.f32 %v10856_v37, %v8646_v55  ;;  %v2757_v60 = vadd.f32 %v2756_v14, %v2755_v50  ;;  %v2760_v37 = vsel %vm2730_vm0, %v10952_v56, 0.0 }
  0x1e   :  { %v3159_v57 = vadd.f32 %v3158_v54, %v2744_v53  ;;  %v8650_v3 = vadd.f32 %v8649_v36, %v8648_v46  ;;  %v2759_v16 = vadd.f32 %v2758_v62, %v2757_v60 }
  0x20   :  { %v3160_v61 = vadd.f32 %v3159_v57, %v2744_v53  ;;  %192 = vperm.xlu1 %10501, %v10921_v10   ;;  %212 = vperm.xlu0 %10500, %v10952_v56   ;;  %v8652_v12 = vadd.f32 %v10863_v39, %v8650_v3  ;;  %v2856_v53 = vsub.f32 1.0, %v10916_v9  ;;  %v2761_v45 = vadd.f32 %v2760_v37, %v2759_v16 }
  0x22   :  { %v3161_v8 = vadd.f32 %v3160_v61, %v2746_v58  ;;  %v8654_v28 = vadd.f32 %v8653_v6, %v8652_v12  ;;  %v8657_v30 = vsel %vm2730_vm0, %v2856_v53, 0.0  ;;  %v2762_v50 = vrot.slane %v2761_v45, 4 }
  0x24   :  { %v3162_v23 = vadd.f32 %v3161_v8, %v2746_v58  ;;  %2861 = vperm.xlu1 %10501, %v2843_v21   ;;  %v8656_v39 = vadd.f32 %v10879_v47, %v8654_v28  ;;  %v8661_v58 = vsel %vm2730_vm0, %v2858_v38, 0.0  ;;  %v2763_v0 = vadd.f32 %v2762_v50, %v2761_v45 }
  0x26   :  { %v3163_v43 = vadd.f32 %v3162_v23, %v2748_v5  ;;  %v8658_v35 = vadd.f32 %v8657_v30, %v8656_v39 }
  0x28   :  { %v3164_v49 = vadd.f32 %v3163_v43, %v2748_v5  ;;  %2871 = vperm.xlu1 %10501, %v2845_v22   ;;  %v8660_v21 = vadd.f32 %v10884_v48, %v8658_v35  ;;  %v311_v22 = vld [vmem:[%s17449_s2] sm:$0x3] }
  0x29   :  { %10494 = vmatprep.subr.msk.bf16.mxu1 %vm443_vm1, %v311_v22  ;;  %v10992_v48 = vsel %vm443_vm1, %v311_v22, 0 }
  0x2a   :  { %v3165_v1 = vadd.f32 %v3164_v49, %v2750_v17  ;;  %v10983_v55 = vadd.f32 %v8661_v58, %v8660_v21 }
  0x2c   :  { %v3166_v54 = vadd.f32 %v3165_v1, %v2750_v17  ;;  %2881 = vperm.xlu1 %10501, %v2847_v25   ;;  %17691 = vst [vmem:[#allocation5_spill] sm:$0xff] %v10983_v55  ;;  %v2764_v25 = vrot.slane %v2763_v0, 2 }
  0x2e   :  { %v3167_v56 = vadd.f32 %v3166_v54, %v2752_v18  ;;  %v2765_v19 = vadd.f32 %v2764_v25, %v2763_v0 }
  0x30   :  { %v3168_v47 = vadd.f32 %v3167_v56, %v2752_v18  ;;  %2891 = vperm.xlu1 %10501, %v2849_v26  }
  0x32   :  { %v3169_v5 = vadd.f32 %v3168_v47, %v2754_v32 }
  0x34   :  { %v3170_v15 = vadd.f32 %v3169_v5, %v2754_v32  ;;  %2901 = vperm.xlu1 %10501, %v2851_v27  }
  0x36   :  { %v3171_v17 = vadd.f32 %v3170_v15, %v2756_v14 }
  0x38   :  { %v3172_v18 = vadd.f32 %v3171_v17, %v2756_v14  ;;  %2911 = vperm.xlu1 %10501, %v2853_v31  }
  0x3a   :  { %v3173_v26 = vadd.f32 %v3172_v18, %v2758_v62 }
  0x3b   :  { %21 = vsyncpa [#allocation3], 0  ;;  %v2766_v57 = vrot.slane %v2765_v19, 1  ;;  %s17692_s29 = sld [smem:[#allocation158_spill]]  ;;  %vm346_vm2 = vcmask 31744   ;;  %vm1838_vm3 = vcmask 261120  }
  0x3c   :  { %v3174_v36 = vadd.f32 %v3173_v26, %v2758_v62  ;;  %2921 = vperm.xlu1 %10501, %v2855_v40   ;;  %vm2639_vm4 = vcmask 523264   ;;  %vm6801_vm5 = vcmask 130048   ;;  %vm8673_vm6 = vcmask 0  }
  0x3d   :  { %v2767_v20 = vadd.f32 %v2766_v57, %v2765_v19 }
  0x3e   :  { %v3175_v46 = vadd.f32 %v3174_v36, %v2760_v37 }
  0x40   :  { %v3176_v60 = vadd.f32 %v3175_v46, %v2760_v37  ;;  %2931 = vperm.xlu1 %10501, %v2857_v41  }
  0x41   :  { %v56_v33 = vld [vmem:[%s17692_s29 + $0x8] sm:$0xff]  ;;  %v59_v7 = vld [vmem:[%s17692_s29 + $0x20] sm:$0xff]  ;;  %v61_v34 = vld [vmem:[%s17692_s29 + $0x30] sm:$0xff] }
  0x42   :  { %v3177_v27 = vrot.slane %v3176_v60, 4  ;;  %v7190_v4 = vsel %vm346_vm2, %v56_v33, 0.0  ;;  %v7199_v11 = vsel %vm346_vm2, %v59_v7, 0.0  ;;  %v7205_v40 = vsel %vm346_vm2, %v61_v34, 0.0  ;;  %v63_v41 = vld [vmem:[%s17692_s29 + $0x40] sm:$0xff]  ;;  %v11046_v9 = vld [vmem:[%s17692_s29 + $0x70] sm:$0xff] }
  0x43   :  { %v7211_v42 = vsel %vm346_vm2, %v63_v41, 0.0  ;;  %v11039_v63 = vld [vmem:[%s17692_s29 + $0x60] sm:$0xff]  ;;  %v11076_v37 = vld [vmem:[%s17692_s29 + $0x28] sm:$0xff]  ;;  %v11107_v45 = vld [vmem:[%s17692_s29 + $0x38] sm:$0xff] }
  0x44   :  { %2770 = vperm.xlu1 %10501, %v2767_v20   ;;  %v3178_v32 = vadd.f32 %v3177_v27, %v3176_v60  ;;  %v55_v10 = vld [vmem:[%s17692_s29] sm:$0xff]  ;;  %v11092_v30 = vld [vmem:[%s17692_s29 + $0x48] sm:$0xff]  ;;  %v11122_v1 = vld [vmem:[%s17692_s29 + $0x90] sm:$0xff] }
  0x45   :  { %v11085_v23 = vld [vmem:[%s17692_s29 + $0x80] sm:$0xff]  ;;  %v7241_v54 = vsel %vm346_vm2, %v11122_v1, 0.0  ;;  %v7187_v47 = vsel %vm346_vm2, %v55_v10, 0.0  ;;  %v11154_v25 = vld [vmem:[%s17692_s29 + $0x58] sm:$0xff]  ;;  %v11167_v19 = vld [vmem:[%s17692_s29 + $0x188] sm:$0xff] }
  0x46   :  { %v3179_v14 = vrot.slane %v3178_v32, 2  ;;  %v11145_v22 = vld [vmem:[%s17692_s29 + $0xa0] sm:$0xff]  ;;  %17698 = vst [vmem:[#allocation11_spill] sm:$0xff] %v11167_v19  ;;  %v11172_v26 = vld [vmem:[%s17692_s29 + $0x190] sm:$0xff]  ;;  %v11177_v36 = vld [vmem:[%s17692_s29 + $0x198] sm:$0xff] }
  0x47   :  { %v7247_v17 = vsel %vm346_vm2, %v11145_v22, 0.0  ;;  %v11161_v18 = vld [vmem:[%s17692_s29 + $0x180] sm:$0xff]  ;;  %17699 = vst [vmem:[#allocation12_spill] sm:$0xff] %v11177_v36  ;;  %v11191_v20 = vld [vmem:[%s17692_s29 + $0x68] sm:$0xff]  ;;  %v11196_v27 = vld [vmem:[%s17692_s29 + $0xb0] sm:$0xff] }
  0x48   :  { %v3180_v24 = vadd.f32 %v3179_v14, %v3178_v32  ;;  %v7253_v14 = vsel %vm346_vm2, %v11196_v27, 0.0  ;;  %v11350_v55 = vld [vmem:[%s17692_s29 + $0xe0] sm:$0xff] }
  0x4a   :  { %v3181_v31 = vrot.slane %v3180_v24, 1 }
  0x4c   :  { %v3182_v61 = vadd.f32 %v3181_v31, %v3180_v24 }
  0x4e   :  { %3185 = vperm.xlu0 %10500, %v3182_v61  }
  0x52   :  { %2866 = vperm.xlu0 %10500, %v2844_v44   ;;  %v65_v44 = vld [vmem:[%s17692_s29 + $0x50] sm:$0xff] }
  0x56   :  { %2876 = vperm.xlu0 %10500, %v2846_v51   ;;  %v7217_v51 = vsel %vm346_vm2, %v65_v44, 0.0 }
  0x5a   :  { %2886 = vperm.xlu0 %10500, %v2848_v2   ;;  %v7223_v2 = vsel %vm346_vm2, %v11039_v63, 0.0 }
  0x5e   :  { %2896 = vperm.xlu0 %10500, %v2850_v29   ;;  %v57_v29 = vld [vmem:[%s17692_s29 + $0x10] sm:$0xff] }
  0x5f   :  { %v7193_v57 = vsel %vm346_vm2, %v57_v29, 0.0 }
  0x62   :  { %2906 = vperm.xlu0 %10500, %v2852_v52   ;;  %v58_v52 = vld [vmem:[%s17692_s29 + $0x18] sm:$0xff] }
  0x66   :  { %2916 = vperm.xlu0 %10500, %v2854_v59   ;;  %v7229_v59 = vsel %vm346_vm2, %v11046_v9, 0.0 }
  0x68   :  { %7191 = vadd.xlane.f32.xlu1 %v7190_v4 }
  0x6a   :  { %2926 = vperm.xlu0 %10500, %v2856_v53  }
  0x6c   :  { %7200 = vadd.xlane.f32.xlu1 %v7199_v11 }
  0x6e   :  { %2936 = vperm.xlu0 %10500, %v2858_v38   ;;  %v7235_v38 = vsel %vm346_vm2, %v11085_v23, 0.0 }
  0x70   :  { %7206 = vadd.xlane.f32.xlu1 %v7205_v40  ;;  %v11228_v40 = vld [vmem:[%s17692_s29 + $0x1a0] sm:$0xff] }
  0x74   :  { %7212 = vadd.xlane.f32.xlu1 %v7211_v42 }
  0x78   :  { %7218 = vadd.xlane.f32.xlu1 %v7217_v51 }
  0x7c   :  { %7224 = vadd.xlane.f32.xlu1 %v7223_v2 }
  0x7f   :  { %v11059_v62 = vpop.permute.xlu0 %137  ;;  %v11109_v49 = vpop.permute.xlu1 %147 }
  0x80   :  { %17693 = vst [vmem:[#allocation6_spill] sm:$0xff] %v11059_v62  ;;  %v11062_v3 = vmul.f32 %v11059_v62, %v55_v10  ;;  %v11065_v6 = vmul.f32 %v11059_v62, %v56_v33  ;;  %v11068_v8 = vmul.f32 %v11059_v62, %v57_v29  ;;  %v11071_v12 = vmul.f32 %v11059_v62, %v58_v52  ;;  %v11246_v10 = vld [vmem:[%s17692_s29 + $0xc0] sm:$0xff] }
  0x81   :  { %7230 = vadd.xlane.f32.xlu1 %v7229_v59  ;;  %17695 = vst [vmem:[#allocation8_spill] sm:$0xff] %v11109_v49  ;;  %v11117_v58 = vmul.f32 %v11109_v49, %v11092_v30  ;;  %v11137_v56 = vmul.f32 %v11109_v49, %v63_v41  ;;  %v11182_v46 = vmul.f32 %v11109_v49, %v65_v44  ;;  %v11233_v41 = vld [vmem:[%s17692_s29 + $0x1a8] sm:$0xff]  ;;  %v11260_v59 = vld [vmem:[%s17692_s29 + $0x1b0] sm:$0xff] }
  0x82   :  { %v312_v16 = vpack.c.bf16 %v11065_v6, %v11062_v3  ;;  %v313_v53 = vpack.c.bf16 %v11071_v12, %v11068_v8  ;;  %v11186_v60 = vmul.f32 %v11109_v49, %v11154_v25  ;;  %17703 = vst [vmem:[#allocation16_spill] sm:$0xff] %v11233_v41  ;;  %v11364_v49 = vld [vmem:[%s17692_s29 + $0x1e8] sm:$0xff] }
  0x83   :  { %v11087_v28 = vpop.permute.xlu0 %142  ;;  %v316_v0 = vpack.c.bf16 %v11117_v58, %v11137_v56  ;;  %v11202_v24 = vpop.permute.xlu1 %152  ;;  %17712 = vst [vmem:[#allocation25_spill] sm:$0xff] %v11364_v49 }
  0x84   :  { %17694 = vst [vmem:[#allocation7_spill] sm:$0xff] %v11087_v28  ;;  %9616 = vmatprep.mubr.msk.bf16.mxu0 %vm346_vm2, %v312_v16  ;;  %v11098_v43 = vmul.f32 %v11087_v28, %v59_v7  ;;  %v11102_v39 = vmul.f32 %v11087_v28, %v11076_v37  ;;  %v11127_v50 = vmul.f32 %v11087_v28, %v61_v34  ;;  %17701 = vst [vmem:[#allocation14_spill] sm:$0xff] %v11202_v24  ;;  %v11265_v16 = vld [vmem:[%s17692_s29 + $0x1b8] sm:$0xff] }
  0x85   :  { %9617 = vmatmul.mubr.msk.bf16.vlgmr.msra.gmra.mxu0 %vm346_vm2, %v313_v53  ;;  %7236 = vadd.xlane.f32.xlu1 %v7235_v38  ;;  %v7196_v7 = vsel %vm346_vm2, %v58_v52, 0.0  ;;  %v11219_v11 = vmul.f32 %v11202_v24, %v11039_v63  ;;  %v11223_v34 = vmul.f32 %v11202_v24, %v11191_v20  ;;  %v317_v63 = vpack.c.bf16 %v11186_v60, %v11182_v46 }
  0x86   :  { %9747 = vmatpush3.bf16.msra.mxu0 %v10928_v13  ;;  %v314_v35 = vpack.c.bf16 %v11102_v39, %v11098_v43  ;;  %v11131_v13 = vmul.f32 %v11087_v28, %v11107_v45  ;;  %17706 = vst [vmem:[#allocation19_spill] sm:$0xff] %v11265_v16  ;;  %v7259_v53 = vsel %vm346_vm2, %v11246_v10, 0.0  ;;  %v7271_v28 = vsel %vm346_vm2, %v11350_v55, 0.0 }
  0x87   :  { %v11124_v21 = vpop.permute.xlu0 %157  ;;  %v318_v38 = vpack.c.bf16 %v11223_v34, %v11219_v11 }
  0x88   :  { %17696 = vst [vmem:[#allocation9_spill] sm:$0xff] %v11124_v21  ;;  %9620 = vmatprep.mubr.msk.bf16.mxu0 %vm346_vm2, %v314_v35  ;;  %v315_v15 = vpack.c.bf16 %v11131_v13, %v11127_v50  ;;  %v11275_v35 = vld [vmem:[%s17692_s29 + $0x1c0] sm:$0xff] }
  0x89   :  { %7242 = vadd.xlane.f32.xlu1 %v7241_v54  ;;  %v11280_v54 = vld [vmem:[%s17692_s29 + $0x1c8] sm:$0xff] }
  0x8a   :  { %17707 = vst [vmem:[#allocation20_spill] sm:$0xff] %v11280_v54 }
  0x8b   :  { %v11147_v5 = vpop.permute.xlu0 %167 }
  0x8c   :  { %17697 = vst [vmem:[#allocation10_spill] sm:$0xff] %v11147_v5 }
  0x8d   :  { %7188 = vadd.xlane.f32.xlu0 %v7187_v47  ;;  %9621 = vmatmul.mubr.msk.bf16.gmra.mxu0 %vm346_vm2, %v315_v15  ;;  %v11290_v15 = vld [vmem:[%s17692_s29 + $0x88] sm:$0xff] }
  0x8e   :  { %9624 = vmatprep.mubr.msk.bf16.mxu0 %vm346_vm2, %v316_v0  ;;  %7248 = vadd.xlane.f32.xlu1 %v7247_v17  ;;  %v7202_v0 = vsel %vm346_vm2, %v11076_v37, 0.0  ;;  %v11303_v37 = vld [vmem:[%s17692_s29 + $0x78] sm:$0xff] }
  0x8f   :  { %v11198_v32 = vpop.permute.xlu0 %197 }
  0x90   :  { %17700 = vst [vmem:[#allocation13_spill] sm:$0xff] %v11198_v32  ;;  %v11206_v31 = vmul.f32 %v11198_v32, %v11161_v18  ;;  %v264_v61 = vmul.f32 %v11198_v32, %v11167_v19  ;;  %v265_v33 = vmul.f32 %v11198_v32, %v11172_v26  ;;  %v11214_v4 = vmul.f32 %v11198_v32, %v11177_v36 }
  0x91   :  { %7194 = vadd.xlane.f32.xlu0 %v7193_v57 }
  0x92   :  { %17702 = vst [vmem:[#allocation15_spill] sm:$0xff] %v11206_v31  ;;  %v11235_v42 = vpack.c.bf16 %v265_v33, %v264_v61  ;;  %v336_v44 = vpack.c.bf16 %v264_v61, %v11206_v31  ;;  %v337_v51 = vpack.c.bf16 %v11214_v4, %v265_v33  ;;  %7254 = vadd.xlane.f32.xlu1 %v7253_v14  ;;  %v11308_v61 = vld [vmem:[%s17692_s29 + $0xd0] sm:$0xff]  ;;  %v7214_v31 = vsel %vm346_vm2, %v11092_v30, 0.0 }
  0x93   :  { %v11241_v2 = vpop.permute.xlu0 %202 }
  0x94   :  { %17704 = vst [vmem:[#allocation17_spill] sm:$0xff] %v11235_v42  ;;  %17705 = vst [vmem:[#allocation18_spill] sm:$0xff] %v11241_v2  ;;  %9664 = vmatprep.mubr.msk.bf16.mxu1 %vm346_vm2, %v336_v44  ;;  %v11251_v29 = vmul.f32 %v11241_v2, %v11228_v40  ;;  %v11255_v52 = vmul.f32 %v11241_v2, %v11233_v41  ;;  %v269_v57 = vmul.f32 %v11241_v2, %v11260_v59  ;;  %v11379_v42 = vld [vmem:[%s17692_s29 + $0x98] sm:$0xff] }
  0x95   :  { %9665 = vmatmul.mubr.msk.bf16.vlgmr.msra.gmra.mxu1 %vm346_vm2, %v337_v51  ;;  %7197 = vadd.xlane.f32.xlu0 %v7196_v7  ;;  %v270_v14 = vmul.f32 %v11241_v2, %v11265_v16  ;;  %v7265_v44 = vsel %vm346_vm2, %v11308_v61, 0.0  ;;  %v11321_v51 = vpop.permute.xlu1 %162 }
  0x96   :  { %9625 = vmatmul.mubr.msk.bf16.gmra.mxu0 %vm346_vm2, %v317_v63  ;;  %v338_v47 = vpack.c.bf16 %v11255_v52, %v11251_v29  ;;  %9681 = vmatpush3.bf16.msra.mxu1 %v10992_v48  ;;  %v11313_v48 = vmul.f32 %v11202_v24, %v11046_v9  ;;  %17709 = vst [vmem:[#allocation22_spill] sm:$0xff] %v11321_v51 }
  0x97   :  { %9628 = vmatprep.mubr.msk.bf16.mxu0 %vm346_vm2, %v318_v38  ;;  %v11294_v17 = vpop.permute.xlu0 %207  ;;  %7260 = vadd.xlane.f32.xlu1 %v7259_v53  ;;  %v11325_v63 = vmul.f32 %v11124_v21, %v11085_v23  ;;  %v11329_v9 = vmul.f32 %v11124_v21, %v11290_v15  ;;  %v7208_v53 = vsel %vm346_vm2, %v11107_v45, 0.0  ;;  %v11335_v38 = vmul.f32 %v11202_v24, %v11303_v37  ;;  %v11345_v23 = vld [vmem:[%s17692_s29 + $0x1d8] sm:$0xff]  ;;  %v11359_v24 = vld [vmem:[%s17692_s29 + $0x1e0] sm:$0xff] }
  0x98   :  { %17708 = vst [vmem:[#allocation21_spill] sm:$0xff] %v11294_v17  ;;  %9668 = vmatprep.mubr.msk.bf16.mxu1 %vm346_vm2, %v338_v47  ;;  %v271_v33 = vmul.f32 %v11294_v17, %v11275_v35  ;;  %v272_v7 = vmul.f32 %v11294_v17, %v11280_v54  ;;  %v339_v47 = vpack.c.bf16 %v270_v14, %v269_v57  ;;  %17710 = vst [vmem:[#allocation23_spill] sm:$0xff] %v11345_v23 }
  0x99   :  { %7203 = vadd.xlane.f32.xlu0 %v7202_v0  ;;  %v11340_v0 = vld [vmem:[%s17692_s29 + $0x1d0] sm:$0xff]  ;;  %v319_v2 = vpack.c.bf16 %v11335_v38, %v11313_v48  ;;  %v320_v62 = vpack.c.bf16 %v11329_v9, %v11325_v63  ;;  %v11394_v16 = vpop.permute.xlu1 %172  ;;  %v11420_v41 = vpack.c.bf16 %v11251_v29, %v11214_v4 }
  0x9a   :  { %v340_v32 = vpack.c.bf16 %v272_v7, %v271_v33  ;;  %v273_v54 = vmul.f32 %v11294_v17, %v11340_v0  ;;  %17714 = vst [vmem:[#allocation27_spill] sm:$0xff] %v11394_v16  ;;  %v11435_v19 = vpack.c.bf16 %v271_v33, %v270_v14 }
  0x9b   :  { %7266 = vadd.xlane.f32.xlu1 %v7265_v44  ;;  %v11352_v45 = vpop.permute.xlu0 %212  ;;  %v11369_v44 = vld [vmem:[%s17692_s29 + $0x1f0] sm:$0xff] }
  0x9c   :  { %17711 = vst [vmem:[#allocation24_spill] sm:$0xff] %v11352_v45  ;;  %17713 = vst [vmem:[#allocation26_spill] sm:$0xff] %v11369_v44  ;;  %v276_v30 = vmul.f32 %v11352_v45, %v11364_v49  ;;  %v11442_v4 = vpack.c.bf16 %v273_v54, %v272_v7  ;;  %v11469_v7 = vld [vmem:[%s17692_s29 + $0xc8] sm:$0xff] }
  0x9d   :  { %9669 = vmatmul.mubr.msk.bf16.gmra.mxu1 %vm346_vm2, %v339_v47  ;;  %7209 = vadd.xlane.f32.xlu0 %v7208_v53  ;;  %v274_v53 = vmul.f32 %v11294_v17, %v11345_v23  ;;  %v11392_v47 = vld [vmem:[%s17692_s29 + $0xa8] sm:$0xff]  ;;  %v11406_v17 = vld [vmem:[%s17692_s29 + $0xf0] sm:$0xff]  ;;  %v11410_v23 = vmul.f32 %v11124_v21, %v11122_v1  ;;  %v11430_v1 = vmul.f32 %v11321_v51, %v11145_v22  ;;  %v11457_v33 = vpop.permute.xlu1 %177 }
  0x9e   :  { %9629 = vmatmul.mubr.msk.bf16.gmra.mxu0 %vm346_vm2, %v319_v2  ;;  %9672 = vmatprep.mubr.msk.bf16.mxu1 %vm346_vm2, %v340_v32  ;;  %v275_v32 = vmul.f32 %v11352_v45, %v11359_v24  ;;  %v277_v2 = vmul.f32 %v11352_v45, %v11369_v44  ;;  %v7277_v49 = vsel %vm346_vm2, %v11406_v17, 0.0  ;;  %v11424_v36 = vmul.f32 %v11321_v51, %v11392_v47 }
  0x9f   :  { %9632 = vmatprep.mubr.msk.bf16.mxu0 %vm346_vm2, %v320_v62  ;;  %7272 = vadd.xlane.f32.xlu1 %v7271_v28  ;;  %v11414_v62 = vmul.f32 %v11124_v21, %v11379_v42  ;;  %v7220_v28 = vsel %vm346_vm2, %v11154_v25, 0.0  ;;  %v11433_v21 = vpack.c.bf16 %v269_v57, %v11255_v52  ;;  %17715 = vst [vmem:[#allocation28_spill] sm:$0xff] %v11435_v19  ;;  %17716 = vst [vmem:[#allocation29_spill] sm:$0xff] %v11442_v4  ;;  %v11453_v57 = vld [vmem:[%s17692_s29 + $0x1f8] sm:$0xff] }
  0xa0   :  { %v341_v44 = vpack.c.bf16 %v274_v53, %v273_v54  ;;  %v11444_v29 = vpack.c.bf16 %v275_v32, %v274_v53  ;;  %v11446_v25 = vpack.c.bf16 %v277_v2, %v276_v30  ;;  %v342_v52 = vpack.c.bf16 %v276_v30, %v275_v32  ;;  %17719 = vst [vmem:[#allocation32_spill] sm:$0xff] %v11457_v33  ;;  %v78_v53 = vld [vmem:[%s17692_s29 + $0xb8] sm:$0xff]  ;;  %v11482_v32 = vld [vmem:[%s17692_s29 + $0x110] sm:$0xff] }
  0xa1   :  { %7215 = vadd.xlane.f32.xlu0 %v7214_v31  ;;  %v11440_v31 = vld [vmem:[%s17692_s29 + $0x100] sm:$0xff]  ;;  %v321_v22 = vpack.c.bf16 %v11414_v62, %v11410_v23  ;;  %v7226_v54 = vsel %vm346_vm2, %v11191_v20, 0.0  ;;  %v11486_v20 = vmul.f32 %v11321_v51, %v11196_v27  ;;  %v7289_v30 = vsel %vm346_vm2, %v11482_v32, 0.0  ;;  %v11503_v27 = vpop.permute.xlu1 %182 }
  0xa2   :  { %17717 = vst [vmem:[#allocation30_spill] sm:$0xff] %v11444_v29  ;;  %17718 = vst [vmem:[#allocation31_spill] sm:$0xff] %v11446_v25  ;;  %v7283_v14 = vsel %vm346_vm2, %v11440_v31, 0.0  ;;  %v7331_v19 = vsel %vm346_vm2, %v11161_v18, 0.0  ;;  %v11715_v18 = vld [vmem:[%s17692_s29 + $0x148] sm:$0xff] }
  0xa3   :  { %7278 = vadd.xlane.f32.xlu1 %v7277_v49  ;;  %v322_v49 = vpack.c.bf16 %v11424_v36, %v11430_v1  ;;  %17721 = vst [vmem:[#allocation34_spill] sm:$0xff] %v11503_v27 }
  0xa5   :  { %9673 = vmatmul.mubr.msk.bf16.gmra.mxu1 %vm346_vm2, %v341_v44  ;;  %7221 = vadd.xlane.f32.xlu0 %v7220_v28  ;;  %v11474_v44 = vmul.f32 %v11352_v45, %v11453_v57  ;;  %v11492_v28 = vmul.f32 %v11147_v5, %v11246_v10  ;;  %v17496_v10 = vmov 0.0  }
  0xa6   :  { %9633 = vmatmul.mubr.msk.bf16.gmra.mxu0 %vm346_vm2, %v321_v22  ;;  %9676 = vmatprep.mubr.msk.bf16.mxu1 %vm346_vm2, %v342_v52  ;;  %v11496_v22 = vmul.f32 %v11147_v5, %v11469_v7  ;;  %v7232_v52 = vsel %vm346_vm2, %v11303_v37, 0.0  ;;  %v279_v45 = vpack.c.bf16 %v11062_v3, %v17496_v10  ;;  %v7238_v3 = vsel %vm346_vm2, %v11290_v15, 0.0  ;;  %v11550_v10 = vpop.permute.xlu1 %187 }
  0xa7   :  { %9636 = vmatprep.mubr.msk.bf16.mxu0 %vm346_vm2, %v322_v49  ;;  %17720 = vst [vmem:[#allocation33_spill] sm:$0xff] %v11474_v44  ;;  %7284 = vadd.xlane.f32.xlu1 %v7283_v14  ;;  %v11501_v14 = vmul.f32 %v11321_v51, %v78_v53  ;;  %v343_v49 = vpack.c.bf16 %v11474_v44, %v277_v2  ;;  %17722 = vst [vmem:[#allocation35_spill] sm:$0xff] %v11550_v10  ;;  %v11569_v44 = vld [vmem:[%s17692_s29 + $0x140] sm:$0xff] }
  0xa8   :  { %v324_v2 = vpack.c.bf16 %v11496_v22, %v11492_v28 }
  0xa9   :  { %7227 = vadd.xlane.f32.xlu0 %v7226_v54  ;;  %v11509_v54 = vld [vmem:[%s17692_s29 + $0x120] sm:$0xff]  ;;  %v323_v37 = vpack.c.bf16 %v11501_v14, %v11486_v20 }
  0xaa   :  { %v7295_v51 = vsel %vm346_vm2, %v11509_v54, 0.0 }
  0xab   :  { %7290 = vadd.xlane.f32.xlu1 %v7289_v30  ;;  %v11523_v30 = vld [vmem:[%s17692_s29 + $0xd8] sm:$0xff] }
  0xac   :  { %v11546_v15 = vmul.f32 %v11147_v5, %v11523_v30 }
  0xad   :  { %9677 = vmatmul.mubr.msk.bf16.gmra.mxu1 %vm346_vm2, %v343_v49  ;;  %7233 = vadd.xlane.f32.xlu0 %v7232_v52  ;;  %v11532_v49 = vld [vmem:[%s17692_s29 + $0xe8] sm:$0xff]  ;;  %v11538_v52 = vld [vmem:[%s17692_s29 + $0x130] sm:$0xff] }
  0xae   :  { %9637 = vmatmul.mubr.msk.bf16.gmra.mxu0 %vm346_vm2, %v323_v37  ;;  %9682 = vmatprep.mubr.msk.bf16.mxu1 %vm346_vm2, %v279_v45  ;;  %v11542_v37 = vmul.f32 %v11147_v5, %v11308_v61  ;;  %v7301_v45 = vsel %vm346_vm2, %v11538_v52, 0.0  ;;  %v11560_v61 = vpack.c.bf16 %v11068_v8, %v11065_v6  ;;  %v11564_v5 = vmul.f32 %v11394_v16, %v11350_v55  ;;  %v11586_v8 = vld [vmem:[%s17692_s29 + $0xf8] sm:$0xff] }
  0xaf   :  { %9640 = vmatprep.mubr.msk.bf16.mxu0 %vm346_vm2, %v324_v2  ;;  %7296 = vadd.xlane.f32.xlu1 %v7295_v51  ;;  %v11554_v2 = vmul.f32 %v11394_v16, %v11532_v49  ;;  %v7244_v51 = vsel %vm346_vm2, %v11379_v42, 0.0  ;;  %v11575_v42 = vpack.c.bf16 %v11098_v43, %v11071_v12  ;;  %v7307_v6 = vsel %vm346_vm2, %v11569_v44, 0.0  ;;  %v11596_v43 = vld [vmem:[%s17692_s29 + $0x108] sm:$0xff] }
  0xb0   :  { %v7250_v12 = vsel %vm346_vm2, %v11392_v47, 0.0  ;;  %v11612_v47 = vmul.f32 %v11394_v16, %v11586_v8  ;;  %v11622_v29 = vmul.f32 %v11457_v33, %v11596_v43 }
  0xb1   :  { %7239 = vadd.xlane.f32.xlu0 %v7238_v3  ;;  %v325_v3 = vpack.c.bf16 %v11546_v15, %v11542_v37  ;;  %v326_v55 = vpack.c.bf16 %v11554_v2, %v11564_v5 }
  0xb3   :  { %7302 = vadd.xlane.f32.xlu1 %v7301_v45  ;;  %v11598_v45 = vpop.permute.xlu1 %192 }
  0xb4   :  { %17723 = vst [vmem:[#allocation36_spill] sm:$0xff] %v11598_v45 }
  0xb5   :  { %7245 = vadd.xlane.f32.xlu0 %v7244_v51  ;;  %9683 = vmatmul.mubr.msk.bf16.vlgmr.msra.gmra.mxu1 %vm346_vm2, %v11560_v61  ;;  %v11604_v51 = vld [vmem:[%s17692_s29 + $0x150] sm:$0xff] }
  0xb6   :  { %9641 = vmatmul.mubr.msk.bf16.gmra.mxu0 %vm346_vm2, %v325_v3  ;;  %9686 = vmatprep.mubr.msk.bf16.mxu1 %vm346_vm2, %v11575_v42  ;;  %v11608_v3 = vmul.f32 %v11394_v16, %v11406_v17  ;;  %v7313_v25 = vsel %vm346_vm2, %v11604_v51, 0.0  ;;  %v11627_v17 = vpack.c.bf16 %v11127_v50, %v11102_v39  ;;  %v11632_v16 = vld [vmem:[%s17692_s29 + $0x160] sm:$0xff]  ;;  %v90_v50 = vld [vmem:[%s17692_s29 + $0x118] sm:$0xff] }
  0xb7   :  { %9644 = vmatprep.mubr.msk.bf16.mxu0 %vm346_vm2, %v326_v55  ;;  %7308 = vadd.xlane.f32.xlu1 %v7307_v6  ;;  %v11618_v55 = vmul.f32 %v11457_v33, %v11440_v31  ;;  %v7256_v6 = vsel %vm346_vm2, %v78_v53, 0.0  ;;  %v7319_v53 = vsel %vm346_vm2, %v11632_v16, 0.0  ;;  %v11642_v4 = vpop.permute.xlu1 %2861 }
  0xb8   :  { %v327_v31 = vpack.c.bf16 %v11612_v47, %v11608_v3  ;;  %17724 = vst [vmem:[#allocation37_spill] sm:$0xff] %v11642_v4 }
  0xb9   :  { %7251 = vadd.xlane.f32.xlu0 %v7250_v12  ;;  %v11638_v12 = vpack.c.bf16 %v11137_v56, %v11131_v13  ;;  %v328_v39 = vpack.c.bf16 %v11622_v29, %v11618_v55  ;;  %v7262_v13 = vsel %vm346_vm2, %v11469_v7, 0.0  ;;  %v11659_v56 = vld [vmem:[%s17692_s29 + $0x128] sm:$0xff] }
  0xba   :  { %v11682_v4 = vmul.f32 %v11503_v27, %v11659_v56 }
  0xbb   :  { %7314 = vadd.xlane.f32.xlu1 %v7313_v25  ;;  %v11665_v25 = vld [vmem:[%s17692_s29 + $0x170] sm:$0xff] }
  0xbc   :  { %v7325_v7 = vsel %vm346_vm2, %v11665_v25, 0.0 }
  0xbd   :  { %7257 = vadd.xlane.f32.xlu0 %v7256_v6  ;;  %9687 = vmatmul.mubr.msk.bf16.gmra.mxu1 %vm346_vm2, %v11627_v17  ;;  %v11669_v6 = vmul.f32 %v11457_v33, %v11482_v32  ;;  %v11686_v32 = vpop.permute.xlu1 %2871 }
  0xbe   :  { %9645 = vmatmul.mubr.msk.bf16.gmra.mxu0 %vm346_vm2, %v327_v31  ;;  %9690 = vmatprep.mubr.msk.bf16.mxu1 %vm346_vm2, %v11638_v12  ;;  %v11672_v31 = vmul.f32 %v11457_v33, %v90_v50  ;;  %17725 = vst [vmem:[#allocation38_spill] sm:$0xff] %v11686_v32  ;;  %v11690_v33 = vpack.c.bf16 %v11182_v46, %v11117_v58  ;;  %v94_v58 = vld [vmem:[%s17692_s29 + $0x138] sm:$0xff]  ;;  %v7274_v46 = vsel %vm346_vm2, %v11532_v49, 0.0 }
  0xbf   :  { %9648 = vmatprep.mubr.msk.bf16.mxu0 %vm346_vm2, %v328_v39  ;;  %7320 = vadd.xlane.f32.xlu1 %v7319_v53  ;;  %v11678_v39 = vmul.f32 %v11503_v27, %v11509_v54  ;;  %v7268_v53 = vsel %vm346_vm2, %v11523_v30, 0.0  ;;  %v11696_v54 = vpack.c.bf16 %v11219_v11, %v11186_v60  ;;  %v11720_v60 = vmul.f32 %v11503_v27, %v11538_v52 }
  0xc0   :  { %v11723_v11 = vmul.f32 %v11503_v27, %v94_v58  ;;  %v11731_v49 = vmul.f32 %v11550_v10, %v11569_v44  ;;  %v7280_v52 = vsel %vm346_vm2, %v11586_v8, 0.0  ;;  %v7343_v44 = vsel %vm346_vm2, %v11228_v40, 0.0  ;;  %v100_v40 = vld [vmem:[%s17692_s29 + $0x168] sm:$0xff] }
  0xc1   :  { %7263 = vadd.xlane.f32.xlu0 %v7262_v13  ;;  %v329_v13 = vpack.c.bf16 %v11672_v31, %v11669_v6  ;;  %v330_v30 = vpack.c.bf16 %v11682_v4, %v11678_v39 }
  0xc3   :  { %7326 = vadd.xlane.f32.xlu1 %v7325_v7  ;;  %v7337_v7 = vsel %vm346_vm2, %v11172_v26, 0.0  ;;  %v331_v26 = vpack.c.bf16 %v11723_v11, %v11720_v60 }
  0xc5   :  { %7269 = vadd.xlane.f32.xlu0 %v7268_v53  ;;  %9691 = vmatmul.mubr.msk.bf16.gmra.mxu1 %vm346_vm2, %v11690_v33  ;;  %v11727_v53 = vpop.permute.xlu1 %2881 }
  0xc6   :  { %9649 = vmatmul.mubr.msk.bf16.gmra.mxu0 %vm346_vm2, %v329_v13  ;;  %9694 = vmatprep.mubr.msk.bf16.mxu1 %vm346_vm2, %v11696_v54  ;;  %17726 = vst [vmem:[#allocation39_spill] sm:$0xff] %v11727_v53  ;;  %v11741_v13 = vpack.c.bf16 %v11313_v48, %v11223_v34  ;;  %v98_v34 = vld [vmem:[%s17692_s29 + $0x158] sm:$0xff]  ;;  %v7286_v48 = vsel %vm346_vm2, %v11596_v43, 0.0  ;;  %v11780_v43 = vmul.f32 %v11598_v45, %v11632_v16  ;;  %v7355_v16 = vsel %vm346_vm2, %v11275_v35, 0.0 }
  0xc7   :  { %9652 = vmatprep.mubr.msk.bf16.mxu0 %vm346_vm2, %v330_v30  ;;  %7332 = vadd.xlane.f32.xlu1 %v7331_v19  ;;  %v11735_v19 = vmul.f32 %v11550_v10, %v11715_v18  ;;  %v11747_v30 = vpack.c.bf16 %v11325_v63, %v11335_v38  ;;  %v11771_v38 = vmul.f32 %v11550_v10, %v11604_v51  ;;  %v7298_v35 = vsel %vm346_vm2, %v11659_v56, 0.0 }
  0xc8   :  { %v11788_v51 = vpack.c.bf16 %v11410_v23, %v11329_v9  ;;  %v102_v23 = vld [vmem:[%s17692_s29 + $0x178] sm:$0xff]  ;;  %v11827_v56 = vpack.c.bf16 %v11486_v20, %v11424_v36  ;;  %v7310_v36 = vsel %vm346_vm2, %v11715_v18, 0.0  ;;  %v17730_v20 = vld [vmem:[#allocation26_spill] sm:$0xff]  ;;  %v11859_v18 = vpack.c.bf16 %v11564_v5, %v11546_v15 }
  0xc9   :  { %7275 = vadd.xlane.f32.xlu0 %v7274_v46  ;;  %v332_v8 = vpack.c.bf16 %v11735_v19, %v11731_v49  ;;  %v11766_v63 = vpop.permute.xlu1 %2891  ;;  %v11774_v46 = vmul.f32 %v11550_v10, %v98_v34  ;;  %v7328_v5 = vsel %vm346_vm2, %v102_v23, 0.0  ;;  %v17735_v15 = vmov 0.0  }
  0xca   :  { %17727 = vst [vmem:[#allocation40_spill] sm:$0xff] %v11766_v63 }
  0xcb   :  { %7338 = vadd.xlane.f32.xlu1 %v7337_v7  ;;  %v7349_v7 = vsel %vm346_vm2, %v11260_v59, 0.0  ;;  %v11794_v59 = vpack.c.bf16 %v11430_v1, %v11414_v62  ;;  %v11815_v62 = vmul.f32 %v11598_v45, %v11665_v25  ;;  %v11818_v1 = vmul.f32 %v11598_v45, %v102_v23 }
  0xcc   :  { %v11898_v23 = vpack.c.bf16 %v11669_v6, %v11622_v29  ;;  %v17741_v29 = vld [vmem:[#allocation16_spill] sm:$0xff] }
  0xcd   :  { %7281 = vadd.xlane.f32.xlu0 %v7280_v52  ;;  %9695 = vmatmul.mubr.msk.bf16.gmra.mxu1 %vm346_vm2, %v11741_v13  ;;  %v11783_v52 = vmul.f32 %v11598_v45, %v100_v40  ;;  %v335_v25 = vpack.c.bf16 %v11818_v1, %v11815_v62  ;;  %v7346_v6 = vsel %vm346_vm2, %v17741_v29, 0.0 }
  0xce   :  { %9653 = vmatmul.mubr.msk.bf16.gmra.mxu0 %vm346_vm2, %v331_v26  ;;  %9698 = vmatprep.mubr.msk.bf16.mxu1 %vm346_vm2, %v11747_v30  ;;  %v7292_v26 = vsel %vm346_vm2, %v90_v50, 0.0  ;;  %v7361_v50 = vsel %vm346_vm2, %v11340_v0, 0.0  ;;  %v7367_v0 = vsel %vm346_vm2, %v11359_v24, 0.0 }
  0xcf   :  { %9656 = vmatprep.mubr.msk.bf16.mxu0 %vm346_vm2, %v332_v8  ;;  %7344 = vadd.xlane.f32.xlu1 %v7343_v44  ;;  %v333_v44 = vpack.c.bf16 %v11774_v46, %v11771_v38  ;;  %v11798_v8 = vpop.permute.xlu1 %2901  ;;  %v334_v9 = vpack.c.bf16 %v11783_v52, %v11780_v43 }
  0xd0   :  { %17728 = vst [vmem:[#allocation41_spill] sm:$0xff] %v11798_v8 }
  0xd1   :  { %7287 = vadd.xlane.f32.xlu0 %v7286_v48  ;;  %v7304_v48 = vsel %vm346_vm2, %v94_v58, 0.0  ;;  %v7316_v58 = vsel %vm346_vm2, %v98_v34, 0.0 }
  0xd3   :  { %7350 = vadd.xlane.f32.xlu1 %v7349_v7  ;;  %v11823_v7 = vpop.permute.xlu1 %2911 }
  0xd4   :  { %17729 = vst [vmem:[#allocation42_spill] sm:$0xff] %v11823_v7 }
  0xd5   :  { %7293 = vadd.xlane.f32.xlu0 %v7292_v26  ;;  %9699 = vmatmul.mubr.msk.bf16.gmra.mxu1 %vm346_vm2, %v11788_v51  ;;  %v11833_v26 = vpack.c.bf16 %v11492_v28, %v11501_v14  ;;  %v7373_v28 = vsel %vm346_vm2, %v17730_v20, 0.0  ;;  %v11850_v14 = vpop.permute.xlu0 %3185 }
  0xd6   :  { %9657 = vmatmul.mubr.msk.bf16.gmra.mxu0 %vm346_vm2, %v333_v44  ;;  %9702 = vmatprep.mubr.msk.bf16.mxu1 %vm346_vm2, %v11794_v59  ;;  %17732 = vst [vmem:[#allocation43_spill] sm:$0xff] %v11850_v14  ;;  %v11855_v44 = vpack.c.bf16 %v11542_v37, %v11496_v22  ;;  %v11877_v37 = vpack.c.bf16 %v11608_v3, %v11554_v2 }
  0xd7   :  { %9660 = vmatprep.mubr.msk.bf16.mxu0 %vm346_vm2, %v334_v9  ;;  %7356 = vadd.xlane.f32.xlu1 %v7355_v16  ;;  %v11848_v24 = vpop.permute.xlu1 %2921 }
  0xd8   :  { %17731 = vst [vmem:[#allocation26_spill] sm:$0xff] %v11848_v24 }
  0xd9   :  { %7299 = vadd.xlane.f32.xlu0 %v7298_v35  ;;  %v11872_v22 = vpop.permute.xlu0 %2866 }
  0xda   :  { %17734 = vst [vmem:[#allocation45_spill] sm:$0xff] %v11872_v22 }
  0xdb   :  { %7362 = vadd.xlane.f32.xlu1 %v7361_v50  ;;  %v11868_v34 = vpop.permute.xlu1 %2931  ;;  %v17743_v50 = vld [vmem:[#allocation19_spill] sm:$0xff] }
  0xdc   :  { %17733 = vst [vmem:[#allocation44_spill] sm:$0xff] %v11868_v34 }
  0xdd   :  { %7305 = vadd.xlane.f32.xlu0 %v7304_v48  ;;  %9703 = vmatmul.mubr.msk.bf16.gmra.mxu1 %vm346_vm2, %v11827_v56  ;;  %v7352_v48 = vsel %vm346_vm2, %v17743_v50, 0.0  ;;  %v17754_v50 = vld [vmem:[#allocation29_spill] sm:$0xff] }
  0xde   :  { %9661 = vmatmul.mubr.msk.bf16.gmra.mxu0 %vm346_vm2, %v335_v25  ;;  %9706 = vmatprep.mubr.msk.bf16.mxu1 %vm346_vm2, %v11833_v26  ;;  %v11930_v25 = vpack.c.bf16 %v11731_v49, %v11723_v11  ;;  %v17746_v49 = vld [vmem:[#allocation23_spill] sm:$0xff] }
  0xdf   :  { %9748 = vmatprep.mubr.msk.bf16.mxu0 %vm346_vm2, %v11560_v61  ;;  %7368 = vadd.xlane.f32.xlu1 %v7367_v0  ;;  %v7322_v61 = vsel %vm346_vm2, %v100_v40, 0.0  ;;  %v11881_v16 = vpop.permute.xlu1 %2770  ;;  %v11885_v40 = vpop.permute.xlu0 %2876  ;;  %v17744_v0 = vld [vmem:[#allocation20_spill] sm:$0xff] }
  0xe0   :  { %17736 = vst [vmem:[#allocation46_spill] sm:$0xff] %v11881_v16  ;;  %17737 = vst [vmem:[#allocation47_spill] sm:$0xff] %v11885_v40 }
  0xe1   :  { %7311 = vadd.xlane.f32.xlu0 %v7310_v36  ;;  %v11953_v36 = vpack.c.bf16 %v11771_v38, %v11735_v19  ;;  %v17748_v19 = vld [vmem:[#allocation25_spill] sm:$0xff] }
  0xe2   :  { %v7370_v38 = vsel %vm346_vm2, %v17748_v19, 0.0 }
  0xe3   :  { %7374 = vadd.xlane.f32.xlu1 %v7373_v28  ;;  %v11900_v35 = vpop.permute.xlu0 %2886 }
  0xe5   :  { %7317 = vadd.xlane.f32.xlu0 %v7316_v58  ;;  %9707 = vmatmul.mubr.msk.bf16.gmra.mxu1 %vm346_vm2, %v11855_v44  ;;  %v11977_v58 = vpack.c.bf16 %v11815_v62, %v11783_v52  ;;  %v17752_v62 = vld [vmem:[#allocation17_spill] sm:$0xff] }
  0xe6   :  { %9749 = vmatmul.mubr.msk.bf16.vlgmr.msra.gmra.mxu0 %vm346_vm2, %v11575_v42  ;;  %9710 = vmatprep.mubr.msk.bf16.mxu1 %vm346_vm2, %v11859_v18  ;;  %v295_v42 = vpack.c.bf16 %v11618_v55, %v17735_v15  ;;  %v17739_v55 = vld [vmem:[#allocation12_spill] sm:$0xff] }
  0xe7   :  { %9752 = vmatprep.mubr.msk.bf16.mxu0 %vm346_vm2, %v11627_v17  ;;  %v17738_v17 = vld [vmem:[#allocation11_spill] sm:$0xff]  ;;  %v7340_v9 = vsel %vm346_vm2, %v17739_v55, 0.0 }
  0xe8   :  { %v7334_v2 = vsel %vm346_vm2, %v17738_v17, 0.0  ;;  %17740 = vst [vmem:[#allocation11_spill] sm:$0xff] %v11900_v35  ;;  %v1124_v17 = vpack.c.bf16 %v17735_v15, %v11612_v47 }
  0xe9   :  { %7323 = vadd.xlane.f32.xlu0 %v7322_v61 }
  0xed   :  { %7329 = vadd.xlane.f32.xlu0 %v7328_v5  ;;  %9711 = vmatmul.mubr.msk.bf16.gmra.mxu1 %vm346_vm2, %v11877_v37 }
  0xee   :  { %9753 = vmatmul.mubr.msk.bf16.gmra.mxu0 %vm346_vm2, %v11638_v12  ;;  %9714 = vmatprep.mubr.msk.bf16.mxu1 %vm346_vm2, %v295_v42  ;;  %v11904_v12 = vpack.c.bf16 %v11678_v39, %v11672_v31  ;;  %v11920_v39 = vpop.permute.xlu0 %2896 }
  0xef   :  { %9756 = vmatprep.mubr.msk.bf16.mxu0 %vm346_vm2, %v11690_v33  ;;  %17742 = vst [vmem:[#allocation12_spill] sm:$0xff] %v11920_v39 }
  0xf1   :  { %7335 = vadd.xlane.f32.xlu0 %v7334_v2  ;;  %v7192_v3 = vpop.xlane.xlu1 %7191 }
  0xf2   :  { %v11947_v11 = vpop.permute.xlu0 %2906 }
  0xf3   :  { %17745 = vst [vmem:[#allocation16_spill] sm:$0xff] %v11947_v11 }
  0xf5   :  { %9715 = vmatmul.mubr.msk.bf16.gmra.mxu1 %vm346_vm2, %v11898_v23  ;;  %7341 = vadd.xlane.f32.xlu0 %v7340_v9  ;;  %v11908_v33 = vpop.xlane.xlu1 %7200 }
  0xf6   :  { %9757 = vmatmul.mubr.msk.bf16.gmra.mxu0 %vm346_vm2, %v11696_v54  ;;  %9718 = vmatprep.mubr.msk.bf16.mxu1 %vm346_vm2, %v11904_v12  ;;  %v11926_v54 = vpack.c.bf16 %v11720_v60, %v11682_v4  ;;  %v7358_v4 = vsel %vm346_vm2, %v17744_v0, 0.0  ;;  %v10502_v60 = vld [vmem:[%s17451_s4 + $0x18] sm:$0xff]   ;;  %v11963_v28 = vpop.permute.xlu0 %2916 }
  0xf7   :  { %9760 = vmatprep.mubr.msk.bf16.mxu0 %vm346_vm2, %v11741_v13  ;;  %9812 = vmatprep.subr.bf16.mxu1 %v10502_v60  ;;  %17747 = vst [vmem:[#allocation19_spill] sm:$0xff] %v11963_v28 }
  0xf8   :  { %9813 = vmatpush3.bf16.msra.mxu1 %v10502_v60 }
  0xf9   :  { %7347 = vadd.xlane.f32.xlu0 %v7346_v6  ;;  %v11918_v31 = vpop.xlane.xlu1 %7206 }
  0xfa   :  { %v11979_v61 = vpop.permute.xlu0 %2926 }
  0xfb   :  { %17749 = vst [vmem:[#allocation20_spill] sm:$0xff] %v11979_v61 }
  0xfd   :  { %9719 = vmatmul.mubr.msk.bf16.gmra.mxu1 %vm346_vm2, %v11926_v54  ;;  %7353 = vadd.xlane.f32.xlu0 %v7352_v48  ;;  %v11934_v13 = vpop.xlane.xlu1 %7212 }
  0xfe   :  { %9761 = vmatmul.mubr.msk.bf16.gmra.mxu0 %vm346_vm2, %v11747_v30  ;;  %9722 = vmatprep.mubr.msk.bf16.mxu1 %vm346_vm2, %v11930_v25  ;;  %v7364_v30 = vsel %vm346_vm2, %v17746_v49, 0.0  ;;  %v11993_v52 = vpop.permute.xlu0 %2936 }
  0xff   :  { %9764 = vmatprep.mubr.msk.bf16.mxu0 %vm346_vm2, %v11788_v51  ;;  %v11959_v51 = vpack.c.bf16 %v11780_v43, %v11774_v46  ;;  %v7376_v43 = vsel %vm346_vm2, %v11453_v57, 0.0  ;;  %17751 = vst [vmem:[#allocation23_spill] sm:$0xff] %v11993_v52 }
 0x101   :  { %7359 = vadd.xlane.f32.xlu0 %v7358_v4  ;;  %v11955_v20 = vpop.xlane.xlu1 %7218  ;;  %v17755_v4 = vld [vmem:[#allocation30_spill] sm:$0xff] }
 0x105   :  { %9723 = vmatmul.mubr.msk.bf16.gmra.mxu1 %vm346_vm2, %v11953_v36  ;;  %7365 = vadd.xlane.f32.xlu0 %v7364_v30  ;;  %v7225_v46 = vpop.xlane.xlu1 %7224 }
 0x106   :  { %9765 = vmatmul.mubr.msk.bf16.gmra.mxu0 %vm346_vm2, %v11794_v59  ;;  %9726 = vmatprep.mubr.msk.bf16.mxu1 %vm346_vm2, %v11959_v51  ;;  %v17750_v59 = vld [vmem:[#allocation15_spill] sm:$0xff] }
 0x107   :  { %9768 = vmatprep.mubr.msk.bf16.mxu0 %vm346_vm2, %v11827_v56  ;;  %v11983_v5 = vpack.c.bf16 %v17750_v59, %v11818_v1 }
 0x109   :  { %7371 = vadd.xlane.f32.xlu0 %v7370_v38 }
 0x10a   :  { %v7231_v57 = vpop.xlane.xlu1 %7230 }
 0x10d   :  { %9727 = vmatmul.mubr.msk.bf16.gmra.mxu1 %vm346_vm2, %v11977_v58  ;;  %7377 = vadd.xlane.f32.xlu0 %v7376_v43 }
 0x10e   :  { %9769 = vmatmul.mubr.msk.bf16.gmra.mxu0 %vm346_vm2, %v11833_v26  ;;  %9730 = vmatprep.mubr.msk.bf16.mxu1 %vm346_vm2, %v11983_v5  ;;  %v11997_v1 = vpop.xlane.xlu1 %7236 }
 0x10f   :  { %9772 = vmatprep.mubr.msk.bf16.mxu0 %vm346_vm2, %v11855_v44 }
 0x112   :  { %v7243_v42 = vpop.xlane.xlu1 %7242 }
 0x115   :  { %9731 = vmatmul.mubr.msk.bf16.gmra.mxu1 %vm346_vm2, %v17752_v62 }
 0x116   :  { %9773 = vmatmul.mubr.msk.bf16.gmra.mxu0 %vm346_vm2, %v11859_v18  ;;  %v7189_v56 = vpop.xlane.xlu0 %7188  ;;  %9734 = vmatprep.mubr.msk.bf16.mxu1 %vm346_vm2, %v11420_v41  ;;  %v17753_v18 = vld [vmem:[#allocation28_spill] sm:$0xff] }
 0x117   :  { %9776 = vmatprep.mubr.msk.bf16.mxu0 %vm346_vm2, %v11877_v37  ;;  %v7379_v44 = vadd.f32 %v7192_v3, %v7189_v56  ;;  %v7249_v3 = vpop.xlane.xlu1 %7248 }
 0x119   :  { %v7411_v55 = vmul.f32 0.5, %v7379_v44 }
 0x11a   :  { %v7195_v26 = vpop.xlane.xlu0 %7194 }
 0x11b   :  { %v7255_v30 = vpop.xlane.xlu1 %7254 }
 0x11d   :  { %9735 = vmatmul.mubr.msk.bf16.gmra.mxu1 %vm346_vm2, %v11433_v21 }
 0x11e   :  { %9777 = vmatmul.mubr.msk.bf16.gmra.mxu0 %vm346_vm2, %v1124_v17  ;;  %v7198_v2 = vpop.xlane.xlu0 %7197  ;;  %9738 = vmatprep.mubr.msk.bf16.mxu1 %vm346_vm2, %v17753_v18 }
 0x11f   :  { %v7380_v9 = vadd.f32 %v7198_v2, %v7195_v26  ;;  %9780 = vmatprep.mubr.msk.bf16.mxu0 %vm346_vm2, %v11898_v23 }
 0x120   :  { %v12027_v56 = vpop.xlane.xlu1 %7260 }
 0x121   :  { %v7412_v37 = vmul.f32 0.5, %v7380_v9 }
 0x122   :  { %v7204_v29 = vpop.xlane.xlu0 %7203 }
 0x123   :  { %v7443_v6 = vadd.f32 %v7412_v37, %v7411_v55  ;;  %v7381_v47 = vadd.f32 %v7204_v29, %v11908_v33 }
 0x124   :  { %v12034_v9 = vpop.xlane.xlu1 %7266 }
 0x125   :  { %9739 = vmatmul.mubr.msk.bf16.gmra.mxu1 %vm346_vm2, %v17754_v50  ;;  %v7459_v48 = vmul.f32 0.5, %v7443_v6  ;;  %v7413_v60 = vmul.f32 0.5, %v7381_v47 }
 0x126   :  { %9781 = vmatmul.mubr.msk.bf16.gmra.mxu0 %vm346_vm2, %v11904_v12  ;;  %v7210_v0 = vpop.xlane.xlu0 %7209  ;;  %9742 = vmatprep.mubr.msk.bf16.mxu1 %vm346_vm2, %v17755_v4  ;;  %v17756_v12 = vld [vmem:[#allocation31_spill] sm:$0xff] }
 0x127   :  { %v7382_v23 = vadd.f32 %v7210_v0, %v11918_v31  ;;  %9784 = vmatprep.mubr.msk.bf16.mxu0 %vm346_vm2, %v11926_v54  ;;  %v7475_v49 = vmul.f32 0.25, %v7459_v48 }
 0x129   :  { %v7414_v33 = vmul.f32 0.5, %v7382_v23  ;;  %7493 = vperm.xlu1 %10501, %v7475_v49  }
 0x12a   :  { %v7216_v19 = vpop.xlane.xlu0 %7215 }
 0x12b   :  { %v7444_v38 = vadd.f32 %v7414_v33, %v7413_v60  ;;  %v7383_v43 = vadd.f32 %v7216_v19, %v11934_v13 }
 0x12d   :  { %v7460_v59 = vmul.f32 0.5, %v7444_v38  ;;  %9743 = vmatmul.mubr.msk.bf16.gmra.mxu1 %vm346_vm2, %v17756_v12  ;;  %v7415_v54 = vmul.f32 0.5, %v7383_v43 }
 0x12e   :  { %9785 = vmatmul.mubr.msk.bf16.gmra.mxu0 %vm346_vm2, %v11930_v25  ;;  %v7222_v31 = vpop.xlane.xlu0 %7221 }
 0x12f   :  { %v7476_v26 = vmul.f32 0.25, %v7460_v59  ;;  %v7384_v44 = vadd.f32 %v7222_v31, %v11955_v20  ;;  %9788 = vmatprep.mubr.msk.bf16.mxu0 %vm346_vm2, %v11953_v36  ;;  %v7273_v36 = vpop.xlane.xlu1 %7272 }
 0x131   :  { %v7416_v17 = vmul.f32 0.5, %v7384_v44  ;;  %7498 = vperm.xlu0 %10500, %v7476_v26  }
 0x132   :  { %v7228_v13 = vpop.xlane.xlu0 %7227 }
 0x133   :  { %v7445_v2 = vadd.f32 %v7416_v17, %v7415_v54  ;;  %v7385_v55 = vadd.f32 %v7228_v13, %v7225_v46 }
 0x135   :  { %v7461_v37 = vmul.f32 0.5, %v7445_v2  ;;  %v7417_v6 = vmul.f32 0.5, %v7385_v55 }
 0x136   :  { %9789 = vmatmul.mubr.msk.bf16.gmra.mxu0 %vm346_vm2, %v11959_v51  ;;  %v7234_v25 = vpop.xlane.xlu0 %7233 }
 0x137   :  { %v7477_v29 = vmul.f32 0.25, %v7461_v37  ;;  %v7386_v47 = vadd.f32 %v7234_v25, %v7231_v57  ;;  %9792 = vmatprep.mubr.msk.bf16.mxu0 %vm346_vm2, %v11977_v58  ;;  %v7279_v57 = vpop.xlane.xlu1 %7278 }
 0x139   :  { %v7418_v20 = vmul.f32 0.5, %v7386_v47  ;;  %7503 = vperm.xlu1 %10501, %v7477_v29  }
 0x13a   :  { %v7240_v48 = vpop.xlane.xlu0 %7239 }
 0x13b   :  { %v7446_v0 = vadd.f32 %v7418_v20, %v7417_v6  ;;  %v7387_v46 = vadd.f32 %v7240_v48, %v11997_v1  ;;  %v12047_v1 = vpop.xlane.xlu1 %7284 }
 0x13d   :  { %v7462_v60 = vmul.f32 0.5, %v7446_v0  ;;  %v7419_v49 = vmul.f32 0.5, %v7387_v46 }
 0x13e   :  { %9793 = vmatmul.mubr.msk.bf16.gmra.mxu0 %vm346_vm2, %v11983_v5  ;;  %v7246_v23 = vpop.xlane.xlu0 %7245 }
 0x13f   :  { %v7478_v51 = vmul.f32 0.25, %v7462_v60  ;;  %v7388_v33 = vadd.f32 %v7246_v23, %v7243_v42  ;;  %9796 = vmatprep.mubr.msk.bf16.mxu0 %vm346_vm2, %v17752_v62  ;;  %v12061_v55 = vpop.xlane.xlu1 %7290 }
 0x141   :  { %v7420_v58 = vmul.f32 0.5, %v7388_v33  ;;  %7508 = vperm.xlu1 %10501, %v7478_v51  }
 0x142   :  { %v7252_v19 = vpop.xlane.xlu0 %7251 }
 0x143   :  { %v7447_v38 = vadd.f32 %v7420_v58, %v7419_v49  ;;  %v7389_v43 = vadd.f32 %v7252_v19, %v7249_v3  ;;  %v7297_v47 = vpop.xlane.xlu1 %7296 }
 0x145   :  { %v7463_v59 = vmul.f32 0.5, %v7447_v38  ;;  %v12045_v31 = vpop.f32.mrf.mxu0  ;;  %v7421_v42 = vmul.f32 0.5, %v7389_v43 }
 0x146   :  { %9797 = vmatmul.mubr.msk.bf16.gmra.mxu0 %vm346_vm2, %v11420_v41  ;;  %v7258_v5 = vpop.xlane.xlu0 %7257 }
 0x147   :  { %v7479_v26 = vmul.f32 0.25, %v7463_v59  ;;  %v7390_v54 = vadd.f32 %v7258_v5, %v7255_v30  ;;  %9800 = vmatprep.mubr.msk.bf16.mxu0 %vm346_vm2, %v11433_v21  ;;  %v12053_v62 = vpop.f32.mrf.mxu0  ;;  %v10503_v30 = vld [vmem:[%s17451_s4 + $0x10] sm:$0xff]  }
 0x148   :  { %9814 = vmatprep.subr.bf16.mxu1 %v10503_v30 }
 0x149   :  { %v7422_v44 = vmul.f32 0.5, %v7390_v54  ;;  %7513 = vperm.xlu0 %10500, %v7479_v26   ;;  %v12055_v3 = vpop.f32.mrf.mxu0  ;;  %9815 = vmatpush3.bf16.msra.mxu1 %v10503_v30  ;;  %v10505_v26 = vld [vmem:[%s17451_s4 + $0x20] sm:$0xff]  }
 0x14a   :  { %v12057_v17 = vpop.xlane.xlu0 %7263 }
 0x14b   :  { %v7448_v13 = vadd.f32 %v7422_v44, %v7421_v42  ;;  %v12059_v2 = vpop.f32.mrf.mxu0 }
 0x14d   :  { %v7464_v41 = vmul.f32 0.5, %v7448_v13  ;;  %v12063_v37 = vpop.f32.mrf.mxu0 }
 0x14e   :  { %9801 = vmatmul.mubr.msk.bf16.gmra.mxu0 %vm346_vm2, %v17753_v18  ;;  %v12067_v21 = vpop.xlane.xlu0 %7269  ;;  %v10504_v18 = vld [vmem:[%s17451_s4 + $0x28] sm:$0xff]  }
 0x14f   :  { %v7480_v25 = vmul.f32 0.25, %v7464_v41  ;;  %9804 = vmatprep.mubr.msk.bf16.mxu0 %vm346_vm2, %v17754_v50  ;;  %v12074_v29 = vpop.f32.mrf.mxu0  ;;  %9884 = vmatprep.subr.bf16.mxu0 %v10504_v18 }
 0x150   :  { %9885 = vmatpush3.bf16.msra.mxu0 %v10504_v18 }
 0x151   :  { %7518 = vperm.xlu1 %10501, %v7480_v25   ;;  %v12076_v6 = vpop.f32.mrf.mxu0  ;;  %9886 = vmatprep.subr.bf16.mxu0 %v10505_v26 }
 0x152   :  { %v7276_v20 = vpop.xlane.xlu0 %7275 }
 0x153   :  { %v7393_v48 = vadd.f32 %v7276_v20, %v7273_v36  ;;  %v12081_v0 = vpop.f32.mrf.mxu0  ;;  %v7303_v36 = vpop.xlane.xlu1 %7302 }
 0x154   :  { %9887 = vmatpush3.bf16.msra.mxu0 %v10505_v26 }
 0x155   :  { %v12083_v46 = vpop.f32.mrf.mxu1  ;;  %v7425_v23 = vmul.f32 0.5, %v7393_v48 }
 0x156   :  { %17757 = vst [vmem:[#allocation25_spill] sm:$0xff] %v12083_v46  ;;  %v12085_v50 = vpop.f32.mrf.mxu0  ;;  %9805 = vmatmul.mubr.msk.bf16.gmra.mxu0 %vm346_vm2, %v17755_v4  ;;  %v7282_v60 = vpop.xlane.xlu0 %7281 }
 0x157   :  { %v7394_v51 = vadd.f32 %v7282_v60, %v7279_v57  ;;  %9808 = vmatprep.mubr.msk.bf16.mxu0 %vm346_vm2, %v17756_v12  ;;  %v12091_v49 = vpop.f32.mrf.mxu1  ;;  %v17761_v57 = vld [vmem:[#allocation33_spill] sm:$0xff]  ;;  %v12112_v44 = vpop.xlane.xlu1 %7308 }
 0x158   :  { %17758 = vst [vmem:[#allocation15_spill] sm:$0xff] %v12091_v49  ;;  %v12093_v33 = vpop.f32.mrf.mxu0  ;;  %v1125_v12 = vpack.c.bf16 %v17735_v15, %v17761_v57 }
 0x159   :  { %v7426_v58 = vmul.f32 0.5, %v7394_v51  ;;  %v12095_v19 = vpop.f32.mrf.mxu1 }
 0x15a   :  { %17759 = vst [vmem:[#allocation17_spill] sm:$0xff] %v12095_v19  ;;  %v12097_v38 = vpop.f32.mrf.mxu0  ;;  %v12099_v43 = vpop.xlane.xlu0 %7287 }
 0x15b   :  { %v7450_v59 = vadd.f32 %v7426_v58, %v7425_v23  ;;  %v12101_v4 = vpop.f32.mrf.mxu1  ;;  %v12129_v58 = vpop.xlane.xlu1 %7314 }
 0x15c   :  { %17760 = vst [vmem:[#allocation28_spill] sm:$0xff] %v12101_v4  ;;  %v12103_v5 = vpop.f32.mrf.mxu0 }
 0x15d   :  { %v7466_v42 = vmul.f32 0.5, %v7450_v59  ;;  %v12110_v54 = vpop.f32.mrf.mxu1 }
 0x15e   :  { %17762 = vst [vmem:[#allocation29_spill] sm:$0xff] %v12110_v54  ;;  %v12114_v13 = vpop.f32.mrf.mxu0  ;;  %9809 = vmatmul.mubr.msk.bf16.gmra.mxu0 %vm346_vm2, %v1125_v12  ;;  %v12117_v41 = vpop.xlane.xlu0 %7293 }
 0x15f   :  { %v7482_v30 = vmul.f32 0.25, %v7466_v42  ;;  %v12119_v25 = vpop.f32.mrf.mxu1 }
 0x160   :  { %17763 = vst [vmem:[#allocation30_spill] sm:$0xff] %v12119_v25  ;;  %v12121_v18 = vpop.f32.mrf.mxu0 }
 0x161   :  { %v12123_v20 = vpop.f32.mrf.mxu1  ;;  %7528 = vperm.xlu1 %10501, %v7482_v30  }
 0x162   :  { %17764 = vst [vmem:[#allocation31_spill] sm:$0xff] %v12123_v20  ;;  %v12125_v48 = vpop.f32.mrf.mxu0  ;;  %v7300_v60 = vpop.xlane.xlu0 %7299 }
 0x163   :  { %v7397_v23 = vadd.f32 %v7300_v60, %v7297_v47  ;;  %v12127_v51 = vpop.f32.mrf.mxu1  ;;  %v7321_v47 = vpop.xlane.xlu1 %7320 }
 0x164   :  { %17765 = vst [vmem:[#allocation33_spill] sm:$0xff] %v12127_v51  ;;  %v12131_v59 = vpop.f32.mrf.mxu0 }
 0x165   :  { %v12133_v57 = vpop.f32.mrf.mxu1  ;;  %v7429_v42 = vmul.f32 0.5, %v7397_v23 }
 0x166   :  { %17766 = vst [vmem:[#allocation48_spill] sm:$0xff] %v12133_v57  ;;  %v12135_v12 = vpop.f32.mrf.mxu0  ;;  %v7306_v26 = vpop.xlane.xlu0 %7305 }
 0x167   :  { %v7398_v16 = vadd.f32 %v7306_v26, %v7303_v36  ;;  %v12137_v52 = vpop.f32.mrf.mxu1  ;;  %v7327_v7 = vpop.xlane.xlu1 %7326 }
 0x168   :  { %17767 = vst [vmem:[#allocation49_spill] sm:$0xff] %v12137_v52  ;;  %v12139_v30 = vpop.f32.mrf.mxu0 }
 0x169   :  { %v7430_v34 = vmul.f32 0.5, %v7398_v16  ;;  %v12141_v61 = vpop.f32.mrf.mxu1 }
 0x16a   :  { %17768 = vst [vmem:[#allocation50_spill] sm:$0xff] %v12141_v61  ;;  %v12143_v60 = vpop.f32.mrf.mxu0  ;;  %v12145_v28 = vpop.xlane.xlu0 %7311 }
 0x16b   :  { %17769 = vst [vmem:[#allocation51_spill] sm:$0xff] %v12143_v60  ;;  %v7452_v11 = vadd.f32 %v7430_v34, %v7429_v42  ;;  %v12147_v35 = vpop.f32.mrf.mxu1  ;;  %v12169_v32 = vpop.xlane.xlu1 %7332 }
 0x16c   :  { %17770 = vst [vmem:[#allocation52_spill] sm:$0xff] %v12147_v35  ;;  %v12149_v40 = vpop.f32.mrf.mxu0 }
 0x16d   :  { %17771 = vst [vmem:[#allocation53_spill] sm:$0xff] %v12149_v40  ;;  %v7468_v22 = vmul.f32 0.5, %v7452_v11  ;;  %v12151_v23 = vpop.f32.mrf.mxu1 }
 0x16e   :  { %17772 = vst [vmem:[#allocation54_spill] sm:$0xff] %v12151_v23  ;;  %v12153_v36 = vpop.f32.mrf.mxu0  ;;  %v12155_v26 = vpop.xlane.xlu0 %7317 }
 0x16f   :  { %17773 = vst [vmem:[#allocation55_spill] sm:$0xff] %v12153_v36  ;;  %v7484_v16 = vmul.f32 0.25, %v7468_v22  ;;  %v12157_v39 = vpop.f32.mrf.mxu1 }
 0x170   :  { %17774 = vst [vmem:[#allocation56_spill] sm:$0xff] %v12157_v39  ;;  %v12159_v24 = vpop.f32.mrf.mxu0 }
 0x171   :  { %17775 = vst [vmem:[#allocation57_spill] sm:$0xff] %v12159_v24  ;;  %v12161_v8 = vpop.f32.mrf.mxu1  ;;  %7538 = vperm.xlu1 %10501, %v7484_v16  }
 0x172   :  { %17776 = vst [vmem:[#allocation58_spill] sm:$0xff] %v12161_v8  ;;  %v12163_v34 = vpop.f32.mrf.mxu0  ;;  %v7324_v42 = vpop.xlane.xlu0 %7323 }
 0x173   :  { %17777 = vst [vmem:[#allocation59_spill] sm:$0xff] %v12163_v34  ;;  %v7401_v63 = vadd.f32 %v7324_v42, %v7321_v47  ;;  %v12165_v11 = vpop.f32.mrf.mxu1  ;;  %v7339_v42 = vpop.xlane.xlu1 %7338 }
 0x174   :  { %17778 = vst [vmem:[#allocation60_spill] sm:$0xff] %v12165_v11  ;;  %v12167_v53 = vpop.f32.mrf.mxu0 }
 0x175   :  { %17779 = vst [vmem:[#allocation61_spill] sm:$0xff] %v12167_v53  ;;  %v12171_v14 = vpop.f32.mrf.mxu1  ;;  %v7433_v45 = vmul.f32 0.5, %v7401_v63 }
 0x176   :  { %v12173_v22 = vpop.f32.mrf.mxu0  ;;  %v7330_v39 = vpop.xlane.xlu0 %7329 }
 0x177   :  { %17780 = vst [vmem:[#allocation62_spill] sm:$0xff] %v12173_v22  ;;  %v7402_v23 = vadd.f32 %v7330_v39, %v7327_v7  ;;  %v12175_v10 = vpop.f32.mrf.mxu1  ;;  %v12195_v51 = vpop.xlane.xlu1 %7344 }
 0x178   :  { %v12177_v16 = vpop.f32.mrf.mxu0 }
 0x179   :  { %17781 = vst [vmem:[#allocation63_spill] sm:$0xff] %v12177_v16  ;;  %v7434_v8 = vmul.f32 0.5, %v7402_v23  ;;  %v12179_v15 = vpop.f32.mrf.mxu1 }
 0x17a   :  { %v12181_v47 = vpop.f32.mrf.mxu0  ;;  %v7336_v61 = vpop.xlane.xlu0 %7335 }
 0x17b   :  { %17782 = vst [vmem:[#allocation64_spill] sm:$0xff] %v12181_v47  ;;  %v7454_v11 = vadd.f32 %v7434_v8, %v7433_v45  ;;  %v12183_v27 = vpop.f32.mrf.mxu1 }
 0x17c   :  { %v12185_v35 = vpop.f32.mrf.mxu0 }
 0x17d   :  { %17783 = vst [vmem:[#allocation65_spill] sm:$0xff] %v12185_v35  ;;  %v7470_v52 = vmul.f32 0.5, %v7454_v11  ;;  %v12187_v57 = vpop.f32.mrf.mxu1 }
 0x17e   :  { %v12189_v63 = vpop.f32.mrf.mxu0  ;;  %v7342_v8 = vpop.xlane.xlu0 %7341 }
 0x17f   :  { %17784 = vst [vmem:[#allocation66_spill] sm:$0xff] %v12189_v63  ;;  %v7486_v7 = vmul.f32 0.25, %v7470_v52  ;;  %v12191_v39 = vpop.f32.mrf.mxu1  ;;  %v7351_v52 = vpop.xlane.xlu1 %7350 }
 0x180   :  { %v12193_v23 = vpop.f32.mrf.mxu0 }
 0x181   :  { %17785 = vst [vmem:[#allocation67_spill] sm:$0xff] %v12193_v23  ;;  %7548 = vperm.xlu1 %10501, %v7486_v7   ;;  %v12197_v20 = vpop.f32.mrf.mxu1 }
 0x182   :  { %v12199_v45 = vpop.f32.mrf.mxu0  ;;  %v7348_v46 = vpop.xlane.xlu0 %7347 }
 0x183   :  { %17786 = vst [vmem:[#allocation68_spill] sm:$0xff] %v12199_v45  ;;  %v12201_v25 = vpop.f32.mrf.mxu1  ;;  %v12221_v35 = vpop.xlane.xlu1 %7356 }
 0x184   :  { %v12203_v11 = vpop.f32.mrf.mxu0  ;;  %17792 = vst [vmem:[#allocation74_spill] sm:$0xff] %v12221_v35  ;;  %v7396_v35 = vadd.f32 %v12117_v41, %v12061_v55 }
 0x185   :  { %17787 = vst [vmem:[#allocation69_spill] sm:$0xff] %v12203_v11  ;;  %v12205_v54 = vpop.f32.mrf.mxu1 }
 0x186   :  { %v12207_v4 = vpop.f32.mrf.mxu0  ;;  %v7428_v41 = vmul.f32 0.5, %v7396_v35  ;;  %v7404_v35 = vadd.f32 %v7342_v8, %v7339_v42 }
 0x187   :  { %17788 = vst [vmem:[#allocation70_spill] sm:$0xff] %v12207_v4  ;;  %v12209_v19 = vpop.f32.mrf.mxu1  ;;  %v7354_v4 = vpop.xlane.xlu0 %7353 }
 0x188   :  { %v12211_v49 = vpop.f32.mrf.mxu0 }
 0x189   :  { %17789 = vst [vmem:[#allocation71_spill] sm:$0xff] %v12211_v49  ;;  %v12213_v7 = vpop.f32.mrf.mxu1  ;;  %v7391_v49 = vadd.f32 %v12057_v17, %v12027_v56  ;;  %v12247_v56 = vpop.xlane.xlu1 %7362 }
 0x18a   :  { %v12215_v23 = vpop.f32.mrf.mxu0  ;;  %17796 = vst [vmem:[#allocation78_spill] sm:$0xff] %v12247_v56 }
 0x18b   :  { %17790 = vst [vmem:[#allocation72_spill] sm:$0xff] %v12215_v23  ;;  %v12217_v45 = vpop.f32.mrf.mxu1  ;;  %v7392_v23 = vadd.f32 %v12067_v21, %v12034_v9  ;;  %v7423_v21 = vmul.f32 0.5, %v7391_v49 }
 0x18c   :  { %v12219_v63 = vpop.f32.mrf.mxu0 }
 0x18d   :  { %17791 = vst [vmem:[#allocation73_spill] sm:$0xff] %v12219_v63  ;;  %v12223_v11 = vpop.f32.mrf.mxu1  ;;  %v7395_v63 = vadd.f32 %v12099_v43, %v12047_v1  ;;  %v12253_v1 = vpop.xlane.xlu0 %7359  ;;  %v7424_v55 = vmul.f32 0.5, %v7392_v23 }
 0x18e   :  { %v12225_v47 = vpop.f32.mrf.mxu0  ;;  %17798 = vst [vmem:[#allocation80_spill] sm:$0xff] %v12253_v1  ;;  %v12263_v56 = vpop.xlane.xlu1 %7368 }
 0x18f   :  { %17793 = vst [vmem:[#allocation75_spill] sm:$0xff] %v12225_v47  ;;  %v12227_v16 = vpop.f32.mrf.mxu1  ;;  %v7399_v47 = vadd.f32 %v12145_v28, %v12112_v44  ;;  %v7427_v43 = vmul.f32 0.5, %v7395_v63  ;;  %17801 = vst [vmem:[#allocation83_spill] sm:$0xff] %v12263_v56  ;;  %v7403_v63 = vadd.f32 %v7336_v61, %v12169_v32  ;;  %v7405_v32 = vadd.f32 %v7348_v46, %v12195_v51 }
 0x190   :  { %v12229_v22 = vpop.f32.mrf.mxu0  ;;  %v7406_v61 = vadd.f32 %v7354_v4, %v7351_v52  ;;  %v870_v46 = vadd.f32 %v12175_v10, %v12053_v62  ;;  %v881_v52 = vadd.f32 %v12179_v15, %v12055_v3  ;;  %v12315_v10 = vadd.f32 %v12191_v39, %v12074_v29  ;;  %v10579_v3 = vld [vmem:[%s17692_s29 + $0x8] sm:$0xff] }
 0x191   :  { %17794 = vst [vmem:[#allocation76_spill] sm:$0xff] %v12229_v22  ;;  %v12239_v53 = vpop.f32.mrf.mxu1  ;;  %v7400_v22 = vadd.f32 %v12155_v26, %v12129_v58  ;;  %v7431_v28 = vmul.f32 0.5, %v7399_v47  ;;  %v12270_v47 = vpop.xlane.xlu0 %7365  ;;  %v12323_v15 = vadd.f32 %v12201_v25, %v12081_v0  ;;  %v10582_v25 = vld [vmem:[%s17692_s29 + $0x18] sm:$0xff]  ;;  %v12355_v39 = vadd.f32 %v12209_v19, %v12093_v33 }
 0x192   :  { %v12245_v34 = vpop.f32.mrf.mxu0  ;;  %17802 = vst [vmem:[#allocation84_spill] sm:$0xff] %v12270_v47 }
 0x193   :  { %17795 = vst [vmem:[#allocation77_spill] sm:$0xff] %v12245_v34  ;;  %v12249_v17 = vpop.f32.mrf.mxu1  ;;  %v7432_v44 = vmul.f32 0.5, %v7400_v22  ;;  %v7449_v34 = vadd.f32 %v7424_v55, %v7423_v21  ;;  %v7435_v55 = vmul.f32 0.5, %v7403_v63 }
 0x194   :  { %v12251_v9 = vpop.f32.mrf.mxu0 }
 0x195   :  { %17797 = vst [vmem:[#allocation79_spill] sm:$0xff] %v12251_v9  ;;  %v12255_v24 = vpop.f32.mrf.mxu1  ;;  %v7451_v9 = vadd.f32 %v7428_v41, %v7427_v43  ;;  %v7453_v49 = vadd.f32 %v7432_v44, %v7431_v28  ;;  %v7436_v43 = vmul.f32 0.5, %v7404_v35  ;;  %v12280_v28 = vpop.xlane.xlu1 %7374  ;;  %v878_v35 = vadd.f32 %v12171_v14, %v12045_v31 }
 0x196   :  { %v12257_v36 = vpop.f32.mrf.mxu0  ;;  %17803 = vst [vmem:[#allocation85_spill] sm:$0xff] %v12280_v28  ;;  %v12287_v44 = vpop.xlane.xlu0 %7371  ;;  %v7438_v28 = vmul.f32 0.5, %v7406_v61  ;;  %v12319_v14 = vadd.f32 %v12197_v20, %v12076_v6  ;;  %v10581_v6 = vld [vmem:[%s17692_s29 + $0x10] sm:$0xff]  ;;  %v12364_v61 = vld [vmem:[%s17450_s3] ss:$0 sm:$0xff] }
 0x197   :  { %17799 = vst [vmem:[#allocation81_spill] sm:$0xff] %v12257_v36  ;;  %v12259_v58 = vpop.f32.mrf.mxu1  ;;  %v7465_v36 = vmul.f32 0.5, %v7449_v34  ;;  %v7469_v21 = vmul.f32 0.5, %v7453_v49  ;;  %17804 = vst [vmem:[#allocation86_spill] sm:$0xff] %v12287_v44  ;;  %v7455_v4 = vadd.f32 %v7436_v43, %v7435_v55  ;;  %v12359_v55 = vadd.f32 %v12213_v7, %v12097_v38 }
 0x198   :  { %v12261_v26 = vpop.f32.mrf.mxu0 }
 0x199   :  { %17800 = vst [vmem:[#allocation82_spill] sm:$0xff] %v12261_v26  ;;  %v12265_v40 = vpop.f32.mrf.mxu1  ;;  %v7467_v26 = vmul.f32 0.5, %v7451_v9  ;;  %v12289_v34 = vmul.f32 0.25, %v7465_v36  ;;  %v12295_v63 = vmul.f32 0.25, %v7469_v21  ;;  %v873_v36 = vadd.f32 %v12183_v27, %v12059_v2 }
 0x19a   :  { %v12268_v23 = vpop.f32.mrf.mxu0  ;;  %v12311_v21 = vadd.f32 %v12187_v57, %v12063_v37  ;;  %v10580_v37 = vld [vmem:[%s17692_s29] sm:$0xff]  ;;  %v12351_v57 = vadd.f32 %v12205_v54, %v12085_v50  ;;  %v7471_v43 = vmul.f32 0.5, %v7455_v4  ;;  %v12371_v50 = vld [vmem:[%s17451_s4 + $0x8] sm:$0xff]   ;;  %v12383_v4 = vadd.f32 %v12217_v45, %v12103_v5 }
 0x19b   :  { %v12272_v22 = vpop.f32.mrf.mxu1  ;;  %17805 = vst [vmem:[#allocation87_spill] sm:$0xff] %v12289_v34  ;;  %v12291_v9 = vmul.f32 0.25, %v7467_v26  ;;  %17807 = vst [vmem:[#allocation89_spill] sm:$0xff] %v12295_v63  ;;  %v7437_v26 = vmul.f32 0.5, %v7405_v32  ;;  %9848 = vmatprep.subr.bf16.mxu1 %v12371_v50 }
 0x19c   :  { %v12274_v1 = vpop.f32.mrf.mxu0 }
 0x19d   :  { %v12276_v60 = vpop.f32.mrf.mxu1  ;;  %17806 = vst [vmem:[#allocation88_spill] sm:$0xff] %v12291_v9  ;;  %v12373_v33 = vadd.f32 %v7438_v28, %v7437_v26 }
 0x19e   :  { %v12278_v41 = vpop.f32.mrf.mxu0 }
 0x19f   :  { %v12283_v42 = vpop.f32.mrf.mxu1 }
 0x1a0   :  { %v12285_v8 = vpop.f32.mrf.mxu0 }
 0x1a1   :  { %v12293_v49 = vpop.f32.mrf.mxu1 }
 0x1a2   :  { %v12301_v51 = vpop.f32.mrf.mxu0 }
 0x1a3   :  { %v12307_v44 = vpop.f32.mrf.mxu1 }
 0x1a4   :  { %v12325_v27 = vpop.f32.mrf.mxu0  ;;  %v7494_v31 = vpop.permute.xlu1 %7493 }
 0x1a5   :  { %17808 = vst [vmem:[#allocation90_spill] sm:$0xff] %v12325_v27  ;;  %v12327_v62 = vpop.f32.mrf.mxu1  ;;  %v12332_v2 = vsub.f32 %v10579_v3, %v7494_v31  ;;  %v12337_v29 = vsub.f32 %v10580_v37, %v7494_v31  ;;  %v12342_v0 = vsub.f32 %v10581_v6, %v7494_v31  ;;  %v12347_v20 = vsub.f32 %v10582_v25, %v7494_v31  ;;  %v12366_v31 = vpop.xlane.xlu0 %7377 }
 0x1a6   :  { %v9750_v32 = vpop.f32.mrf.mxu0  ;;  %17813 = vst [vmem:[#allocation95_spill] sm:$0xff] %v12366_v31  ;;  %v12387_v3 = vadd.f32 %v12223_v11, %v12114_v13  ;;  %v12401_v13 = vadd.f32 %v12227_v16, %v12121_v18  ;;  %v12403_v11 = vmul.f32 0.25, %v7471_v43  ;;  %v12419_v18 = vadd.f32 %v12259_v58, %v12139_v30 }
 0x1a7   :  { %17809 = vst [vmem:[#allocation91_spill] sm:$0xff] %v12332_v2  ;;  %17810 = vst [vmem:[#allocation92_spill] sm:$0xff] %v12337_v29  ;;  %v1428_v19 = vadd.f32 %v9750_v32, %v878_v35  ;;  %v12375_v54 = vpop.f32.mrf.mxu1  ;;  %v7636_v38 = vmul.f32 %v12332_v2, %v12332_v2  ;;  %v7635_v7 = vmul.f32 %v12337_v29, %v12337_v29 }
 0x1a8   :  { %17811 = vst [vmem:[#allocation93_spill] sm:$0xff] %v12342_v0  ;;  %17812 = vst [vmem:[#allocation94_spill] sm:$0xff] %v12347_v20  ;;  %v1171_v37 = vpop.f32.mrf.mxu0  ;;  %v7637_v28 = vmul.f32 %v12342_v0, %v12342_v0  ;;  %v7638_v35 = vmul.f32 %v12347_v20, %v12347_v20  ;;  %v12407_v32 = vadd.f32 %v12239_v53, %v12125_v48  ;;  %v17815_v48 = vld [vmem:[#allocation51_spill] sm:$0xff] }
 0x1a9   :  { %v1499_v26 = vadd.f32 %v12364_v61, %v1428_v19  ;;  %v1426_v6 = vadd.f32 %v1171_v37, %v870_v46  ;;  %v12395_v25 = vpop.f32.mrf.mxu1  ;;  %v7702_v5 = vsel %vm346_vm2, %v7636_v38, 0.0  ;;  %v7699_v45 = vsel %vm346_vm2, %v7635_v7, 0.0  ;;  %17814 = vst [vmem:[#allocation96_spill] sm:$0xff] %v12403_v11  ;;  %v17817_v37 = vld [vmem:[#allocation55_spill] sm:$0xff] }
 0x1aa   :  { %v12411_v19 = vadd.f32 %v12249_v17, %v12131_v59  ;;  %v9751_v46 = vpop.f32.mrf.mxu0  ;;  %7703 = vadd.xlane.f32.xlu0 %v7702_v5  ;;  %7700 = vadd.xlane.f32.xlu1 %v7699_v45  ;;  %v12415_v38 = vadd.f32 %v12255_v24, %v12135_v12  ;;  %v12426_v59 = vadd.f32 %v12265_v40, %v17815_v48  ;;  %v17816_v17 = vld [vmem:[#allocation53_spill] sm:$0xff]  ;;  %v7705_v45 = vsel %vm346_vm2, %v7637_v28, 0.0 }
 0x1ab   :  { %v1497_v16 = vadd.f32 %v12364_v61, %v1426_v6  ;;  %v1429_v43 = vadd.f32 %v9751_v46, %v881_v52  ;;  %v12422_v53 = vpop.f32.mrf.mxu1  ;;  %v12430_v7 = vadd.f32 %v12272_v22, %v17816_v17  ;;  %v12434_v24 = vadd.f32 %v12276_v60, %v17817_v37  ;;  %v17818_v46 = vld [vmem:[#allocation57_spill] sm:$0xff] }
 0x1ac   :  { %v1563_v12 = vmax.f32 %v1499_v26, 0.0  ;;  %v1174_v30 = vpop.f32.mrf.mxu0  ;;  %v7499_v58 = vpop.permute.xlu0 %7498  ;;  %v7708_v40 = vsel %vm346_vm2, %v7638_v35, 0.0  ;;  %v12443_v22 = vadd.f32 %v12283_v42, %v17818_v46  ;;  %v10583_v60 = vld [vmem:[%s17692_s29 + $0x28] sm:$0xff]  ;;  %v17821_v35 = vld [vmem:[#allocation59_spill] sm:$0xff] }
 0x1ad   :  { %v1500_v6 = vadd.f32 %v12364_v61, %v1429_v43  ;;  %v1427_v52 = vadd.f32 %v1174_v30, %v873_v36  ;;  %v12437_v5 = vpop.f32.mrf.mxu1  ;;  %v1561_v48 = vmax.f32 %v1497_v16, 0.0  ;;  %v12448_v26 = vsub.f32 %v10583_v60, %v7499_v58  ;;  %v10584_v36 = vld [vmem:[%s17692_s29 + $0x20] sm:$0xff] }
 0x1ae   :  { %v9754_v17 = vpop.f32.mrf.mxu0  ;;  %7706 = vadd.xlane.f32.xlu0 %v7705_v45  ;;  %7709 = vadd.xlane.f32.xlu1 %v7708_v40  ;;  %v12453_v28 = vsub.f32 %v10584_v36, %v7499_v58  ;;  %v12457_v42 = vadd.f32 %v12293_v49, %v17821_v35  ;;  %v17822_v45 = vld [vmem:[#allocation6_spill] sm:$0xff]  ;;  %v10585_v49 = vld [vmem:[%s17692_s29 + $0x38] sm:$0xff] }
 0x1af   :  { %17819 = vst [vmem:[#allocation51_spill] sm:$0xff] %v12448_v26  ;;  %v1564_v16 = vmax.f32 %v1500_v6, 0.0  ;;  %v1498_v43 = vadd.f32 %v12364_v61, %v1427_v52  ;;  %v1432_v37 = vadd.f32 %v9754_v17, %v12311_v21  ;;  %v12461_v30 = vpop.f32.mrf.mxu1  ;;  %v1627_v40 = vmul.f32 %v1563_v12, %v17822_v45 }
 0x1b0   :  { %17820 = vst [vmem:[#allocation53_spill] sm:$0xff] %v12453_v28  ;;  %v1187_v46 = vpop.f32.mrf.mxu0  ;;  %v7640_v60 = vmul.f32 %v12448_v26, %v12448_v26  ;;  %v7639_v36 = vmul.f32 %v12453_v28, %v12453_v28  ;;  %v12471_v6 = vsub.f32 %v10585_v49, %v7499_v58  ;;  %v1625_v26 = vmul.f32 %v1561_v48, %v17822_v45 }
 0x1b1   :  { %v1628_v52 = vmul.f32 %v1564_v16, %v17822_v45  ;;  %v1562_v21 = vmax.f32 %v1498_v43, 0.0  ;;  %v1503_v17 = vadd.f32 %v12364_v61, %v1432_v37  ;;  %v1430_v12 = vadd.f32 %v1187_v46, %v12315_v10  ;;  %v12476_v35 = vpop.f32.mrf.mxu1  ;;  %v17824_v46 = vld [vmem:[#allocation61_spill] sm:$0xff] }
 0x1b2   :  { %17823 = vst [vmem:[#allocation55_spill] sm:$0xff] %v12471_v6  ;;  %v9755_v2 = vpop.f32.mrf.mxu0  ;;  %v7714_v28 = vsel %vm346_vm2, %v7640_v60, 0.0  ;;  %v7711_v20 = vsel %vm346_vm2, %v7639_v36, 0.0  ;;  %v7642_v49 = vmul.f32 %v12471_v6, %v12471_v6  ;;  %v12484_v16 = vmul.f32 0.5, %v12373_v33  ;;  %v17825_v36 = vld [vmem:[#allocation62_spill] sm:$0xff] }
 0x1b3   :  { %v1690_v43 = vadd.f32 %v1628_v52, %v1627_v40  ;;  %v1626_v37 = vmul.f32 %v1562_v21, %v17822_v45  ;;  %v1501_v10 = vadd.f32 %v12364_v61, %v1430_v12  ;;  %7715 = vadd.xlane.f32.xlu1 %v7714_v28  ;;  %7712 = vadd.xlane.f32.xlu0 %v7711_v20  ;;  %v12488_v48 = vpop.f32.mrf.mxu1  ;;  %v10586_v40 = vld [vmem:[%s17692_s29 + $0x30] sm:$0xff]  ;;  %v1567_v12 = vmax.f32 %v1503_v17, 0.0 }
 0x1b4   :  { %v12492_v60 = vadd.f32 %v12307_v44, %v17824_v46  ;;  %v12496_v29 = vadd.f32 %v12327_v62, %v17825_v36  ;;  %v1433_v33 = vadd.f32 %v9755_v2, %v12319_v14  ;;  %v1190_v6 = vpop.f32.mrf.mxu0  ;;  %v12502_v52 = vsub.f32 %v10586_v40, %v7499_v58  ;;  %v17827_v20 = vld [vmem:[#allocation63_spill] sm:$0xff] }
 0x1b5   :  { %v12506_v28 = vadd.f32 %v12375_v54, %v17827_v20  ;;  %v12508_v21 = vmul.f32 0.5, %v1690_v43  ;;  %v1689_v44 = vadd.f32 %v1626_v37, %v1625_v26  ;;  %v12510_v46 = vpop.f32.mrf.mxu1  ;;  %v1431_v14 = vadd.f32 %v1190_v6, %v12323_v15 }
 0x1b6   :  { %17826 = vst [vmem:[#allocation57_spill] sm:$0xff] %v12502_v52  ;;  %v1504_v62 = vadd.f32 %v12364_v61, %v1433_v33  ;;  %v9758_v2 = vpop.f32.mrf.mxu0  ;;  %v7720_v36 = vsel %vm346_vm2, %v7642_v49, 0.0  ;;  %v7641_v58 = vmul.f32 %v12502_v52, %v12502_v52  ;;  %v1565_v26 = vmax.f32 %v1501_v10, 0.0  ;;  %v17830_v33 = vld [vmem:[#allocation64_spill] sm:$0xff]  ;;  %v17832_v52 = vld [vmem:[#allocation65_spill] sm:$0xff] }
 0x1b7   :  { %17828 = vst [vmem:[#allocation59_spill] sm:$0xff] %v12508_v21  ;;  %v12519_v54 = vmul.f32 %v12508_v21, %v17822_v45  ;;  %v12521_v43 = vmul.f32 0.5, %v1689_v44  ;;  %v1436_v17 = vadd.f32 %v9758_v2, %v12351_v57  ;;  %7721 = vadd.xlane.f32.xlu1 %v7720_v36  ;;  %v12524_v37 = vpop.f32.mrf.mxu1  ;;  %v12528_v15 = vadd.f32 %v12395_v25, %v17830_v33  ;;  %v12547_v33 = vpop.permute.xlu1 %7503 }
 0x1b8   :  { %v1568_v6 = vmax.f32 %v1504_v62, 0.0  ;;  %v1502_v49 = vadd.f32 %v12364_v61, %v1431_v14  ;;  %v7717_v40 = vsel %vm346_vm2, %v7641_v58, 0.0  ;;  %v1203_v20 = vpop.f32.mrf.mxu0  ;;  %v12536_v10 = vadd.f32 %v12422_v53, %v17832_v52  ;;  %v17835_v14 = vld [vmem:[#allocation7_spill] sm:$0xff] }
 0x1b9   :  { %17829 = vst [vmem:[#allocation61_spill] sm:$0xff] %v12521_v43  ;;  %17831 = vst [vmem:[#allocation62_spill] sm:$0xff] %v12528_v15  ;;  %v3046_v44 = vmul.f32 %v12519_v54, %v12508_v21  ;;  %v12540_v57 = vmul.f32 %v12521_v43, %v17822_v45  ;;  %v1507_v25 = vadd.f32 %v12364_v61, %v1436_v17  ;;  %7718 = vadd.xlane.f32.xlu0 %v7717_v40  ;;  %v12543_v62 = vpop.f32.mrf.mxu1  ;;  %v17836_v17 = vld [vmem:[#allocation66_spill] sm:$0xff] }
 0x1ba   :  { %17833 = vst [vmem:[#allocation63_spill] sm:$0xff] %v12536_v10  ;;  %v1631_v2 = vmul.f32 %v1567_v12, %v17835_v14  ;;  %v1632_v36 = vmul.f32 %v1568_v6, %v17835_v14  ;;  %v1566_v58 = vmax.f32 %v1502_v49, 0.0  ;;  %v1434_v0 = vadd.f32 %v1203_v20, %v12355_v39  ;;  %v9759_v53 = vpop.f32.mrf.mxu0 }
 0x1bb   :  { %17834 = vst [vmem:[#allocation64_spill] sm:$0xff] %v12540_v57  ;;  %v2976_v52 = vsel %vm1838_vm3, %v12540_v57, 0.0  ;;  %v3045_v31 = vmul.f32 %v12540_v57, %v12521_v43  ;;  %v12556_v40 = vadd.f32 %v12437_v5, %v17836_v17  ;;  %v1629_v12 = vmul.f32 %v1565_v26, %v17835_v14  ;;  %v12559_v56 = vpop.f32.mrf.mxu1  ;;  %v10587_v5 = vld [vmem:[%s17692_s29 + $0x48] sm:$0xff] }
 0x1bc   :  { %v1692_v6 = vadd.f32 %v1632_v36, %v1631_v2  ;;  %v1630_v49 = vmul.f32 %v1566_v58, %v17835_v14  ;;  %v1571_v47 = vmax.f32 %v1507_v25, 0.0  ;;  %v1505_v39 = vadd.f32 %v12364_v61, %v1434_v0  ;;  %v1206_v20 = vpop.f32.mrf.mxu0 }
 0x1bd   :  { %17837 = vst [vmem:[#allocation65_spill] sm:$0xff] %v12556_v40  ;;  %v2977_v45 = vsel %vm1838_vm3, %v12519_v54, 0.0  ;;  %v3078_v21 = vsel %vm1838_vm3, %v3046_v44, 0.0  ;;  %v1437_v43 = vadd.f32 %v9759_v53, %v12359_v55  ;;  %v12571_v26 = vsub.f32 %v10587_v5, %v12547_v33  ;;  %v12573_v2 = vpop.f32.mrf.mxu1  ;;  %v10588_v53 = vld [vmem:[%s17692_s29 + $0x40] sm:$0xff] }
 0x1be   :  { %v2978_v25 = vadd.f32 %v2977_v45, %v2976_v52  ;;  %v3077_v0 = vsel %vm1838_vm3, %v3045_v31, 0.0  ;;  %v12576_v36 = vmul.f32 0.5, %v1692_v6  ;;  %v1691_v58 = vadd.f32 %v1630_v49, %v1629_v12  ;;  %v9762_v17 = vpop.f32.mrf.mxu0  ;;  %v17842_v12 = vld [vmem:[#allocation8_spill] sm:$0xff] }
 0x1bf   :  { %17838 = vst [vmem:[#allocation66_spill] sm:$0xff] %v12571_v26  ;;  %v1569_v11 = vmax.f32 %v1505_v39, 0.0  ;;  %v1508_v44 = vadd.f32 %v12364_v61, %v1437_v43  ;;  %v7644_v55 = vmul.f32 %v12571_v26, %v12571_v26  ;;  %v12585_v5 = vsub.f32 %v10588_v53, %v12547_v33  ;;  %v12587_v45 = vpop.f32.mrf.mxu1 }
 0x1c0   :  { %17839 = vst [vmem:[#allocation97_spill] sm:$0xff] %v12576_v36  ;;  %v12591_v31 = vmul.f32 %v12576_v36, %v17835_v14  ;;  %v12593_v52 = vmul.f32 0.5, %v1691_v58  ;;  %v1635_v43 = vmul.f32 %v1571_v47, %v17842_v12  ;;  %v1435_v6 = vadd.f32 %v1206_v20, %v12383_v4  ;;  %v1219_v49 = vpop.f32.mrf.mxu0 }
 0x1c1   :  { %17840 = vst [vmem:[#allocation98_spill] sm:$0xff] %v12585_v5  ;;  %v1572_v39 = vmax.f32 %v1508_v44, 0.0  ;;  %v7726_v26 = vsel %vm346_vm2, %v7644_v55, 0.0  ;;  %v7643_v53 = vmul.f32 %v12585_v5, %v12585_v5  ;;  %v1805_v63 = vpack.c.bf16 %v12519_v54, %v12540_v57  ;;  %v12602_v9 = vpop.f32.mrf.mxu1 }
 0x1c2   :  { %17841 = vst [vmem:[#allocation99_spill] sm:$0xff] %v12593_v52  ;;  %v3079_v34 = vadd.f32 %v3078_v21, %v3077_v0  ;;  %v3048_v58 = vmul.f32 %v12591_v31, %v12576_v36  ;;  %v12608_v47 = vmul.f32 %v12593_v52, %v17835_v14  ;;  %7727 = vadd.xlane.f32.xlu1 %v7726_v26  ;;  %v9763_v20 = vpop.f32.mrf.mxu0  ;;  %v2981_v14 = vsel %vm1838_vm3, %v12591_v31, 0.0 }
 0x1c3   :  { %v1506_v4 = vadd.f32 %v12364_v61, %v1435_v6  ;;  %v1633_v44 = vmul.f32 %v1569_v11, %v17842_v12  ;;  %v1636_v55 = vmul.f32 %v1572_v39, %v17842_v12  ;;  %v7723_v5 = vsel %vm346_vm2, %v7643_v53, 0.0  ;;  %9816 = vmatprep.mubr.msk.bf16.mxu1 %vm1838_vm3, %v1805_v63  ;;  %v12616_v0 = vpop.f32.mrf.mxu1 }
 0x1c4   :  { %v1440_v21 = vadd.f32 %v9762_v17, %v12387_v3  ;;  %v2979_v26 = vsel %vm1838_vm3, %v12608_v47, 0.0  ;;  %v3047_v6 = vmul.f32 %v12608_v47, %v12593_v52  ;;  %7724 = vadd.xlane.f32.xlu0 %v7723_v5  ;;  %v1222_v39 = vpop.f32.mrf.mxu0  ;;  %v10589_v3 = vld [vmem:[%s17692_s29 + $0x58] sm:$0xff]  ;;  %v3082_v40 = vsel %vm1838_vm3, %v3048_v58, 0.0 }
 0x1c5   :  { %v1570_v11 = vmax.f32 %v1506_v4, 0.0  ;;  %v2980_v36 = vadd.f32 %v2979_v26, %v2978_v25  ;;  %v1694_v53 = vadd.f32 %v1636_v55, %v1635_v43  ;;  %v12629_v17 = vsub.f32 %v10589_v3, %v12547_v33  ;;  %v12631_v57 = vpop.f32.mrf.mxu1  ;;  %v10590_v25 = vld [vmem:[%s17692_s29 + $0x50] sm:$0xff] }
 0x1c6   :  { %v1511_v63 = vadd.f32 %v12364_v61, %v1440_v21  ;;  %v3080_v52 = vsel %vm1838_vm3, %v3047_v6, 0.0  ;;  %v12640_v43 = vsub.f32 %v10590_v25, %v12547_v33  ;;  %v12642_v4 = vpop.f32.mrf.mxu0  ;;  %v12648_v6 = vpop.permute.xlu1 %7508  ;;  %v1438_v33 = vadd.f32 %v1219_v49, %v12401_v13 }
 0x1c7   :  { %17843 = vst [vmem:[#allocation100_spill] sm:$0xff] %v12629_v17  ;;  %v1634_v5 = vmul.f32 %v1570_v11, %v17842_v12  ;;  %v3081_v55 = vadd.f32 %v3080_v52, %v3079_v34  ;;  %v12644_v21 = vmul.f32 0.5, %v1694_v53  ;;  %v2982_v26 = vadd.f32 %v2981_v14, %v2980_v36  ;;  %v12646_v10 = vpop.f32.mrf.mxu1  ;;  %v17846_v34 = vld [vmem:[#allocation67_spill] sm:$0xff]  ;;  %v17848_v14 = vld [vmem:[#allocation68_spill] sm:$0xff] }
 0x1c8   :  { %17844 = vst [vmem:[#allocation101_spill] sm:$0xff] %v12640_v43  ;;  %v1575_v3 = vmax.f32 %v1511_v63, 0.0  ;;  %v7646_v11 = vmul.f32 %v12629_v17, %v12629_v17  ;;  %v7645_v15 = vmul.f32 %v12640_v43, %v12640_v43  ;;  %v12655_v25 = vpop.f32.mrf.mxu0  ;;  %v12659_v52 = vadd.f32 %v12461_v30, %v17846_v34 }
 0x1c9   :  { %17845 = vst [vmem:[#allocation102_spill] sm:$0xff] %v12644_v21  ;;  %v1693_v58 = vadd.f32 %v1634_v5, %v1633_v44  ;;  %v12663_v36 = vadd.f32 %v12476_v35, %v17848_v14  ;;  %v12667_v44 = vmul.f32 %v12644_v21, %v17842_v12  ;;  %v3083_v53 = vadd.f32 %v3082_v40, %v3081_v55  ;;  %v12669_v63 = vpop.f32.mrf.mxu1  ;;  %v17852_v14 = vld [vmem:[#allocation69_spill] sm:$0xff] }
 0x1ca   :  { %17847 = vst [vmem:[#allocation67_spill] sm:$0xff] %v12659_v52  ;;  %v7732_v13 = vsel %vm346_vm2, %v7646_v11, 0.0  ;;  %v7729_v49 = vsel %vm346_vm2, %v7645_v15, 0.0  ;;  %v1509_v30 = vadd.f32 %v12364_v61, %v1438_v33  ;;  %v12676_v34 = vpop.f32.mrf.mxu0  ;;  %v12679_v35 = vmul.f32 0.25, %v12484_v16  ;;  %v10591_v55 = vld [vmem:[%s17692_s29 + $0x68] sm:$0xff] }
 0x1cb   :  { %17849 = vst [vmem:[#allocation68_spill] sm:$0xff] %v12663_v36  ;;  %v12671_v5 = vmul.f32 0.5, %v1693_v58  ;;  %v12683_v17 = vadd.f32 %v12488_v48, %v17852_v14  ;;  %7733 = vadd.xlane.f32.xlu1 %v7732_v13  ;;  %7730 = vadd.xlane.f32.xlu0 %v7729_v49  ;;  %v1441_v40 = vadd.f32 %v9763_v20, %v12407_v32  ;;  %v12692_v58 = vpop.f32.mrf.mxu1  ;;  %v2985_v16 = vsel %vm1838_vm3, %v12667_v44, 0.0  ;;  %v17855_v11 = vld [vmem:[#allocation14_spill] sm:$0xff]  ;;  %v10592_v32 = vld [vmem:[%s17692_s29 + $0x60] sm:$0xff] }
 0x1cc   :  { %17851 = vst [vmem:[#allocation104_spill] sm:$0xff] %v12679_v35  ;;  %v12690_v15 = vsub.f32 %v10591_v55, %v12648_v6  ;;  %v1639_v33 = vmul.f32 %v1575_v3, %v17855_v11  ;;  %v12705_v20 = vsub.f32 %v10592_v32, %v12648_v6  ;;  %v12707_v13 = vpop.f32.mrf.mxu0  ;;  %v3050_v49 = vmul.f32 %v12667_v44, %v12644_v21 }
 0x1cd   :  { %17850 = vst [vmem:[#allocation103_spill] sm:$0xff] %v12671_v5  ;;  %17853 = vst [vmem:[#allocation69_spill] sm:$0xff] %v12683_v17  ;;  %v12698_v48 = vmul.f32 %v12671_v5, %v17842_v12  ;;  %v1512_v14 = vadd.f32 %v12364_v61, %v1441_v40  ;;  %v1439_v43 = vadd.f32 %v1222_v39, %v12411_v19  ;;  %v12715_v3 = vpop.f32.mrf.mxu1  ;;  %v1573_v21 = vmax.f32 %v1509_v30, 0.0 }
 0x1ce   :  { %17854 = vst [vmem:[#allocation105_spill] sm:$0xff] %v12690_v15  ;;  %17856 = vst [vmem:[#allocation106_spill] sm:$0xff] %v12705_v20  ;;  %v7648_v55 = vmul.f32 %v12690_v15, %v12690_v15  ;;  %v12725_v17 = vpop.f32.mrf.mxu0  ;;  %v7647_v19 = vmul.f32 %v12705_v20, %v12705_v20  ;;  %v12738_v30 = vpack.c.bf16 %v12608_v47, %v12519_v54  ;;  %v10593_v54 = vld [vmem:[%s17692_s29 + $0x78] sm:$0xff] }
 0x1cf   :  { %v12719_v12 = vpack.c.bf16 %v12698_v48, %v12591_v31  ;;  %v2983_v32 = vsel %vm1838_vm3, %v12698_v48, 0.0  ;;  %v3049_v35 = vmul.f32 %v12698_v48, %v12671_v5  ;;  %v1576_v36 = vmax.f32 %v1512_v14, 0.0  ;;  %v12730_v39 = vpop.f32.mrf.mxu1 }
 0x1d0   :  { %v2984_v40 = vadd.f32 %v2983_v32, %v2982_v26  ;;  %v7738_v15 = vsel %vm346_vm2, %v7648_v55, 0.0  ;;  %v1510_v27 = vadd.f32 %v12364_v61, %v1439_v43  ;;  %v1806_v5 = vpack.c.bf16 %v12591_v31, %v12608_v47  ;;  %17858 = vst [vmem:[#allocation108_spill] sm:$0xff] %v12738_v30  ;;  %v12740_v26 = vpop.f32.mrf.mxu0  ;;  %9888 = vmatprep.mubr.msk.bf16.mxu0 %vm1838_vm3, %v12738_v30 }
 0x1d1   :  { %17857 = vst [vmem:[#allocation107_spill] sm:$0xff] %v12719_v12  ;;  %v3084_v52 = vsel %vm1838_vm3, %v3049_v35, 0.0  ;;  %7739 = vadd.xlane.f32.xlu1 %v7738_v15  ;;  %v1640_v55 = vmul.f32 %v1576_v36, %v17855_v11  ;;  %v7735_v32 = vsel %vm346_vm2, %v7647_v19, 0.0  ;;  %v3086_v35 = vsel %vm1838_vm3, %v3050_v49, 0.0  ;;  %v10507_v36 = vld [vmem:[%s17451_s4] sm:$0xff]   ;;  %v12772_v15 = vpop.f32.mrf.mxu1  ;;  %v12775_v49 = vpop.permute.xlu0 %7513  ;;  %9889 = vmatmul.mubr.msk.bf16.vlgmr.msra.gmra.mxu0 %vm1838_vm3, %v12719_v12 }
 0x1d2   :  { %v3085_v14 = vadd.f32 %v3084_v52, %v3083_v53  ;;  %v12744_v20 = vadd.f32 %v2985_v16, %v2984_v40  ;;  %7736 = vadd.xlane.f32.xlu0 %v7735_v32  ;;  %v1574_v43 = vmax.f32 %v1510_v27, 0.0  ;;  %9817 = vmatmul.mubr.msk.bf16.vlgmr.msra.gmra.mxu1 %vm1838_vm3, %v1806_v5  ;;  %v1444_v31 = vadd.f32 %v12642_v4, %v12415_v38  ;;  %v12756_v52 = vpop.f32.mrf.mxu0  ;;  %v10594_v38 = vld [vmem:[%s17692_s29 + $0x70] sm:$0xff] }
 0x1d3   :  { %v12754_v47 = vsub.f32 %v10593_v54, %v12648_v6  ;;  %v1637_v27 = vmul.f32 %v1573_v21, %v17855_v11  ;;  %v1696_v53 = vadd.f32 %v1640_v55, %v1639_v33  ;;  %v12770_v4 = vsub.f32 %v10594_v38, %v12648_v6  ;;  %v17861_v6 = vld [vmem:[#allocation70_spill] sm:$0xff]  ;;  %9849 = vmatpush3.bf16.msra.mxu1 %v12371_v50  ;;  %v17864_v38 = vld [vmem:[#allocation71_spill] sm:$0xff] }
 0x1d4   :  { %v12762_v5 = vadd.f32 %v3086_v35, %v3085_v14  ;;  %v1638_v16 = vmul.f32 %v1574_v43, %v17855_v11  ;;  %v1515_v21 = vadd.f32 %v12364_v61, %v1444_v31  ;;  %v1442_v40 = vadd.f32 %v12655_v25, %v12419_v18  ;;  %v12784_v19 = vpop.f32.mrf.mxu0  ;;  %9850 = vmatprep.subr.bf16.mxu1 %v10507_v36  ;;  %v10595_v50 = vld [vmem:[%s17692_s29 + $0x88] sm:$0xff] }
 0x1d5   :  { %17859 = vst [vmem:[#allocation109_spill] sm:$0xff] %v12754_v47  ;;  %17860 = vst [vmem:[#allocation110_spill] sm:$0xff] %v12770_v4  ;;  %v7650_v33 = vmul.f32 %v12754_v47, %v12754_v47  ;;  %v12788_v14 = vadd.f32 %v12510_v46, %v17861_v6  ;;  %v12790_v55 = vmul.f32 0.5, %v1696_v53  ;;  %v7649_v32 = vmul.f32 %v12770_v4, %v12770_v4  ;;  %v10596_v6 = vld [vmem:[%s17692_s29 + $0x80] sm:$0xff] }
 0x1d6   :  { %v1445_v35 = vadd.f32 %v12676_v34, %v12426_v59  ;;  %v1695_v18 = vadd.f32 %v1638_v16, %v1637_v27  ;;  %v1579_v25 = vmax.f32 %v1515_v21, 0.0  ;;  %v1513_v31 = vadd.f32 %v12364_v61, %v1442_v40  ;;  %v12799_v54 = vpop.f32.mrf.mxu0  ;;  %v12813_v27 = vpop.f32.mrf.mxu1  ;;  %v17865_v21 = vld [vmem:[#allocation72_spill] sm:$0xff] }
 0x1d7   :  { %17862 = vst [vmem:[#allocation70_spill] sm:$0xff] %v12790_v55  ;;  %v7744_v43 = vsel %vm346_vm2, %v7650_v33, 0.0  ;;  %v12803_v46 = vmul.f32 %v12790_v55, %v17855_v11  ;;  %v7741_v53 = vsel %vm346_vm2, %v7649_v32, 0.0  ;;  %v12811_v34 = vsub.f32 %v10595_v50, %v12775_v49  ;;  %v17869_v50 = vld [vmem:[#allocation75_spill] sm:$0xff]  ;;  %9851 = vmatpush3.bf16.msra.mxu1 %v10507_v36 }
 0x1d8   :  { %7745 = vadd.xlane.f32.xlu1 %v7744_v43  ;;  %v1516_v59 = vadd.f32 %v12364_v61, %v1445_v35  ;;  %v12817_v16 = vadd.f32 %v12524_v37, %v17864_v38  ;;  %v12821_v33 = vadd.f32 %v12543_v62, %v17865_v21  ;;  %v12823_v40 = vmul.f32 0.5, %v1695_v18  ;;  %7742 = vadd.xlane.f32.xlu0 %v7741_v53  ;;  %v12831_v35 = vpop.f32.mrf.mxu0  ;;  %v17868_v43 = vld [vmem:[#allocation73_spill] sm:$0xff] }
 0x1d9   :  { %17863 = vst [vmem:[#allocation111_spill] sm:$0xff] %v12811_v34  ;;  %v12829_v32 = vsub.f32 %v10596_v6, %v12775_v49  ;;  %v12835_v37 = vadd.f32 %v12559_v56, %v17868_v43  ;;  %v12839_v62 = vadd.f32 %v12573_v2, %v17869_v50  ;;  %v7652_v53 = vmul.f32 %v12811_v34, %v12811_v34  ;;  %v17870_v21 = vld [vmem:[#allocation9_spill] sm:$0xff]  ;;  %v12858_v34 = vpop.f32.mrf.mxu1 }
 0x1da   :  { %17866 = vst [vmem:[#allocation71_spill] sm:$0xff] %v12823_v40  ;;  %v1580_v18 = vmax.f32 %v1516_v59, 0.0  ;;  %v12845_v38 = vmul.f32 %v12823_v40, %v17855_v11  ;;  %v1643_v6 = vmul.f32 %v1579_v25, %v17870_v21  ;;  %v1577_v47 = vmax.f32 %v1513_v31, 0.0  ;;  %v12850_v43 = vpop.f32.mrf.mxu0 }
 0x1db   :  { %17867 = vst [vmem:[#allocation72_spill] sm:$0xff] %v12829_v32  ;;  %v7651_v56 = vmul.f32 %v12829_v32, %v12829_v32  ;;  %v3052_v2 = vmul.f32 %v12803_v46, %v12790_v55  ;;  %v7750_v50 = vsel %vm346_vm2, %v7652_v53, 0.0  ;;  %v1443_v36 = vadd.f32 %v12707_v13, %v12430_v7 }
 0x1dc   :  { %v1644_v59 = vmul.f32 %v1580_v18, %v17870_v21  ;;  %v2987_v25 = vsel %vm1838_vm3, %v12845_v38, 0.0  ;;  %v3051_v31 = vmul.f32 %v12845_v38, %v12823_v40  ;;  %7751 = vadd.xlane.f32.xlu1 %v7750_v50  ;;  %v1807_v4 = vpack.c.bf16 %v12667_v44, %v12698_v48  ;;  %v12867_v18 = vpop.f32.mrf.mxu0  ;;  %v10597_v48 = vld [vmem:[%s17692_s29 + $0x98] sm:$0xff] }
 0x1dd   :  { %v7747_v32 = vsel %vm346_vm2, %v7651_v56, 0.0  ;;  %v2989_v53 = vsel %vm1838_vm3, %v12803_v46, 0.0  ;;  %v2988_v7 = vadd.f32 %v2987_v25, %v12744_v20  ;;  %v1514_v11 = vadd.f32 %v12364_v61, %v1443_v36  ;;  %v10598_v20 = vld [vmem:[%s17692_s29 + $0x90] sm:$0xff]  ;;  %v12898_v25 = vpop.f32.mrf.mxu1 }
 0x1de   :  { %v1698_v13 = vadd.f32 %v1644_v59, %v1643_v6  ;;  %7748 = vadd.xlane.f32.xlu0 %v7747_v32  ;;  %v3088_v55 = vsel %vm1838_vm3, %v3051_v31, 0.0  ;;  %9820 = vmatprep.mubr.msk.bf16.mxu1 %vm1838_vm3, %v1807_v4  ;;  %v1448_v56 = vadd.f32 %v12725_v17, %v12434_v24  ;;  %v12881_v50 = vsub.f32 %v10597_v48, %v12775_v49  ;;  %v12889_v6 = vpop.f32.mrf.mxu0  ;;  %v17873_v4 = vld [vmem:[#allocation76_spill] sm:$0xff] }
 0x1df   :  { %v12887_v32 = vsub.f32 %v10598_v20, %v12775_v49  ;;  %v12893_v59 = vadd.f32 %v12587_v45, %v17873_v4  ;;  %v3089_v24 = vadd.f32 %v3088_v55, %v12762_v5  ;;  %v1578_v17 = vmax.f32 %v1514_v11, 0.0  ;;  %v12911_v11 = vpop.permute.xlu1 %7518 }
 0x1e0   :  { %17871 = vst [vmem:[#allocation73_spill] sm:$0xff] %v12881_v50  ;;  %v12896_v36 = vadd.f32 %v2989_v53, %v2988_v7  ;;  %v3090_v31 = vsel %vm1838_vm3, %v3052_v2, 0.0  ;;  %v1641_v48 = vmul.f32 %v1577_v47, %v17870_v21  ;;  %v7654_v49 = vmul.f32 %v12881_v50, %v12881_v50  ;;  %v12906_v40 = vpop.f32.mrf.mxu0  ;;  %v17874_v47 = vld [vmem:[#allocation77_spill] sm:$0xff]  ;;  %v17875_v7 = vld [vmem:[#allocation79_spill] sm:$0xff] }
 0x1e1   :  { %17872 = vst [vmem:[#allocation75_spill] sm:$0xff] %v12887_v32  ;;  %v7653_v20 = vmul.f32 %v12887_v32, %v12887_v32  ;;  %v1642_v45 = vmul.f32 %v1578_v17, %v17870_v21  ;;  %v12909_v5 = vadd.f32 %v3090_v31, %v3089_v24  ;;  %v1519_v55 = vadd.f32 %v12364_v61, %v1448_v56  ;;  %v17876_v31 = vld [vmem:[#allocation81_spill] sm:$0xff] }
 0x1e2   :  { %v1446_v2 = vadd.f32 %v12740_v26, %v12443_v22  ;;  %v12918_v53 = vadd.f32 %v12602_v9, %v17874_v47  ;;  %v12922_v4 = vadd.f32 %v12616_v0, %v17875_v7  ;;  %v7756_v50 = vsel %vm346_vm2, %v7654_v49, 0.0  ;;  %v12926_v17 = vpop.f32.mrf.mxu0  ;;  %v12935_v26 = vpop.f32.mrf.mxu1  ;;  %v17878_v0 = vld [vmem:[#allocation82_spill] sm:$0xff] }
 0x1e3   :  { %v7753_v24 = vsel %vm346_vm2, %v7653_v20, 0.0  ;;  %v12930_v56 = vadd.f32 %v12631_v57, %v17876_v31  ;;  %v12932_v32 = vmul.f32 0.5, %v1698_v13  ;;  %v1697_v22 = vadd.f32 %v1642_v45, %v1641_v48  ;;  %7757 = vadd.xlane.f32.xlu1 %v7756_v50  ;;  %v10599_v13 = vld [vmem:[%s17692_s29 + $0xa0] sm:$0xff] }
 0x1e4   :  { %7754 = vadd.xlane.f32.xlu0 %v7753_v24  ;;  %v1517_v9 = vadd.f32 %v12364_v61, %v1446_v2  ;;  %v12939_v49 = vadd.f32 %v12646_v10, %v17878_v0  ;;  %v12943_v20 = vadd.f32 %v12669_v63, %v12268_v23  ;;  %v1449_v57 = vadd.f32 %v12756_v52, %v12457_v42  ;;  %v12953_v48 = vpop.f32.mrf.mxu0  ;;  %v12981_v7 = vpop.f32.mrf.mxu1 }
 0x1e5   :  { %17877 = vst [vmem:[#allocation76_spill] sm:$0xff] %v12932_v32  ;;  %v12951_v50 = vsub.f32 %v10599_v13, %v12911_v11  ;;  %v12957_v10 = vadd.f32 %v12692_v58, %v12274_v1  ;;  %v12959_v45 = vmul.f32 0.5, %v1697_v22  ;;  %v1583_v23 = vmax.f32 %v1519_v55, 0.0 }
 0x1e6   :  { %v1447_v63 = vadd.f32 %v12784_v19, %v12492_v60  ;;  %v1520_v42 = vadd.f32 %v12364_v61, %v1449_v57  ;;  %v1808_v2 = vpack.c.bf16 %v12803_v46, %v12845_v38  ;;  %v12970_v47 = vpack.c.bf16 %v12845_v38, %v12667_v44  ;;  %v12972_v1 = vpop.f32.mrf.mxu0  ;;  %v10600_v38 = vld [vmem:[%s17692_s29 + $0xa8] sm:$0xff] }
 0x1e7   :  { %17879 = vst [vmem:[#allocation77_spill] sm:$0xff] %v12951_v50  ;;  %17880 = vst [vmem:[#allocation79_spill] sm:$0xff] %v12959_v45  ;;  %v7655_v52 = vmul.f32 %v12951_v50, %v12951_v50  ;;  %v12976_v58 = vmul.f32 %v12932_v32, %v17870_v21  ;;  %v1761_v60 = vmul.f32 %v12959_v45, %v17870_v21  ;;  %v1581_v19 = vmax.f32 %v1517_v9, 0.0  ;;  %v17886_v21 = vld [vmem:[#allocation25_spill] sm:$0xff] }
 0x1e8   :  { %17881 = vst [vmem:[#allocation81_spill] sm:$0xff] %v12970_v47  ;;  %v1518_v55 = vadd.f32 %v12364_v61, %v1447_v63  ;;  %v1584_v24 = vmax.f32 %v1520_v42, 0.0  ;;  %9821 = vmatmul.mubr.msk.bf16.gmra.mxu1 %vm1838_vm3, %v1808_v2  ;;  %9892 = vmatprep.mubr.msk.bf16.mxu0 %vm1838_vm3, %v12970_v47  ;;  %v1452_v44 = vadd.f32 %v12799_v54, %v12496_v29  ;;  %v12995_v9 = vpop.f32.mrf.mxu0  ;;  %v17883_v63 = vld [vmem:[#allocation22_spill] sm:$0xff]  ;;  %v13021_v2 = vpop.f32.mrf.mxu1 }
 0x1e9   :  { %v7759_v31 = vsel %vm346_vm2, %v7655_v52, 0.0  ;;  %v12993_v22 = vsub.f32 %v10600_v38, %v12911_v11  ;;  %v12999_v0 = vadd.f32 %v12715_v3, %v12278_v41  ;;  %v13003_v57 = vadd.f32 %v12730_v39, %v12285_v8 }
 0x1ea   :  { %v13007_v29 = vadd.f32 %v12772_v15, %v12301_v51  ;;  %7760 = vadd.xlane.f32.xlu1 %v7759_v31  ;;  %v1582_v54 = vmax.f32 %v1518_v55, 0.0  ;;  %v3053_v13 = vmul.f32 %v1761_v60, %v12959_v45  ;;  %v1647_v42 = vmul.f32 %v1583_v23, %v17883_v63  ;;  %v13014_v3 = vpop.f32.mrf.mxu0  ;;  %v17884_v31 = vld [vmem:[#allocation90_spill] sm:$0xff] }
 0x1eb   :  { %17882 = vst [vmem:[#allocation82_spill] sm:$0xff] %v12993_v22  ;;  %v1648_v52 = vmul.f32 %v1584_v24, %v17883_v63  ;;  %v7656_v41 = vmul.f32 %v12993_v22, %v12993_v22  ;;  %v1645_v8 = vmul.f32 %v1581_v19, %v17883_v63  ;;  %v1523_v51 = vadd.f32 %v12364_v61, %v1452_v44 }
 0x1ec   :  { %v1646_v39 = vmul.f32 %v1582_v54, %v17883_v63  ;;  %v1450_v15 = vadd.f32 %v12831_v35, %v12506_v28  ;;  %v2993_v23 = vsel %vm1838_vm3, %v12976_v58, 0.0  ;;  %v3054_v55 = vmul.f32 %v12976_v58, %v12932_v32  ;;  %v13031_v19 = vpop.f32.mrf.mxu0  ;;  %v17885_v35 = vld [vmem:[#allocation62_spill] sm:$0xff] }
 0x1ed   :  { %v1700_v24 = vadd.f32 %v1648_v52, %v1647_v42  ;;  %v13029_v38 = vadd.f32 %v12813_v27, %v17884_v31  ;;  %v2991_v44 = vsel %vm1838_vm3, %v1761_v60, 0.0  ;;  %v7762_v28 = vsel %vm346_vm2, %v7656_v41, 0.0  ;;  %v10601_v42 = vld [vmem:[%s17692_s29 + $0xb0] sm:$0xff] }
 0x1ee   :  { %v1699_v54 = vadd.f32 %v1646_v39, %v1645_v8  ;;  %v1453_v50 = vadd.f32 %v12850_v43, %v17885_v35  ;;  %v3092_v22 = vsel %vm1838_vm3, %v3053_v13, 0.0  ;;  %v13040_v32 = vadd.f32 %v12858_v34, %v17886_v21  ;;  %7763 = vadd.xlane.f32.xlu1 %v7762_v28  ;;  %v13049_v41 = vpop.f32.mrf.mxu0  ;;  %v13056_v21 = vpop.f32.mrf.mxu1  ;;  %v17890_v31 = vld [vmem:[#allocation63_spill] sm:$0xff] }
 0x1ef   :  { %v1521_v27 = vadd.f32 %v12364_v61, %v1450_v15  ;;  %v13047_v52 = vsub.f32 %v10601_v42, %v12911_v11  ;;  %v13051_v8 = vmul.f32 0.5, %v1700_v24  ;;  %v1587_v13 = vmax.f32 %v1523_v51, 0.0 }
 0x1f0   :  { %v13053_v43 = vmul.f32 0.5, %v1699_v54  ;;  %v1524_v34 = vadd.f32 %v12364_v61, %v1453_v50  ;;  %v2992_v39 = vadd.f32 %v2991_v44, %v12896_v36  ;;  %v1451_v28 = vadd.f32 %v12867_v18, %v17890_v31  ;;  %v13064_v42 = vpop.f32.mrf.mxu0  ;;  %v17892_v36 = vld [vmem:[#allocation15_spill] sm:$0xff] }
 0x1f1   :  { %17887 = vst [vmem:[#allocation90_spill] sm:$0xff] %v13047_v52  ;;  %17888 = vst [vmem:[#allocation62_spill] sm:$0xff] %v13051_v8  ;;  %v7657_v15 = vmul.f32 %v13047_v52, %v13047_v52  ;;  %v1809_v35 = vpack.c.bf16 %v12976_v58, %v1761_v60  ;;  %v3093_v24 = vadd.f32 %v3092_v22, %v12909_v5  ;;  %v1585_v52 = vmax.f32 %v1521_v27, 0.0  ;;  %v13092_v27 = vpop.f32.mrf.mxu1 }
 0x1f2   :  { %17889 = vst [vmem:[#allocation25_spill] sm:$0xff] %v13053_v43  ;;  %v13069_v51 = vmul.f32 %v13053_v43, %v17883_v63  ;;  %v1588_v50 = vmax.f32 %v1524_v34, 0.0  ;;  %v13072_v54 = vpack.c.bf16 %v1761_v60, %v12803_v46  ;;  %v13076_v44 = vadd.f32 %v12898_v25, %v17892_v36  ;;  %v13081_v5 = vpop.f32.mrf.mxu0  ;;  %v17893_v46 = vld [vmem:[#allocation10_spill] sm:$0xff]  ;;  %v17895_v36 = vld [vmem:[#allocation65_spill] sm:$0xff] }
 0x1f3   :  { %v7765_v18 = vsel %vm346_vm2, %v7657_v15, 0.0  ;;  %v1522_v31 = vadd.f32 %v12364_v61, %v1451_v28  ;;  %9824 = vmatprep.mubr.msk.bf16.mxu1 %vm1838_vm3, %v1809_v35  ;;  %v3094_v22 = vsel %vm1838_vm3, %v3054_v55, 0.0  ;;  %v13086_v34 = vmul.f32 %v13051_v8, %v17883_v63  ;;  %v17894_v28 = vld [vmem:[#allocation17_spill] sm:$0xff] }
 0x1f4   :  { %17891 = vst [vmem:[#allocation63_spill] sm:$0xff] %v13072_v54  ;;  %v1651_v60 = vmul.f32 %v1587_v13, %v17893_v46  ;;  %v1652_v25 = vmul.f32 %v1588_v50, %v17893_v46  ;;  %7766 = vadd.xlane.f32.xlu1 %v7765_v18  ;;  %9893 = vmatmul.mubr.msk.bf16.gmra.mxu0 %vm1838_vm3, %v13072_v54  ;;  %v13100_v45 = vpop.f32.mrf.mxu0  ;;  %v10602_v54 = vld [vmem:[%s17692_s29 + $0xb8] sm:$0xff] }
 0x1f5   :  { %v2994_v15 = vadd.f32 %v2993_v23, %v2992_v39  ;;  %v13096_v35 = vadd.f32 %v12935_v26, %v17894_v28  ;;  %v1586_v55 = vmax.f32 %v1522_v31, 0.0  ;;  %v1456_v63 = vadd.f32 %v12889_v6, %v17895_v36  ;;  %v17897_v39 = vld [vmem:[#allocation28_spill] sm:$0xff] }
 0x1f6   :  { %v3055_v13 = vmul.f32 %v13069_v51, %v13053_v43  ;;  %v3095_v50 = vadd.f32 %v3094_v22, %v3093_v24  ;;  %v1702_v18 = vadd.f32 %v1652_v25, %v1651_v60  ;;  %v13108_v23 = vsub.f32 %v10602_v54, %v12911_v11  ;;  %v13117_v36 = vpop.f32.mrf.mxu0  ;;  %v17899_v54 = vld [vmem:[#allocation67_spill] sm:$0xff]  ;;  %v1080_v60 = vpop.f32.mrf.mxu1 }
 0x1f7   :  { %v1649_v26 = vmul.f32 %v1585_v52, %v17893_v46  ;;  %v13113_v31 = vadd.f32 %v12981_v7, %v17897_v39  ;;  %v1650_v6 = vmul.f32 %v1586_v55, %v17893_v46  ;;  %v1527_v28 = vadd.f32 %v12364_v61, %v1456_v63  ;;  %v17900_v55 = vld [vmem:[#allocation68_spill] sm:$0xff] }
 0x1f8   :  { %17896 = vst [vmem:[#allocation15_spill] sm:$0xff] %v13108_v23  ;;  %v2997_v24 = vsel %vm1838_vm3, %v13086_v34, 0.0  ;;  %v13121_v22 = vmul.f32 0.5, %v1702_v18  ;;  %v7658_v11 = vmul.f32 %v13108_v23, %v13108_v23  ;;  %v1454_v52 = vadd.f32 %v12906_v40, %v17899_v54  ;;  %v13133_v43 = vpop.f32.mrf.mxu0  ;;  %v17901_v54 = vld [vmem:[#allocation87_spill] sm:$0xff]  ;;  %v9740_v30 = vpop.f32.mrf.mxu1 }
 0x1f9   :  { %v3056_v7 = vmul.f32 %v13086_v34, %v13051_v8  ;;  %v2995_v63 = vsel %vm1838_vm3, %v13069_v51, 0.0  ;;  %v1701_v25 = vadd.f32 %v1650_v6, %v1649_v26  ;;  %v1457_v39 = vadd.f32 %v12926_v17, %v17900_v55  ;;  %v17903_v26 = vld [vmem:[#allocation69_spill] sm:$0xff] }
 0x1fa   :  { %17898 = vst [vmem:[#allocation17_spill] sm:$0xff] %v13121_v22  ;;  %v3096_v18 = vsel %vm1838_vm3, %v3055_v13, 0.0  ;;  %v1591_v47 = vmax.f32 %v1527_v28, 0.0  ;;  %v7768_v23 = vsel %vm346_vm2, %v7658_v11, 0.0  ;;  %v1525_v40 = vadd.f32 %v12364_v61, %v1454_v52  ;;  %7523 = vperm.xlu0 %10500, %v17901_v54   ;;  %v13148_v13 = vpop.f32.mrf.mxu0  ;;  %v17904_v11 = vld [vmem:[#allocation29_spill] sm:$0xff] }
 0x1fb   :  { %v13141_v8 = vmul.f32 %v13121_v22, %v17893_v46  ;;  %v13143_v12 = vmul.f32 0.5, %v1701_v25  ;;  %7769 = vadd.xlane.f32.xlu1 %v7768_v23  ;;  %v1528_v17 = vadd.f32 %v12364_v61, %v1457_v39  ;;  %v1455_v6 = vadd.f32 %v12953_v48, %v17903_v26 }
 0x1fc   :  { %v2996_v28 = vadd.f32 %v2995_v63, %v2994_v15  ;;  %v13152_v52 = vadd.f32 %v13021_v2, %v17904_v11  ;;  %v1589_v55 = vmax.f32 %v1525_v40, 0.0  ;;  %v1810_v54 = vpack.c.bf16 %v13086_v34, %v13069_v51  ;;  %v13163_v15 = vpop.f32.mrf.mxu0  ;;  %v17906_v40 = vld [vmem:[#allocation30_spill] sm:$0xff]  ;;  %v17907_v11 = vld [vmem:[#allocation88_spill] sm:$0xff] }
 0x1fd   :  { %17902 = vst [vmem:[#allocation65_spill] sm:$0xff] %v13143_v12  ;;  %v1765_v23 = vmul.f32 %v13143_v12, %v17893_v46  ;;  %v1592_v25 = vmax.f32 %v1528_v17, 0.0  ;;  %v1526_v39 = vadd.f32 %v12364_v61, %v1455_v6  ;;  %v13161_v48 = vpack.c.bf16 %v13069_v51, %v12976_v58  ;;  %v17908_v51 = vld [vmem:[#allocation27_spill] sm:$0xff] }
 0x1fe   :  { %v3098_v2 = vsel %vm1838_vm3, %v3056_v7, 0.0  ;;  %v3097_v63 = vadd.f32 %v3096_v18, %v3095_v50  ;;  %v13168_v26 = vadd.f32 %v13056_v21, %v17906_v40  ;;  %9825 = vmatmul.mubr.msk.bf16.gmra.mxu1 %vm1838_vm3, %v1810_v54  ;;  %v1460_v17 = vadd.f32 %v12972_v1, %v12788_v14  ;;  %7533 = vperm.xlu0 %10500, %v17907_v11   ;;  %v13180_v21 = vpop.f32.mrf.mxu0  ;;  %v1093_v1 = vpop.f32.mrf.mxu1 }
 0x1ff   :  { %17905 = vst [vmem:[#allocation28_spill] sm:$0xff] %v13161_v48  ;;  %v3058_v58 = vmul.f32 %v13141_v8, %v13121_v22  ;;  %v1655_v6 = vmul.f32 %v1591_v47, %v17908_v51  ;;  %v1656_v46 = vmul.f32 %v1592_v25, %v17908_v51  ;;  %v1590_v7 = vmax.f32 %v1526_v39, 0.0  ;;  %9896 = vmatprep.mubr.msk.bf16.mxu0 %vm1838_vm3, %v13161_v48  ;;  %v17909_v47 = vld [vmem:[#allocation31_spill] sm:$0xff] }
 0x200   :  { %v2998_v50 = vadd.f32 %v2997_v24, %v2996_v28  ;;  %v3057_v18 = vmul.f32 %v1765_v23, %v13143_v12  ;;  %v1531_v14 = vadd.f32 %v12364_v61, %v1460_v17  ;;  %v1458_v54 = vadd.f32 %v12995_v9, %v12817_v16  ;;  %v13192_v22 = vpop.f32.mrf.mxu0  ;;  %v17910_v17 = vld [vmem:[#allocation33_spill] sm:$0xff] }
 0x201   :  { %v1653_v40 = vmul.f32 %v1589_v55, %v17908_v51  ;;  %v13189_v25 = vadd.f32 %v13092_v27, %v17909_v47  ;;  %v1704_v39 = vadd.f32 %v1656_v46, %v1655_v6  ;;  %v1654_v11 = vmul.f32 %v1590_v7, %v17908_v51  ;;  %v17911_v9 = vld [vmem:[#allocation89_spill] sm:$0xff] }
 0x202   :  { %v3001_v24 = vsel %vm1838_vm3, %v13141_v8, 0.0  ;;  %v3099_v28 = vadd.f32 %v3098_v2, %v3097_v63  ;;  %v13197_v12 = vadd.f32 %v1080_v60, %v17910_v17  ;;  %v1529_v16 = vadd.f32 %v12364_v61, %v1458_v54  ;;  %7543 = vperm.xlu0 %10500, %v17911_v9   ;;  %v13205_v7 = vpop.f32.mrf.mxu0  ;;  %v17912_v2 = vld [vmem:[#allocation48_spill] sm:$0xff]  ;;  %v9741_v17 = vpop.f32.mrf.mxu1 }
 0x203   :  { %v3102_v55 = vsel %vm1838_vm3, %v3058_v58, 0.0  ;;  %v2999_v27 = vsel %vm1838_vm3, %v1765_v23, 0.0  ;;  %v1703_v46 = vadd.f32 %v1654_v11, %v1653_v40  ;;  %v1461_v6 = vadd.f32 %v13014_v3, %v12821_v33 }
 0x204   :  { %v3100_v47 = vsel %vm1838_vm3, %v3057_v18, 0.0  ;;  %v13209_v63 = vadd.f32 %v9740_v30, %v17912_v2  ;;  %v1595_v60 = vmax.f32 %v1531_v14, 0.0  ;;  %v1459_v54 = vadd.f32 %v13031_v19, %v12835_v37  ;;  %v13219_v3 = vpop.f32.mrf.mxu0  ;;  %v17915_v2 = vld [vmem:[#allocation96_spill] sm:$0xff]  ;;  %v17916_v19 = vld [vmem:[#allocation49_spill] sm:$0xff] }
 0x205   :  { %v13213_v9 = vmul.f32 0.5, %v1704_v39  ;;  %v13215_v58 = vmul.f32 0.5, %v1703_v46  ;;  %v1532_v40 = vadd.f32 %v12364_v61, %v1461_v6  ;;  %v1811_v33 = vpack.c.bf16 %v13141_v8, %v1765_v23  ;;  %v17917_v46 = vld [vmem:[#allocation50_spill] sm:$0xff] }
 0x206   :  { %v3000_v11 = vadd.f32 %v2999_v27, %v2998_v50  ;;  %v1593_v18 = vmax.f32 %v1529_v16, 0.0  ;;  %v1530_v30 = vadd.f32 %v12364_v61, %v1459_v54  ;;  %v13223_v14 = vpack.c.bf16 %v1765_v23, %v13086_v34  ;;  %7553 = vperm.xlu0 %10500, %v17915_v2   ;;  %v13235_v50 = vpop.f32.mrf.mxu0 }
 0x207   :  { %17913 = vst [vmem:[#allocation67_spill] sm:$0xff] %v13215_v58  ;;  %v1767_v37 = vmul.f32 %v13215_v58, %v17908_v51  ;;  %v13229_v39 = vadd.f32 %v1093_v1, %v17916_v19  ;;  %v13232_v6 = vadd.f32 %v9741_v17, %v17917_v46  ;;  %v1596_v48 = vmax.f32 %v1532_v40, 0.0  ;;  %9828 = vmatprep.mubr.msk.bf16.mxu1 %vm1838_vm3, %v1811_v33  ;;  %v17919_v17 = vld [vmem:[#allocation32_spill] sm:$0xff] }
 0x208   :  { %17914 = vst [vmem:[#allocation68_spill] sm:$0xff] %v13223_v14  ;;  %v3101_v61 = vadd.f32 %v3100_v47, %v3099_v28  ;;  %v1594_v16 = vmax.f32 %v1530_v30, 0.0  ;;  %9897 = vmatmul.mubr.msk.bf16.gmra.mxu0 %vm1838_vm3, %v13223_v14  ;;  %v1464_v34 = vadd.f32 %v13049_v41, %v12839_v62  ;;  %v1462_v23 = vadd.f32 %v13064_v42, %v12893_v59  ;;  %v1096_v28 = vpop.f32.mrf.mxu1  ;;  %v13248_v47 = vpop.f32.mrf.mxu0  ;;  %v13256_v59 = vld [vmem:[%s17450_s3] ss:$0 sm:$0xff] }
 0x209   :  { %17918 = vst [vmem:[#allocation87_spill] sm:$0xff] %v13232_v6  ;;  %v1768_v1 = vmul.f32 %v13213_v9, %v17908_v51  ;;  %v3059_v27 = vmul.f32 %v1767_v37, %v13215_v58  ;;  %v1659_v54 = vmul.f32 %v1595_v60, %v17919_v17  ;;  %v1660_v40 = vmul.f32 %v1596_v48, %v17919_v17  ;;  %v17920_v42 = vld [vmem:[#allocation104_spill] sm:$0xff] }
 0x20a   :  { %v3003_v33 = vsel %vm1838_vm3, %v1767_v37, 0.0  ;;  %v1657_v30 = vmul.f32 %v1593_v18, %v17919_v17  ;;  %v1658_v62 = vmul.f32 %v1594_v16, %v17919_v17  ;;  %v1535_v41 = vadd.f32 %v13256_v59, %v1464_v34  ;;  %7558 = vperm.xlu0 %10500, %v17920_v42   ;;  %v13264_v18 = vpop.f32.mrf.mxu0  ;;  %v17921_v51 = vld [vmem:[#allocation52_spill] sm:$0xff] }
 0x20b   :  { %v3104_v48 = vsel %vm1838_vm3, %v3059_v27, 0.0  ;;  %v1706_v60 = vadd.f32 %v1660_v40, %v1659_v54  ;;  %v1533_v2 = vadd.f32 %v13256_v59, %v1462_v23  ;;  %v1465_v19 = vadd.f32 %v13081_v5, %v12918_v53  ;;  %v10508_v53 = vld [vmem:[%s17455_s8 + $0x8] sm:$0xff]  }
 0x20c   :  { %v3002_v46 = vadd.f32 %v3001_v24, %v3000_v11  ;;  %v3103_v16 = vadd.f32 %v3102_v55, %v3101_v61  ;;  %v13267_v58 = vadd.f32 %v1096_v28, %v17921_v51  ;;  %v1705_v14 = vadd.f32 %v1658_v62, %v1657_v30  ;;  %v13273_v54 = vpop.f32.mrf.mxu0  ;;  %9956 = vmatprep.subr.bf16.mxu0 %v10508_v53  ;;  %v17922_v62 = vld [vmem:[#allocation34_spill] sm:$0xff] }
 0x20d   :  { %v3060_v34 = vmul.f32 %v1768_v1, %v13213_v9  ;;  %v13270_v6 = vmul.f32 0.5, %v1706_v60  ;;  %v1599_v42 = vmax.f32 %v1535_v41, 0.0  ;;  %v1536_v27 = vadd.f32 %v13256_v59, %v1465_v19  ;;  %9957 = vmatpush3.bf16.msra.mxu0 %v10508_v53 }
 0x20e   :  { %v3004_v5 = vadd.f32 %v3003_v33, %v3002_v46  ;;  %v3105_v24 = vadd.f32 %v3104_v48, %v3103_v16  ;;  %v13278_v55 = vmul.f32 0.5, %v1705_v14  ;;  %v1463_v51 = vadd.f32 %v13100_v45, %v12922_v4  ;;  %v13296_v45 = vpop.f32.mrf.mxu0 }
 0x20f   :  { %v13284_v11 = vmul.f32 %v13270_v6, %v17919_v17  ;;  %v1597_v61 = vmax.f32 %v1533_v2, 0.0  ;;  %v1600_v23 = vmax.f32 %v1536_v27, 0.0  ;;  %v1812_v40 = vpack.c.bf16 %v1768_v1, %v1767_v37 }
 0x210   :  { %v13288_v28 = vmul.f32 %v13278_v55, %v17919_v17  ;;  %v1534_v33 = vadd.f32 %v13256_v59, %v1463_v51  ;;  %v13292_v14 = vpack.c.bf16 %v1767_v37, %v13141_v8  ;;  %v1468_v4 = vadd.f32 %v13117_v36, %v12930_v56  ;;  %v13318_v51 = vpop.f32.mrf.mxu0 }
 0x211   :  { %v3005_v30 = vsel %vm1838_vm3, %v1768_v1, 0.0  ;;  %v1663_v41 = vmul.f32 %v1599_v42, %v17922_v62  ;;  %v1664_v48 = vmul.f32 %v1600_v23, %v17922_v62  ;;  %9829 = vmatmul.mubr.msk.bf16.gmra.mxu1 %vm1838_vm3, %v1812_v40  ;;  %v17923_v60 = vmov 0.0  }
 0x212   :  { %v2269_v2 = vpack.c.bf16 %v17923_v60, %v1768_v1  ;;  %v3106_v19 = vsel %vm1838_vm3, %v3060_v34, 0.0  ;;  %v3061_v8 = vmul.f32 %v13288_v28, %v13278_v55  ;;  %v1598_v37 = vmax.f32 %v1534_v33, 0.0  ;;  %9900 = vmatprep.mubr.msk.bf16.mxu0 %vm1838_vm3, %v13292_v14 }
 0x213   :  { %v1539_v56 = vadd.f32 %v13256_v59, %v1468_v4  ;;  %v3062_v36 = vmul.f32 %v13284_v11, %v13270_v6  ;;  %v3006_v46 = vadd.f32 %v3005_v30, %v3004_v5  ;;  %v1708_v16 = vadd.f32 %v1664_v48, %v1663_v41 }
 0x214   :  { %9901 = vmatmul.mubr.msk.bf16.gmra.mxu0 %vm1838_vm3, %v2269_v2  ;;  %v1466_v1 = vadd.f32 %v13133_v43, %v12939_v49  ;;  %v3107_v34 = vadd.f32 %v3106_v19, %v3105_v24  ;;  %v1661_v42 = vmul.f32 %v1597_v61, %v17922_v62  ;;  %v1662_v27 = vmul.f32 %v1598_v37, %v17922_v62  ;;  %v10509_v49 = vld [vmem:[%s17455_s8] sm:$0xff]   ;;  %v13331_v43 = vld [vmem:[%s17455_s8 + $0x18] sm:$0xff]  }
 0x215   :  { %v1469_v53 = vadd.f32 %v13148_v13, %v12943_v20  ;;  %v3009_v23 = vsel %vm1838_vm3, %v13284_v11, 0.0  ;;  %v3007_v5 = vsel %vm1838_vm3, %v13288_v28, 0.0  ;;  %v1603_v40 = vmax.f32 %v1539_v56, 0.0  ;;  %9958 = vmatprep.subr.bf16.mxu0 %v10509_v49  ;;  %9920 = vmatprep.subr.bf16.mxu1 %v13331_v43 }
 0x216   :  { %v1537_v33 = vadd.f32 %v13256_v59, %v1466_v1  ;;  %v3108_v20 = vsel %vm1838_vm3, %v3061_v8, 0.0  ;;  %v1707_v13 = vadd.f32 %v1662_v27, %v1661_v42  ;;  %v1467_v61 = vadd.f32 %v13163_v15, %v12957_v10  ;;  %v13348_v10 = vpop.f32.mrf.mxu0  ;;  %9959 = vmatpush3.bf16.msra.mxu0 %v10509_v49 }
 0x217   :  { %v1540_v24 = vadd.f32 %v13256_v59, %v1469_v53  ;;  %v3110_v4 = vsel %vm1838_vm3, %v3062_v36, 0.0  ;;  %v13338_v30 = vmul.f32 0.5, %v1708_v16  ;;  %v1813_v48 = vpack.c.bf16 %v13284_v11, %v13288_v28  ;;  %v17924_v36 = vld [vmem:[#allocation35_spill] sm:$0xff] }
 0x218   :  { %v1601_v41 = vmax.f32 %v1537_v33, 0.0  ;;  %v13343_v2 = vmul.f32 0.5, %v1707_v13  ;;  %v1538_v8 = vadd.f32 %v13256_v59, %v1467_v61  ;;  %v1472_v37 = vadd.f32 %v13180_v21, %v12999_v0  ;;  %v9744_v21 = vpop.f32.mrf.mxu1 }
 0x219   :  { %v1604_v19 = vmax.f32 %v1540_v24, 0.0  ;;  %v3008_v15 = vadd.f32 %v3007_v5, %v3006_v46  ;;  %v3109_v56 = vadd.f32 %v3108_v20, %v3107_v34  ;;  %v1667_v16 = vmul.f32 %v1603_v40, %v17924_v36  ;;  %9832 = vmatprep.mubr.msk.bf16.mxu1 %vm1838_vm3, %v1813_v48  ;;  %v13370_v20 = vpop.f32.mrf.mxu0 }
 0x21a   :  { %v1470_v1 = vadd.f32 %v13192_v22, %v13003_v57  ;;  %v1771_v42 = vmul.f32 %v13343_v2, %v17922_v62  ;;  %v1602_v53 = vmax.f32 %v1538_v8, 0.0  ;;  %v1543_v0 = vadd.f32 %v13256_v59, %v1472_v37 }
 0x21b   :  { %v1668_v27 = vmul.f32 %v1604_v19, %v17924_v36  ;;  %v13360_v46 = vmul.f32 %v13338_v30, %v17922_v62  ;;  %v1473_v5 = vadd.f32 %v13205_v7, %v13007_v29  ;;  %v1471_v57 = vadd.f32 %v13219_v3, %v13029_v38  ;;  %v17925_v3 = vld [vmem:[#allocation54_spill] sm:$0xff] }
 0x21c   :  { %v1541_v34 = vadd.f32 %v13256_v59, %v1470_v1  ;;  %v3063_v22 = vmul.f32 %v1771_v42, %v13343_v2  ;;  %v1665_v40 = vmul.f32 %v1601_v41, %v17924_v36  ;;  %v1666_v49 = vmul.f32 %v1602_v53, %v17924_v36  ;;  %v1109_v41 = vpop.f32.mrf.mxu1 }
 0x21d   :  { %v1710_v33 = vadd.f32 %v1668_v27, %v1667_v16  ;;  %v3010_v13 = vadd.f32 %v3009_v23, %v3008_v15  ;;  %v3011_v24 = vsel %vm1838_vm3, %v1771_v42, 0.0  ;;  %v1607_v61 = vmax.f32 %v1543_v0, 0.0  ;;  %v13385_v0 = vpop.f32.mrf.mxu0 }
 0x21e   :  { %v1544_v48 = vadd.f32 %v13256_v59, %v1473_v5  ;;  %v3112_v29 = vsel %vm1838_vm3, %v3063_v22, 0.0  ;;  %v1709_v7 = vadd.f32 %v1666_v49, %v1665_v40  ;;  %v1605_v19 = vmax.f32 %v1541_v34, 0.0  ;;  %v9745_v49 = vpop.f32.mrf.mxu1 }
 0x21f   :  { %v1542_v38 = vadd.f32 %v13256_v59, %v1471_v57  ;;  %v13377_v8 = vadd.f32 %v9744_v21, %v17925_v3  ;;  %v3064_v37 = vmul.f32 %v13360_v46, %v13338_v30  ;;  %v3111_v16 = vadd.f32 %v3110_v4, %v3109_v56  ;;  %v17926_v56 = vld [vmem:[#allocation36_spill] sm:$0xff] }
 0x220   :  { %v13381_v23 = vmul.f32 0.5, %v1710_v33  ;;  %v3012_v15 = vadd.f32 %v3011_v24, %v3010_v13  ;;  %v13383_v1 = vmul.f32 0.5, %v1709_v7  ;;  %v1608_v27 = vmax.f32 %v1544_v48, 0.0  ;;  %v17927_v7 = vld [vmem:[#allocation56_spill] sm:$0xff] }
 0x221   :  { %v1606_v53 = vmax.f32 %v1542_v38, 0.0  ;;  %v3113_v34 = vadd.f32 %v3112_v29, %v3111_v16  ;;  %v1814_v5 = vpack.c.bf16 %v13360_v46, %v1771_v42  ;;  %v13389_v21 = vpack.c.bf16 %v1771_v42, %v13284_v11  ;;  %v13413_v29 = vpop.f32.mrf.mxu0 }
 0x222   :  { %v1476_v57 = vadd.f32 %v13235_v50, %v13040_v32  ;;  %v1773_v4 = vmul.f32 %v13383_v1, %v17924_v36  ;;  %v1671_v22 = vmul.f32 %v1607_v61, %v17926_v56  ;;  %v1669_v40 = vmul.f32 %v1605_v19, %v17926_v56 }
 0x223   :  { %v1672_v33 = vmul.f32 %v1608_v27, %v17926_v56  ;;  %v3013_v13 = vsel %vm1838_vm3, %v13360_v46, 0.0  ;;  %v13402_v11 = vmul.f32 %v13381_v23, %v17924_v36  ;;  %v1670_v42 = vmul.f32 %v1606_v53, %v17926_v56  ;;  %9833 = vmatmul.mubr.msk.bf16.gmra.mxu1 %vm1838_vm3, %v1814_v5  ;;  %9904 = vmatprep.mubr.msk.bf16.mxu0 %vm1838_vm3, %v13389_v21  ;;  %v17928_v27 = vld [vmem:[#allocation58_spill] sm:$0xff] }
 0x224   :  { %v1474_v32 = vadd.f32 %v13248_v47, %v13076_v44  ;;  %v3015_v50 = vsel %vm1838_vm3, %v1773_v4, 0.0  ;;  %v3065_v24 = vmul.f32 %v1773_v4, %v13383_v1  ;;  %v1547_v48 = vadd.f32 %v13256_v59, %v1476_v57 }
 0x225   :  { %v1712_v61 = vadd.f32 %v1672_v33, %v1671_v22  ;;  %v13416_v19 = vadd.f32 %v1109_v41, %v17927_v7  ;;  %v3014_v38 = vadd.f32 %v3013_v13, %v3012_v15  ;;  %v1711_v3 = vadd.f32 %v1670_v42, %v1669_v40  ;;  %v9807_v13 = vpop.f32.mrf.mxu0 }
 0x226   :  { %v1545_v16 = vadd.f32 %v13256_v59, %v1474_v32  ;;  %v13420_v53 = vadd.f32 %v9745_v49, %v17928_v27  ;;  %v3114_v44 = vsel %vm1838_vm3, %v3064_v37, 0.0  ;;  %v1477_v47 = vadd.f32 %v13264_v18, %v13096_v35 }
 0x227   :  { %v1475_v5 = vadd.f32 %v13273_v54, %v13113_v31  ;;  %v3066_v57 = vmul.f32 %v13402_v11, %v13381_v23  ;;  %v3016_v41 = vadd.f32 %v3015_v50, %v3014_v38  ;;  %v3116_v15 = vsel %vm1838_vm3, %v3065_v24, 0.0  ;;  %v17929_v38 = vld [vmem:[#allocation13_spill] sm:$0xff]  ;;  %v1398_v27 = vpop.f32.mrf.mxu0 }
 0x228   :  { %v13430_v22 = vmul.f32 0.5, %v1711_v3  ;;  %v3115_v40 = vadd.f32 %v3114_v44, %v3113_v34  ;;  %v1611_v33 = vmax.f32 %v1547_v48, 0.0  ;;  %v1548_v49 = vadd.f32 %v13256_v59, %v1477_v47 }
 0x229   :  { %v1546_v37 = vadd.f32 %v13256_v59, %v1475_v5  ;;  %v1609_v18 = vmax.f32 %v1545_v16, 0.0  ;;  %v1815_v31 = vpack.c.bf16 %v13402_v11, %v1773_v4  ;;  %v13438_v54 = vpack.c.bf16 %v1773_v4, %v13360_v46 }
 0x22a   :  { %v1775_v35 = vmul.f32 %v13430_v22, %v17926_v56  ;;  %v3017_v42 = vsel %vm1838_vm3, %v13402_v11, 0.0  ;;  %v3117_v32 = vadd.f32 %v3116_v15, %v3115_v40  ;;  %v13442_v34 = vmul.f32 0.5, %v1712_v61 }
 0x22b   :  { %v1612_v50 = vmax.f32 %v1548_v49, 0.0  ;;  %v3118_v24 = vsel %vm1838_vm3, %v3066_v57, 0.0  ;;  %v3018_v48 = vadd.f32 %v3017_v42, %v3016_v41  ;;  %v1610_v7 = vmax.f32 %v1546_v37, 0.0  ;;  %9836 = vmatprep.mubr.msk.bf16.mxu1 %vm1838_vm3, %v1815_v31  ;;  %9905 = vmatmul.mubr.msk.bf16.gmra.mxu0 %vm1838_vm3, %v13438_v54 }
 0x22c   :  { %v1480_v46 = vadd.f32 %v13296_v45, %v13152_v52  ;;  %v3067_v4 = vmul.f32 %v1775_v35, %v13430_v22  ;;  %v1675_v3 = vmul.f32 %v1611_v33, %v17929_v38  ;;  %v1478_v16 = vadd.f32 %v13318_v51, %v13168_v26 }
 0x22d   :  { %v1676_v61 = vmul.f32 %v1612_v50, %v17929_v38  ;;  %v1673_v44 = vmul.f32 %v1609_v18, %v17929_v38  ;;  %v1674_v47 = vmul.f32 %v1610_v7, %v17929_v38  ;;  %v1481_v57 = vadd.f32 %v13348_v10, %v13189_v25  ;;  %v9810_v18 = vpop.f32.mrf.mxu0 }
 0x22e   :  { %v1551_v5 = vadd.f32 %v13256_v59, %v1480_v46  ;;  %v1776_v52 = vmul.f32 %v13442_v34, %v17926_v56  ;;  %v3119_v45 = vadd.f32 %v3118_v24, %v3117_v32  ;;  %v1549_v15 = vadd.f32 %v13256_v59, %v1478_v16  ;;  %v1112_v46 = vpop.f32.mrf.mxu1 }
 0x22f   :  { %v1714_v41 = vadd.f32 %v1676_v61, %v1675_v3  ;;  %v3019_v40 = vsel %vm1838_vm3, %v1775_v35, 0.0  ;;  %v1713_v26 = vadd.f32 %v1674_v47, %v1673_v44  ;;  %v1552_v51 = vadd.f32 %v13256_v59, %v1481_v57  ;;  %v17930_v61 = vld [vmem:[#allocation18_spill] sm:$0xff] }
 0x230   :  { %v1479_v33 = vadd.f32 %v13370_v20, %v13197_v12  ;;  %v3120_v49 = vsel %vm1838_vm3, %v3067_v4, 0.0  ;;  %v1615_v25 = vmax.f32 %v1551_v5, 0.0  ;;  %v1816_v10 = vpack.c.bf16 %v1776_v52, %v1775_v35 }
 0x231   :  { %v13468_v37 = vmul.f32 0.5, %v1714_v41  ;;  %v13470_v31 = vmul.f32 0.5, %v1713_v26  ;;  %v1613_v42 = vmax.f32 %v1549_v15, 0.0  ;;  %v1616_v32 = vmax.f32 %v1552_v51, 0.0  ;;  %v17932_v15 = vld [vmem:[#allocation60_spill] sm:$0xff] }
 0x232   :  { %v1550_v50 = vadd.f32 %v13256_v59, %v1479_v33  ;;  %v3068_v24 = vmul.f32 %v1776_v52, %v13442_v34  ;;  %v3020_v7 = vadd.f32 %v3019_v40, %v3018_v48  ;;  %9837 = vmatmul.mubr.msk.bf16.gmra.mxu1 %vm1838_vm3, %v1816_v10  ;;  %v13476_v12 = vpack.c.bf16 %v1775_v35, %v13402_v11  ;;  %v17931_v35 = vld [vmem:[#allocation87_spill] sm:$0xff] }
 0x233   :  { %v1484_v20 = vadd.f32 %v13385_v0, %v13209_v63  ;;  %v3121_v4 = vadd.f32 %v3120_v49, %v3119_v45  ;;  %v1777_v3 = vmul.f32 %v13470_v31, %v17929_v38  ;;  %v1680_v16 = vmul.f32 %v1616_v32, %v17930_v61  ;;  %v1411_v0 = vpop.f32.mrf.mxu0 }
 0x234   :  { %v1614_v44 = vmax.f32 %v1550_v50, 0.0  ;;  %v1679_v47 = vmul.f32 %v1615_v25, %v17930_v61  ;;  %9908 = vmatprep.mubr.msk.bf16.mxu0 %vm1838_vm3, %v13476_v12  ;;  %v1482_v11 = vadd.f32 %v13413_v29, %v13229_v39  ;;  %v1485_v63 = vadd.f32 %v9807_v13, %v17931_v35  ;;  %v17934_v35 = vld [vmem:[#allocation21_spill] sm:$0xff] }
 0x235   :  { %v1555_v48 = vadd.f32 %v13256_v59, %v1484_v20  ;;  %v13492_v5 = vmul.f32 %v13468_v37, %v17929_v38  ;;  %v3069_v57 = vmul.f32 %v1777_v3, %v13470_v31  ;;  %v1677_v45 = vmul.f32 %v1613_v42, %v17930_v61  ;;  %v9811_v50 = vpop.f32.mrf.mxu0 }
 0x236   :  { %v1678_v41 = vmul.f32 %v1614_v44, %v17930_v61  ;;  %v1113_v40 = vadd.f32 %v1112_v46, %v17932_v15  ;;  %v3021_v26 = vsel %vm1838_vm3, %v1776_v52, 0.0  ;;  %v3122_v51 = vsel %vm1838_vm3, %v3068_v24, 0.0 }
 0x237   :  { %v1716_v39 = vadd.f32 %v1680_v16, %v1679_v47  ;;  %v3023_v29 = vsel %vm1838_vm3, %v1777_v3, 0.0  ;;  %v1619_v33 = vmax.f32 %v1555_v48, 0.0  ;;  %v1556_v49 = vadd.f32 %v13256_v59, %v1485_v63 }
 0x238   :  { %v1715_v13 = vadd.f32 %v1678_v41, %v1677_v45  ;;  %v3022_v25 = vadd.f32 %v3021_v26, %v3020_v7  ;;  %v3123_v10 = vadd.f32 %v3122_v51, %v3121_v4  ;;  %v3124_v32 = vsel %vm1838_vm3, %v3069_v57, 0.0  ;;  %v13518_v45 = vpop.xlane.xlu0 %7703 }
 0x239   :  { %v1553_v42 = vadd.f32 %v13256_v59, %v1482_v11  ;;  %v3070_v20 = vmul.f32 %v13492_v5, %v13468_v37  ;;  %v1620_v24 = vmax.f32 %v1556_v49, 0.0  ;;  %v1483_v16 = vadd.f32 %v1398_v27, %v13267_v58  ;;  %17935 = vst [vmem:[#allocation29_spill] sm:$0xff] %v13518_v45  ;;  %v17975_v45 = vld [vmem:[#allocation16_spill] sm:$0xff] }
 0x23a   :  { %v13506_v46 = vmul.f32 0.5, %v1715_v13  ;;  %v3024_v44 = vadd.f32 %v3023_v29, %v3022_v25  ;;  %v13509_v47 = vmul.f32 0.5, %v1716_v39  ;;  %v1817_v48 = vpack.c.bf16 %v13492_v5, %v1777_v3 }
 0x23b   :  { %v13512_v7 = vpack.c.bf16 %v1777_v3, %v1776_v52  ;;  %v3125_v4 = vadd.f32 %v3124_v32, %v3123_v10  ;;  %v1683_v63 = vmul.f32 %v1619_v33, %v17934_v35  ;;  %v1684_v57 = vmul.f32 %v1620_v24, %v17934_v35  ;;  %v1414_v3 = vpop.f32.mrf.mxu0 }
 0x23c   :  { %17933 = vst [vmem:[#allocation69_spill] sm:$0xff] %v13509_v47  ;;  %v1779_v11 = vmul.f32 %v13506_v46, %v17930_v61  ;;  %v1617_v41 = vmax.f32 %v1553_v42, 0.0  ;;  %v1554_v58 = vadd.f32 %v13256_v59, %v1483_v16  ;;  %9840 = vmatprep.mubr.msk.bf16.mxu1 %vm1838_vm3, %v1817_v48  ;;  %v1488_v27 = vadd.f32 %v9810_v18, %v13377_v8 }
 0x23d   :  { %9909 = vmatmul.mubr.msk.bf16.gmra.mxu0 %vm1838_vm3, %v13512_v7  ;;  %v1486_v52 = vadd.f32 %v1411_v0, %v13416_v19  ;;  %v3025_v15 = vsel %vm1838_vm3, %v13492_v5, 0.0  ;;  %v3126_v26 = vsel %vm1838_vm3, %v3070_v20, 0.0  ;;  %v1718_v39 = vadd.f32 %v1684_v57, %v1683_v63 }
 0x23e   :  { %v3071_v51 = vmul.f32 %v1779_v11, %v13506_v46  ;;  %v1780_v29 = vmul.f32 %v13509_v47, %v17930_v61  ;;  %v1618_v13 = vmax.f32 %v1554_v58, 0.0  ;;  %v1559_v33 = vadd.f32 %v13256_v59, %v1488_v27 }
 0x23f   :  { %v1557_v49 = vadd.f32 %v13256_v59, %v1486_v52  ;;  %v3026_v8 = vadd.f32 %v3025_v15, %v3024_v44  ;;  %v3127_v18 = vadd.f32 %v3126_v26, %v3125_v4  ;;  %v1489_v19 = vadd.f32 %v9811_v50, %v13420_v53  ;;  %v13543_v44 = vpop.xlane.xlu0 %7706  ;;  %v17937_v15 = vld [vmem:[#allocation24_spill] sm:$0xff] }
 0x240   :  { %v1487_v0 = vadd.f32 %v1414_v3, %v1113_v40  ;;  %v3027_v25 = vsel %vm1838_vm3, %v1779_v11, 0.0  ;;  %v3128_v10 = vsel %vm1838_vm3, %v3071_v51, 0.0  ;;  %v1681_v32 = vmul.f32 %v1617_v41, %v17934_v35  ;;  %17936 = vst [vmem:[#allocation30_spill] sm:$0xff] %v13543_v44  ;;  %v17974_v44 = vld [vmem:[#allocation11_spill] sm:$0xff] }
 0x241   :  { %v1682_v42 = vmul.f32 %v1618_v13, %v17934_v35  ;;  %v13539_v20 = vmul.f32 0.5, %v1718_v39  ;;  %v1623_v24 = vmax.f32 %v1559_v33, 0.0  ;;  %v1560_v16 = vadd.f32 %v13256_v59, %v1489_v19  ;;  %v13569_v19 = vld [vmem:[%s17455_s8 + $0x38] sm:$0xff]  }
 0x242   :  { %v1558_v48 = vadd.f32 %v13256_v59, %v1487_v0  ;;  %v3072_v53 = vmul.f32 %v1780_v29, %v13509_v47  ;;  %v1621_v50 = vmax.f32 %v1557_v49, 0.0  ;;  %v1818_v4 = vpack.c.bf16 %v1780_v29, %v1779_v11  ;;  %10028 = vmatprep.subr.bf16.mxu0 %v13569_v19 }
 0x243   :  { %v1717_v40 = vadd.f32 %v1682_v42, %v1681_v32  ;;  %v3028_v63 = vadd.f32 %v3027_v25, %v3026_v8  ;;  %v3129_v57 = vadd.f32 %v3128_v10, %v3127_v18  ;;  %v1624_v58 = vmax.f32 %v1560_v16, 0.0  ;;  %v13564_v18 = vpop.xlane.xlu0 %7712 }
 0x244   :  { %v1622_v27 = vmax.f32 %v1558_v48, 0.0  ;;  %9841 = vmatmul.mubr.msk.bf16.gmra.mxu1 %vm1838_vm3, %v1818_v4  ;;  %v13550_v52 = vpack.c.bf16 %v1779_v11, %v13492_v5  ;;  %v3029_v59 = vsel %vm1838_vm3, %v1780_v29, 0.0  ;;  %v1782_v3 = vmul.f32 %v13539_v20, %v17934_v35  ;;  %17938 = vst [vmem:[#allocation88_spill] sm:$0xff] %v13564_v18 }
 0x245   :  { %v13546_v41 = vmul.f32 0.5, %v1717_v40  ;;  %v1687_v26 = vmul.f32 %v1623_v24, %v17937_v15  ;;  %v1688_v51 = vmul.f32 %v1624_v58, %v17937_v15  ;;  %v3130_v39 = vsel %vm1838_vm3, %v3072_v53, 0.0 }
 0x246   :  { %v1685_v33 = vmul.f32 %v1621_v50, %v17937_v15  ;;  %v1686_v49 = vmul.f32 %v1622_v27, %v17937_v15  ;;  %9912 = vmatprep.mubr.msk.bf16.mxu0 %vm1838_vm3, %v13550_v52  ;;  %v3030_v5 = vadd.f32 %v3029_v59, %v3028_v63  ;;  %v3131_v11 = vadd.f32 %v3130_v39, %v3129_v57 }
 0x247   :  { %v1781_v13 = vmul.f32 %v13546_v41, %v17934_v35  ;;  %v1720_v8 = vadd.f32 %v1688_v51, %v1687_v26  ;;  %v3074_v42 = vmul.f32 %v1782_v3, %v13539_v20  ;;  %v3033_v63 = vsel %vm1838_vm3, %v1782_v3, 0.0  ;;  %v13592_v59 = vpop.xlane.xlu0 %7718  ;;  %v17978_v35 = vld [vmem:[#allocation20_spill] sm:$0xff] }
 0x248   :  { %v1719_v10 = vadd.f32 %v1686_v49, %v1685_v33  ;;  %17939 = vst [vmem:[#allocation31_spill] sm:$0xff] %v13592_v59 }
 0x249   :  { %v3031_v0 = vsel %vm1838_vm3, %v1781_v13, 0.0  ;;  %v3073_v25 = vmul.f32 %v1781_v13, %v13546_v41  ;;  %v1819_v32 = vpack.c.bf16 %v1782_v3, %v1781_v13  ;;  %v13574_v16 = vmul.f32 0.5, %v1720_v8  ;;  %v17941_v8 = vld [vmem:[#allocation43_spill] sm:$0xff] }
 0x24a   :  { %v3032_v24 = vadd.f32 %v3031_v0, %v3030_v5  ;;  %v13576_v48 = vpack.c.bf16 %v1781_v13, %v1780_v29  ;;  %v13580_v40 = vmul.f32 0.5, %v1719_v10  ;;  %v3134_v57 = vsel %vm1838_vm3, %v3074_v42, 0.0  ;;  %v17940_v5 = vld [vmem:[#allocation64_spill] sm:$0xff] }
 0x24b   :  { %v3132_v53 = vsel %vm1838_vm3, %v3073_v25, 0.0  ;;  %9844 = vmatprep.mubr.msk.bf16.mxu1 %vm1838_vm3, %v1819_v32  ;;  %v1784_v4 = vmul.f32 %v13574_v16, %v17937_v15  ;;  %10537 = vrcp.f32 %v17941_v8 }
 0x24c   :  { %v3133_v50 = vadd.f32 %v3132_v53, %v3131_v11  ;;  %9913 = vmatmul.mubr.msk.bf16.gmra.mxu0 %vm1838_vm3, %v13576_v48  ;;  %v1783_v29 = vmul.f32 %v13580_v40, %v17937_v15  ;;  %v3034_v27 = vadd.f32 %v3033_v63, %v3032_v24  ;;  %v1785_v11 = vpack.c.bf16 %v17940_v5, %v17923_v60  ;;  %v13626_v5 = vld [vmem:[%s17455_s8 + $0x28] sm:$0xff]  }
 0x24d   :  { %v3076_v58 = vmul.f32 %v1784_v4, %v13574_v16  ;;  %v3037_v0 = vsel %vm1838_vm3, %v1784_v4, 0.0  ;;  %v17587_v63 = vmov 0.0|0.0  }
 0x24e   :  { %v3035_v26 = vsel %vm1838_vm3, %v1783_v29, 0.0  ;;  %v3075_v51 = vmul.f32 %v1783_v29, %v13580_v40  ;;  %v1820_v39 = vpack.c.bf16 %v1784_v4, %v1783_v29  ;;  %v13596_v13 = vpack.c.bf16 %v1783_v29, %v1782_v3 }
 0x24f   :  { %v3036_v33 = vadd.f32 %v3035_v26, %v3034_v27  ;;  %v3135_v49 = vadd.f32 %v3134_v57, %v3133_v50  ;;  %v2270_v3 = vpack.c.bf16 %v17923_v60, %v1784_v4  ;;  %v3138_v42 = vsel %vm1838_vm3, %v3076_v58, 0.0  ;;  %v13610_v50 = vpop.xlane.xlu0 %7724  ;;  %v10511_v27 = vld [vmem:[%s17455_s8 + $0x10] sm:$0xff]   ;;  %v17943_v4 = vld [vmem:[#allocation108_spill] sm:$0xff] }
 0x250   :  { %v3136_v25 = vsel %vm1838_vm3, %v3075_v51, 0.0  ;;  %9845 = vmatmul.mubr.msk.bf16.gmra.mxu1 %vm1838_vm3, %v1820_v39  ;;  %9916 = vmatprep.mubr.msk.bf16.mxu0 %vm1838_vm3, %v13596_v13  ;;  %17942 = vst [vmem:[#allocation33_spill] sm:$0xff] %v13610_v50  ;;  %v17973_v50 = vld [vmem:[#allocation47_spill] sm:$0xff] }
 0x251   :  { %v3038_v10 = vadd.f32 %v3037_v0, %v3036_v33  ;;  %v3137_v32 = vadd.f32 %v3136_v25, %v3135_v49  ;;  %9852 = vmatprep.mubr.msk.bf16.mxu1 %vm1838_vm3, %v1785_v11  ;;  %v17944_v33 = vld [vmem:[#allocation107_spill] sm:$0xff] }
 0x253   :  { %v3039_v24 = vrot.slane %v3038_v10, 4  ;;  %v3139_v53 = vadd.f32 %v3138_v42, %v3137_v32 }
 0x254   :  { %9917 = vmatmul.mubr.msk.bf16.gmra.mxu0 %vm1838_vm3, %v2270_v3  ;;  %v13620_v49 = vpop.xlane.xlu0 %7730 }
 0x255   :  { %9960 = vmatprep.mubr.bf16.mxu0 %v17587_v63  ;;  %v3040_v29 = vadd.f32 %v3039_v24, %v3038_v10  ;;  %v3140_v57 = vrot.slane %v3139_v53, 4  ;;  %17945 = vst [vmem:[#allocation89_spill] sm:$0xff] %v13620_v49  ;;  %v17947_v24 = vld [vmem:[#allocation81_spill] sm:$0xff] }
 0x257   :  { %v3041_v26 = vrot.slane %v3040_v29, 2  ;;  %v3141_v51 = vadd.f32 %v3140_v57, %v3139_v53  ;;  %v17948_v57 = vld [vmem:[#allocation63_spill] sm:$0xff] }
 0x258   :  { %9853 = vmatmul.mubr.msk.bf16.vlgmr.msra.gmra.mxu1 %vm1838_vm3, %v17943_v4  ;;  %v10538_v0 = vpop.eup %10537 }
 0x259   :  { %v3042_v58 = vadd.f32 %v3041_v26, %v3040_v29  ;;  %v3142_v39 = vrot.slane %v3141_v51, 2  ;;  %9856 = vmatprep.mubr.msk.bf16.mxu1 %vm1838_vm3, %v17944_v33  ;;  %9921 = vmatpush3.bf16.msra.mxu1 %v13331_v43  ;;  %v2787_v43 = vlaneseq  ;;  %v17951_v33 = vld [vmem:[#allocation28_spill] sm:$0xff] }
 0x25a   :  { %9922 = vmatprep.subr.bf16.mxu1 %v10511_v27 }
 0x25b   :  { %v3043_v11 = vrot.slane %v3042_v58, 1  ;;  %v3143_v8 = vadd.f32 %v3142_v39, %v3141_v51  ;;  %v13631_v42 = vpop.xlane.xlu0 %7736 }
 0x25c   :  { %17946 = vst [vmem:[#allocation48_spill] sm:$0xff] %v13631_v42  ;;  %v17968_v42 = vld [vmem:[#allocation12_spill] sm:$0xff] }
 0x25d   :  { %v3044_v25 = vadd.f32 %v3043_v11, %v3042_v58  ;;  %v3144_v10 = vrot.slane %v3143_v8, 1  ;;  %9923 = vmatpush3.bf16.msra.mxu1 %v10511_v27  ;;  %v13639_v27 = vshrl.u32 %v2787_v43, 7  ;;  %v13649_v11 = vld [vmem:[%s17454_s7] sm:$0x7] }
 0x25e   :  { %9992 = vmatprep.subr.bf16.mxu1 %v13626_v5 }
 0x25f   :  { %v3145_v32 = vadd.f32 %v3144_v10, %v3143_v8  ;;  %v13629_v3 = vmul.f32 %v10538_v0, %v3044_v25  ;;  %17949 = vst [vmem:[#allocation96_spill] sm:$0xff] %v13639_v27  ;;  %v17586_v39 = vsub.s32 2, %v13639_v27  ;;  %v17952_v8 = vld [vmem:[#allocation68_spill] sm:$0xff]  ;;  %v17988_v56 = vsub.s32 0, %v13639_v27 }
 0x260   :  { %9857 = vmatmul.mubr.msk.bf16.gmra.mxu1 %vm1838_vm3, %v17947_v24 }
 0x261   :  { %v3190_v53 = vmul.f32 %v10538_v0, %v3145_v32  ;;  %v3191_v29 = vmul.f32 %v13629_v3, %v13629_v3  ;;  %9860 = vmatprep.mubr.msk.bf16.mxu1 %vm1838_vm3, %v17948_v57  ;;  %v13641_v4 = vpop.xlane.xlu0 %7742  ;;  %v7529_v0 = vpop.permute.xlu1 %7528  ;;  %v13658_v10 = vrot.slane %v13649_v11, %v17586_v39  ;;  %v10604_v32 = vld [vmem:[%s17692_s29 + $0xe0] sm:$0xff]  ;;  %v17961_v57 = vld [vmem:[#allocation39_spill] sm:$0xff] }
 0x262   :  { %17950 = vst [vmem:[#allocation49_spill] sm:$0xff] %v13641_v4  ;;  %v13663_v43 = vsub.f32 %v10604_v32, %v7529_v0  ;;  %v10605_v32 = vld [vmem:[%s17692_s29 + $0xe8] sm:$0xff] }
 0x263   :  { %v3192_v26 = vsub.f32 %v3190_v53, %v3191_v29  ;;  %17954 = vst [vmem:[#allocation104_spill] sm:$0xff] %v13658_v10  ;;  %v1793_v53 = vpack.c.bf16 %v13288_v28, %v17923_v60  ;;  %v13687_v39 = vsub.f32 %v10605_v32, %v7529_v0  ;;  %v17962_v29 = vld [vmem:[#allocation40_spill] sm:$0xff]  ;;  %v17964_v32 = vld [vmem:[#allocation42_spill] sm:$0xff]  ;;  %v13739_v18 = vmul.f32 %v13658_v10, %v17975_v45 }
 0x264   :  { %17955 = vst [vmem:[#allocation52_spill] sm:$0xff] %v13663_v43  ;;  %v7663_v28 = vmul.f32 %v13663_v43, %v13663_v43  ;;  %v17963_v43 = vld [vmem:[#allocation41_spill] sm:$0xff] }
 0x265   :  { %v3193_v51 = vmax.f32 %v3192_v26, 0.0  ;;  %v7539_v24 = vpop.permute.xlu1 %7538  ;;  %v17956_v26 = vld [vmem:[#allocation37_spill] sm:$0xff]  ;;  %17959 = vst [vmem:[#allocation56_spill] sm:$0xff] %v13687_v39 }
 0x266   :  { %v10608_v45 = vld [vmem:[%s17692_s29 + $0xc8] sm:$0xff] }
 0x267   :  { %v3194_v58 = vadd.f32 1e-05, %v3193_v51  ;;  %v13653_v25 = vpop.xlane.xlu0 %7748  ;;  %v13671_v51 = vmul.f32 %v13658_v10, %v17956_v26  ;;  %v17966_v26 = vld [vmem:[#allocation26_spill] sm:$0xff] }
 0x268   :  { %9861 = vmatmul.mubr.msk.bf16.gmra.mxu1 %vm1838_vm3, %v17951_v33  ;;  %17953 = vst [vmem:[#allocation50_spill] sm:$0xff] %v13653_v25  ;;  %v13700_v25 = vmul.f32 %v13658_v10, %v17962_v29  ;;  %v17971_v29 = vld [vmem:[#allocation45_spill] sm:$0xff] }
 0x269   :  { %10539 = vrsqrt.f32 %v3194_v58  ;;  %9864 = vmatprep.mubr.msk.bf16.mxu1 %vm1838_vm3, %v17952_v8  ;;  %v17957_v58 = vld [vmem:[#allocation38_spill] sm:$0xff]  ;;  %v13718_v4 = vpop.permute.xlu1 %7548  ;;  %v13722_v49 = vmul.f32 %v13658_v10, %v17971_v29  ;;  %v17976_v29 = vld [vmem:[#allocation19_spill] sm:$0xff] }
 0x26a   :  { %v13677_v33 = vmul.f32 %v13658_v10, %v17957_v58  ;;  %v13708_v58 = vmul.f32 %v13658_v10, %v17964_v32  ;;  %17970 = vst [vmem:[#allocation43_spill] sm:$0xff] %v13718_v4  ;;  %v13743_v59 = vmul.f32 %v13658_v10, %v17976_v29 }
 0x26c   :  { %17965 = vst [vmem:[#allocation87_spill] sm:$0xff] %v13708_v58  ;;  %17977 = vst [vmem:[#allocation107_spill] sm:$0xff] %v13743_v59 }
 0x26d   :  { %v13680_v8 = vpop.xlane.xlu0 %7754 }
 0x26e   :  { %17958 = vst [vmem:[#allocation54_spill] sm:$0xff] %v13680_v8  ;;  %v13704_v8 = vmul.f32 %v13658_v10, %v17963_v43  ;;  %v10607_v43 = vld [vmem:[%s17692_s29 + $0xf8] sm:$0xff] }
 0x26f   :  { %v13727_v32 = vsub.f32 %v10607_v43, %v7529_v0  ;;  %v7664_v43 = vmul.f32 %v13687_v39, %v13687_v39  ;;  %v10610_v39 = vld [vmem:[%s17692_s29 + $0xd0] sm:$0xff] }
 0x270   :  { %9865 = vmatmul.mubr.msk.bf16.gmra.mxu1 %vm1838_vm3, %v13292_v14  ;;  %v10606_v14 = vld [vmem:[%s17692_s29 + $0xf0] sm:$0xff] }
 0x271   :  { %9868 = vmatprep.mubr.msk.bf16.mxu1 %vm1838_vm3, %v1793_v53  ;;  %v13692_v63 = vsub.f32 %v10606_v14, %v7529_v0  ;;  %v13696_v53 = vmul.f32 %v13658_v10, %v17961_v57  ;;  %v13712_v14 = vmul.f32 %v13658_v10, %v17966_v26  ;;  %v13716_v57 = vmul.f32 %v13658_v10, %v17968_v42 }
 0x272   :  { %17972 = vst [vmem:[#allocation108_spill] sm:$0xff] %v13727_v32  ;;  %v13731_v26 = vmul.f32 %v13658_v10, %v17973_v50  ;;  %v13735_v42 = vmul.f32 %v13658_v10, %v17974_v44  ;;  %v7783_v0 = vsel %vm346_vm2, %v7663_v28, 0.0  ;;  %v13752_v44 = vmul.f32 %v13658_v10, %v17978_v35  ;;  %v10609_v28 = vld [vmem:[%s17692_s29 + $0xc0] sm:$0xff] }
 0x273   :  { %17960 = vst [vmem:[#allocation58_spill] sm:$0xff] %v13692_v63  ;;  %17967 = vst [vmem:[#allocation60_spill] sm:$0xff] %v13712_v14  ;;  %v7665_v50 = vmul.f32 %v13692_v63, %v13692_v63  ;;  %v10611_v35 = vld [vmem:[%s17692_s29 + $0x160] sm:$0xff]  ;;  %v7666_v10 = vmul.f32 %v13727_v32, %v13727_v32 }
 0x274   :  { %17969 = vst [vmem:[#allocation64_spill] sm:$0xff] %v13716_v57  ;;  %17979 = vst [vmem:[#allocation81_spill] sm:$0xff] %v13752_v44  ;;  %v13773_v44 = vsub.f32 %v10611_v35, %v13718_v4  ;;  %v18002_v57 = vld [vmem:[#allocation65_spill] sm:$0xff] }
 0x275   :  { %v7524_v15 = vpop.permute.xlu0 %7523 }
 0x276   :  { %v10540_v61 = vpop.eup %10539  ;;  %v13757_v29 = vsub.f32 %v10608_v45, %v7524_v15  ;;  %v13762_v14 = vsub.f32 %v10609_v28, %v7524_v15  ;;  %v13767_v63 = vsub.f32 %v10610_v39, %v7524_v15  ;;  %17983 = vst [vmem:[#allocation112_spill] sm:$0xff] %v13773_v44  ;;  %v10612_v28 = vld [vmem:[%s17692_s29 + $0x170] sm:$0xff]  ;;  %v10613_v39 = vld [vmem:[%s17692_s29 + $0x120] sm:$0xff] }
 0x277   :  { %v3196_v45 = vmul.f32 %v10540_v61, %v13649_v11  ;;  %v13782_v59 = vsub.f32 %v10612_v28, %v13718_v4  ;;  %v13787_v38 = vsub.f32 %v10613_v39, %v7539_v24  ;;  %v10614_v28 = vld [vmem:[%s17692_s29 + $0x128] sm:$0xff]  ;;  %v10615_v39 = vld [vmem:[%s17692_s29 + $0x130] sm:$0xff] }
 0x278   :  { %17980 = vst [vmem:[#allocation63_spill] sm:$0xff] %v13757_v29  ;;  %17981 = vst [vmem:[#allocation28_spill] sm:$0xff] %v13762_v14  ;;  %9869 = vmatmul.mubr.msk.bf16.gmra.mxu1 %vm1838_vm3, %v13389_v21  ;;  %v7660_v61 = vmul.f32 %v13757_v29, %v13757_v29  ;;  %v7659_v35 = vmul.f32 %v13762_v14, %v13762_v14  ;;  %v13798_v32 = vsub.f32 %v10614_v28, %v7539_v24  ;;  %v10616_v28 = vld [vmem:[%s17692_s29 + $0xd8] sm:$0xff] }
 0x279   :  { %17982 = vst [vmem:[#allocation68_spill] sm:$0xff] %v13767_v63  ;;  %17984 = vst [vmem:[#allocation113_spill] sm:$0xff] %v13782_v59  ;;  %v13803_v4 = vsub.f32 %v10615_v39, %v7539_v24  ;;  %v3197_v21 = vmul.f32 %v3196_v45, %v13629_v3  ;;  %v13808_v29 = vrot.slane %v3196_v45, %v17988_v56  ;;  %9872 = vmatprep.mubr.msk.bf16.mxu1 %vm1838_vm3, %v13438_v54  ;;  %v10617_v39 = vld [vmem:[%s17692_s29 + $0x138] sm:$0xff] }
 0x27a   :  { %17985 = vst [vmem:[#allocation114_spill] sm:$0xff] %v13787_v38  ;;  %17986 = vst [vmem:[#allocation115_spill] sm:$0xff] %v13798_v32  ;;  %v13815_v14 = vsub.f32 %v10616_v28, %v7524_v15  ;;  %v13820_v58 = vsub.f32 %v10617_v39, %v7539_v24  ;;  %v7774_v3 = vsel %vm346_vm2, %v7660_v61, 0.0  ;;  %v7771_v56 = vsel %vm346_vm2, %v7659_v35, 0.0 }
 0x27b   :  { %17987 = vst [vmem:[#allocation116_spill] sm:$0xff] %v13803_v4  ;;  %v7661_v45 = vmul.f32 %v13767_v63, %v13767_v63  ;;  %v7786_v54 = vsel %vm346_vm2, %v7664_v43, 0.0  ;;  %v3199_v47 = vrot.slane %v3197_v21, 7  ;;  %v3236_v15 = vmul.f32 %v13808_v29, %v13580_v40  ;;  %7775 = vadd.xlane.f32.xlu1 %v7774_v3  ;;  %7772 = vadd.xlane.f32.xlu0 %v7771_v56  ;;  %v17993_v3 = vld [vmem:[#allocation61_spill] sm:$0xff] }
 0x27c   :  { %17989 = vst [vmem:[#allocation117_spill] sm:$0xff] %v13815_v14  ;;  %17990 = vst [vmem:[#allocation118_spill] sm:$0xff] %v13820_v58  ;;  %v7789_v28 = vsel %vm346_vm2, %v7665_v50, 0.0  ;;  %v13832_v24 = vmul.f32 %v13773_v44, %v13773_v44  ;;  %v13835_v61 = vsel %vm346_vm2, %v7666_v10, 0.0  ;;  %v13839_v35 = vmul.f32 %v13782_v59, %v13782_v59  ;;  %v17994_v59 = vld [vmem:[#allocation59_spill] sm:$0xff] }
 0x27d   :  { %v13843_v43 = vmul.f32 %v13787_v38, %v13787_v38  ;;  %v13847_v40 = vmul.f32 %v13798_v32, %v13798_v32  ;;  %v3201_v50 = vsub.f32 %v13649_v11, %v3199_v47  ;;  %v7662_v21 = vmul.f32 %v13815_v14, %v13815_v14  ;;  %v17995_v38 = vld [vmem:[#allocation99_spill] sm:$0xff] }
 0x27e   :  { %v13854_v10 = vmul.f32 %v13803_v4, %v13803_v4  ;;  %v13858_v39 = vmul.f32 %v13820_v58, %v13820_v58  ;;  %v3206_v56 = vmul.f32 %v13808_v29, %v17993_v3  ;;  %v3207_v44 = vmul.f32 %v13808_v29, %v17994_v59  ;;  %v17997_v4 = vld [vmem:[#allocation97_spill] sm:$0xff]  ;;  %v17998_v58 = vld [vmem:[#allocation103_spill] sm:$0xff] }
 0x27f   :  { %v3208_v47 = vmul.f32 %v13808_v29, %v17995_v38  ;;  %v7777_v11 = vsel %vm346_vm2, %v7661_v45, 0.0  ;;  %v17996_v32 = vsub.s32 1, %v13639_v27  ;;  %v3209_v63 = vmul.f32 %v13808_v29, %v17997_v4  ;;  %7784 = vadd.xlane.f32.xlu1 %v7783_v0  ;;  %v18000_v59 = vld [vmem:[#allocation79_spill] sm:$0xff]  ;;  %v18001_v38 = vld [vmem:[#allocation76_spill] sm:$0xff] }
 0x280   :  { %17991 = vst [vmem:[#allocation119_spill] sm:$0xff] %v13854_v10  ;;  %17992 = vst [vmem:[#allocation120_spill] sm:$0xff] %v13858_v39  ;;  %v3210_v39 = vmul.f32 %v13808_v29, %v17998_v58  ;;  %v17999_v10 = vld [vmem:[#allocation102_spill] sm:$0xff]  ;;  %v3214_v36 = vmul.f32 %v13808_v29, %v18000_v59  ;;  %v3215_v45 = vmul.f32 %v13808_v29, %v18001_v38  ;;  %9873 = vmatmul.mubr.msk.bf16.gmra.mxu1 %vm1838_vm3, %v13476_v12  ;;  %v18004_v58 = vld [vmem:[#allocation67_spill] sm:$0xff] }
 0x281   :  { %v13869_v14 = vrot.slane %v3201_v50, %v17996_v32  ;;  %v3211_v3 = vmul.f32 %v13808_v29, %v17999_v10  ;;  %v3218_v32 = vmul.f32 %v13808_v29, %v18002_v57  ;;  %v18003_v50 = vld [vmem:[#allocation17_spill] sm:$0xff]  ;;  %v3220_v0 = vmul.f32 %v13808_v29, %v18004_v58  ;;  %9876 = vmatprep.mubr.msk.bf16.mxu1 %vm1838_vm3, %v13512_v7 }
 0x282   :  { %v3219_v27 = vmul.f32 %v13808_v29, %v18003_v50  ;;  %v3221_v10 = vmul.f32 %v13808_v29, %v13213_v9  ;;  %v3222_v59 = vmul.f32 %v13808_v29, %v13278_v55  ;;  %v3223_v57 = vmul.f32 %v13808_v29, %v13270_v6  ;;  %v13906_v50 = vpop.permute.xlu0 %7533  ;;  %7778 = vadd.xlane.f32.xlu0 %v7777_v11 }
 0x283   :  { %v13888_v4 = vadd.f32 %v13869_v14, %v3236_v15  ;;  %v3226_v12 = vmul.f32 %v13808_v29, %v13383_v1  ;;  %v3227_v15 = vmul.f32 %v13808_v29, %v13381_v23  ;;  %v3230_v38 = vmul.f32 %v13808_v29, %v13470_v31  ;;  %7787 = vadd.xlane.f32.xlu1 %v7786_v54 }
 0x284   :  { %v3231_v9 = vmul.f32 %v13808_v29, %v13468_v37  ;;  %v3234_v55 = vmul.f32 %v13808_v29, %v13546_v41  ;;  %v3235_v6 = vmul.f32 %v13808_v29, %v13539_v20  ;;  %v3237_v1 = vmul.f32 %v13808_v29, %v13574_v16 }
 0x285   :  { %v3242_v23 = vadd.f32 %v13869_v14, %v3206_v56  ;;  %v3243_v31 = vadd.f32 %v13869_v14, %v3207_v44  ;;  %v3246_v7 = vadd.f32 %v13869_v14, %v3210_v39  ;;  %v3247_v11 = vadd.f32 %v13869_v14, %v3211_v3 }
 0x286   :  { %v13921_v37 = vadd.f32 %v13869_v14, %v3214_v36  ;;  %v13924_v41 = vadd.f32 %v13869_v14, %v3215_v45  ;;  %v13927_v20 = vadd.f32 %v13869_v14, %v3218_v32  ;;  %v13930_v16 = vadd.f32 %v13869_v14, %v3219_v27 }
 0x287   :  { %v13933_v54 = vadd.f32 %v13869_v14, %v3220_v0  ;;  %v13936_v44 = vadd.f32 %v13869_v14, %v3221_v10  ;;  %v13939_v39 = vadd.f32 %v13869_v14, %v3222_v59  ;;  %v13942_v36 = vadd.f32 %v13869_v14, %v3223_v57  ;;  %7790 = vadd.xlane.f32.xlu1 %v7789_v28  ;;  %v18006_v10 = vld [vmem:[#allocation6_spill] sm:$0xff]  ;;  %v13966_v57 = vpop.permute.xlu0 %7543 }
 0x288   :  { %v13945_v56 = vadd.f32 %v13869_v14, %v3226_v12  ;;  %v13948_v3 = vadd.f32 %v13869_v14, %v3227_v15  ;;  %v13951_v27 = vadd.f32 %v13869_v14, %v3230_v38  ;;  %v13954_v45 = vadd.f32 %v13869_v14, %v3231_v9  ;;  %9877 = vmatmul.mubr.msk.bf16.gmra.mxu1 %vm1838_vm3, %v13550_v52  ;;  %v18007_v12 = vld [vmem:[#allocation71_spill] sm:$0xff]  ;;  %v18008_v28 = vld [vmem:[#allocation70_spill] sm:$0xff] }
 0x289   :  { %v13957_v32 = vadd.f32 %v13869_v14, %v3234_v55  ;;  %v13960_v58 = vadd.f32 %v13869_v14, %v3235_v6  ;;  %v13963_v0 = vadd.f32 %v13869_v14, %v3237_v1  ;;  %v3274_v59 = vmul.f32 %v3242_v23, %v18006_v10  ;;  %9880 = vmatprep.mubr.msk.bf16.mxu1 %vm1838_vm3, %v13576_v48  ;;  %v10618_v23 = vld [vmem:[%s17692_s29 + $0x100] sm:$0xff] }
 0x28a   :  { %v3212_v15 = vmul.f32 %v13808_v29, %v18007_v12  ;;  %v3213_v38 = vmul.f32 %v13808_v29, %v18008_v28  ;;  %v3275_v9 = vmul.f32 %v3243_v31, %v18006_v10  ;;  %v7780_v55 = vsel %vm346_vm2, %v7662_v21, 0.0  ;;  %v18010_v31 = vld [vmem:[#allocation25_spill] sm:$0xff]  ;;  %v18014_v10 = vld [vmem:[#allocation7_spill] sm:$0xff] }
 0x28b   :  { %18005 = vst [vmem:[#allocation61_spill] sm:$0xff] %v13963_v0  ;;  %v3326_v6 = vadd.f32 %v13671_v51, %v3274_v59  ;;  %7781 = vadd.xlane.f32.xlu0 %v7780_v55  ;;  %v3244_v1 = vadd.f32 %v13869_v14, %v3208_v47  ;;  %v3245_v52 = vadd.f32 %v13869_v14, %v3209_v63  ;;  %v10619_v48 = vld [vmem:[%s17692_s29 + $0x140] sm:$0xff]  ;;  %v18013_v55 = vld [vmem:[#allocation62_spill] sm:$0xff] }
 0x28c   :  { %v13985_v12 = vsub.f32 %v10618_v23, %v13906_v50  ;;  %v3216_v21 = vmul.f32 %v13808_v29, %v18010_v31  ;;  %v3327_v28 = vadd.f32 %v13671_v51, %v3275_v9  ;;  %7793 = vadd.xlane.f32.xlu1 %v13835_v61  ;;  %v13995_v63 = vsub.f32 %v10619_v48, %v13966_v57  ;;  %v18012_v47 = vld [vmem:[#allocation8_spill] sm:$0xff] }
 0x28d   :  { %v3278_v59 = vmul.f32 %v3246_v7, %v18012_v47  ;;  %v3217_v23 = vmul.f32 %v13808_v29, %v18013_v55  ;;  %v3276_v0 = vmul.f32 %v3244_v1, %v18014_v10  ;;  %v3277_v31 = vmul.f32 %v3245_v52, %v18014_v10 }
 0x28e   :  { %18009 = vst [vmem:[#allocation59_spill] sm:$0xff] %v13985_v12  ;;  %18011 = vst [vmem:[#allocation99_spill] sm:$0xff] %v13995_v63  ;;  %v7667_v51 = vmul.f32 %v13985_v12, %v13985_v12  ;;  %v14006_v61 = vmul.f32 %v13808_v29, %v13343_v2  ;;  %v14008_v9 = vpack.c.bf16 %v3327_v28, %v3326_v6 }
 0x28f   :  { %v7675_v48 = vmul.f32 %v13995_v63, %v13995_v63  ;;  %v3279_v7 = vmul.f32 %v3247_v11, %v18012_v47  ;;  %v3328_v55 = vadd.f32 %v13722_v49, %v3276_v0  ;;  %v3329_v1 = vadd.f32 %v13722_v49, %v3277_v31  ;;  %v10513_v11 = vld [vmem:[%s17455_s8 + $0x30] sm:$0xff]  }
 0x290   :  { %v7795_v52 = vsel %vm346_vm2, %v7667_v51, 0.0  ;;  %v3330_v10 = vadd.f32 %v13677_v33, %v3278_v59  ;;  %9961 = vmatmul.mubr.msk.bf16.vlgmr.msra.gmra.mxu0 %vm1838_vm3, %v14008_v9  ;;  %v3377_v2 = vpack.c.bf16 %v3326_v6, %v17923_v60  ;;  %v3248_v63 = vadd.f32 %v13869_v14, %v3212_v15  ;;  %9881 = vmatmul.mubr.msk.bf16.gmra.mxu1 %vm1838_vm3, %v13596_v13  ;;  %v10620_v6 = vld [vmem:[%s17692_s29 + $0x108] sm:$0xff]  ;;  %v10621_v13 = vld [vmem:[%s17692_s29 + $0x150] sm:$0xff] }
 0x291   :  { %7796 = vadd.xlane.f32.xlu0 %v7795_v52  ;;  %v3331_v12 = vadd.f32 %v13677_v33, %v3279_v7  ;;  %v14025_v0 = vpack.c.bf16 %v3329_v1, %v3328_v55  ;;  %v14027_v49 = vpack.c.bf16 %v3328_v55, %v3327_v28  ;;  %v3249_v59 = vadd.f32 %v13869_v14, %v3213_v38  ;;  %v18016_v28 = vld [vmem:[#allocation14_spill] sm:$0xff] }
 0x292   :  { %v14036_v33 = vsub.f32 %v10620_v6, %v13906_v50  ;;  %v7819_v15 = vsel %vm346_vm2, %v7675_v48, 0.0  ;;  %9924 = vmatprep.mubr.msk.bf16.mxu1 %vm1838_vm3, %v3377_v2  ;;  %v3280_v51 = vmul.f32 %v3248_v63, %v18016_v28  ;;  %v14047_v38 = vsub.f32 %v10621_v13, %v13966_v57  ;;  %10029 = vmatpush3.bf16.msra.mxu0 %v13569_v19  ;;  %v10622_v63 = vld [vmem:[%s17692_s29 + $0x110] sm:$0xff]  ;;  %v18019_v6 = vld [vmem:[#allocation9_spill] sm:$0xff] }
 0x293   :  { %v14040_v31 = vpack.c.bf16 %v3331_v12, %v3330_v10  ;;  %9964 = vmatprep.mubr.msk.bf16.mxu0 %vm1838_vm3, %v14025_v0  ;;  %v3281_v48 = vmul.f32 %v3249_v59, %v18016_v28  ;;  %v14059_v55 = vsub.f32 %v10622_v63, %v13906_v50  ;;  %v14061_v52 = vpack.c.bf16 %v3330_v10, %v3329_v1 }
 0x294   :  { %18015 = vst [vmem:[#allocation97_spill] sm:$0xff] %v14036_v33  ;;  %18017 = vst [vmem:[#allocation103_spill] sm:$0xff] %v14047_v38  ;;  %v7668_v7 = vmul.f32 %v14036_v33, %v14036_v33  ;;  %v3332_v19 = vadd.f32 %v13731_v26, %v3280_v51  ;;  %v7677_v2 = vmul.f32 %v14047_v38, %v14047_v38  ;;  %10030 = vmatprep.subr.bf16.mxu0 %v10513_v11  ;;  %v14088_v38 = vpop.permute.xlu0 %7553 }
 0x295   :  { %18018 = vst [vmem:[#allocation102_spill] sm:$0xff] %v14059_v55  ;;  %7820 = vadd.xlane.f32.xlu0 %v7819_v15  ;;  %v3282_v59 = vmul.f32 %v13921_v37, %v18019_v6  ;;  %v3333_v13 = vadd.f32 %v13731_v26, %v3281_v48  ;;  %v7669_v63 = vmul.f32 %v14059_v55, %v14059_v55 }
 0x296   :  { %v7798_v33 = vsel %vm346_vm2, %v7668_v7, 0.0  ;;  %v3283_v10 = vmul.f32 %v13924_v41, %v18019_v6  ;;  %v3225_v1 = vmul.f32 %v13808_v29, %v13338_v30  ;;  %v14076_v15 = vpack.c.bf16 %v3332_v19, %v3331_v12  ;;  %10031 = vmatpush3.bf16.msra.mxu0 %v10513_v11  ;;  %v10623_v12 = vld [vmem:[%s17692_s29 + $0x118] sm:$0xff]  ;;  %v18021_v11 = vld [vmem:[#allocation22_spill] sm:$0xff] }
 0x297   :  { %7799 = vadd.xlane.f32.xlu1 %v7798_v33  ;;  %v3334_v51 = vadd.f32 %v13696_v53, %v3282_v59  ;;  %v14079_v37 = vpack.c.bf16 %v3333_v13, %v3332_v19  ;;  %v7825_v26 = vsel %vm346_vm2, %v7677_v2, 0.0  ;;  %v3252_v7 = vadd.f32 %v13869_v14, %v3216_v21 }
 0x298   :  { %v3335_v48 = vadd.f32 %v13696_v53, %v3283_v10  ;;  %v14086_v41 = vmul.f32 %v13808_v29, %v13430_v22  ;;  %9965 = vmatmul.mubr.msk.bf16.gmra.mxu0 %vm1838_vm3, %v14040_v31  ;;  %v3253_v30 = vadd.f32 %v13869_v14, %v3217_v23  ;;  %v14097_v53 = vsub.f32 %v10623_v12, %v13906_v50  ;;  %v10515_v22 = vld [vmem:[%s17455_s8 + $0x20] sm:$0xff]   ;;  %v10625_v12 = vld [vmem:[%s17692_s29 + $0x190] sm:$0xff] }
 0x299   :  { %7826 = vadd.xlane.f32.xlu0 %v7825_v26  ;;  %9968 = vmatprep.mubr.msk.bf16.mxu0 %vm1838_vm3, %v14079_v37  ;;  %v7801_v21 = vsel %vm346_vm2, %v7669_v63, 0.0  ;;  %v3284_v33 = vmul.f32 %v3252_v7, %v18021_v11  ;;  %v14110_v19 = vpack.c.bf16 %v3334_v51, %v3333_v13  ;;  %v3229_v50 = vmul.f32 %v13808_v29, %v13442_v34  ;;  %v10624_v13 = vld [vmem:[%s17692_s29 + $0x180] sm:$0xff] }
 0x29a   :  { %18020 = vst [vmem:[#allocation79_spill] sm:$0xff] %v14097_v53  ;;  %9925 = vmatmul.mubr.msk.bf16.vlgmr.msra.gmra.mxu1 %vm1838_vm3, %v14027_v49  ;;  %v14107_v23 = vpack.c.bf16 %v3335_v48, %v3334_v51  ;;  %v7831_v2 = vsel %vm346_vm2, %v13832_v24, 0.0  ;;  %v3285_v59 = vmul.f32 %v3253_v30, %v18021_v11  ;;  %v7670_v63 = vmul.f32 %v14097_v53, %v14097_v53  ;;  %v18023_v51 = vld [vmem:[#allocation10_spill] sm:$0xff] }
 0x29b   :  { %7802 = vadd.xlane.f32.xlu1 %v7801_v21  ;;  %9928 = vmatprep.mubr.msk.bf16.mxu1 %vm1838_vm3, %v14061_v52  ;;  %v3336_v10 = vadd.f32 %v13735_v42, %v3284_v33  ;;  %v14126_v34 = vsub.f32 %v10624_v13, %v14088_v38  ;;  %v3286_v24 = vmul.f32 %v13927_v20, %v18023_v51  ;;  %v7837_v30 = vsel %vm346_vm2, %v13839_v35, 0.0 }
 0x29c   :  { %v3287_v26 = vmul.f32 %v13930_v16, %v18023_v51  ;;  %9993 = vmatpush3.bf16.msra.mxu1 %v13626_v5  ;;  %v3337_v7 = vadd.f32 %v13735_v42, %v3285_v59  ;;  %v14140_v21 = vsub.f32 %v10625_v12, %v14088_v38  ;;  %v3290_v20 = vmul.f32 %v13939_v39, %v17919_v17  ;;  %v18026_v12 = vld [vmem:[#allocation64_spill] sm:$0xff] }
 0x29d   :  { %18022 = vst [vmem:[#allocation76_spill] sm:$0xff] %v14126_v34  ;;  %7832 = vadd.xlane.f32.xlu0 %v7831_v2  ;;  %9994 = vmatprep.subr.bf16.mxu1 %v10515_v22  ;;  %v14144_v16 = vpack.c.bf16 %v3336_v10, %v3335_v48  ;;  %v7804_v5 = vsel %vm346_vm2, %v7670_v63, 0.0  ;;  %v3338_v42 = vadd.f32 %v13700_v25, %v3286_v24  ;;  %v18025_v24 = vld [vmem:[#allocation27_spill] sm:$0xff] }
 0x29e   :  { %18024 = vst [vmem:[#allocation65_spill] sm:$0xff] %v14140_v21  ;;  %v3339_v33 = vadd.f32 %v13700_v25, %v3287_v26  ;;  %v14149_v35 = vpack.c.bf16 %v3337_v7, %v3336_v10  ;;  %v3291_v2 = vmul.f32 %v13942_v36, %v17919_v17  ;;  %v14154_v59 = vadd.f32 %v13704_v8, %v3290_v20  ;;  %v14168_v36 = vld [vmem:[%s17455_s8 + $0x48] sm:$0xff]  }
 0x29f   :  { %7805 = vadd.xlane.f32.xlu1 %v7804_v5  ;;  %v3260_v39 = vadd.f32 %v13869_v14, %v14006_v61  ;;  %v7683_v48 = vmul.f32 %v14126_v34, %v14126_v34  ;;  %v14162_v13 = vpack.c.bf16 %v3338_v42, %v3337_v7  ;;  %v3261_v25 = vadd.f32 %v13869_v14, %v3225_v1 }
 0x2a0   :  { %v14160_v63 = vpack.c.bf16 %v3339_v33, %v3338_v42  ;;  %9995 = vmatpush3.bf16.msra.mxu1 %v10515_v22  ;;  %9969 = vmatmul.mubr.msk.bf16.gmra.mxu0 %vm1838_vm3, %v14107_v23  ;;  %v3343_v61 = vadd.f32 %v13704_v8, %v3291_v2  ;;  %v3288_v26 = vmul.f32 %v13933_v54, %v18025_v24  ;;  %v7807_v22 = vsel %vm346_vm2, %v13843_v43, 0.0  ;;  %v18027_v42 = vld [vmem:[#allocation35_spill] sm:$0xff] }
 0x2a1   :  { %7838 = vadd.xlane.f32.xlu0 %v7837_v30  ;;  %v3292_v10 = vmul.f32 %v3260_v39, %v17922_v62  ;;  %v3232_v1 = vmul.f32 %v13808_v29, %v13506_v46  ;;  %9972 = vmatprep.mubr.msk.bf16.mxu0 %vm1838_vm3, %v14149_v35  ;;  %v7685_v8 = vmul.f32 %v14140_v21, %v14140_v21  ;;  %v7810_v46 = vsel %vm346_vm2, %v13847_v40, 0.0  ;;  %v18031_v21 = vld [vmem:[#allocation13_spill] sm:$0xff] }
 0x2a2   :  { %9929 = vmatmul.mubr.msk.bf16.gmra.mxu1 %vm1838_vm3, %v14076_v15  ;;  %v3293_v7 = vmul.f32 %v3261_v25, %v17922_v62  ;;  %v14192_v54 = vpack.c.bf16 %v3343_v61, %v14154_v59  ;;  %v14196_v20 = vadd.f32 %v18026_v12, %v3288_v26  ;;  %v7843_v43 = vsel %vm346_vm2, %v7683_v48, 0.0  ;;  %10064 = vmatprep.subr.bf16.mxu1 %v14168_v36 }
 0x2a3   :  { %7808 = vadd.xlane.f32.xlu1 %v7807_v22  ;;  %9932 = vmatprep.mubr.msk.bf16.mxu1 %vm1838_vm3, %v14110_v19  ;;  %v3344_v30 = vadd.f32 %v13739_v18, %v3292_v10  ;;  %v3294_v2 = vmul.f32 %v13945_v56, %v18027_v42  ;;  %v3295_v39 = vmul.f32 %v13948_v3, %v18027_v42  ;;  %v18029_v22 = vld [vmem:[#allocation87_spill] sm:$0xff]  ;;  %v10633_v42 = vld [vmem:[%s17692_s29 + $0x1a8] sm:$0xff] }
 0x2a4   :  { %v3345_v5 = vadd.f32 %v13739_v18, %v3293_v7  ;;  %v14208_v25 = vpack.c.bf16 %v14196_v20, %v3339_v33  ;;  %v3264_v10 = vadd.f32 %v13869_v14, %v14086_v41  ;;  %v3265_v48 = vadd.f32 %v13869_v14, %v3229_v50  ;;  %v18028_v18 = vld [vmem:[#allocation69_spill] sm:$0xff] }
 0x2a5   :  { %7844 = vadd.xlane.f32.xlu0 %v7843_v43  ;;  %v14205_v40 = vpack.c.bf16 %v3344_v30, %v3343_v61  ;;  %v3233_v26 = vmul.f32 %v13808_v29, %v18028_v18  ;;  %v3346_v3 = vadd.f32 %v18029_v22, %v3294_v2  ;;  %v3347_v7 = vadd.f32 %v18029_v22, %v3295_v39  ;;  %v18030_v43 = vld [vmem:[#allocation36_spill] sm:$0xff] }
 0x2a6   :  { %v14215_v56 = vpack.c.bf16 %v3345_v5, %v3344_v30  ;;  %v7849_v61 = vsel %vm346_vm2, %v7685_v8, 0.0  ;;  %v3296_v33 = vmul.f32 %v3264_v10, %v18030_v43  ;;  %v3297_v34 = vmul.f32 %v3265_v48, %v18030_v43  ;;  %v10626_v8 = vld [vmem:[%s17692_s29 + $0x148] sm:$0xff]  ;;  %v18036_v10 = vld [vmem:[#allocation60_spill] sm:$0xff] }
 0x2a7   :  { %7811 = vadd.xlane.f32.xlu1 %v7810_v46  ;;  %v3298_v41 = vmul.f32 %v13951_v27, %v18031_v21  ;;  %v14224_v50 = vpack.c.bf16 %v3347_v7, %v3346_v3  ;;  %v14226_v55 = vpack.c.bf16 %v3346_v3, %v3345_v5  ;;  %v3299_v29 = vmul.f32 %v13954_v45, %v18031_v21  ;;  %v18033_v27 = vld [vmem:[#allocation107_spill] sm:$0xff] }
 0x2a8   :  { %v3268_v30 = vadd.f32 %v13869_v14, %v3232_v1  ;;  %9973 = vmatmul.mubr.msk.bf16.gmra.mxu0 %vm1838_vm3, %v14160_v63  ;;  %v14237_v46 = vsub.f32 %v10626_v8, %v13966_v57  ;;  %v3348_v2 = vadd.f32 %v18033_v27, %v3296_v33  ;;  %v3349_v5 = vadd.f32 %v18033_v27, %v3297_v34  ;;  %v18035_v1 = vld [vmem:[#allocation119_spill] sm:$0xff] }
 0x2a9   :  { %7850 = vadd.xlane.f32.xlu0 %v7849_v61  ;;  %v18034_v45 = vmov 0.0|0.0   ;;  %v7813_v39 = vsel %vm346_vm2, %v18035_v1, 0.0  ;;  %v3350_v48 = vadd.f32 %v18036_v10, %v3298_v41  ;;  %v3351_v18 = vadd.f32 %v18036_v10, %v3299_v29  ;;  %v18037_v61 = vld [vmem:[#allocation18_spill] sm:$0xff]  ;;  %v18038_v41 = vld [vmem:[#allocation44_spill] sm:$0xff] }
 0x2aa   :  { %18032 = vst [vmem:[#allocation17_spill] sm:$0xff] %v14237_v46  ;;  %9933 = vmatmul.mubr.msk.bf16.gmra.mxu1 %vm1838_vm3, %v14144_v16  ;;  %9976 = vmatprep.mubr.bf16.mxu0 %v18034_v45  ;;  %v3269_v22 = vadd.f32 %v13869_v14, %v3233_v26  ;;  %v14251_v3 = vpack.c.bf16 %v3349_v5, %v3348_v2  ;;  %v18039_v29 = vld [vmem:[#allocation104_spill] sm:$0xff]  ;;  %v18040_v14 = vld [vmem:[#allocation81_spill] sm:$0xff] }
 0x2ab   :  { %7814 = vadd.xlane.f32.xlu1 %v7813_v39  ;;  %9936 = vmatprep.mubr.msk.bf16.mxu1 %vm1838_vm3, %v14162_v13  ;;  %v14253_v34 = vpack.c.bf16 %v3348_v2, %v3347_v7  ;;  %v3300_v33 = vmul.f32 %v3268_v30, %v18037_v61  ;;  %v14256_v8 = vpack.c.bf16 %v3351_v18, %v3350_v48  ;;  %v18041_v39 = vld [vmem:[#allocation21_spill] sm:$0xff]  ;;  %v18042_v2 = vld [vmem:[#allocation120_spill] sm:$0xff] }
 0x2ac   :  { %v3301_v27 = vmul.f32 %v3269_v22, %v18037_v61  ;;  %v14259_v1 = vpack.c.bf16 %v3350_v48, %v3349_v5  ;;  %v3324_v10 = vmul.f32 %v18039_v29, %v18038_v41  ;;  %v3302_v53 = vmul.f32 %v13957_v32, %v18041_v39  ;;  %v10627_v5 = vld [vmem:[%s17692_s29 + $0x158] sm:$0xff] }
 0x2ad   :  { %v3352_v26 = vadd.f32 %v18040_v14, %v3300_v33  ;;  %v3303_v7 = vmul.f32 %v13960_v58, %v18041_v39  ;;  %v7816_v30 = vsel %vm346_vm2, %v18042_v2, 0.0  ;;  %v7676_v21 = vmul.f32 %v14237_v46, %v14237_v46  ;;  %v18044_v41 = vld [vmem:[#allocation23_spill] sm:$0xff]  ;;  %v14285_v46 = vpop.xlane.xlu1 %7700 }
 0x2ae   :  { %v14276_v48 = vsub.f32 %v10627_v5, %v13966_v57  ;;  %v3353_v22 = vadd.f32 %v18040_v14, %v3301_v27  ;;  %v3354_v33 = vadd.f32 %v3324_v10, %v3302_v53  ;;  %v3325_v2 = vmul.f32 %v18039_v29, %v18044_v41  ;;  %v10628_v14 = vld [vmem:[%s17692_s29 + $0x168] sm:$0xff] }
 0x2af   :  { %7817 = vadd.xlane.f32.xlu1 %v7816_v30  ;;  %v14279_v32 = vpack.c.bf16 %v3352_v26, %v3351_v18  ;;  %v3355_v58 = vadd.f32 %v3324_v10, %v3303_v7  ;;  %v3385_v57 = vpack.c.bf16 %v14154_v59, %v17923_v60  ;;  %v18046_v18 = vld [vmem:[#allocation24_spill] sm:$0xff]  ;;  %v14297_v10 = vpop.f32.mrf.mxu1  ;;  %v7822_v29 = vsel %vm346_vm2, %v7676_v21, 0.0 }
 0x2b0   :  { %18043 = vst [vmem:[#allocation67_spill] sm:$0xff] %v14276_v48  ;;  %v14283_v39 = vpack.c.bf16 %v3353_v22, %v3352_v26  ;;  %9977 = vmatmul.mubr.msk.bf16.gmra.mxu0 %vm1838_vm3, %v14192_v54  ;;  %v14293_v27 = vpack.c.bf16 %v3354_v33, %v3353_v22  ;;  %v3304_v53 = vmul.f32 %v13888_v4, %v18046_v18  ;;  %v18047_v26 = vld [vmem:[#allocation43_spill] sm:$0xff]  ;;  %v18049_v22 = vld [vmem:[#allocation61_spill] sm:$0xff] }
 0x2b1   :  { %v14291_v5 = vpack.c.bf16 %v3355_v58, %v3354_v33  ;;  %9980 = vmatprep.mubr.msk.bf16.mxu0 %vm1838_vm3, %v14215_v56  ;;  %v7678_v59 = vmul.f32 %v14276_v48, %v14276_v48  ;;  %v14310_v7 = vsub.f32 %v10628_v14, %v18047_v26  ;;  %v3289_v30 = vmul.f32 %v13936_v44, %v18025_v24  ;;  %v14324_v61 = vpop.f32.mrf.mxu1  ;;  %v10629_v44 = vld [vmem:[%s17692_s29 + $0x178] sm:$0xff] }
 0x2b2   :  { %9937 = vmatmul.mubr.msk.bf16.gmra.mxu1 %vm1838_vm3, %v14208_v25  ;;  %v3356_v4 = vadd.f32 %v3325_v2, %v3304_v53  ;;  %v3305_v21 = vmul.f32 %v18049_v22, %v18046_v18  ;;  %v14333_v53 = vsub.f32 %v10629_v44, %v18047_v26  ;;  %v10630_v26 = vld [vmem:[%s17692_s29 + $0x188] sm:$0xff] }
 0x2b3   :  { %18045 = vst [vmem:[#allocation71_spill] sm:$0xff] %v14291_v5  ;;  %18048 = vst [vmem:[#allocation70_spill] sm:$0xff] %v14310_v7  ;;  %7823 = vadd.xlane.f32.xlu1 %v7822_v29  ;;  %9940 = vmatprep.mubr.msk.bf16.mxu1 %vm1838_vm3, %v3385_v57  ;;  %v14320_v48 = vadd.f32 %v18026_v12, %v3289_v30  ;;  %v7828_v29 = vsel %vm346_vm2, %v7678_v59, 0.0  ;;  %v7680_v57 = vmul.f32 %v14310_v7, %v14310_v7  ;;  %v14346_v59 = vpop.f32.mrf.mxu1  ;;  %v18055_v7 = vld [vmem:[#allocation31_spill] sm:$0xff] }
 0x2b4   :  { %v14317_v33 = vpack.c.bf16 %v3356_v4, %v3355_v58  ;;  %v14322_v41 = vadd.f32 %v3325_v2, %v3305_v21  ;;  %18050 = vst [vmem:[#allocation25_spill] sm:$0xff] %v14333_v53  ;;  %v14335_v58 = vpop.xlane.xlu1 %7709 }
 0x2b5   :  { %v14339_v12 = vpack.c.bf16 %v14320_v48, %v14196_v20  ;;  %v7834_v14 = vsel %vm346_vm2, %v7680_v57, 0.0  ;;  %v7682_v20 = vmul.f32 %v14333_v53, %v14333_v53  ;;  %v14363_v22 = vpop.f32.mrf.mxu1  ;;  %v10631_v57 = vld [vmem:[%s17692_s29 + $0x198] sm:$0xff] }
 0x2b6   :  { %v14342_v2 = vpack.c.bf16 %v14322_v41, %v3356_v4  ;;  %v14359_v4 = vsub.f32 %v10630_v26, %v14088_v38  ;;  %v14372_v44 = vsub.f32 %v10631_v57, %v14088_v38  ;;  %v7559_v26 = vpop.permute.xlu0 %7558  ;;  %v10632_v38 = vld [vmem:[%s17692_s29 + $0x1a0] sm:$0xff] }
 0x2b7   :  { %7829 = vadd.xlane.f32.xlu1 %v7828_v29  ;;  %v7840_v21 = vsel %vm346_vm2, %v7682_v20, 0.0 }
 0x2b8   :  { %18051 = vst [vmem:[#allocation62_spill] sm:$0xff] %v14342_v2  ;;  %9981 = vmatmul.mubr.msk.bf16.gmra.mxu0 %vm1838_vm3, %v14224_v50  ;;  %18052 = vst [vmem:[#allocation64_spill] sm:$0xff] %v14359_v4  ;;  %v7716_v30 = vpop.xlane.xlu1 %7715  ;;  %v7684_v29 = vmul.f32 %v14359_v4, %v14359_v4  ;;  %v7686_v4 = vmul.f32 %v14372_v44, %v14372_v44 }
 0x2b9   :  { %9984 = vmatprep.mubr.msk.bf16.mxu0 %vm1838_vm3, %v14251_v3  ;;  %18053 = vst [vmem:[#allocation69_spill] sm:$0xff] %v14372_v44 }
 0x2ba   :  { %9941 = vmatmul.mubr.msk.bf16.gmra.mxu1 %vm1838_vm3, %v14205_v40  ;;  %v7846_v20 = vsel %vm346_vm2, %v7684_v29, 0.0  ;;  %v7852_v29 = vsel %vm346_vm2, %v7686_v4, 0.0 }
 0x2bb   :  { %7835 = vadd.xlane.f32.xlu1 %v7834_v14  ;;  %9944 = vmatprep.mubr.msk.bf16.mxu1 %vm1838_vm3, %v14226_v55  ;;  %v14374_v14 = vpop.f32.mrf.mxu1 }
 0x2bc   :  { %v7722_v57 = vpop.xlane.xlu1 %7721 }
 0x2bd   :  { %v14392_v53 = vpop.f32.mrf.mxu1  ;;  %v7894_v18 = vadd.f32 %v7722_v57, %v18055_v7 }
 0x2bf   :  { %7841 = vadd.xlane.f32.xlu1 %v7840_v21  ;;  %v14388_v21 = vsub.f32 %v10632_v38, %v7559_v26  ;;  %v14401_v38 = vsub.f32 %v10633_v42, %v7559_v26  ;;  %v14404_v62 = vpop.f32.mrf.mxu1  ;;  %v7926_v7 = vmul.f32 0.5, %v7894_v18 }
 0x2c0   :  { %9985 = vmatmul.mubr.msk.bf16.gmra.mxu0 %vm1838_vm3, %v14256_v8 }
 0x2c1   :  { %9988 = vmatprep.mubr.msk.bf16.mxu0 %vm1838_vm3, %v14283_v39  ;;  %18054 = vst [vmem:[#allocation87_spill] sm:$0xff] %v14388_v21  ;;  %v7687_v44 = vmul.f32 %v14388_v21, %v14388_v21  ;;  %18056 = vst [vmem:[#allocation107_spill] sm:$0xff] %v14401_v38  ;;  %v7688_v42 = vmul.f32 %v14401_v38, %v14401_v38 }
 0x2c2   :  { %9945 = vmatmul.mubr.msk.bf16.gmra.mxu1 %vm1838_vm3, %v14253_v34 }
 0x2c3   :  { %7847 = vadd.xlane.f32.xlu1 %v7846_v20  ;;  %9948 = vmatprep.mubr.msk.bf16.mxu1 %vm1838_vm3, %v14259_v1  ;;  %v18057_v20 = vld [vmem:[#allocation88_spill] sm:$0xff]  ;;  %v7855_v4 = vsel %vm346_vm2, %v7687_v44, 0.0  ;;  %v7858_v21 = vsel %vm346_vm2, %v7688_v42, 0.0 }
 0x2c4   :  { %v7893_v43 = vadd.f32 %v7716_v30, %v18057_v20  ;;  %v10634_v30 = vld [vmem:[%s17692_s29 + $0x1b0] sm:$0xff] }
 0x2c5   :  { %v14418_v57 = vsub.f32 %v10634_v30, %v7559_v26 }
 0x2c6   :  { %v7925_v18 = vmul.f32 0.5, %v7893_v43 }
 0x2c7   :  { %7853 = vadd.xlane.f32.xlu1 %v7852_v29  ;;  %18058 = vst [vmem:[#allocation119_spill] sm:$0xff] %v14418_v57  ;;  %v14424_v29 = vpop.f32.mrf.mxu1  ;;  %v7689_v38 = vmul.f32 %v14418_v57, %v14418_v57 }
 0x2c8   :  { %9989 = vmatmul.mubr.msk.bf16.gmra.mxu0 %vm1838_vm3, %v14291_v5  ;;  %v7956_v20 = vadd.f32 %v7926_v7, %v7925_v18 }
 0x2c9   :  { %10032 = vmatprep.mubr.msk.bf16.mxu0 %vm1838_vm3, %v14027_v49  ;;  %v14422_v49 = vpop.xlane.xlu1 %7727  ;;  %v14426_v44 = vpop.f32.mrf.mxu1  ;;  %v7861_v42 = vsel %vm346_vm2, %v7689_v38, 0.0 }
 0x2ca   :  { %9949 = vmatmul.mubr.msk.bf16.gmra.mxu1 %vm1838_vm3, %v14279_v32  ;;  %18059 = vst [vmem:[#allocation60_spill] sm:$0xff] %v14422_v49  ;;  %v7972_v43 = vmul.f32 0.5, %v7956_v20  ;;  %v18064_v20 = vld [vmem:[#allocation78_spill] sm:$0xff] }
 0x2cb   :  { %7856 = vadd.xlane.f32.xlu1 %v7855_v4  ;;  %9952 = vmatprep.mubr.msk.bf16.mxu1 %vm1838_vm3, %v14293_v27  ;;  %v10635_v4 = vld [vmem:[%s17692_s29 + $0x1b8] sm:$0xff]  ;;  %v14440_v7 = vpop.f32.mrf.mxu1 }
 0x2cc   :  { %v14434_v30 = vsub.f32 %v10635_v4, %v7559_v26  ;;  %v18065_v4 = vld [vmem:[#allocation84_spill] sm:$0xff] }
 0x2cd   :  { %v14438_v49 = vpop.xlane.xlu1 %7733  ;;  %v7408_v57 = vadd.f32 %v18065_v4, %v18064_v20  ;;  %v4055_v20 = vpack.c.bf16 %v17923_v60, %v14320_v48 }
 0x2ce   :  { %18060 = vst [vmem:[#allocation104_spill] sm:$0xff] %v14434_v30  ;;  %18061 = vst [vmem:[#allocation81_spill] sm:$0xff] %v14438_v49  ;;  %v7690_v26 = vmul.f32 %v14434_v30, %v14434_v30  ;;  %v7988_v49 = vmul.f32 0.26666668, %v7972_v43  ;;  %v14476_v43 = vpop.f32.mrf.mxu0 }
 0x2cf   :  { %7859 = vadd.xlane.f32.xlu1 %v7858_v21  ;;  %v18063_v21 = vld [vmem:[#allocation80_spill] sm:$0xff]  ;;  %v7440_v51 = vmul.f32 0.5, %v7408_v57 }
 0x2d0   :  { %10033 = vmatmul.mubr.msk.bf16.vlgmr.msra.gmra.mxu0 %vm1838_vm3, %v14061_v52  ;;  %v18062_v52 = vld [vmem:[#allocation74_spill] sm:$0xff]  ;;  %v7864_v17 = vsel %vm346_vm2, %v7690_v26, 0.0  ;;  %v14482_v26 = vpop.f32.mrf.mxu0 }
 0x2d1   :  { %10036 = vmatprep.mubr.msk.bf16.mxu0 %vm1838_vm3, %v14076_v15  ;;  %v7407_v18 = vadd.f32 %v18063_v21, %v18062_v52  ;;  %v14455_v15 = vpop.f32.mrf.mxu1  ;;  %v14458_v24 = vpop.xlane.xlu1 %7739 }
 0x2d2   :  { %9953 = vmatmul.mubr.msk.bf16.gmra.mxu1 %vm1838_vm3, %v14317_v33  ;;  %18066 = vst [vmem:[#allocation120_spill] sm:$0xff] %v14458_v24 }
 0x2d3   :  { %7862 = vadd.xlane.f32.xlu1 %v7861_v42  ;;  %9996 = vmatprep.mubr.msk.bf16.mxu1 %vm1838_vm3, %v14008_v9  ;;  %v7439_v38 = vmul.f32 0.5, %v7407_v18  ;;  %v10517_v9 = vld [vmem:[%s17455_s8 + $0x40] sm:$0xff]   ;;  %v8004_v42 = vadd.f32 1e-06, %v7988_v49  ;;  %v14465_v52 = vpop.f32.mrf.mxu1  ;;  %v14496_v18 = vpop.f32.mrf.mxu0 }
 0x2d5   :  { %v14474_v57 = vpop.f32.mrf.mxu1  ;;  %10541 = vrsqrt.f32 %v8004_v42 }
 0x2d7   :  { %7865 = vadd.xlane.f32.xlu1 %v7864_v17  ;;  %v7457_v17 = vadd.f32 %v7440_v51, %v7439_v38 }
 0x2d8   :  { %10037 = vmatmul.mubr.msk.bf16.gmra.mxu0 %vm1838_vm3, %v14110_v19  ;;  %v14478_v19 = vpop.xlane.xlu1 %7745 }
 0x2d9   :  { %10040 = vmatprep.mubr.msk.bf16.mxu0 %vm1838_vm3, %v14144_v16  ;;  %18067 = vst [vmem:[#allocation43_spill] sm:$0xff] %v14478_v19  ;;  %v7473_v49 = vmul.f32 0.5, %v7457_v17  ;;  %v14480_v16 = vpop.f32.mrf.mxu1 }
 0x2da   :  { %9997 = vmatmul.mubr.msk.bf16.vlgmr.msra.gmra.mxu1 %vm1838_vm3, %v14025_v0 }
 0x2db   :  { %10000 = vmatprep.mubr.msk.bf16.mxu1 %vm1838_vm3, %v14040_v31  ;;  %10065 = vmatpush3.bf16.msra.mxu1 %v14168_v36  ;;  %v7489_v51 = vmul.f32 0.25, %v7473_v49  ;;  %v14494_v21 = vpop.f32.mrf.mxu1 }
 0x2dc   :  { %10066 = vmatprep.subr.bf16.mxu1 %v10517_v9  ;;  %v14492_v36 = vpop.xlane.xlu1 %7751 }
 0x2dd   :  { %18068 = vst [vmem:[#allocation61_spill] sm:$0xff] %v14492_v36 }
 0x2df   :  { %10067 = vmatpush3.bf16.msra.mxu1 %v10517_v9 }
 0x2e0   :  { %10041 = vmatmul.mubr.msk.bf16.gmra.mxu0 %vm1838_vm3, %v14162_v13  ;;  %v14500_v13 = vpop.f32.mrf.mxu1  ;;  %v14505_v4 = vpop.xlane.xlu1 %7757 }
 0x2e1   :  { %10044 = vmatprep.mubr.msk.bf16.mxu0 %vm1838_vm3, %v14208_v25  ;;  %v14502_v25 = vpop.f32.mrf.mxu0  ;;  %18069 = vst [vmem:[#allocation31_spill] sm:$0xff] %v14505_v4 }
 0x2e2   :  { %10001 = vmatmul.mubr.msk.bf16.gmra.mxu1 %vm1838_vm3, %v14079_v37  ;;  %v10542_v9 = vpop.eup %10541 }
 0x2e3   :  { %10004 = vmatprep.mubr.msk.bf16.mxu1 %vm1838_vm3, %v14107_v23  ;;  %v14507_v38 = vpop.f32.mrf.mxu1  ;;  %v14513_v42 = vpop.f32.mrf.mxu0 }
 0x2e4   :  { %18070 = vst [vmem:[#allocation88_spill] sm:$0xff] %v14507_v38  ;;  %v14521_v49 = vpop.xlane.xlu1 %7760 }
 0x2e5   :  { %v14517_v48 = vpop.f32.mrf.mxu1  ;;  %v14519_v17 = vpop.f32.mrf.mxu0  ;;  %18071 = vst [vmem:[#allocation74_spill] sm:$0xff] %v14521_v49 }
 0x2e8   :  { %7563 = vperm.xlu1 %10501, %v7489_v51   ;;  %10045 = vmatmul.mubr.msk.bf16.gmra.mxu0 %vm1838_vm3, %v4055_v20  ;;  %v14531_v51 = vpop.f32.mrf.mxu0  ;;  %v14535_v20 = vpop.xlane.xlu1 %7763 }
 0x2e9   :  { %10048 = vmatprep.mubr.msk.bf16.mxu0 %vm1838_vm3, %v14205_v40  ;;  %v14525_v40 = vpop.f32.mrf.mxu1  ;;  %18072 = vst [vmem:[#allocation80_spill] sm:$0xff] %v14535_v20 }
 0x2ea   :  { %10005 = vmatmul.mubr.msk.bf16.gmra.mxu1 %vm1838_vm3, %v14149_v35  ;;  %v14539_v30 = vpop.f32.mrf.mxu0 }
 0x2eb   :  { %10008 = vmatprep.mubr.msk.bf16.mxu1 %vm1838_vm3, %v14160_v63 }
 0x2ec   :  { %8042 = vperm.xlu1 %10501, %v10542_v9   ;;  %v14537_v9 = vpop.f32.mrf.mxu1  ;;  %v14543_v36 = vpop.f32.mrf.mxu0 }
 0x2ed   :  { %18073 = vst [vmem:[#allocation78_spill] sm:$0xff] %v14537_v9 }
 0x2ee   :  { %v14557_v4 = vpop.f32.mrf.mxu0 }
 0x2f0   :  { %10049 = vmatmul.mubr.msk.bf16.gmra.mxu0 %vm1838_vm3, %v14226_v55  ;;  %v14561_v49 = vpop.f32.mrf.mxu0 }
 0x2f1   :  { %10052 = vmatprep.mubr.msk.bf16.mxu0 %vm1838_vm3, %v14253_v34 }
 0x2f2   :  { %10009 = vmatmul.mubr.msk.bf16.gmra.mxu1 %vm1838_vm3, %v14339_v12  ;;  %v14541_v55 = vpop.f32.mrf.mxu1 }
 0x2f3   :  { %10012 = vmatprep.mubr.msk.bf16.mxu1 %vm1838_vm3, %v14192_v54  ;;  %18074 = vst [vmem:[#allocation84_spill] sm:$0xff] %v14541_v55  ;;  %v14553_v54 = vpop.xlane.xlu1 %7766 }
 0x2f4   :  { %18075 = vst [vmem:[#allocation121_spill] sm:$0xff] %v14553_v54  ;;  %v14555_v34 = vpop.f32.mrf.mxu1  ;;  %v14575_v54 = vpop.f32.mrf.mxu0 }
 0x2f5   :  { %18076 = vst [vmem:[#allocation122_spill] sm:$0xff] %v14555_v34 }
 0x2f6   :  { %v14559_v20 = vpop.f32.mrf.mxu1 }
 0x2f7   :  { %18077 = vst [vmem:[#allocation123_spill] sm:$0xff] %v14559_v20 }
 0x2f8   :  { %10053 = vmatmul.mubr.msk.bf16.gmra.mxu0 %vm1838_vm3, %v14259_v1  ;;  %v14565_v1 = vpop.xlane.xlu1 %7769 }
 0x2f9   :  { %10056 = vmatprep.mubr.msk.bf16.mxu0 %vm1838_vm3, %v14279_v32  ;;  %18078 = vst [vmem:[#allocation124_spill] sm:$0xff] %v14565_v1  ;;  %v14573_v32 = vpop.f32.mrf.mxu1 }
 0x2fa   :  { %10013 = vmatmul.mubr.msk.bf16.gmra.mxu1 %vm1838_vm3, %v14215_v56  ;;  %18079 = vst [vmem:[#allocation125_spill] sm:$0xff] %v14573_v32 }
 0x2fb   :  { %10016 = vmatprep.mubr.msk.bf16.mxu1 %vm1838_vm3, %v14224_v50 }
 0x300   :  { %10057 = vmatmul.mubr.msk.bf16.gmra.mxu0 %vm1838_vm3, %v14293_v27  ;;  %v4056_v27 = vpack.c.bf16 %v17923_v60, %v14322_v41 }
 0x301   :  { %10060 = vmatprep.mubr.msk.bf16.mxu0 %vm1838_vm3, %v14317_v33  ;;  %v14585_v33 = vpop.f32.mrf.mxu0 }
 0x302   :  { %10017 = vmatmul.mubr.msk.bf16.gmra.mxu1 %vm1838_vm3, %v14251_v3 }
 0x303   :  { %10020 = vmatprep.mubr.msk.bf16.mxu1 %vm1838_vm3, %v14256_v8 }
 0x304   :  { %v14577_v24 = vpop.f32.mrf.mxu1  ;;  %v14579_v19 = vpop.xlane.xlu1 %7775 }
 0x305   :  { %18080 = vst [vmem:[#allocation126_spill] sm:$0xff] %v14577_v24  ;;  %18081 = vst [vmem:[#allocation127_spill] sm:$0xff] %v14579_v19  ;;  %v14596_v19 = vpop.f32.mrf.mxu0 }
 0x306   :  { %v14583_v1 = vpop.f32.mrf.mxu1 }
 0x307   :  { %18082 = vst [vmem:[#allocation128_spill] sm:$0xff] %v14583_v1  ;;  %v14602_v60 = vpop.f32.mrf.mxu0 }
 0x308   :  { %10061 = vmatmul.mubr.msk.bf16.gmra.mxu0 %vm1838_vm3, %v4056_v27  ;;  %v14590_v55 = vpop.xlane.xlu1 %7784  ;;  %v14594_v24 = vpop.f32.mrf.mxu1 }
 0x309   :  { %18083 = vst [vmem:[#allocation129_spill] sm:$0xff] %v14590_v55  ;;  %18084 = vst [vmem:[#allocation130_spill] sm:$0xff] %v14594_v24  ;;  %v14614_v24 = vpop.f32.mrf.mxu0 }
 0x30a   :  { %10021 = vmatmul.mubr.msk.bf16.gmra.mxu1 %vm1838_vm3, %v14283_v39  ;;  %v14600_v41 = vpop.f32.mrf.mxu1 }
 0x30b   :  { %10024 = vmatprep.mubr.msk.bf16.mxu1 %vm1838_vm3, %v14291_v5  ;;  %18086 = vst [vmem:[#allocation132_spill] sm:$0xff] %v14600_v41 }
 0x30c   :  { %v14598_v32 = vpop.xlane.xlu1 %7787 }
 0x30d   :  { %18085 = vst [vmem:[#allocation131_spill] sm:$0xff] %v14598_v32  ;;  %v14618_v32 = vpop.f32.mrf.mxu0 }
 0x30e   :  { %18091 = vst [vmem:[#allocation137_spill] sm:$0xff] %v14618_v32 }
 0x30f   :  { %v14626_v9 = vpop.f32.mrf.mxu0 }
 0x310   :  { %v14604_v1 = vpop.f32.mrf.mxu1  ;;  %v14612_v55 = vpop.xlane.xlu1 %7790  ;;  %18094 = vst [vmem:[#allocation140_spill] sm:$0xff] %v14626_v9 }
 0x311   :  { %18087 = vst [vmem:[#allocation133_spill] sm:$0xff] %v14604_v1  ;;  %18089 = vst [vmem:[#allocation135_spill] sm:$0xff] %v14612_v55 }
 0x312   :  { %10025 = vmatmul.mubr.msk.bf16.gmra.mxu1 %vm1838_vm3, %v14342_v2  ;;  %v14610_v27 = vpop.f32.mrf.mxu1 }
 0x313   :  { %10068 = vmatprep.mubr.msk.bf16.mxu1 %vm1838_vm3, %v14025_v0  ;;  %18088 = vst [vmem:[#allocation134_spill] sm:$0xff] %v14610_v27  ;;  %v14630_v27 = vpop.f32.mrf.mxu0 }
 0x314   :  { %v14616_v20 = vpop.f32.mrf.mxu1  ;;  %18095 = vst [vmem:[#allocation141_spill] sm:$0xff] %v14630_v27 }
 0x315   :  { %18090 = vst [vmem:[#allocation136_spill] sm:$0xff] %v14616_v20  ;;  %v14624_v1 = vpop.xlane.xlu1 %7793 }
 0x316   :  { %v14620_v41 = vpop.f32.mrf.mxu1  ;;  %18093 = vst [vmem:[#allocation139_spill] sm:$0xff] %v14624_v1 }
 0x317   :  { %18092 = vst [vmem:[#allocation138_spill] sm:$0xff] %v14620_v41  ;;  %v14636_v41 = vpop.f32.mrf.mxu0 }
 0x318   :  { %v9854_v34 = vpop.f32.mrf.mxu1  ;;  %18097 = vst [vmem:[#allocation143_spill] sm:$0xff] %v14636_v41 }
 0x319   :  { %v14644_v27 = vpop.f32.mrf.mxu0 }
 0x31a   :  { %10069 = vmatmul.mubr.msk.bf16.vlgmr.msra.gmra.mxu1 %vm1838_vm3, %v14040_v31  ;;  %v2142_v0 = vpop.f32.mrf.mxu1 }
 0x31b   :  { %10072 = vmatprep.mubr.msk.bf16.mxu1 %vm1838_vm3, %v14079_v37  ;;  %v2143_v9 = vadd.f32 %v2142_v0, %v14324_v61  ;;  %v10519_v0 = vld [vmem:[%s17457_s10 + $0x30] sm:$0xff]  }
 0x31c   :  { %v9855_v55 = vpop.f32.mrf.mxu1 }
 0x31d   :  { %v2154_v31 = vadd.f32 %v9855_v55, %v14346_v59  ;;  %v14654_v55 = vpop.f32.mrf.mxu0  ;;  %v2455_v61 = vadd.f32 %v14482_v26, %v2143_v9 }
 0x31e   :  { %v2145_v2 = vpop.f32.mrf.mxu1 }
 0x31f   :  { %v2146_v1 = vadd.f32 %v2145_v2, %v14363_v22 }
 0x320   :  { %v14632_v20 = vpop.xlane.xlu1 %7799  ;;  %v9858_v32 = vpop.f32.mrf.mxu1 }
 0x321   :  { %18096 = vst [vmem:[#allocation142_spill] sm:$0xff] %v14632_v20  ;;  %v2151_v20 = vadd.f32 %v9854_v34, %v14297_v10  ;;  %v2456_v41 = vadd.f32 %v14502_v25, %v2146_v1  ;;  %v2167_v34 = vadd.f32 %v9858_v32, %v14374_v14 }
 0x322   :  { %10073 = vmatmul.mubr.msk.bf16.gmra.mxu1 %vm1838_vm3, %v14107_v23  ;;  %v2158_v5 = vpop.f32.mrf.mxu1  ;;  %v2458_v23 = vadd.f32 %v14496_v18, %v2154_v31  ;;  %v14664_v18 = vld [vmem:[%s17452_s5] ss:$0 sm:$0xff] }
 0x323   :  { %10076 = vmatprep.mubr.msk.bf16.mxu1 %vm1838_vm3, %v14149_v35  ;;  %v2159_v59 = vadd.f32 %v2158_v5, %v14392_v53  ;;  %v2457_v10 = vadd.f32 %v14476_v43, %v2151_v20  ;;  %v2495_v25 = vadd.f32 %v14664_v18, %v2456_v41  ;;  %v14678_v20 = vpop.f32.mrf.mxu0  ;;  %v2494_v9 = vadd.f32 %v14664_v18, %v2455_v61 }
 0x324   :  { %v14642_v37 = vpop.xlane.xlu1 %7802  ;;  %v9859_v38 = vpop.f32.mrf.mxu1  ;;  %v2497_v53 = vadd.f32 %v14664_v18, %v2458_v23  ;;  %v2461_v1 = vadd.f32 %v14513_v42, %v2167_v34 }
 0x325   :  { %18098 = vst [vmem:[#allocation144_spill] sm:$0xff] %v14642_v37  ;;  %v2170_v2 = vadd.f32 %v9859_v38, %v14404_v62  ;;  %v14656_v37 = vpop.xlane.xlu0 %7772  ;;  %v2459_v14 = vadd.f32 %v14519_v17, %v2159_v59  ;;  %v2526_v61 = vmax.f32 %v2494_v9, 0.0  ;;  %v18104_v9 = vld [vmem:[#allocation6_spill] sm:$0xff] }
 0x326   :  { %v2161_v35 = vpop.f32.mrf.mxu1  ;;  %18100 = vst [vmem:[#allocation146_spill] sm:$0xff] %v14656_v37  ;;  %v2529_v17 = vmax.f32 %v2497_v53, 0.0  ;;  %v2500_v34 = vadd.f32 %v14664_v18, %v2461_v1 }
 0x327   :  { %v2162_v62 = vadd.f32 %v2161_v35, %v14424_v29  ;;  %v2462_v43 = vadd.f32 %v14531_v51, %v2170_v2  ;;  %v2527_v51 = vmax.f32 %v2495_v25, 0.0  ;;  %v2498_v31 = vadd.f32 %v14664_v18, %v2459_v14  ;;  %v10522_v2 = vld [vmem:[%s17457_s10 + $0x18] sm:$0xff]   ;;  %v14699_v35 = vpop.f32.mrf.mxu0  ;;  %v10523_v14 = vld [vmem:[%s17457_s10 + $0x10] sm:$0xff]  }
 0x328   :  { %v14652_v22 = vpop.xlane.xlu1 %7805  ;;  %v9862_v5 = vpop.f32.mrf.mxu1  ;;  %10140 = vmatprep.subr.bf16.mxu1 %v10522_v2 }
 0x329   :  { %18099 = vst [vmem:[#allocation145_spill] sm:$0xff] %v14652_v22  ;;  %v2460_v26 = vadd.f32 %v14539_v30, %v2162_v62  ;;  %v14684_v41 = vpop.xlane.xlu0 %7778  ;;  %v10518_v30 = vld [vmem:[%s17457_s10 + $0x38] sm:$0xff]   ;;  %v2501_v23 = vadd.f32 %v14664_v18, %v2462_v43  ;;  %v14709_v43 = vpop.f32.mrf.mxu0  ;;  %v2183_v1 = vadd.f32 %v9862_v5, %v14426_v44  ;;  %v2532_v5 = vmax.f32 %v2500_v34, 0.0  ;;  %10141 = vmatpush3.bf16.msra.mxu1 %v10522_v2 }
 0x32a   :  { %10077 = vmatmul.mubr.msk.bf16.gmra.mxu1 %vm1838_vm3, %v14160_v63  ;;  %v2174_v29 = vpop.f32.mrf.mxu1  ;;  %v2496_v63 = vadd.f32 %v14664_v18, %v2457_v10  ;;  %10100 = vmatprep.subr.bf16.mxu0 %v10518_v30 }
 0x32b   :  { %10080 = vmatprep.mubr.msk.bf16.mxu1 %vm1838_vm3, %v14339_v12  ;;  %v2499_v32 = vadd.f32 %v14664_v18, %v2460_v26  ;;  %10101 = vmatpush3.bf16.msra.mxu0 %v10518_v30  ;;  %v18103_v26 = vld [vmem:[#allocation7_spill] sm:$0xff]  ;;  %v2175_v30 = vadd.f32 %v2174_v29, %v14440_v7  ;;  %v14731_v29 = vpop.f32.mrf.mxu0 }
 0x32c   :  { %v14676_v38 = vpop.xlane.xlu1 %7808  ;;  %v9863_v12 = vpop.f32.mrf.mxu1  ;;  %v2528_v10 = vmax.f32 %v2496_v63, 0.0  ;;  %v2561_v63 = vmul.f32 %v2529_v17, %v18103_v26  ;;  %10102 = vmatprep.subr.bf16.mxu0 %v10519_v0  ;;  %10142 = vmatprep.subr.bf16.mxu1 %v10523_v14 }
 0x32d   :  { %18101 = vst [vmem:[#allocation147_spill] sm:$0xff] %v14676_v38  ;;  %v2531_v62 = vmax.f32 %v2499_v32, 0.0  ;;  %v2186_v53 = vadd.f32 %v9863_v12, %v14455_v15  ;;  %v10520_v15 = vld [vmem:[%s17457_s10 + $0x28] sm:$0xff]   ;;  %v2530_v32 = vmax.f32 %v2498_v31, 0.0  ;;  %v2533_v12 = vmax.f32 %v2501_v23, 0.0  ;;  %v14724_v17 = vpop.xlane.xlu0 %7781  ;;  %10143 = vmatpush3.bf16.msra.mxu1 %v10523_v14 }
 0x32e   :  { %v2177_v59 = vpop.f32.mrf.mxu1  ;;  %18106 = vst [vmem:[#allocation150_spill] sm:$0xff] %v14724_v17  ;;  %v2560_v44 = vmul.f32 %v2528_v10, %v18103_v26  ;;  %v2465_v17 = vadd.f32 %v14543_v36, %v2183_v1  ;;  %v10524_v36 = vld [vmem:[%s17457_s10 + $0x8] sm:$0xff]  }
 0x32f   :  { %v2466_v31 = vadd.f32 %v14561_v49, %v2186_v53  ;;  %v2178_v23 = vadd.f32 %v2177_v59, %v14465_v52  ;;  %10103 = vmatpush3.bf16.msra.mxu0 %v10519_v0  ;;  %v2562_v10 = vmul.f32 %v2530_v32, %v18012_v47  ;;  %v2565_v2 = vmul.f32 %v2533_v12, %v18016_v28  ;;  %v10521_v0 = vld [vmem:[%s17457_s10 + $0x20] sm:$0xff]   ;;  %v14760_v12 = vpop.f32.mrf.mxu0 }
 0x330   :  { %v14694_v42 = vpop.xlane.xlu1 %7811  ;;  %v14703_v25 = vpop.f32.mrf.mxu1  ;;  %10104 = vmatprep.subr.bf16.mxu0 %v10520_v15  ;;  %10144 = vmatprep.subr.bf16.mxu1 %v10524_v36 }
 0x331   :  { %18102 = vst [vmem:[#allocation148_spill] sm:$0xff] %v14694_v42  ;;  %v2559_v42 = vmul.f32 %v2527_v51, %v18104_v9  ;;  %v2563_v51 = vmul.f32 %v2531_v62, %v18012_v47  ;;  %v2464_v49 = vadd.f32 %v14575_v54, %v2178_v23  ;;  %v18109_v62 = vld [vmem:[#allocation30_spill] sm:$0xff]  ;;  %10145 = vmatpush3.bf16.msra.mxu1 %v10524_v36 }
 0x332   :  { %10081 = vmatmul.mubr.bf16.gmra.mxu1 %v18034_v45  ;;  %v14722_v22 = vpop.f32.mrf.mxu1  ;;  %v7892_v53 = vadd.f32 %v14335_v58, %v18109_v62  ;;  %v14762_v58 = vpop.xlane.xlu0 %7796 }
 0x333   :  { %10084 = vmatprep.mubr.msk.bf16.mxu1 %vm1838_vm3, %v14215_v56  ;;  %v2558_v56 = vmul.f32 %v2526_v61, %v18104_v9  ;;  %v2463_v61 = vadd.f32 %v14557_v4, %v2175_v30  ;;  %v2564_v4 = vmul.f32 %v2532_v5, %v18016_v28  ;;  %v2592_v54 = vadd.f32 %v2563_v51, %v2562_v10 }
 0x334   :  { %v14720_v38 = vpop.xlane.xlu1 %7814  ;;  %v9867_v7 = vpop.f32.mrf.mxu1  ;;  %v2503_v1 = vadd.f32 %v14664_v18, %v2464_v49  ;;  %10105 = vmatpush3.bf16.msra.mxu0 %v10520_v15  ;;  %v2199_v10 = vadd.f32 %v14703_v25, %v14474_v57  ;;  %v2191_v49 = vadd.f32 %v14722_v22, %v14480_v16 }
 0x335   :  { %18105 = vst [vmem:[#allocation149_spill] sm:$0xff] %v14720_v38  ;;  %v2591_v38 = vadd.f32 %v2561_v63, %v2560_v44  ;;  %v2590_v37 = vadd.f32 %v2559_v42, %v2558_v56  ;;  %v18108_v42 = vld [vmem:[#allocation29_spill] sm:$0xff]  ;;  %v2505_v63 = vadd.f32 %v14664_v18, %v2466_v31  ;;  %v2504_v44 = vadd.f32 %v14664_v18, %v2465_v17 }
 0x336   :  { %v2193_v52 = vpop.f32.mrf.mxu1  ;;  %v7891_v59 = vadd.f32 %v18108_v42, %v14285_v46  ;;  %v10525_v46 = vld [vmem:[%s17457_s10] sm:$0xff]   ;;  %v2593_v15 = vadd.f32 %v2565_v2, %v2564_v4  ;;  %v2502_v56 = vadd.f32 %v14664_v18, %v2463_v61  ;;  %v2202_v5 = vadd.f32 %v9867_v7, %v14494_v21  ;;  %10106 = vmatprep.subr.bf16.mxu0 %v10521_v0  ;;  %v14782_v61 = vpop.f32.mrf.mxu0  ;;  %v18117_v4 = vld [vmem:[#allocation86_spill] sm:$0xff] }
 0x337   :  { %v14764_v14 = vmul.f32 0.5, %v2591_v38  ;;  %v14766_v30 = vmul.f32 0.5, %v2590_v37  ;;  %v7924_v31 = vmul.f32 0.5, %v7892_v53  ;;  %v14778_v17 = vmul.f32 0.5, %v2592_v54  ;;  %10146 = vmatprep.subr.bf16.mxu1 %v10525_v46  ;;  %v18116_v53 = vld [vmem:[#allocation83_spill] sm:$0xff]  ;;  %v14808_v22 = vpop.xlane.xlu0 %7820 }
 0x338   :  { %v14738_v34 = vpop.xlane.xlu1 %7817  ;;  %v14753_v32 = vpop.f32.mrf.mxu1  ;;  %v7923_v37 = vmul.f32 0.5, %v7891_v59  ;;  %v2535_v23 = vmax.f32 %v2503_v1, 0.0  ;;  %10107 = vmatpush3.bf16.msra.mxu0 %v10521_v0  ;;  %v2194_v36 = vadd.f32 %v2193_v52, %v14500_v13  ;;  %v14791_v42 = vmul.f32 0.5, %v2593_v15  ;;  %v18119_v1 = vld [vmem:[#allocation95_spill] sm:$0xff]  ;;  %18120 = vst [vmem:[#allocation83_spill] sm:$0xff] %v14808_v22  ;;  %10147 = vmatpush3.bf16.msra.mxu1 %v10525_v46 }
 0x339   :  { %18107 = vst [vmem:[#allocation151_spill] sm:$0xff] %v14738_v34  ;;  %18110 = vst [vmem:[#allocation29_spill] sm:$0xff] %v14764_v14  ;;  %v2624_v21 = vmul.f32 %v14764_v14, %v18103_v26  ;;  %v2623_v7 = vmul.f32 %v14766_v30, %v18104_v9  ;;  %v2536_v57 = vmax.f32 %v2504_v44, 0.0  ;;  %v2534_v25 = vmax.f32 %v2502_v56, 0.0  ;;  %v18129_v9 = vld [vmem:[#allocation78_spill] sm:$0xff] }
 0x33a   :  { %10085 = vmatmul.mubr.msk.bf16.gmra.mxu1 %vm1838_vm3, %v14224_v50  ;;  %18111 = vst [vmem:[#allocation30_spill] sm:$0xff] %v14766_v30  ;;  %v10526_v50 = vld [vmem:[%s17457_s10 + $0x58] sm:$0xff]   ;;  %v2206_v38 = vpop.f32.mrf.mxu1  ;;  %18113 = vst [vmem:[#allocation153_spill] sm:$0xff] %v14778_v17  ;;  %v2470_v0 = vadd.f32 %v14602_v60, %v2202_v5  ;;  %v14800_v54 = vadd.f32 %v18117_v4, %v18116_v53  ;;  %v14806_v13 = vadd.f32 %v7924_v31, %v7923_v37  ;;  %v14820_v5 = vpop.f32.mrf.mxu0 }
 0x33b   :  { %10088 = vmatprep.mubr.msk.bf16.mxu1 %vm1838_vm3, %v14251_v3  ;;  %v2537_v3 = vmax.f32 %v2505_v63, 0.0  ;;  %10180 = vmatprep.subr.bf16.mxu0 %v10526_v50  ;;  %18114 = vst [vmem:[#allocation154_spill] sm:$0xff] %v14791_v42  ;;  %v18118_v63 = vld [vmem:[#allocation85_spill] sm:$0xff]  ;;  %v2468_v52 = vadd.f32 %v14614_v24, %v2194_v36  ;;  %v2625_v60 = vmul.f32 %v14778_v17, %v18012_v47  ;;  %v2640_v36 = vsel %vm2639_vm4, %v2623_v7, 0.0 }
 0x33c   :  { %v14776_v51 = vpop.xlane.xlu1 %7823  ;;  %v9871_v2 = vpop.f32.mrf.mxu1  ;;  %v14804_v16 = vadd.f32 %v18119_v1, %v18118_v63  ;;  %v2567_v50 = vmul.f32 %v2535_v23, %v18019_v6  ;;  %v2469_v15 = vadd.f32 %v14585_v33, %v2199_v10  ;;  %v2678_v24 = vmul.f32 %v2624_v21, %v14764_v14  ;;  %v18123_v47 = vld [vmem:[#allocation141_spill] sm:$0xff] }
 0x33d   :  { %18112 = vst [vmem:[#allocation152_spill] sm:$0xff] %v14776_v51  ;;  %v2569_v44 = vmul.f32 %v2537_v3, %v18021_v11  ;;  %v2677_v46 = vmul.f32 %v2623_v7, %v14766_v30  ;;  %v2467_v37 = vadd.f32 %v14596_v19, %v2191_v49  ;;  %v2626_v33 = vmul.f32 %v14791_v42, %v18016_v28  ;;  %v14840_v1 = vpop.f32.mrf.mxu0  ;;  %v14844_v7 = vpop.xlane.xlu0 %7826 }
 0x33e   :  { %v14796_v62 = vpop.f32.mrf.mxu1  ;;  %v2568_v31 = vmul.f32 %v2536_v57, %v18021_v11  ;;  %v2566_v3 = vmul.f32 %v2534_v25, %v18019_v6  ;;  %v2507_v53 = vadd.f32 %v14664_v18, %v2468_v52  ;;  %v2207_v19 = vadd.f32 %v2206_v38, %v14517_v48  ;;  %v18121_v48 = vld [vmem:[#allocation88_spill] sm:$0xff] }
 0x33f   :  { %v2679_v49 = vmul.f32 %v2625_v60, %v14778_v17  ;;  %v2508_v57 = vadd.f32 %v14664_v18, %v2469_v15  ;;  %v2694_v34 = vsel %vm2639_vm4, %v2678_v24, 0.0  ;;  %v2506_v52 = vadd.f32 %v14664_v18, %v2467_v37 }
 0x340   :  { %v14794_v59 = vpop.xlane.xlu1 %7829  ;;  %v14816_v56 = vpop.f32.mrf.mxu1  ;;  %v2595_v4 = vadd.f32 %v2569_v44, %v2568_v31  ;;  %v2594_v63 = vadd.f32 %v2567_v50, %v2566_v3  ;;  %v2680_v44 = vmul.f32 %v2626_v33, %v14791_v42  ;;  %v2539_v24 = vmax.f32 %v2507_v53, 0.0  ;;  %v18122_v3 = vld [vmem:[#allocation140_spill] sm:$0xff] }
 0x341   :  { %18115 = vst [vmem:[#allocation155_spill] sm:$0xff] %v14794_v59  ;;  %v2471_v28 = vadd.f32 %v18122_v3, %v2207_v19  ;;  %v2696_v26 = vsel %vm2639_vm4, %v2679_v49, 0.0  ;;  %v2645_v53 = vsel %vm2639_vm4, %v2626_v33, 0.0  ;;  %v2538_v19 = vmax.f32 %v2506_v52, 0.0  ;;  %v18126_v3 = vld [vmem:[#allocation137_spill] sm:$0xff]  ;;  %v18131_v52 = vld [vmem:[#allocation10_spill] sm:$0xff] }
 0x342   :  { %10089 = vmatmul.mubr.msk.bf16.gmra.mxu1 %vm1838_vm3, %v14256_v8  ;;  %v2509_v8 = vadd.f32 %v14664_v18, %v2470_v0  ;;  %v2222_v10 = vpop.f32.mrf.mxu1  ;;  %v2641_v0 = vsel %vm2639_vm4, %v2624_v21, 0.0  ;;  %v2643_v21 = vsel %vm2639_vm4, %v2625_v60, 0.0  ;;  %v2698_v49 = vsel %vm2639_vm4, %v2680_v44, 0.0 }
 0x343   :  { %10092 = vmatprep.mubr.msk.bf16.mxu1 %vm1838_vm3, %v14283_v39  ;;  %v2218_v39 = vadd.f32 %v9871_v2, %v14525_v40  ;;  %v2215_v40 = vadd.f32 %v14753_v32, %v18121_v48  ;;  %v2642_v38 = vadd.f32 %v2641_v0, %v2640_v36  ;;  %v2693_v2 = vsel %vm2639_vm4, %v2677_v46, 0.0  ;;  %v14867_v48 = vpop.f32.mrf.mxu0 }
 0x344   :  { %v14832_v23 = vpop.xlane.xlu1 %7835  ;;  %v9875_v25 = vpop.f32.mrf.mxu1  ;;  %v2541_v50 = vmax.f32 %v2509_v8, 0.0  ;;  %v14859_v32 = vmul.f32 0.5, %v2595_v4  ;;  %v14861_v36 = vmul.f32 0.5, %v2594_v63  ;;  %v2540_v46 = vmax.f32 %v2508_v57, 0.0  ;;  %v18125_v8 = vld [vmem:[#allocation71_spill] sm:$0xff] }
 0x345   :  { %v2474_v37 = vadd.f32 %v18123_v47, %v2218_v39  ;;  %v2695_v60 = vadd.f32 %v2694_v34, %v2693_v2  ;;  %v2473_v47 = vadd.f32 %v18126_v3, %v2215_v40  ;;  %v18127_v39 = vld [vmem:[#allocation62_spill] sm:$0xff]  ;;  %v2644_v4 = vadd.f32 %v2643_v21, %v2642_v38  ;;  %v18128_v63 = vld [vmem:[#allocation27_spill] sm:$0xff]  ;;  %v7833_v34 = vpop.xlane.xlu0 %7832 }
 0x346   :  { %v14853_v31 = vpop.f32.mrf.mxu1  ;;  %18124 = vst [vmem:[#allocation86_spill] sm:$0xff] %v14859_v32  ;;  %v2573_v57 = vmul.f32 %v2541_v50, %v18128_v63  ;;  %v2210_v42 = vadd.f32 %v14796_v62, %v18129_v9  ;;  %v2571_v2 = vmul.f32 %v2539_v24, %v18131_v52  ;;  %v2510_v40 = vadd.f32 %v14664_v18, %v2471_v28  ;;  %v18132_v62 = vld [vmem:[#allocation143_spill] sm:$0xff]  ;;  %v18133_v24 = vld [vmem:[#allocation122_spill] sm:$0xff] }
 0x347   :  { %v2697_v33 = vadd.f32 %v2696_v26, %v2695_v60  ;;  %v2513_v3 = vadd.f32 %v14664_v18, %v2474_v37  ;;  %v2628_v38 = vmul.f32 %v14859_v32, %v18021_v11  ;;  %v2627_v44 = vmul.f32 %v14861_v36, %v18019_v6  ;;  %v18134_v60 = vld [vmem:[#allocation123_spill] sm:$0xff] }
 0x348   :  { %v14851_v15 = vpop.xlane.xlu1 %7841  ;;  %v14863_v0 = vpop.f32.mrf.mxu1  ;;  %v2572_v9 = vmul.f32 %v2540_v46, %v18128_v63  ;;  %v2472_v50 = vadd.f32 %v18132_v62, %v2210_v42  ;;  %v2570_v26 = vmul.f32 %v2538_v19, %v18131_v52  ;;  %v2512_v28 = vadd.f32 %v14664_v18, %v2473_v47 }
 0x349   :  { %v2223_v37 = vadd.f32 %v2222_v10, %v18133_v24  ;;  %v2234_v14 = vadd.f32 %v9875_v25, %v18134_v60  ;;  %v2646_v11 = vadd.f32 %v2645_v53, %v2644_v4  ;;  %v2699_v62 = vadd.f32 %v2698_v49, %v2697_v33 }
 0x34a   :  { %10093 = vmatmul.mubr.msk.bf16.gmra.mxu1 %vm1838_vm3, %v18125_v8  ;;  %v14879_v17 = vpop.f32.mrf.mxu1  ;;  %v2597_v30 = vadd.f32 %v2573_v57, %v2572_v9  ;;  %v2511_v6 = vadd.f32 %v14664_v18, %v2472_v50  ;;  %v2596_v51 = vadd.f32 %v2571_v2, %v2570_v26  ;;  %v2542_v22 = vmax.f32 %v2510_v40, 0.0 }
 0x34b   :  { %10096 = vmatprep.mubr.msk.bf16.mxu1 %vm1838_vm3, %v18127_v39  ;;  %v14892_v39 = vpop.f32.mrf.mxu0  ;;  %v2545_v59 = vmax.f32 %v2513_v3, 0.0  ;;  %v2682_v47 = vmul.f32 %v2628_v38, %v14859_v32  ;;  %v2647_v10 = vsel %vm2639_vm4, %v2627_v44, 0.0  ;;  %v7913_v53 = vadd.f32 %v14832_v23, %v7833_v34 }
 0x34c   :  { %v14877_v8 = vpop.xlane.xlu1 %7847  ;;  %v14890_v21 = vpop.f32.mrf.mxu1  ;;  %v2543_v25 = vmax.f32 %v2511_v6, 0.0  ;;  %v2681_v49 = vmul.f32 %v2627_v44, %v14861_v36  ;;  %v2475_v33 = vadd.f32 %v14654_v55, %v2223_v37  ;;  %v2478_v2 = vadd.f32 %v14678_v20, %v2234_v14  ;;  %v18137_v6 = vld [vmem:[#allocation32_spill] sm:$0xff]  ;;  %v18139_v55 = vld [vmem:[#allocation34_spill] sm:$0xff]  ;;  %v18140_v37 = vld [vmem:[#allocation125_spill] sm:$0xff] }
 0x34d   :  { %18130 = vst [vmem:[#allocation85_spill] sm:$0xff] %v14877_v8  ;;  %v18135_v8 = vld [vmem:[#allocation84_spill] sm:$0xff]  ;;  %v14918_v3 = vmul.f32 0.5, %v2597_v30  ;;  %v14925_v26 = vmul.f32 0.5, %v2596_v51  ;;  %v2574_v44 = vmul.f32 %v2542_v22, %v18137_v6  ;;  %v7945_v14 = vmul.f32 0.5, %v7913_v53  ;;  %v18141_v22 = vld [vmem:[#allocation126_spill] sm:$0xff] }
 0x34e   :  { %v2231_v46 = vadd.f32 %v14816_v56, %v18135_v8  ;;  %v14901_v42 = vpop.f32.mrf.mxu1  ;;  %v7839_v56 = vpop.xlane.xlu0 %7838  ;;  %v2544_v8 = vmax.f32 %v2512_v28, 0.0  ;;  %v2575_v23 = vmul.f32 %v2543_v25, %v18137_v6  ;;  %v2577_v28 = vmul.f32 %v2545_v59, %v18139_v55 }
 0x34f   :  { %18136 = vst [vmem:[#allocation95_spill] sm:$0xff] %v14918_v3  ;;  %v7914_v9 = vadd.f32 %v14851_v15, %v7839_v56  ;;  %18138 = vst [vmem:[#allocation88_spill] sm:$0xff] %v14925_v26  ;;  %v2517_v30 = vadd.f32 %v14664_v18, %v2478_v2  ;;  %v2700_v15 = vsel %vm2639_vm4, %v2681_v49, 0.0  ;;  %v2514_v51 = vadd.f32 %v14664_v18, %v2475_v33  ;;  %v18144_v33 = vld [vmem:[#allocation128_spill] sm:$0xff] }
 0x350   :  { %v14903_v19 = vpop.f32.mrf.mxu0  ;;  %v14908_v4 = vpop.xlane.xlu1 %7853  ;;  %v2477_v34 = vadd.f32 %v14644_v27, %v2231_v46  ;;  %v2226_v27 = vadd.f32 %v14853_v31, %v18140_v37  ;;  %v2247_v59 = vadd.f32 %v14863_v0, %v18141_v22  ;;  %v2649_v49 = vsel %vm2639_vm4, %v2628_v38, 0.0  ;;  %v18145_v22 = vld [vmem:[#allocation130_spill] sm:$0xff] }
 0x351   :  { %v14910_v57 = vpop.f32.mrf.mxu1  ;;  %v7946_v24 = vmul.f32 0.5, %v7914_v9  ;;  %v2629_v0 = vmul.f32 %v14925_v26, %v18131_v52  ;;  %v2702_v9 = vsel %vm2639_vm4, %v2682_v47, 0.0  ;;  %v2701_v38 = vadd.f32 %v2700_v15, %v2699_v62 }
 0x352   :  { %10097 = vmatmul.mubr.bf16.gmra.mxu1 %v18034_v45  ;;  %v14916_v40 = vpop.f32.mrf.mxu0  ;;  %v2648_v45 = vadd.f32 %v2647_v10, %v2646_v11  ;;  %v2576_v11 = vmul.f32 %v2544_v8, %v18139_v55  ;;  %v2598_v10 = vadd.f32 %v2575_v23, %v2574_v44  ;;  %v2516_v25 = vadd.f32 %v14664_v18, %v2477_v34 }
 0x353   :  { %v14923_v50 = vpop.f32.mrf.mxu1  ;;  %v14944_v53 = vadd.f32 %v7946_v24, %v7945_v14  ;;  %v2476_v31 = vadd.f32 %v14699_v35, %v2226_v27  ;;  %v2630_v8 = vmul.f32 %v14918_v3, %v18128_v63  ;;  %v2239_v23 = vadd.f32 %v14879_v17, %v18144_v33 }
 0x354   :  { %v14929_v20 = vpop.f32.mrf.mxu0  ;;  %v14947_v56 = vpop.xlane.xlu1 %7856  ;;  %v2599_v35 = vadd.f32 %v2577_v28, %v2576_v11  ;;  %v2549_v44 = vmax.f32 %v2517_v30, 0.0  ;;  %v2546_v37 = vmax.f32 %v2514_v51, 0.0  ;;  %v2481_v27 = vadd.f32 %v14709_v43, %v2247_v59 }
 0x355   :  { %v14934_v60 = vpop.f32.mrf.mxu1  ;;  %18143 = vst [vmem:[#allocation141_spill] sm:$0xff] %v14944_v53  ;;  %v2515_v14 = vadd.f32 %v14664_v18, %v2476_v31  ;;  %v2650_v17 = vadd.f32 %v2649_v49, %v2648_v45  ;;  %v14969_v33 = vmul.f32 0.5, %v2598_v10  ;;  %v2548_v63 = vmax.f32 %v2516_v25, 0.0  ;;  %v18148_v45 = vld [vmem:[#allocation36_spill] sm:$0xff]  ;;  %v18149_v49 = vld [vmem:[#allocation35_spill] sm:$0xff] }
 0x356   :  { %v14941_v46 = vpop.f32.mrf.mxu0  ;;  %v2479_v47 = vadd.f32 %v14731_v29, %v2239_v23  ;;  %v2653_v30 = vsel %vm2639_vm4, %v2630_v8, 0.0  ;;  %v2684_v62 = vmul.f32 %v2630_v8, %v14918_v3  ;;  %v2651_v15 = vsel %vm2639_vm4, %v2629_v0, 0.0 }
 0x357   :  { %18142 = vst [vmem:[#allocation140_spill] sm:$0xff] %v14941_v46  ;;  %v14949_v2 = vpop.f32.mrf.mxu1  ;;  %v2250_v46 = vadd.f32 %v14890_v21, %v18145_v22  ;;  %18146 = vst [vmem:[#allocation71_spill] sm:$0xff] %v14969_v33  ;;  %v2547_v43 = vmax.f32 %v2515_v14, 0.0  ;;  %v2683_v21 = vmul.f32 %v2629_v0, %v14925_v26  ;;  %v14980_v51 = vmul.f32 0.5, %v2599_v35 }
 0x358   :  { %v14958_v34 = vpop.f32.mrf.mxu0  ;;  %v2581_v59 = vmul.f32 %v2549_v44, %v18148_v45  ;;  %v14984_v29 = vpop.xlane.xlu1 %7859  ;;  %v2703_v31 = vadd.f32 %v2702_v9, %v2701_v38  ;;  %v2578_v8 = vmul.f32 %v2546_v37, %v18149_v49  ;;  %v2520_v14 = vadd.f32 %v14664_v18, %v2481_v27 }
 0x359   :  { %18147 = vst [vmem:[#allocation137_spill] sm:$0xff] %v14980_v51  ;;  %v2482_v10 = vadd.f32 %v14760_v12, %v2250_v46  ;;  %v2579_v23 = vmul.f32 %v2547_v43, %v18149_v49  ;;  %v2631_v0 = vmul.f32 %v14969_v33, %v18137_v6  ;;  %v2580_v35 = vmul.f32 %v2548_v63, %v18148_v45  ;;  %v18152_v43 = vld [vmem:[#allocation132_spill] sm:$0xff] }
 0x35a   :  { %v14962_v24 = vpop.f32.mrf.mxu1  ;;  %v14967_v53 = vpop.f32.mrf.mxu0  ;;  %v2518_v12 = vadd.f32 %v14664_v18, %v2479_v47  ;;  %v2706_v9 = vsel %vm2639_vm4, %v2684_v62, 0.0  ;;  %v2652_v38 = vadd.f32 %v2651_v15, %v2650_v17  ;;  %v2242_v27 = vadd.f32 %v14901_v42, %v18152_v43  ;;  %v18154_v62 = vld [vmem:[#allocation133_spill] sm:$0xff]  ;;  %v18155_v43 = vld [vmem:[#allocation136_spill] sm:$0xff] }
 0x35b   :  { %v2521_v46 = vadd.f32 %v14664_v18, %v2482_v10  ;;  %v2600_v37 = vadd.f32 %v2579_v23, %v2578_v8  ;;  %v2632_v63 = vmul.f32 %v14980_v51, %v18139_v55  ;;  %v2601_v6 = vadd.f32 %v2581_v59, %v2580_v35 }
 0x35c   :  { %v14972_v28 = vpop.f32.mrf.mxu1  ;;  %v14977_v11 = vpop.f32.mrf.mxu0  ;;  %v2480_v17 = vadd.f32 %v14782_v61, %v2242_v27  ;;  %v2263_v15 = vadd.f32 %v14910_v57, %v18154_v62  ;;  %v2655_v8 = vsel %vm2639_vm4, %v2631_v0, 0.0  ;;  %v2550_v23 = vmax.f32 %v2518_v12, 0.0  ;;  %v18157_v27 = vld [vmem:[#allocation134_spill] sm:$0xff] }
 0x35d   :  { %v2553_v47 = vmax.f32 %v2521_v46, 0.0  ;;  %v15010_v10 = vmul.f32 0.5, %v2600_v37  ;;  %v2266_v59 = vadd.f32 %v14934_v60, %v18155_v43  ;;  %v15021_v35 = vpop.xlane.xlu1 %7862  ;;  %v2255_v62 = vadd.f32 %v14923_v50, %v18157_v27 }
 0x35e   :  { %v14986_v25 = vpop.f32.mrf.mxu1  ;;  %v14991_v22 = vpop.f32.mrf.mxu0  ;;  %v2519_v61 = vadd.f32 %v14664_v18, %v2480_v17  ;;  %v2485_v57 = vadd.f32 %v14820_v5, %v2263_v15  ;;  %v2654_v12 = vadd.f32 %v2653_v30, %v2652_v38  ;;  %v2686_v26 = vmul.f32 %v2632_v63, %v14980_v51 }
 0x35f   :  { %18150 = vst [vmem:[#allocation62_spill] sm:$0xff] %v14991_v22  ;;  %v2704_v22 = vsel %vm2639_vm4, %v2683_v21, 0.0  ;;  %18153 = vst [vmem:[#allocation143_spill] sm:$0xff] %v15010_v10  ;;  %v2685_v21 = vmul.f32 %v2631_v0, %v14969_v33  ;;  %v15032_v33 = vmul.f32 0.5, %v2601_v6  ;;  %v2486_v60 = vadd.f32 %v14867_v48, %v2266_v59 }
 0x360   :  { %v14998_v44 = vpop.f32.mrf.mxu1  ;;  %v15003_v52 = vpop.f32.mrf.mxu0  ;;  %v2705_v0 = vadd.f32 %v2704_v22, %v2703_v31  ;;  %v2551_v5 = vmax.f32 %v2519_v61, 0.0  ;;  %v2656_v50 = vadd.f32 %v2655_v8, %v2654_v12  ;;  %v18159_v31 = vld [vmem:[#allocation13_spill] sm:$0xff]  ;;  %v2524_v6 = vadd.f32 %v14664_v18, %v2485_v57 }
 0x361   :  { %18151 = vst [vmem:[#allocation78_spill] sm:$0xff] %v14998_v44  ;;  %v2552_v44 = vmax.f32 %v2520_v14, 0.0  ;;  %v18156_v14 = vld [vmem:[#allocation18_spill] sm:$0xff]  ;;  %v2708_v27 = vsel %vm2639_vm4, %v2685_v21, 0.0  ;;  %v2582_v30 = vmul.f32 %v2550_v23, %v18159_v31  ;;  %v2483_v59 = vadd.f32 %v14840_v1, %v2255_v62  ;;  %v18161_v8 = vld [vmem:[#allocation33_spill] sm:$0xff]  ;;  %v18162_v21 = vld [vmem:[#allocation60_spill] sm:$0xff] }
 0x362   :  { %v15008_v3 = vpop.f32.mrf.mxu1  ;;  %v15015_v42 = vpop.f32.mrf.mxu0  ;;  %v2585_v37 = vmul.f32 %v2553_v47, %v18156_v14  ;;  %v2633_v47 = vmul.f32 %v15010_v10, %v18149_v49  ;;  %v2583_v38 = vmul.f32 %v2551_v5, %v18159_v31  ;;  %v2525_v49 = vadd.f32 %v14664_v18, %v2486_v60 }
 0x363   :  { %v2584_v17 = vmul.f32 %v2552_v44, %v18156_v14  ;;  %v15052_v61 = vmul.f32 0.5, %v14806_v13  ;;  %v15056_v12 = vadd.f32 %v18162_v21, %v18161_v8  ;;  %v2707_v23 = vadd.f32 %v2706_v9, %v2705_v0 }
 0x364   :  { %v15023_v46 = vpop.f32.mrf.mxu1  ;;  %v15030_v55 = vpop.f32.mrf.mxu0  ;;  %v2634_v57 = vmul.f32 %v15032_v33, %v18148_v45  ;;  %v2657_v1 = vsel %vm2639_vm4, %v2632_v63, 0.0  ;;  %v2687_v62 = vmul.f32 %v2633_v47, %v15010_v10  ;;  %v2602_v60 = vadd.f32 %v2583_v38, %v2582_v30  ;;  %v18163_v30 = vld [vmem:[#allocation24_spill] sm:$0xff]  ;;  %v18164_v10 = vld [vmem:[#allocation138_spill] sm:$0xff] }
 0x365   :  { %v2603_v48 = vadd.f32 %v2585_v37, %v2584_v17  ;;  %v15060_v37 = vpop.xlane.xlu1 %7865  ;;  %v2557_v5 = vmax.f32 %v2525_v49, 0.0  ;;  %v2710_v13 = vsel %vm2639_vm4, %v2686_v26, 0.0  ;;  %v2659_v8 = vsel %vm2639_vm4, %v2633_v47, 0.0 }
 0x366   :  { %v9931_v43 = vpop.f32.mrf.mxu1  ;;  %v15039_v15 = vpop.f32.mrf.mxu0  ;;  %v2556_v9 = vmax.f32 %v2524_v6, 0.0  ;;  %v2658_v21 = vadd.f32 %v2657_v1, %v2656_v50  ;;  %v15070_v51 = vmul.f32 0.5, %v2602_v60  ;;  %v2522_v63 = vadd.f32 %v14664_v18, %v2483_v59 }
 0x367   :  { %18158 = vst [vmem:[#allocation122_spill] sm:$0xff] %v15039_v15  ;;  %v15068_v45 = vmul.f32 0.5, %v2603_v48  ;;  %v2688_v49 = vmul.f32 %v2634_v57, %v15032_v33  ;;  %v2589_v38 = vmul.f32 %v2557_v5, %v18163_v30  ;;  %v2258_v26 = vadd.f32 %v14949_v2, %v18164_v10  ;;  %v18167_v5 = vld [vmem:[#allocation89_spill] sm:$0xff] }
 0x368   :  { %v15044_v22 = vpop.f32.mrf.mxu1  ;;  %v15049_v44 = vpop.f32.mrf.mxu0  ;;  %v15081_v47 = vadd.f32 %v14903_v19, %v14962_v24  ;;  %v2712_v6 = vsel %vm2639_vm4, %v2687_v62, 0.0  ;;  %v15086_v48 = vadd.f32 %v14916_v40, %v14972_v28  ;;  %v15090_v59 = vadd.f32 %v14929_v20, %v14986_v25 }
 0x369   :  { %18160 = vst [vmem:[#allocation123_spill] sm:$0xff] %v15044_v22  ;;  %v2709_v22 = vadd.f32 %v2708_v27, %v2707_v23  ;;  %v2660_v27 = vadd.f32 %v2659_v8, %v2658_v21  ;;  %v2635_v2 = vmul.f32 %v15070_v51, %v18159_v31  ;;  %v2588_v19 = vmul.f32 %v2556_v9, %v18163_v30  ;;  %v7564_v1 = vpop.permute.xlu1 %7563  ;;  %v18168_v8 = vld [vmem:[#allocation81_spill] sm:$0xff] }
 0x36a   :  { %v9934_v17 = vpop.f32.mrf.mxu1  ;;  %v15064_v15 = vpop.f32.mrf.mxu0  ;;  %v2484_v24 = vadd.f32 %v14892_v39, %v2258_v26  ;;  %v15100_v10 = vadd.f32 %v14958_v34, %v15008_v3  ;;  %v2636_v20 = vmul.f32 %v15068_v45, %v18156_v14  ;;  %v2554_v25 = vmax.f32 %v2522_v63, 0.0 }
 0x36b   :  { %v2711_v28 = vadd.f32 %v2710_v13, %v2709_v22  ;;  %v15108_v62 = vadd.f32 %v14967_v53, %v15023_v46  ;;  %v7896_v39 = vadd.f32 %v18168_v8, %v18167_v5  ;;  %v2605_v9 = vadd.f32 %v2589_v38, %v2588_v19  ;;  %v18169_v22 = vld [vmem:[#allocation49_spill] sm:$0xff]  ;;  %v18170_v13 = vld [vmem:[#allocation43_spill] sm:$0xff] }
 0x36c   :  { %v3524_v0 = vpop.f32.mrf.mxu1  ;;  %v15073_v32 = vpop.f32.mrf.mxu0  ;;  %v2523_v3 = vadd.f32 %v14664_v18, %v2484_v24  ;;  %v15114_v34 = vadd.f32 %v14977_v11, %v9931_v43  ;;  %v7898_v26 = vadd.f32 %v18170_v13, %v18169_v22  ;;  %v2661_v63 = vsel %vm2639_vm4, %v2634_v57, 0.0  ;;  %v10636_v53 = vld [vmem:[%s17692_s29 + $0x1c8] sm:$0xff] }
 0x36d   :  { %v15122_v46 = vsub.f32 %v10636_v53, %v7564_v1  ;;  %v2714_v38 = vsel %vm2639_vm4, %v2688_v49, 0.0  ;;  %v2662_v18 = vadd.f32 %v2661_v63, %v2660_v27  ;;  %v2689_v11 = vmul.f32 %v2635_v2, %v15070_v51  ;;  %v18172_v8 = vld [vmem:[#allocation21_spill] sm:$0xff] }
 0x36e   :  { %v9935_v50 = vpop.f32.mrf.mxu1  ;;  %v15092_v23 = vpop.f32.mrf.mxu0  ;;  %v2555_v43 = vmax.f32 %v2523_v3, 0.0  ;;  %v2690_v24 = vmul.f32 %v2636_v20, %v15068_v45  ;;  %v2586_v22 = vmul.f32 %v2554_v25, %v18172_v8  ;;  %v2663_v49 = vsel %vm2639_vm4, %v2635_v2, 0.0 }
 0x36f   :  { %18165 = vst [vmem:[#allocation84_spill] sm:$0xff] %v15092_v23  ;;  %v2713_v23 = vadd.f32 %v2712_v6, %v2711_v28  ;;  %18171 = vst [vmem:[#allocation126_spill] sm:$0xff] %v15122_v46  ;;  %v7692_v57 = vmul.f32 %v15122_v46, %v15122_v46  ;;  %v10637_v6 = vld [vmem:[%s17692_s29 + $0x1c0] sm:$0xff]  ;;  %v15136_v27 = vmul.f32 0.5, %v2605_v9  ;;  %v15140_v63 = vadd.f32 %v15003_v52, %v9934_v17  ;;  %v10638_v52 = vld [vmem:[%s17692_s29 + $0x1d0] sm:$0xff] }
 0x370   :  { %v15102_v40 = vpop.f32.mrf.mxu1  ;;  %v9978_v60 = vpop.f32.mrf.mxu0  ;;  %v15133_v28 = vsub.f32 %v10637_v6, %v7564_v1  ;;  %v2587_v3 = vmul.f32 %v2555_v43, %v18172_v8  ;;  %v15146_v6 = vadd.f32 %v15015_v42, %v3524_v0  ;;  %v2716_v2 = vsel %vm2639_vm4, %v2689_v11, 0.0  ;;  %v10639_v0 = vld [vmem:[%s17692_s29 + $0x1d8] sm:$0xff] }
 0x371   :  { %18166 = vst [vmem:[#allocation125_spill] sm:$0xff] %v15102_v40  ;;  %v2715_v53 = vadd.f32 %v2714_v38, %v2713_v23  ;;  %v7870_v46 = vsel %vm346_vm2, %v7692_v57, 0.0  ;;  %v15154_v17 = vsub.f32 %v10638_v52, %v7564_v1  ;;  %v15157_v23 = vadd.f32 %v15030_v55, %v9935_v50  ;;  %v18178_v52 = vld [vmem:[#allocation48_spill] sm:$0xff] }
 0x372   :  { %v9938_v21 = vpop.f32.mrf.mxu1  ;;  %v3774_v5 = vpop.f32.mrf.mxu0  ;;  %18173 = vst [vmem:[#allocation128_spill] sm:$0xff] %v15133_v28  ;;  %v7691_v40 = vmul.f32 %v15133_v28, %v15133_v28  ;;  %v2604_v9 = vadd.f32 %v2587_v3, %v2586_v22  ;;  %7871 = vadd.xlane.f32.xlu1 %v7870_v46  ;;  %v2664_v43 = vadd.f32 %v2663_v49, %v2662_v18  ;;  %v7928_v49 = vmul.f32 0.5, %v7896_v39 }
 0x373   :  { %18175 = vst [vmem:[#allocation132_spill] sm:$0xff] %v15154_v17  ;;  %v15165_v11 = vsub.f32 %v10639_v0, %v7564_v1  ;;  %v15168_v46 = vadd.f32 %v15049_v44, %v9938_v21  ;;  %v2638_v57 = vmul.f32 %v15136_v27, %v18163_v30  ;;  %v7693_v50 = vmul.f32 %v15154_v17, %v15154_v17  ;;  %v18179_v0 = vld [vmem:[#allocation120_spill] sm:$0xff] }
 0x374   :  { %v3540_v19 = vpop.f32.mrf.mxu1  ;;  %v9979_v13 = vpop.f32.mrf.mxu0  ;;  %v7867_v42 = vsel %vm346_vm2, %v7691_v40, 0.0  ;;  %v15172_v55 = vmul.f32 0.5, %v2604_v9  ;;  %v2717_v1 = vadd.f32 %v2716_v2, %v2715_v53  ;;  %v7897_v9 = vadd.f32 %v18179_v0, %v18178_v52 }
 0x375   :  { %18177 = vst [vmem:[#allocation136_spill] sm:$0xff] %v15165_v11  ;;  %7868 = vadd.xlane.f32.xlu0 %v7867_v42  ;;  %v15177_v40 = vadd.f32 %v15064_v15, %v3540_v19  ;;  %v7930_v28 = vmul.f32 0.5, %v7898_v26  ;;  %v2665_v42 = vsel %vm2639_vm4, %v2636_v20, 0.0  ;;  %v7873_v39 = vsel %vm346_vm2, %v7693_v50, 0.0 }
 0x376   :  { %v9939_v25 = vpop.f32.mrf.mxu1  ;;  %v15148_v14 = vpop.f32.mrf.mxu0  ;;  %v2637_v17 = vmul.f32 %v15172_v55, %v18172_v8  ;;  %v2666_v19 = vadd.f32 %v2665_v42, %v2664_v43  ;;  %v7694_v53 = vmul.f32 %v15165_v11, %v15165_v11  ;;  %v2692_v2 = vmul.f32 %v2638_v57, %v15136_v27  ;;  %v18182_v11 = vld [vmem:[#allocation124_spill] sm:$0xff] }
 0x377   :  { %18174 = vst [vmem:[#allocation130_spill] sm:$0xff] %v15148_v14  ;;  %v15180_v44 = vadd.f32 %v15073_v32, %v9939_v25  ;;  %v7927_v43 = vmul.f32 0.5, %v15056_v12  ;;  %v2669_v14 = vsel %vm2639_vm4, %v2638_v57, 0.0 }
 0x378   :  { %v15159_v38 = vpop.f32.mrf.mxu1  ;;  %v9982_v22 = vpop.f32.mrf.mxu0  ;;  %v2667_v26 = vsel %vm2639_vm4, %v2637_v17, 0.0  ;;  %v2691_v20 = vmul.f32 %v2637_v17, %v15172_v55  ;;  %v18184_v17 = vld [vmem:[#allocation46_spill] sm:$0xff] }
 0x379   :  { %18176 = vst [vmem:[#allocation133_spill] sm:$0xff] %v15159_v38  ;;  %7874 = vadd.xlane.f32.xlu0 %v7873_v39  ;;  %v2668_v52 = vadd.f32 %v2667_v26, %v2666_v19  ;;  %10543 = vrcp.f32 %v18184_v17  ;;  %v18185_v26 = vld [vmem:[#allocation74_spill] sm:$0xff] }
 0x37a   :  { %v9942_v18 = vpop.f32.mrf.mxu1  ;;  %v3790_v3 = vpop.f32.mrf.mxu0  ;;  %v2720_v38 = vsel %vm2639_vm4, %v2691_v20, 0.0 }
 0x37b   :  { %v15182_v21 = vadd.f32 %v9978_v60, %v9942_v18  ;;  %v2718_v60 = vsel %vm2639_vm4, %v2690_v24, 0.0  ;;  %v2670_v39 = vadd.f32 %v2669_v14, %v2668_v52  ;;  %v7441_v14 = vmul.f32 0.5, %v14800_v54 }
 0x37c   :  { %v3556_v15 = vpop.f32.mrf.mxu1  ;;  %v9983_v32 = vpop.f32.mrf.mxu0  ;;  %v2719_v50 = vadd.f32 %v2718_v60, %v2717_v1  ;;  %v7876_v1 = vsel %vm346_vm2, %v7694_v53, 0.0  ;;  %v7957_v60 = vadd.f32 %v7928_v49, %v7927_v43  ;;  %v7987_v53 = vmul.f32 0.26666668, %v15052_v61 }
 0x37d   :  { %v15192_v25 = vadd.f32 %v3774_v5, %v3556_v15  ;;  %v7929_v5 = vmul.f32 0.5, %v7897_v9  ;;  %v18181_v15 = vld [vmem:[#allocation121_spill] sm:$0xff]  ;;  %v18186_v9 = vld [vmem:[#allocation80_spill] sm:$0xff]  ;;  %7877 = vadd.xlane.f32.xlu0 %v7876_v1 }
 0x37e   :  { %v9943_v18 = vpop.f32.mrf.mxu1  ;;  %v15199_v0 = vpop.f32.mrf.mxu0  ;;  %v7902_v24 = vadd.f32 %v18182_v11, %v18181_v15  ;;  %v2721_v12 = vadd.f32 %v2720_v38, %v2719_v50  ;;  %v2722_v11 = vsel %vm2639_vm4, %v2692_v2, 0.0  ;;  %v2671_v15 = vrot.slane %v2670_v39, 4 }
 0x37f   :  { %18180 = vst [vmem:[#allocation134_spill] sm:$0xff] %v15199_v0  ;;  %v15201_v42 = vadd.f32 %v9979_v13, %v9943_v18  ;;  %v7958_v13 = vadd.f32 %v7930_v28, %v7929_v5  ;;  %v7901_v18 = vadd.f32 %v18186_v9, %v18185_v26  ;;  %v7442_v38 = vmul.f32 0.5, %v14804_v16 }
 0x380   :  { %v15207_v30 = vpop.f32.mrf.mxu1  ;;  %v9986_v19 = vpop.f32.mrf.mxu0  ;;  %v2723_v20 = vadd.f32 %v2722_v11, %v2721_v12  ;;  %v7934_v49 = vmul.f32 0.5, %v7902_v24  ;;  %v2672_v43 = vadd.f32 %v2671_v15, %v2670_v39  ;;  %v7973_v2 = vmul.f32 0.5, %v7957_v60  ;;  %v18189_v12 = vld [vmem:[#allocation150_spill] sm:$0xff]  ;;  %v18193_v15 = vld [vmem:[#allocation127_spill] sm:$0xff] }
 0x381   :  { %18183 = vst [vmem:[#allocation13_spill] sm:$0xff] %v15207_v30  ;;  %v7974_v17 = vmul.f32 0.5, %v7958_v13  ;;  %v7933_v1 = vmul.f32 0.5, %v7901_v18  ;;  %v7458_v61 = vadd.f32 %v7442_v38, %v7441_v14  ;;  %v8003_v24 = vadd.f32 1e-06, %v7987_v53  ;;  %v18195_v60 = vld [vmem:[#allocation135_spill] sm:$0xff] }
 0x382   :  { %v9946_v57 = vpop.f32.mrf.mxu1  ;;  %v3806_v0 = vpop.f32.mrf.mxu0  ;;  %v2724_v52 = vrot.slane %v2723_v20, 4  ;;  %v2673_v9 = vrot.slane %v2672_v43, 2  ;;  %v18196_v13 = vld [vmem:[#allocation139_spill] sm:$0xff] }
 0x383   :  { %v15214_v30 = vadd.f32 %v9982_v22, %v9946_v57  ;;  %v7904_v22 = vadd.f32 %v18189_v12, %v14684_v41  ;;  %v7960_v39 = vadd.f32 %v7934_v49, %v7933_v1  ;;  %v18192_v57 = vld [vmem:[#allocation146_spill] sm:$0xff]  ;;  %v7906_v18 = vadd.f32 %v18196_v13, %v18195_v60 }
 0x384   :  { %v3572_v28 = vpop.f32.mrf.mxu1  ;;  %v9987_v50 = vpop.f32.mrf.mxu0  ;;  %v2725_v54 = vadd.f32 %v2724_v52, %v2723_v20  ;;  %v2674_v8 = vadd.f32 %v2673_v9, %v2672_v43  ;;  %v7990_v20 = vmul.f32 0.26666668, %v7974_v17  ;;  %10545 = vrsqrt.f32 %v8003_v24 }
 0x385   :  { %18187 = vst [vmem:[#allocation33_spill] sm:$0xff] %v15214_v30  ;;  %v15219_v5 = vadd.f32 %v3790_v3, %v3572_v28  ;;  %v7903_v3 = vadd.f32 %v18193_v15, %v18192_v57  ;;  %v7936_v52 = vmul.f32 0.5, %v7904_v22  ;;  %v7474_v57 = vmul.f32 0.5, %v7458_v61  ;;  %v7845_v9 = vpop.xlane.xlu0 %7844 }
 0x386   :  { %v9947_v26 = vpop.f32.mrf.mxu1  ;;  %v15223_v11 = vpop.f32.mrf.mxu0  ;;  %v2726_v41 = vrot.slane %v2725_v54, 2  ;;  %v2675_v38 = vrot.slane %v2674_v8, 1  ;;  %v7976_v15 = vmul.f32 0.5, %v7960_v39  ;;  %v7938_v43 = vmul.f32 0.5, %v7906_v18 }
 0x387   :  { %18188 = vst [vmem:[#allocation60_spill] sm:$0xff] %v15219_v5  ;;  %18190 = vst [vmem:[#allocation138_spill] sm:$0xff] %v15223_v11  ;;  %v15225_v16 = vadd.f32 %v9983_v32, %v9947_v26  ;;  %v7989_v5 = vmul.f32 0.26666668, %v7973_v2  ;;  %v18197_v32 = vld [vmem:[#allocation129_spill] sm:$0xff]  ;;  %v18198_v26 = vld [vmem:[#allocation131_spill] sm:$0xff] }
 0x388   :  { %v15229_v28 = vpop.f32.mrf.mxu1  ;;  %v9990_v12 = vpop.f32.mrf.mxu0  ;;  %v7905_v14 = vadd.f32 %v18198_v26, %v18197_v32  ;;  %v2727_v53 = vadd.f32 %v2726_v41, %v2725_v54  ;;  %v2676_v13 = vadd.f32 %v2675_v38, %v2674_v8  ;;  %v8006_v32 = vadd.f32 1e-06, %v7990_v20  ;;  %v18200_v54 = vld [vmem:[#allocation144_spill] sm:$0xff]  ;;  %v18201_v41 = vld [vmem:[#allocation145_spill] sm:$0xff] }
 0x389   :  { %18191 = vst [vmem:[#allocation89_spill] sm:$0xff] %v15225_v16  ;;  %18194 = vst [vmem:[#allocation81_spill] sm:$0xff] %v15229_v28  ;;  %v7935_v28 = vmul.f32 0.5, %v7903_v3  ;;  %v10544_v16 = vpop.eup %10543  ;;  %v8005_v30 = vadd.f32 1e-06, %v7989_v5 }
 0x38a   :  { %v9950_v11 = vpop.f32.mrf.mxu1  ;;  %v3822_v49 = vpop.f32.mrf.mxu0  ;;  %v2728_v2 = vrot.slane %v2727_v53, 1  ;;  %v7937_v61 = vmul.f32 0.5, %v7905_v14  ;;  %v15241_v39 = vmul.f32 %v10544_v16, %v2676_v13  ;;  %v7992_v8 = vmul.f32 0.26666668, %v7976_v15  ;;  %v18206_v13 = vld [vmem:[#allocation155_spill] sm:$0xff] }
 0x38b   :  { %v15235_v1 = vadd.f32 %v9986_v19, %v9950_v11  ;;  %v7961_v26 = vadd.f32 %v7936_v52, %v7935_v28  ;;  %v7908_v19 = vadd.f32 %v18201_v41, %v18200_v54  ;;  %10547 = vrsqrt.f32 %v8005_v30  ;;  %v7851_v15 = vpop.xlane.xlu0 %7850 }
 0x38c   :  { %v3588_v60 = vpop.f32.mrf.mxu1  ;;  %v9991_v17 = vpop.f32.mrf.mxu0  ;;  %v2729_v24 = vadd.f32 %v2728_v2, %v2727_v53  ;;  %v7962_v5 = vadd.f32 %v7938_v43, %v7937_v61  ;;  %v2776_v20 = vmul.f32 %v15241_v39, %v15241_v39  ;;  %v7912_v2 = vadd.f32 %v18206_v13, %v14844_v7  ;;  %v18208_v61 = vld [vmem:[#allocation83_spill] sm:$0xff]  ;;  %v18211_v13 = vld [vmem:[#allocation85_spill] sm:$0xff] }
 0x38d   :  { %v15237_v22 = vadd.f32 %v3806_v0, %v3588_v60  ;;  %v18204_v0 = vld [vmem:[#allocation142_spill] sm:$0xff]  ;;  %v7977_v14 = vmul.f32 0.5, %v7961_v26  ;;  %v7940_v53 = vmul.f32 0.5, %v7908_v19  ;;  %v7490_v54 = vmul.f32 0.25, %v7474_v57 }
 0x38e   :  { %v9951_v11 = vpop.f32.mrf.mxu1  ;;  %v15243_v3 = vpop.f32.mrf.mxu0  ;;  %v7907_v38 = vadd.f32 %v18204_v0, %v14762_v58  ;;  %v2775_v28 = vmul.f32 %v10544_v16, %v2729_v24  ;;  %10549 = vrsqrt.f32 %v8006_v32  ;;  %v8008_v43 = vadd.f32 1e-06, %v7992_v8  ;;  %v18209_v24 = vld [vmem:[#allocation152_spill] sm:$0xff] }
 0x38f   :  { %18199 = vst [vmem:[#allocation49_spill] sm:$0xff] %v15237_v22  ;;  %18202 = vst [vmem:[#allocation43_spill] sm:$0xff] %v15243_v3  ;;  %v15245_v18 = vadd.f32 %v9987_v50, %v9951_v11  ;;  %v7911_v0 = vadd.f32 %v18209_v24, %v18208_v61  ;;  %v7916_v30 = vadd.f32 %v14908_v4, %v7851_v15  ;;  %v7978_v19 = vmul.f32 0.5, %v7962_v5 }
 0x390   :  { %v15249_v60 = vpop.f32.mrf.mxu1  ;;  %v10034_v52 = vpop.f32.mrf.mxu0  ;;  %v2777_v41 = vsub.f32 %v2775_v28, %v2776_v20  ;;  %v7939_v16 = vmul.f32 0.5, %v7907_v38  ;;  %v7918_v7 = vadd.f32 %v15060_v37, %v15021_v35  ;;  %v7993_v28 = vmul.f32 0.26666668, %v7977_v14 }
 0x391   :  { %18203 = vst [vmem:[#allocation48_spill] sm:$0xff] %v15245_v18  ;;  %18205 = vst [vmem:[#allocation120_spill] sm:$0xff] %v15249_v60  ;;  %v7915_v8 = vadd.f32 %v18211_v13, %v7845_v9  ;;  %10551 = vrsqrt.f32 %v8008_v43  ;;  %v7943_v15 = vmul.f32 0.5, %v7911_v0  ;;  %v7948_v35 = vmul.f32 0.5, %v7916_v30  ;;  %v18241_v60 = vld [vmem:[#allocation30_spill] sm:$0xff] }
 0x392   :  { %v9954_v50 = vpop.f32.mrf.mxu1  ;;  %v4114_v58 = vpop.f32.mrf.mxu0  ;;  %v2778_v3 = vmax.f32 %v2777_v41, 0.0  ;;  %v7963_v20 = vadd.f32 %v7940_v53, %v7939_v16  ;;  %v7994_v14 = vmul.f32 0.26666668, %v7978_v19  ;;  %v7950_v53 = vmul.f32 0.5, %v7918_v7  ;;  %v18258_v18 = vld [vmem:[#allocation10_spill] sm:$0xff] }
 0x393   :  { %v15255_v11 = vadd.f32 %v9990_v12, %v9954_v50  ;;  %v7944_v12 = vmul.f32 0.5, %v7912_v2  ;;  %v7917_v50 = vadd.f32 %v14984_v29, %v14947_v56  ;;  %7568 = vperm.xlu0 %10500, %v7490_v54   ;;  %v8009_v2 = vadd.f32 1e-06, %v7993_v28 }
 0x394   :  { %v3604_v26 = vpop.f32.mrf.mxu1  ;;  %v10035_v57 = vpop.f32.mrf.mxu0  ;;  %v2779_v61 = vadd.f32 1e-05, %v2778_v3  ;;  %v7979_v41 = vmul.f32 0.5, %v7963_v20  ;;  %v7947_v56 = vmul.f32 0.5, %v7915_v8  ;;  %v8010_v7 = vadd.f32 1e-06, %v7994_v14 }
 0x395   :  { %18207 = vst [vmem:[#allocation121_spill] sm:$0xff] %v15255_v11  ;;  %v15262_v32 = vadd.f32 %v3822_v49, %v3604_v26  ;;  %v10546_v49 = vpop.eup %10545  ;;  %v7965_v16 = vadd.f32 %v7944_v12, %v7943_v15  ;;  %v7949_v3 = vmul.f32 0.5, %v7917_v50  ;;  %v15280_v8 = vld [vmem:[%s17453_s6] sm:$0x7]  ;;  %v18257_v11 = vld [vmem:[#allocation22_spill] sm:$0xff] }
 0x396   :  { %v9955_v38 = vpop.f32.mrf.mxu1  ;;  %v15267_v4 = vpop.f32.mrf.mxu0  ;;  %10553 = vrsqrt.f32 %v2779_v61  ;;  %v7967_v43 = vadd.f32 %v7948_v35, %v7947_v56  ;;  %v7995_v28 = vmul.f32 0.26666668, %v7979_v41  ;;  %v18220_v14 = vld [vmem:[#allocation96_spill] sm:$0xff] }
 0x397   :  { %18210 = vst [vmem:[#allocation124_spill] sm:$0xff] %v15262_v32  ;;  %18212 = vst [vmem:[#allocation46_spill] sm:$0xff] %v15267_v4  ;;  %v15269_v5 = vadd.f32 %v9991_v17, %v9955_v38  ;;  %8037 = vperm.xlu0 %10500, %v10546_v49   ;;  %v7968_v54 = vadd.f32 %v7950_v53, %v7949_v3  ;;  %10555 = vrsqrt.f32 %v8009_v2  ;;  %v7981_v20 = vmul.f32 0.5, %v7965_v16 }
 0x398   :  { %v15271_v37 = vpop.f32.mrf.mxu1  ;;  %v10038_v9 = vpop.f32.mrf.mxu0  ;;  %v18221_v53 = vsub.s32 2, %v18220_v14  ;;  %10557 = vrsqrt.f32 %v8010_v7  ;;  %v8011_v41 = vadd.f32 1e-06, %v7995_v28  ;;  %v18223_v28 = vld [vmem:[#allocation37_spill] sm:$0xff] }
 0x399   :  { %18213 = vst [vmem:[#allocation74_spill] sm:$0xff] %v15269_v5  ;;  %18214 = vst [vmem:[#allocation80_spill] sm:$0xff] %v15271_v37  ;;  %v10548_v13 = vpop.eup %10547  ;;  %v7984_v15 = vmul.f32 0.5, %v7968_v54 }
 0x39a   :  { %v9998_v29 = vpop.f32.mrf.mxu1  ;;  %v4130_v24 = vpop.f32.mrf.mxu0  ;;  %v15296_v2 = vrot.slane %v15280_v8, %v18221_v53  ;;  %10559 = vrsqrt.f32 %v8011_v41  ;;  %v18228_v53 = vld [vmem:[#allocation39_spill] sm:$0xff] }
 0x39b   :  { %v4025_v17 = vadd.f32 %v9998_v29, %v15081_v47  ;;  %8047 = vperm.xlu0 %10500, %v10548_v13  }
 0x39c   :  { %v3896_v0 = vpop.f32.mrf.mxu1  ;;  %v10039_v30 = vpop.f32.mrf.mxu0  ;;  %v15324_v41 = vmul.f32 %v15296_v2, %v18228_v53 }
 0x39d   :  { %v4023_v26 = vadd.f32 %v3896_v0, %v15086_v48  ;;  %v15275_v19 = vadd.f32 %v10034_v52, %v4025_v17  ;;  %v10550_v48 = vpop.eup %10549  ;;  %v7983_v52 = vmul.f32 0.5, %v7967_v43  ;;  %v8000_v43 = vmul.f32 0.26666668, %v7984_v15 }
 0x39e   :  { %v9999_v12 = vpop.f32.mrf.mxu1  ;;  %v15282_v47 = vpop.f32.mrf.mxu0 }
 0x39f   :  { %18215 = vst [vmem:[#allocation150_spill] sm:$0xff] %v15275_v19  ;;  %18216 = vst [vmem:[#allocation146_spill] sm:$0xff] %v15282_v47  ;;  %v4026_v38 = vadd.f32 %v9999_v12, %v15090_v59  ;;  %v15285_v50 = vadd.f32 %v4114_v58, %v4023_v26  ;;  %v7997_v59 = vmul.f32 0.26666668, %v7981_v20  ;;  %v7999_v29 = vmul.f32 0.26666668, %v7983_v52  ;;  %8052 = vperm.xlu0 %10500, %v10550_v48   ;;  %v10552_v17 = vpop.eup %10551 }
 0x3a0   :  { %v15287_v61 = vpop.f32.mrf.mxu1  ;;  %v15289_v35 = vpop.f32.mrf.mxu0  ;;  %v15308_v20 = vmul.f32 %v15296_v2, %v18223_v28  ;;  %v18225_v48 = vld [vmem:[#allocation38_spill] sm:$0xff] }
 0x3a1   :  { %18217 = vst [vmem:[#allocation127_spill] sm:$0xff] %v15285_v50  ;;  %18218 = vst [vmem:[#allocation135_spill] sm:$0xff] %v15287_v61  ;;  %v15291_v49 = vadd.f32 %v10035_v57, %v4026_v38  ;;  %v8013_v7 = vadd.f32 1e-06, %v7997_v59  ;;  %v15316_v52 = vmul.f32 %v15296_v2, %v18225_v48  ;;  %v18229_v59 = vld [vmem:[#allocation40_spill] sm:$0xff]  ;;  %v18234_v48 = vld [vmem:[#allocation42_spill] sm:$0xff] }
 0x3a2   :  { %v10002_v58 = vpop.f32.mrf.mxu1  ;;  %v15298_v16 = vpop.f32.mrf.mxu0  ;;  %v18235_v28 = vld [vmem:[#allocation26_spill] sm:$0xff] }
 0x3a3   :  { %18219 = vst [vmem:[#allocation139_spill] sm:$0xff] %v15291_v49  ;;  %v4029_v56 = vadd.f32 %v10002_v58, %v15100_v10  ;;  %v10554_v26 = vpop.eup %10553  ;;  %8062 = vperm.xlu0 %10500, %v10552_v17   ;;  %v15328_v58 = vmul.f32 %v15296_v2, %v18229_v59  ;;  %v8016_v17 = vadd.f32 1e-06, %v8000_v43  ;;  %10561 = vrsqrt.f32 %v8013_v7  ;;  %v18244_v61 = vld [vmem:[#allocation154_spill] sm:$0xff] }
 0x3a4   :  { %v3912_v3 = vpop.f32.mrf.mxu1  ;;  %v15301_v57 = vpop.f32.mrf.mxu0  ;;  %v2781_v10 = vmul.f32 %v10554_v26, %v15280_v8 }
 0x3a5   :  { %v4027_v0 = vadd.f32 %v3912_v3, %v15108_v62  ;;  %v15304_v54 = vadd.f32 %v10038_v9, %v4029_v56  ;;  %v8015_v9 = vadd.f32 1e-06, %v7999_v29  ;;  %v18230_v56 = vld [vmem:[#allocation41_spill] sm:$0xff] }
 0x3a6   :  { %v10003_v12 = vpop.f32.mrf.mxu1  ;;  %v15311_v13 = vpop.f32.mrf.mxu0  ;;  %v2782_v3 = vmul.f32 %v2781_v10, %v15241_v39  ;;  %v15351_v39 = vmul.f32 %v15296_v2, %v18235_v28  ;;  %v18239_v28 = vld [vmem:[#allocation16_spill] sm:$0xff] }
 0x3a7   :  { %18222 = vst [vmem:[#allocation129_spill] sm:$0xff] %v15304_v54  ;;  %18224 = vst [vmem:[#allocation131_spill] sm:$0xff] %v15311_v13  ;;  %v4030_v38 = vadd.f32 %v10003_v12, %v15114_v34  ;;  %v15318_v62 = vadd.f32 %v4130_v24, %v4027_v0  ;;  %v15332_v34 = vmul.f32 %v15296_v2, %v18230_v56  ;;  %v18231_v24 = vsub.s32 0, %v18220_v14  ;;  %v18233_v12 = vld [vmem:[#allocation45_spill] sm:$0xff]  ;;  %v18237_v13 = vld [vmem:[#allocation11_spill] sm:$0xff] }
 0x3a8   :  { %v15320_v15 = vpop.f32.mrf.mxu1  ;;  %v15339_v0 = vpop.f32.mrf.mxu0  ;;  %v2944_v53 = vmul.f32 %v15296_v2, %v18233_v12  ;;  %v15347_v56 = vmul.f32 %v15296_v2, %v18234_v48  ;;  %v18238_v48 = vld [vmem:[#allocation12_spill] sm:$0xff]  ;;  %v15369_v37 = vmul.f32 %v15296_v2, %v18239_v28  ;;  %10563 = vrsqrt.f32 %v8015_v9  ;;  %v18242_v9 = vld [vmem:[#allocation29_spill] sm:$0xff]  ;;  %v18251_v54 = vld [vmem:[#allocation95_spill] sm:$0xff] }
 0x3a9   :  { %18226 = vst [vmem:[#allocation144_spill] sm:$0xff] %v15318_v62  ;;  %18227 = vst [vmem:[#allocation145_spill] sm:$0xff] %v15320_v15  ;;  %v15337_v29 = vrot.slane %v2781_v10, %v18231_v24  ;;  %v15341_v26 = vadd.f32 %v10039_v30, %v4030_v38  ;;  %v10556_v10 = vpop.eup %10555  ;;  %v18236_v24 = vld [vmem:[#allocation47_spill] sm:$0xff]  ;;  %v2948_v30 = vmul.f32 %v15296_v2, %v18237_v13  ;;  %v2784_v38 = vrot.slane %v2782_v3, 7 }
 0x3aa   :  { %v10006_v59 = vpop.f32.mrf.mxu1  ;;  %v2946_v43 = vmul.f32 %v15296_v2, %v18236_v24  ;;  %v15361_v12 = vpop.f32.mrf.mxu0  ;;  %v15365_v47 = vmul.f32 %v15296_v2, %v18238_v48  ;;  %8067 = vperm.xlu0 %10500, %v10556_v10   ;;  %v18240_v3 = vld [vmem:[#allocation19_spill] sm:$0xff]  ;;  %10565 = vrsqrt.f32 %v8016_v17  ;;  %v18245_v17 = vsub.s32 1, %v18220_v14 }
 0x3ab   :  { %18232 = vst [vmem:[#allocation142_spill] sm:$0xff] %v15341_v26  ;;  %v15359_v7 = vmul.f32 %v15337_v29, %v15172_v55  ;;  %v4033_v24 = vadd.f32 %v10006_v59, %v15140_v63  ;;  %v15374_v4 = vmul.f32 %v15296_v2, %v18240_v3  ;;  %v2786_v55 = vsub.f32 %v15280_v8, %v2784_v38  ;;  %v18243_v63 = vld [vmem:[#allocation153_spill] sm:$0xff]  ;;  %v10558_v8 = vpop.eup %10557 }
 0x3ac   :  { %v3928_v13 = vpop.f32.mrf.mxu1  ;;  %v15377_v15 = vpop.f32.mrf.mxu0  ;;  %v2791_v28 = vmul.f32 %v15337_v29, %v18241_v60  ;;  %v2792_v10 = vmul.f32 %v15337_v29, %v18242_v9  ;;  %v2793_v59 = vmul.f32 %v15337_v29, %v18243_v63  ;;  %v2794_v3 = vmul.f32 %v15337_v29, %v18244_v61  ;;  %v18248_v63 = vld [vmem:[#allocation86_spill] sm:$0xff] }
 0x3ad   :  { %v15380_v48 = vadd.f32 %v3928_v13, %v15146_v6  ;;  %v15392_v38 = vrot.slane %v2786_v55, %v18245_v17  ;;  %v2795_v60 = vmul.f32 %v15337_v29, %v14861_v36  ;;  %v15403_v9 = vmul.f32 %v15337_v29, %v15070_v51  ;;  %v18249_v55 = vld [vmem:[#allocation88_spill] sm:$0xff] }
 0x3ae   :  { %v10007_v26 = vpop.f32.mrf.mxu1  ;;  %v15394_v6 = vpop.f32.mrf.mxu0  ;;  %8072 = vperm.xlu0 %10500, %v10558_v8   ;;  %v2796_v14 = vmul.f32 %v15337_v29, %v18248_v63  ;;  %v2797_v17 = vmul.f32 %v15337_v29, %v18249_v55 }
 0x3af   :  { %18246 = vst [vmem:[#allocation155_spill] sm:$0xff] %v15394_v6  ;;  %v15397_v13 = vadd.f32 %v10007_v26, %v15157_v23  ;;  %v15413_v23 = vmul.f32 %v15337_v29, %v15136_v27  ;;  %v15416_v26 = vadd.f32 %v15289_v35, %v4033_v24  ;;  %v2811_v36 = vadd.f32 %v15392_v38, %v2791_v28  ;;  %v10560_v24 = vpop.eup %10559  ;;  %v18252_v28 = vld [vmem:[#allocation6_spill] sm:$0xff] }
 0x3b0   :  { %v15405_v61 = vpop.f32.mrf.mxu1  ;;  %v2812_v51 = vadd.f32 %v15392_v38, %v2792_v10  ;;  %v2813_v8 = vadd.f32 %v15392_v38, %v2793_v59  ;;  %v15421_v6 = vpop.f32.mrf.mxu0  ;;  %v2814_v63 = vadd.f32 %v15392_v38, %v2794_v3  ;;  %v2816_v62 = vadd.f32 %v15392_v38, %v2796_v14  ;;  %v18253_v10 = vld [vmem:[#allocation7_spill] sm:$0xff]  ;;  %v18254_v59 = vld [vmem:[#allocation8_spill] sm:$0xff]  ;;  %v18255_v3 = vld [vmem:[#allocation14_spill] sm:$0xff] }
 0x3b1   :  { %18247 = vst [vmem:[#allocation83_spill] sm:$0xff] %v15405_v61  ;;  %18250 = vst [vmem:[#allocation152_spill] sm:$0xff] %v15416_v26  ;;  %v2815_v61 = vadd.f32 %v15392_v38, %v2795_v60  ;;  %v2817_v27 = vadd.f32 %v15392_v38, %v2797_v17  ;;  %v2798_v35 = vmul.f32 %v15337_v29, %v18251_v54  ;;  %v18256_v60 = vld [vmem:[#allocation9_spill] sm:$0xff] }
 0x3b2   :  { %v10010_v55 = vpop.f32.mrf.mxu1  ;;  %v2827_v26 = vmul.f32 %v2811_v36, %v18252_v28  ;;  %v2828_v49 = vmul.f32 %v2812_v51, %v18253_v10  ;;  %v2829_v50 = vmul.f32 %v2813_v8, %v18254_v59  ;;  %v15432_v19 = vpop.f32.mrf.mxu0  ;;  %v2830_v5 = vmul.f32 %v2814_v63, %v18255_v3  ;;  %8077 = vperm.xlu0 %10500, %v10560_v24   ;;  %v10527_v59 = vld [vmem:[%s17457_s10 + $0x50] sm:$0xff]  }
 0x3b3   :  { %v2831_v32 = vmul.f32 %v2815_v61, %v18256_v60  ;;  %v15437_v14 = vadd.f32 %v10010_v55, %v15168_v46  ;;  %v2832_v54 = vmul.f32 %v2816_v62, %v18257_v11  ;;  %v2833_v22 = vmul.f32 %v2817_v27, %v18258_v18  ;;  %v18266_v3 = vld [vmem:[#allocation143_spill] sm:$0xff] }
 0x3b4   :  { %v3944_v17 = vpop.f32.mrf.mxu1  ;;  %v2959_v36 = vadd.f32 %v15308_v20, %v2827_v26  ;;  %v2960_v51 = vadd.f32 %v2944_v53, %v2828_v49  ;;  %v2961_v8 = vadd.f32 %v15316_v52, %v2829_v50  ;;  %v15443_v28 = vadd.f32 %v2946_v43, %v2830_v5  ;;  %v15445_v10 = vpop.f32.mrf.mxu0  ;;  %v18264_v43 = vld [vmem:[#allocation71_spill] sm:$0xff] }
 0x3b5   :  { %v15448_v63 = vadd.f32 %v15324_v41, %v2831_v32  ;;  %v15451_v46 = vadd.f32 %v3944_v17, %v15177_v40  ;;  %v15453_v61 = vadd.f32 %v2948_v30, %v2832_v54  ;;  %v15456_v18 = vadd.f32 %v15328_v58, %v2833_v22  ;;  %v10562_v20 = vpop.eup %10561  ;;  %v18265_v58 = vld [vmem:[#allocation137_spill] sm:$0xff] }
 0x3b6   :  { %v10011_v11 = vpop.f32.mrf.mxu1  ;;  %v15458_v49 = vpack.c.bf16 %v2960_v51, %v2959_v36  ;;  %v4546_v50 = vpack.c.bf16 %v2959_v36, %v2959_v36  ;;  %v18260_v5 = vmov 0.0   ;;  %v4547_v62 = vpack.c.bf16 %v2960_v51, %v2960_v51  ;;  %v15461_v53 = vpop.f32.mrf.mxu0  ;;  %8087 = vperm.xlu0 %10500, %v10562_v20   ;;  %v10640_v20 = vld [vmem:[%s17457_s10 + $0x58] sm:$0xff]  }
 0x3b7   :  { %v4522_v52 = vpack.c.bf16 %v2959_v36, %v18260_v5  ;;  %18261 = vst [vmem:[#allocation96_spill] sm:$0xff] %v15461_v53  ;;  %v15463_v32 = vpack.c.bf16 %v2961_v8, %v2960_v51  ;;  %v15466_v40 = vpack.c.bf16 %v15443_v28, %v2961_v8  ;;  %v2799_v22 = vmul.f32 %v15337_v29, %v18264_v43  ;;  %v10564_v26 = vpop.eup %10563 }
 0x3b8   :  { %18259 = vst [vmem:[#allocation85_spill] sm:$0xff] %v15458_v49  ;;  %v15468_v41 = vpop.f32.mrf.mxu1  ;;  %v2800_v30 = vmul.f32 %v15337_v29, %v18265_v58  ;;  %10108 = vmatprep.mubr.msk.bf16.mxu0 %vm2639_vm4, %v4546_v50  ;;  %v4548_v55 = vpack.c.bf16 %v2961_v8, %v2961_v8  ;;  %v15478_v27 = vpack.c.bf16 %v15448_v63, %v15443_v28  ;;  %v15480_v24 = vpop.f32.mrf.mxu0  ;;  %v10528_v58 = vld [vmem:[%s17457_s10 + $0x48] sm:$0xff]  }
 0x3b9   :  { %18262 = vst [vmem:[#allocation30_spill] sm:$0xff] %v15463_v32  ;;  %18263 = vst [vmem:[#allocation29_spill] sm:$0xff] %v15468_v41  ;;  %10148 = vmatprep.mubr.msk.bf16.mxu1 %vm2639_vm4, %v4522_v52  ;;  %v2801_v60 = vmul.f32 %v15337_v29, %v18266_v3  ;;  %v10566_v17 = vpop.eup %10565  ;;  %10109 = vmatmul.mubr.msk.bf16.vlgmr.msra.gmra.mxu0 %vm2639_vm4, %v4547_v62  ;;  %v15492_v54 = vpack.c.bf16 %v15453_v61, %v15448_v63  ;;  %v18267_v3 = vld [vmem:[#allocation27_spill] sm:$0xff]  ;;  %v18269_v41 = vld [vmem:[#allocation34_spill] sm:$0xff] }
 0x3ba   :  { %10149 = vmatmul.mubr.msk.bf16.vlgmr.msra.gmra.mxu1 %vm2639_vm4, %v15458_v49  ;;  %v15495_v36 = vadd.f32 %v10011_v11, %v15180_v44  ;;  %v10014_v51 = vpop.f32.mrf.mxu1  ;;  %v2802_v8 = vmul.f32 %v15337_v29, %v15032_v33  ;;  %10181 = vmatpush3.bf16.msra.mxu0 %v10640_v20  ;;  %v15503_v50 = vpop.f32.mrf.mxu0  ;;  %v15507_v52 = vpack.c.bf16 %v15456_v18, %v15453_v61  ;;  %v18272_v49 = vld [vmem:[#allocation36_spill] sm:$0xff] }
 0x3bb   :  { %10112 = vmatprep.mubr.msk.bf16.mxu0 %vm2639_vm4, %v4548_v55  ;;  %v15510_v44 = vadd.f32 %v10014_v51, %v15182_v21  ;;  %v2804_v11 = vmul.f32 %v15337_v29, %v15068_v45  ;;  %10152 = vmatprep.mubr.msk.bf16.mxu1 %vm2639_vm4, %v15463_v32  ;;  %v2818_v62 = vadd.f32 %v15392_v38, %v2798_v35 }
 0x3bc   :  { %8097 = vperm.xlu0 %10500, %v10564_v26   ;;  %v3960_v33 = vpop.f32.mrf.mxu1  ;;  %v2819_v43 = vadd.f32 %v15392_v38, %v2799_v22  ;;  %v2820_v55 = vadd.f32 %v15392_v38, %v2800_v30  ;;  %10182 = vmatprep.subr.bf16.mxu0 %v10527_v59  ;;  %v15522_v21 = vpop.f32.mrf.mxu0  ;;  %v2821_v29 = vadd.f32 %v15392_v38, %v2801_v60  ;;  %v18268_v30 = vld [vmem:[#allocation32_spill] sm:$0xff] }
 0x3bd   :  { %v15525_v45 = vadd.f32 %v3960_v33, %v15192_v25  ;;  %v2822_v26 = vadd.f32 %v15392_v38, %v2802_v8  ;;  %v2823_v35 = vadd.f32 %v15392_v38, %v15403_v9  ;;  %v4549_v22 = vpack.c.bf16 %v15443_v28, %v15443_v28  ;;  %v18271_v8 = vld [vmem:[#allocation35_spill] sm:$0xff] }
 0x3be   :  { %v2834_v51 = vmul.f32 %v2818_v62, %v18267_v3  ;;  %v10015_v20 = vpop.f32.mrf.mxu1  ;;  %v2835_v53 = vmul.f32 %v2819_v43, %v18268_v30  ;;  %v2836_v32 = vmul.f32 %v2820_v55, %v18269_v41  ;;  %10183 = vmatpush3.bf16.msra.mxu0 %v10527_v59  ;;  %v15536_v25 = vpop.f32.mrf.mxu0  ;;  %v2837_v33 = vmul.f32 %v2821_v29, %v18271_v8  ;;  %v18274_v55 = vld [vmem:[#allocation44_spill] sm:$0xff] }
 0x3bf   :  { %18270 = vst [vmem:[#allocation153_spill] sm:$0xff] %v15536_v25  ;;  %v15539_v60 = vadd.f32 %v10015_v20, %v15201_v42  ;;  %v2838_v9 = vmul.f32 %v2822_v26, %v18272_v49  ;;  %v2839_v5 = vmul.f32 %v2823_v35, %v18159_v31  ;;  %10184 = vmatprep.subr.bf16.mxu0 %v10528_v58  ;;  %v10529_v49 = vld [vmem:[%s17457_s10 + $0x40] sm:$0xff]   ;;  %v18277_v20 = vld [vmem:[#allocation18_spill] sm:$0xff] }
 0x3c0   :  { %8102 = vperm.xlu0 %10500, %v10566_v17   ;;  %v15545_v28 = vadd.f32 %v15365_v47, %v2834_v51  ;;  %v15548_v62 = vadd.f32 %v15332_v34, %v2835_v53  ;;  %v15550_v41 = vpop.f32.mrf.mxu1  ;;  %v15553_v59 = vadd.f32 %v15369_v37, %v2836_v32  ;;  %v4550_v42 = vpack.c.bf16 %v15448_v63, %v15448_v63  ;;  %v15557_v43 = vpop.f32.mrf.mxu0  ;;  %v18275_v29 = vld [vmem:[#allocation20_spill] sm:$0xff] }
 0x3c1   :  { %v15560_v31 = vadd.f32 %v15347_v56, %v2837_v33  ;;  %v15563_v47 = vadd.f32 %v15374_v4, %v2838_v9  ;;  %v15566_v34 = vadd.f32 %v15351_v39, %v2839_v5  ;;  %10113 = vmatmul.mubr.msk.bf16.gmra.mxu0 %vm2639_vm4, %v4549_v22  ;;  %v2824_v4 = vadd.f32 %v15392_v38, %v2804_v11  ;;  %v18273_v39 = vld [vmem:[#allocation33_spill] sm:$0xff]  ;;  %v18276_v35 = vld [vmem:[#allocation60_spill] sm:$0xff] }
 0x3c2   :  { %10153 = vmatmul.mubr.msk.bf16.gmra.mxu1 %vm2639_vm4, %v15466_v40  ;;  %v15576_v37 = vpack.c.bf16 %v15545_v28, %v15456_v18  ;;  %v10018_v56 = vpop.f32.mrf.mxu1  ;;  %10116 = vmatprep.mubr.msk.bf16.mxu0 %vm2639_vm4, %v4550_v42  ;;  %v4210_v5 = vpop.f32.mrf.mxu0  ;;  %v15585_v32 = vpack.c.bf16 %v15553_v59, %v15548_v62  ;;  %v2957_v11 = vmul.f32 %v15296_v2, %v18274_v55  ;;  %v18318_v55 = vld [vmem:[#allocation61_spill] sm:$0xff] }
 0x3c3   :  { %10156 = vmatprep.mubr.msk.bf16.mxu1 %vm2639_vm4, %v15478_v27  ;;  %v4045_v63 = vadd.f32 %v10018_v56, %v18273_v39  ;;  %10185 = vmatpush3.bf16.msra.mxu0 %v10528_v58  ;;  %v15589_v17 = vpack.c.bf16 %v15560_v31, %v15553_v59  ;;  %v2956_v26 = vmul.f32 %v15296_v2, %v18275_v29  ;;  %v18278_v56 = vld [vmem:[#allocation89_spill] sm:$0xff] }
 0x3c4   :  { %v3976_v53 = vpop.f32.mrf.mxu1  ;;  %v15598_v3 = vpack.c.bf16 %v15563_v47, %v15560_v31  ;;  %v15602_v51 = vpack.c.bf16 %v15566_v34, %v15563_v47  ;;  %10186 = vmatprep.subr.bf16.mxu0 %v10529_v49  ;;  %v2840_v30 = vmul.f32 %v2824_v4, %v18277_v20  ;;  %v2825_v8 = vadd.f32 %v15392_v38, %v15359_v7  ;;  %v10059_v7 = vpop.f32.mrf.mxu0  ;;  %v18283_v20 = vld [vmem:[#allocation49_spill] sm:$0xff] }
 0x3c5   :  { %v4043_v22 = vadd.f32 %v3976_v53, %v18276_v35  ;;  %v2826_v33 = vadd.f32 %v15392_v38, %v15413_v23  ;;  %v15611_v9 = vadd.f32 %v15298_v16, %v15380_v48  ;;  %v4551_v42 = vpack.c.bf16 %v15453_v61, %v15453_v61  ;;  %v18279_v16 = vld [vmem:[#allocation21_spill] sm:$0xff]  ;;  %v18280_v23 = vld [vmem:[#allocation24_spill] sm:$0xff] }
 0x3c6   :  { %v10019_v58 = vpop.f32.mrf.mxu1  ;;  %v15618_v53 = vadd.f32 %v15301_v57, %v15397_v13  ;;  %v15622_v4 = vadd.f32 %v15339_v0, %v15437_v14  ;;  %v15626_v38 = vadd.f32 %v2956_v26, %v2840_v30  ;;  %v2841_v48 = vmul.f32 %v2825_v8, %v18279_v16  ;;  %v18281_v57 = vld [vmem:[#allocation23_spill] sm:$0xff] }
 0x3c7   :  { %v4046_v39 = vadd.f32 %v10019_v58, %v18278_v56  ;;  %10187 = vmatpush3.bf16.msra.mxu0 %v10529_v49  ;;  %v2842_v61 = vmul.f32 %v2826_v33, %v18280_v23  ;;  %v15632_v58 = vadd.f32 %v15361_v12, %v15451_v46  ;;  %v2958_v13 = vmul.f32 %v15296_v2, %v18281_v57 }
 0x3c8   :  { %v15624_v35 = vpop.f32.mrf.mxu1  ;;  %v4552_v0 = vpack.c.bf16 %v15456_v18, %v15456_v18  ;;  %v15640_v14 = vadd.f32 %v15377_v15, %v15495_v36  ;;  %v15644_v49 = vadd.f32 %v15421_v6, %v15510_v44  ;;  %v15651_v2 = vpack.c.bf16 %v15626_v38, %v15566_v34  ;;  %v15665_v36 = vpop.f32.mrf.mxu0 }
 0x3c9   :  { %10117 = vmatmul.mubr.msk.bf16.gmra.mxu0 %vm2639_vm4, %v4551_v42  ;;  %v15653_v46 = vadd.f32 %v2957_v11, %v2841_v48  ;;  %v15659_v6 = vadd.f32 %v2958_v13, %v2842_v61  ;;  %v15663_v18 = vadd.f32 %v15432_v19, %v15525_v45  ;;  %18282 = vst [vmem:[#allocation154_spill] sm:$0xff] %v15665_v36  ;;  %v18284_v42 = vld [vmem:[#allocation48_spill] sm:$0xff] }
 0x3ca   :  { %10157 = vmatmul.mubr.msk.bf16.gmra.mxu1 %vm2639_vm4, %v15492_v54  ;;  %v10022_v12 = vpop.f32.mrf.mxu1  ;;  %10120 = vmatprep.mubr.msk.bf16.mxu0 %vm2639_vm4, %v4552_v0  ;;  %v15673_v26 = vadd.f32 %v15445_v10, %v15539_v60  ;;  %v15681_v19 = vadd.f32 %v15480_v24, %v4045_v63  ;;  %v15684_v45 = vadd.f32 %v15503_v50, %v4043_v22  ;;  %v10062_v48 = vpop.f32.mrf.mxu0  ;;  %v18285_v50 = vmov 0.0   ;;  %v18287_v13 = vld [vmem:[#allocation124_spill] sm:$0xff] }
 0x3cb   :  { %10160 = vmatprep.mubr.msk.bf16.mxu1 %vm2639_vm4, %v15507_v52  ;;  %v4049_v15 = vadd.f32 %v10022_v12, %v15235_v1  ;;  %v15669_v11 = vpack.c.bf16 %v15653_v46, %v15626_v38  ;;  %v15678_v1 = vpack.c.bf16 %v15659_v6, %v15653_v46  ;;  %v15687_v33 = vadd.f32 %v15522_v21, %v4046_v39 }
 0x3cc   :  { %v3992_v44 = vpop.f32.mrf.mxu1  ;;  %v4553_v16 = vpack.c.bf16 %v15545_v28, %v15545_v28  ;;  %v4554_v24 = vpack.c.bf16 %v15548_v62, %v15548_v62  ;;  %v4530_v21 = vpack.c.bf16 %v15548_v62, %v18285_v50  ;;  %v4226_v39 = vpop.f32.mrf.mxu0 }
 0x3cd   :  { %v4047_v30 = vadd.f32 %v3992_v44, %v18283_v20  ;;  %v15691_v10 = vadd.f32 %v15557_v43, %v4049_v15  ;;  %v4555_v20 = vpack.c.bf16 %v15553_v59, %v15553_v59  ;;  %v18290_v59 = vld [vmem:[#allocation150_spill] sm:$0xff] }
 0x3ce   :  { %v10023_v8 = vpop.f32.mrf.mxu1 }
 0x3cf   :  { %v4050_v56 = vadd.f32 %v10023_v8, %v18284_v42  ;;  %v15693_v60 = vadd.f32 %v4210_v5, %v4047_v30  ;;  %v18286_v5 = vld [vmem:[#allocation121_spill] sm:$0xff]  ;;  %v10063_v30 = vpop.f32.mrf.mxu0  ;;  %v4556_v42 = vpack.c.bf16 %v15560_v31, %v15560_v31 }
 0x3d0   :  { %v15697_v23 = vpop.f32.mrf.mxu1 }
 0x3d1   :  { %v15703_v63 = vadd.f32 %v10059_v7, %v4050_v56  ;;  %10121 = vmatmul.mubr.msk.bf16.gmra.mxu0 %vm2639_vm4, %v4553_v16  ;;  %v18288_v7 = vld [vmem:[#allocation74_spill] sm:$0xff] }
 0x3d2   :  { %10161 = vmatmul.mubr.msk.bf16.gmra.mxu1 %vm2639_vm4, %v15576_v37  ;;  %v10026_v43 = vpop.f32.mrf.mxu1  ;;  %10124 = vmatprep.mubr.msk.bf16.mxu0 %vm2639_vm4, %v4554_v24 }
 0x3d3   :  { %10164 = vmatprep.mubr.msk.bf16.mxu1 %vm2639_vm4, %v4530_v21  ;;  %v4053_v22 = vadd.f32 %v10026_v43, %v18286_v5  ;;  %v18291_v21 = vld [vmem:[#allocation127_spill] sm:$0xff] }
 0x3d4   :  { %v4008_v61 = vpop.f32.mrf.mxu1  ;;  %v18292_v5 = vld [vmem:[#allocation139_spill] sm:$0xff] }
 0x3d5   :  { %v4051_v0 = vadd.f32 %v4008_v61, %v18287_v13  ;;  %v15712_v12 = vadd.f32 %v10062_v48, %v4053_v22  ;;  %v4558_v13 = vpack.c.bf16 %v15566_v34, %v15566_v34  ;;  %v18295_v34 = vld [vmem:[#allocation142_spill] sm:$0xff] }
 0x3d6   :  { %v10027_v62 = vpop.f32.mrf.mxu1 }
 0x3d7   :  { %v4054_v15 = vadd.f32 %v10027_v62, %v18288_v7  ;;  %v15715_v44 = vadd.f32 %v4226_v39, %v4051_v0  ;;  %v4557_v39 = vpack.c.bf16 %v15563_v47, %v15563_v47  ;;  %v18293_v62 = vld [vmem:[#allocation129_spill] sm:$0xff] }
 0x3d8   :  { %v15719_v8 = vpop.f32.mrf.mxu1 }
 0x3d9   :  { %18289 = vst [vmem:[#allocation86_spill] sm:$0xff] %v15719_v8  ;;  %v15723_v56 = vadd.f32 %v10063_v30, %v4054_v15  ;;  %10125 = vmatmul.mubr.msk.bf16.gmra.mxu0 %vm2639_vm4, %v4555_v20  ;;  %v18294_v15 = vld [vmem:[#allocation144_spill] sm:$0xff] }
 0x3da   :  { %10165 = vmatmul.mubr.msk.bf16.gmra.mxu1 %vm2639_vm4, %v15585_v32  ;;  %v10070_v16 = vpop.f32.mrf.mxu1  ;;  %10128 = vmatprep.mubr.msk.bf16.mxu0 %vm2639_vm4, %v4556_v42 }
 0x3db   :  { %10168 = vmatprep.mubr.msk.bf16.mxu1 %vm2639_vm4, %v15589_v17  ;;  %v15732_v48 = vadd.f32 %v10070_v16, %v18290_v59  ;;  %v4559_v16 = vpack.c.bf16 %v15626_v38, %v15626_v38 }
 0x3dc   :  { %v4324_v24 = vpop.f32.mrf.mxu1 }
 0x3dd   :  { %v15735_v43 = vadd.f32 %v4324_v24, %v18291_v21  ;;  %v4560_v24 = vpack.c.bf16 %v15653_v46, %v15653_v46 }
 0x3de   :  { %v10071_v31 = vpop.f32.mrf.mxu1 }
 0x3df   :  { %v15738_v22 = vadd.f32 %v10071_v31, %v18292_v5  ;;  %v18296_v31 = vld [vmem:[#allocation152_spill] sm:$0xff] }
 0x3e0   :  { %v15742_v61 = vpop.f32.mrf.mxu1 }
 0x3e1   :  { %10129 = vmatmul.mubr.msk.bf16.gmra.mxu0 %vm2639_vm4, %v4557_v39 }
 0x3e2   :  { %10169 = vmatmul.mubr.msk.bf16.gmra.mxu1 %vm2639_vm4, %v15598_v3  ;;  %v10074_v0 = vpop.f32.mrf.mxu1  ;;  %10132 = vmatprep.mubr.msk.bf16.mxu0 %vm2639_vm4, %v4558_v13 }
 0x3e3   :  { %10172 = vmatprep.mubr.msk.bf16.mxu1 %vm2639_vm4, %v15602_v51  ;;  %v15753_v7 = vadd.f32 %v10074_v0, %v18293_v62  ;;  %v4561_v0 = vpack.c.bf16 %v15659_v6, %v15659_v6 }
 0x3e4   :  { %v4340_v47 = vpop.f32.mrf.mxu1 }
 0x3e5   :  { %v15756_v20 = vadd.f32 %v4340_v47, %v18294_v15  ;;  %v18298_v15 = vld [vmem:[#allocation85_spill] sm:$0xff] }
 0x3e6   :  { %v10075_v30 = vpop.f32.mrf.mxu1 }
 0x3e7   :  { %v15759_v42 = vadd.f32 %v10075_v30, %v18295_v34 }
 0x3e8   :  { %v15763_v59 = vpop.f32.mrf.mxu1 }
 0x3e9   :  { %10133 = vmatmul.mubr.msk.bf16.gmra.mxu0 %vm2639_vm4, %v4559_v16 }
 0x3ea   :  { %10173 = vmatmul.mubr.msk.bf16.gmra.mxu1 %vm2639_vm4, %v15651_v2  ;;  %v10078_v21 = vpop.f32.mrf.mxu1  ;;  %10136 = vmatprep.mubr.msk.bf16.mxu0 %vm2639_vm4, %v4560_v24 }
 0x3eb   :  { %10176 = vmatprep.mubr.msk.bf16.mxu1 %vm2639_vm4, %v15669_v11  ;;  %v15774_v5 = vadd.f32 %v10078_v21, %v18296_v31  ;;  %v18303_v21 = vld [vmem:[#allocation30_spill] sm:$0xff] }
 0x3ec   :  { %v4356_v38 = vpop.f32.mrf.mxu1 }
 0x3ed   :  { %v15777_v39 = vadd.f32 %v4356_v38, %v15611_v9 }
 0x3ee   :  { %v10079_v13 = vpop.f32.mrf.mxu1 }
 0x3ef   :  { %v15780_v46 = vadd.f32 %v10079_v13, %v15618_v53 }
 0x3f0   :  { %v15784_v62 = vpop.f32.mrf.mxu1 }
 0x3f1   :  { %18297 = vst [vmem:[#allocation88_spill] sm:$0xff] %v15784_v62  ;;  %10137 = vmatmul.mubr.msk.bf16.gmra.mxu0 %vm2639_vm4, %v4561_v0  ;;  %v18369_v62 = vld [vmem:[#allocation81_spill] sm:$0xff] }
 0x3f2   :  { %10177 = vmatmul.mubr.msk.bf16.gmra.mxu1 %vm2639_vm4, %v15678_v1  ;;  %v10082_v47 = vpop.f32.mrf.mxu1  ;;  %10188 = vmatprep.mubr.msk.bf16.mxu0 %vm2639_vm4, %v18298_v15 }
 0x3f3   :  { %v15792_v9 = vadd.f32 %v10082_v47, %v15622_v4 }
 0x3f4   :  { %v4372_v30 = vpop.f32.mrf.mxu1 }
 0x3f5   :  { %18299 = vst [vmem:[#allocation95_spill] sm:$0xff] %v15792_v9  ;;  %v15795_v53 = vadd.f32 %v4372_v30, %v15632_v58  ;;  %v15810_v58 = vld [vmem:[%s17456_s9] ss:$0 sm:$0xff] }
 0x3f6   :  { %v10083_v34 = vpop.f32.mrf.mxu1 }
 0x3f7   :  { %18300 = vst [vmem:[#allocation6_spill] sm:$0xff] %v15795_v53  ;;  %v15798_v16 = vadd.f32 %v10083_v34, %v15640_v14 }
 0x3f8   :  { %v15800_v24 = vpop.f32.mrf.mxu1 }
 0x3f9   :  { %18301 = vst [vmem:[#allocation7_spill] sm:$0xff] %v15798_v16  ;;  %18302 = vst [vmem:[#allocation8_spill] sm:$0xff] %v15800_v24  ;;  %10189 = vmatmul.mubr.msk.bf16.vlgmr.msra.gmra.mxu0 %vm2639_vm4, %v18303_v21  ;;  %v18360_v24 = vld [vmem:[#allocation135_spill] sm:$0xff] }
 0x3fa   :  { %v10086_v31 = vpop.f32.mrf.mxu1  ;;  %10192 = vmatprep.mubr.msk.bf16.mxu0 %vm2639_vm4, %v15466_v40 }
 0x3fb   :  { %v4469_v4 = vadd.f32 %v10086_v31, %v15644_v49 }
 0x3fc   :  { %v4388_v38 = vpop.f32.mrf.mxu1 }
 0x3fd   :  { %v15813_v14 = vadd.f32 %v15810_v58, %v4469_v4  ;;  %v15816_v13 = vadd.f32 %v4388_v38, %v15663_v18 }
 0x3fe   :  { %v10087_v0 = vpop.f32.mrf.mxu1  ;;  %v15828_v30 = vpop.xlane.xlu0 %7868 }
 0x3ff   :  { %18304 = vst [vmem:[#allocation14_spill] sm:$0xff] %v15813_v14  ;;  %18305 = vst [vmem:[#allocation9_spill] sm:$0xff] %v15816_v13  ;;  %v4470_v47 = vadd.f32 %v10087_v0, %v15673_v26 }
 0x400   :  { %v15819_v15 = vpop.f32.mrf.mxu1 }
 0x401   :  { %18306 = vst [vmem:[#allocation22_spill] sm:$0xff] %v15819_v15  ;;  %v15822_v40 = vadd.f32 %v15810_v58, %v4470_v47  ;;  %10193 = vmatmul.mubr.msk.bf16.gmra.mxu0 %vm2639_vm4, %v15478_v27  ;;  %v10530_v47 = vld [vmem:[%s17459_s12 + $0x18] sm:$0xff]  }
 0x402   :  { %v10090_v49 = vpop.f32.mrf.mxu1  ;;  %10196 = vmatprep.mubr.msk.bf16.mxu0 %vm2639_vm4, %v15492_v54  ;;  %v7875_v0 = vpop.xlane.xlu0 %7874  ;;  %10220 = vmatprep.subr.bf16.mxu1 %v10530_v47 }
 0x403   :  { %18307 = vst [vmem:[#allocation10_spill] sm:$0xff] %v15822_v40  ;;  %v4473_v18 = vadd.f32 %v10090_v49, %v15681_v19  ;;  %10221 = vmatpush3.bf16.msra.mxu1 %v10530_v47 }
 0x404   :  { %v4404_v34 = vpop.f32.mrf.mxu1 }
 0x405   :  { %v15832_v21 = vadd.f32 %v15810_v58, %v4473_v18  ;;  %v4471_v26 = vadd.f32 %v4404_v34, %v15684_v45 }
 0x406   :  { %v10091_v31 = vpop.f32.mrf.mxu1 }
 0x407   :  { %18308 = vst [vmem:[#allocation71_spill] sm:$0xff] %v15832_v21  ;;  %v15836_v4 = vadd.f32 %v15810_v58, %v4471_v26  ;;  %v4474_v27 = vadd.f32 %v10091_v31, %v15687_v33  ;;  %v18314_v26 = vld [vmem:[#allocation31_spill] sm:$0xff] }
 0x408   :  { %v15839_v38 = vpop.f32.mrf.mxu1 }
 0x409   :  { %18309 = vst [vmem:[#allocation137_spill] sm:$0xff] %v15836_v4  ;;  %18310 = vst [vmem:[#allocation143_spill] sm:$0xff] %v15839_v38  ;;  %v15842_v54 = vadd.f32 %v15810_v58, %v4474_v27  ;;  %10197 = vmatmul.mubr.msk.bf16.gmra.mxu0 %vm2639_vm4, %v15507_v52  ;;  %v18313_v52 = vld [vmem:[#allocation54_spill] sm:$0xff]  ;;  %v7878_v27 = vpop.xlane.xlu0 %7877 }
 0x40a   :  { %v10094_v19 = vpop.f32.mrf.mxu1  ;;  %10200 = vmatprep.mubr.msk.bf16.mxu0 %vm2639_vm4, %v15576_v37  ;;  %v7900_v31 = vadd.f32 %v18314_v26, %v18313_v52  ;;  %v18320_v26 = vld [vmem:[#allocation149_spill] sm:$0xff] }
 0x40b   :  { %18311 = vst [vmem:[#allocation27_spill] sm:$0xff] %v15842_v54  ;;  %v4477_v45 = vadd.f32 %v10094_v19, %v15691_v10  ;;  %v5037_v19 = vpack.c.bf16 %v18285_v50, %v15545_v28  ;;  %v15895_v54 = vpop.permute.xlu1 %8042 }
 0x40c   :  { %v4420_v33 = vpop.f32.mrf.mxu1  ;;  %v7932_v52 = vmul.f32 0.5, %v7900_v31  ;;  %18327 = vst [vmem:[#allocation89_spill] sm:$0xff] %v15895_v54 }
 0x40d   :  { %v15853_v49 = vadd.f32 %v15810_v58, %v4477_v45  ;;  %v4475_v18 = vadd.f32 %v4420_v33, %v15693_v60  ;;  %v18317_v45 = vld [vmem:[#allocation50_spill] sm:$0xff] }
 0x40e   :  { %v10095_v34 = vpop.f32.mrf.mxu1  ;;  %v7899_v60 = vadd.f32 %v18318_v55, %v18317_v45  ;;  %v10641_v55 = vld [vmem:[%s17692_s29 + $0x1e0] sm:$0xff] }
 0x40f   :  { %18312 = vst [vmem:[#allocation32_spill] sm:$0xff] %v15853_v49  ;;  %v15859_v37 = vadd.f32 %v15810_v58, %v4475_v18  ;;  %v4478_v10 = vadd.f32 %v10095_v34, %v15703_v63  ;;  %v18321_v18 = vld [vmem:[#allocation151_spill] sm:$0xff]  ;;  %v7569_v63 = vpop.permute.xlu0 %7568 }
 0x410   :  { %v15864_v57 = vpop.f32.mrf.mxu1  ;;  %v7910_v29 = vadd.f32 %v18321_v18, %v18320_v26  ;;  %v15880_v34 = vsub.f32 %v10641_v55, %v7569_v63  ;;  %v7931_v45 = vmul.f32 0.5, %v7899_v60  ;;  %v18324_v26 = vld [vmem:[#allocation147_spill] sm:$0xff]  ;;  %v18325_v18 = vld [vmem:[#allocation148_spill] sm:$0xff] }
 0x411   :  { %18315 = vst [vmem:[#allocation34_spill] sm:$0xff] %v15859_v37  ;;  %18316 = vst [vmem:[#allocation35_spill] sm:$0xff] %v15864_v57  ;;  %v15869_v33 = vadd.f32 %v15810_v58, %v4478_v10  ;;  %10201 = vmatmul.mubr.msk.bf16.gmra.mxu0 %vm2639_vm4, %v5037_v19  ;;  %v10642_v10 = vld [vmem:[%s17692_s29 + $0x1e8] sm:$0xff] }
 0x412   :  { %v10098_v47 = vpop.f32.mrf.mxu1  ;;  %10204 = vmatprep.mubr.msk.bf16.mxu0 %vm2639_vm4, %v15585_v32  ;;  %18322 = vst [vmem:[#allocation33_spill] sm:$0xff] %v15880_v34  ;;  %v15885_v31 = vsub.f32 %v10642_v10, %v7569_v63  ;;  %v7909_v32 = vadd.f32 %v18325_v18, %v18324_v26  ;;  %v7959_v37 = vadd.f32 %v7932_v52, %v7931_v45  ;;  %v7942_v49 = vmul.f32 0.5, %v7910_v29  ;;  %v7872_v18 = vpop.xlane.xlu1 %7871 }
 0x413   :  { %18319 = vst [vmem:[#allocation36_spill] sm:$0xff] %v15869_v33  ;;  %v4481_v28 = vadd.f32 %v10098_v47, %v15712_v12  ;;  %v7695_v47 = vmul.f32 %v15880_v34, %v15880_v34 }
 0x414   :  { %18323 = vst [vmem:[#allocation60_spill] sm:$0xff] %v15885_v31  ;;  %v4436_v19 = vpop.f32.mrf.mxu1  ;;  %v7941_v52 = vmul.f32 0.5, %v7909_v32  ;;  %v10644_v32 = vld [vmem:[%s17692_s29 + $0x1f8] sm:$0xff] }
 0x415   :  { %v15890_v33 = vadd.f32 %v15810_v58, %v4481_v28  ;;  %v4479_v12 = vadd.f32 %v4436_v19, %v15715_v44  ;;  %v7879_v26 = vsel %vm346_vm2, %v7695_v47, 0.0  ;;  %v7696_v28 = vmul.f32 %v15885_v31, %v15885_v31  ;;  %v10643_v44 = vld [vmem:[%s17692_s29 + $0x1f0] sm:$0xff] }
 0x416   :  { %v10099_v55 = vpop.f32.mrf.mxu1  ;;  %v15907_v19 = vsub.f32 %v10643_v44, %v7569_v63  ;;  %7880 = vadd.xlane.f32.xlu1 %v7879_v26  ;;  %v7964_v45 = vadd.f32 %v7942_v49, %v7941_v52  ;;  %v18332_v44 = vld [vmem:[#allocation141_spill] sm:$0xff] }
 0x417   :  { %18326 = vst [vmem:[#allocation18_spill] sm:$0xff] %v15890_v33  ;;  %v15898_v10 = vadd.f32 %v15810_v58, %v4479_v12  ;;  %v4482_v60 = vadd.f32 %v10099_v55, %v15723_v56  ;;  %v7975_v56 = vmul.f32 0.5, %v7959_v37  ;;  %v7920_v12 = vadd.f32 %v7878_v27, %v7875_v0 }
 0x418   :  { %18329 = vst [vmem:[#allocation24_spill] sm:$0xff] %v15907_v19  ;;  %v7882_v47 = vsel %vm346_vm2, %v7696_v28, 0.0  ;;  %v7697_v55 = vmul.f32 %v15907_v19, %v15907_v19  ;;  %v7980_v37 = vmul.f32 0.5, %v7964_v45 }
 0x419   :  { %18328 = vst [vmem:[#allocation21_spill] sm:$0xff] %v15898_v10  ;;  %v15910_v29 = vadd.f32 %v15810_v58, %v4482_v60  ;;  %10205 = vmatmul.mubr.msk.bf16.gmra.mxu0 %vm2639_vm4, %v15589_v17  ;;  %v15922_v60 = vsub.f32 %v10644_v32, %v7569_v63  ;;  %v7919_v17 = vadd.f32 %v7872_v18, %v15828_v30  ;;  %v7991_v49 = vmul.f32 0.26666668, %v7975_v56 }
 0x41a   :  { %10208 = vmatprep.mubr.msk.bf16.mxu0 %vm2639_vm4, %v15598_v3  ;;  %7883 = vadd.xlane.f32.xlu1 %v7882_v47  ;;  %v7952_v26 = vmul.f32 0.5, %v7920_v12  ;;  %v7885_v3 = vsel %vm346_vm2, %v7697_v55, 0.0  ;;  %v7996_v63 = vmul.f32 0.26666668, %v7980_v37  ;;  %v7982_v30 = vmul.f32 0.5, %v18332_v44  ;;  %v10532_v37 = vld [vmem:[%s17459_s12 + $0x8] sm:$0xff]  }
 0x41b   :  { %18330 = vst [vmem:[#allocation49_spill] sm:$0xff] %v15910_v29  ;;  %18331 = vst [vmem:[#allocation48_spill] sm:$0xff] %v15922_v60  ;;  %v7698_v0 = vmul.f32 %v15922_v60, %v15922_v60  ;;  %v7951_v27 = vmul.f32 0.5, %v7919_v17  ;;  %v8007_v28 = vadd.f32 1e-06, %v7991_v49  ;;  %v5038_v32 = vpack.c.bf16 %v18285_v50, %v15659_v6  ;;  %10288 = vmatprep.subr.bf16.mxu0 %v10532_v37  ;;  %v10533_v6 = vld [vmem:[%s17459_s12] sm:$0xff]  }
 0x41c   :  { %v8012_v45 = vadd.f32 1e-06, %v7996_v63  ;;  %v7998_v18 = vmul.f32 0.26666668, %v7982_v30  ;;  %10289 = vmatpush3.bf16.msra.mxu0 %v10532_v37 }
 0x41d   :  { %v7969_v52 = vadd.f32 %v7952_v26, %v7951_v27  ;;  %v7888_v56 = vsel %vm346_vm2, %v7698_v0, 0.0  ;;  %10567 = vrsqrt.f32 %v8007_v28  ;;  %v15953_v26 = vld [vmem:[%s17459_s12 + $0x28] sm:$0xff]   ;;  %10290 = vmatprep.subr.bf16.mxu0 %v10533_v6  ;;  %v15958_v0 = vpop.f32.mrf.mxu1 }
 0x41e   :  { %7886 = vadd.xlane.f32.xlu1 %v7885_v3  ;;  %10569 = vrsqrt.f32 %v8012_v45  ;;  %v15956_v3 = vpop.f32.mrf.mxu0  ;;  %18334 = vst [vmem:[#allocation124_spill] sm:$0xff] %v15958_v0 }
 0x41f   :  { %v7985_v12 = vmul.f32 0.5, %v7969_v52  ;;  %18333 = vst [vmem:[#allocation121_spill] sm:$0xff] %v15956_v3 }
 0x420   :  { %10291 = vmatpush3.bf16.msra.mxu0 %v10533_v6 }
 0x421   :  { %10209 = vmatmul.mubr.msk.bf16.gmra.mxu0 %vm2639_vm4, %v15602_v51  ;;  %v10531_v51 = vld [vmem:[%s17459_s12 + $0x10] sm:$0xff]   ;;  %v8001_v47 = vmul.f32 0.26666668, %v7985_v12 }
 0x422   :  { %10212 = vmatprep.mubr.msk.bf16.mxu0 %vm2639_vm4, %v15651_v2  ;;  %7889 = vadd.xlane.f32.xlu1 %v7888_v56  ;;  %v8014_v2 = vadd.f32 1e-06, %v7998_v18 }
 0x423   :  { %10222 = vmatprep.subr.bf16.mxu1 %v10531_v51  ;;  %v8017_v55 = vadd.f32 1e-06, %v8001_v47 }
 0x424   :  { %10223 = vmatpush3.bf16.msra.mxu1 %v10531_v51  ;;  %10571 = vrsqrt.f32 %v8014_v2 }
 0x425   :  { %10573 = vrsqrt.f32 %v8017_v55  ;;  %10356 = vmatprep.subr.bf16.mxu1 %v15953_v26 }
 0x429   :  { %10213 = vmatmul.mubr.msk.bf16.gmra.mxu0 %vm2639_vm4, %v15669_v11 }
 0x42a   :  { %10216 = vmatprep.mubr.msk.bf16.mxu0 %vm2639_vm4, %v15678_v1  ;;  %v10568_v11 = vpop.eup %10567 }
 0x42b   :  { %v10570_v1 = vpop.eup %10569 }
 0x431   :  { %10217 = vmatmul.mubr.msk.bf16.gmra.mxu0 %vm2639_vm4, %v5038_v32  ;;  %v10572_v17 = vpop.eup %10571 }
 0x432   :  { %v10574_v49 = vpop.eup %10573 }
 0x433   :  { %8057 = vperm.xlu1 %10501, %v10568_v11  }
 0x437   :  { %8082 = vperm.xlu1 %10501, %v10570_v1  }
 0x43b   :  { %8092 = vperm.xlu1 %10501, %v10572_v17  }
 0x43f   :  { %8107 = vperm.xlu1 %10501, %v10574_v49  }
 0x479   :  { %v10110_v27 = vpop.f32.mrf.mxu0 }
 0x47a   :  { %v10150_v28 = vpop.f32.mrf.mxu1 }
 0x47b   :  { %v4677_v63 = vpop.f32.mrf.mxu0 }
 0x47c   :  { %v4910_v44 = vpop.f32.mrf.mxu1 }
 0x47d   :  { %v10111_v30 = vpop.f32.mrf.mxu0 }
 0x47e   :  { %v10151_v52 = vpop.f32.mrf.mxu1 }
 0x47f   :  { %v15960_v56 = vpop.f32.mrf.mxu0 }
 0x480   :  { %v15964_v18 = vpop.f32.mrf.mxu1 }
 0x481   :  { %v15962_v45 = vpop.f32.mrf.mxu0 }
 0x482   :  { %v15970_v2 = vpop.f32.mrf.mxu1 }
 0x483   :  { %v15966_v12 = vpop.f32.mrf.mxu0 }
 0x484   :  { %v15976_v32 = vpop.f32.mrf.mxu1 }
 0x485   :  { %v15968_v51 = vpop.f32.mrf.mxu0 }
 0x486   :  { %v15982_v17 = vpop.f32.mrf.mxu1 }
 0x487   :  { %v15972_v47 = vpop.f32.mrf.mxu0 }
 0x488   :  { %v15988_v6 = vpop.f32.mrf.mxu1 }
 0x489   :  { %v15974_v55 = vpop.f32.mrf.mxu0 }
 0x48a   :  { %v15994_v31 = vpop.f32.mrf.mxu1 }
 0x48b   :  { %v15978_v11 = vpop.f32.mrf.mxu0 }
 0x48c   :  { %v16000_v29 = vpop.f32.mrf.mxu1 }
 0x48d   :  { %v15980_v1 = vpop.f32.mrf.mxu0 }
 0x48e   :  { %v16006_v0 = vpop.f32.mrf.mxu1 }
 0x48f   :  { %v15984_v49 = vpop.f32.mrf.mxu0 }
 0x490   :  { %18335 = vst [vmem:[#allocation74_spill] sm:$0xff] %v15984_v49  ;;  %v16012_v4 = vpop.f32.mrf.mxu1  ;;  %v18366_v49 = vld [vmem:[#allocation84_spill] sm:$0xff] }
 0x491   :  { %v15986_v37 = vpop.f32.mrf.mxu0  ;;  %18343 = vst [vmem:[#allocation85_spill] sm:$0xff] %v16012_v4  ;;  %v18363_v4 = vld [vmem:[#allocation125_spill] sm:$0xff] }
 0x493   :  { %v15990_v60 = vpop.f32.mrf.mxu0 }
 0x495   :  { %v15992_v19 = vpop.f32.mrf.mxu0 }
 0x496   :  { %18336 = vst [vmem:[#allocation150_spill] sm:$0xff] %v15992_v19 }
 0x497   :  { %v15996_v34 = vpop.f32.mrf.mxu0 }
 0x498   :  { %18337 = vst [vmem:[#allocation127_spill] sm:$0xff] %v15996_v34  ;;  %v16018_v34 = vpop.f32.mrf.mxu1 }
 0x499   :  { %v15998_v54 = vpop.f32.mrf.mxu0 }
 0x49a   :  { %18338 = vst [vmem:[#allocation139_spill] sm:$0xff] %v15998_v54  ;;  %v16024_v13 = vpop.f32.mrf.mxu1 }
 0x49b   :  { %v16002_v10 = vpop.f32.mrf.mxu0 }
 0x49c   :  { %18339 = vst [vmem:[#allocation129_spill] sm:$0xff] %v16002_v10 }
 0x49d   :  { %v16004_v33 = vpop.f32.mrf.mxu0 }
 0x49e   :  { %18340 = vst [vmem:[#allocation144_spill] sm:$0xff] %v16004_v33 }
 0x49f   :  { %v16008_v3 = vpop.f32.mrf.mxu0 }
 0x4a0   :  { %18341 = vst [vmem:[#allocation142_spill] sm:$0xff] %v16008_v3  ;;  %v16030_v3 = vpop.f32.mrf.mxu1 }
 0x4a1   :  { %v16010_v57 = vpop.f32.mrf.mxu0  ;;  %18350 = vst [vmem:[#allocation151_spill] sm:$0xff] %v16030_v3  ;;  %v18370_v3 = vld [vmem:[#allocation134_spill] sm:$0xff] }
 0x4a2   :  { %18342 = vst [vmem:[#allocation152_spill] sm:$0xff] %v16010_v57  ;;  %v16066_v19 = vadd.f32 %v18370_v3, %v18369_v62  ;;  %v4914_v62 = vadd.f32 %v15964_v18, %v15960_v56 }
 0x4a3   :  { %v16014_v21 = vpop.f32.mrf.mxu0 }
 0x4a4   :  { %18344 = vst [vmem:[#allocation30_spill] sm:$0xff] %v16014_v21  ;;  %v16036_v21 = vpop.f32.mrf.mxu1 }
 0x4a5   :  { %v16016_v40 = vpop.f32.mrf.mxu0  ;;  %18353 = vst [vmem:[#allocation141_spill] sm:$0xff] %v16036_v21  ;;  %v18361_v21 = vld [vmem:[#allocation123_spill] sm:$0xff] }
 0x4a6   :  { %18345 = vst [vmem:[#allocation54_spill] sm:$0xff] %v16016_v40  ;;  %v16044_v10 = vpop.f32.mrf.mxu1 }
 0x4a7   :  { %v16020_v38 = vpop.f32.mrf.mxu0 }
 0x4a8   :  { %18346 = vst [vmem:[#allocation31_spill] sm:$0xff] %v16020_v38  ;;  %v18356_v38 = vld [vmem:[#allocation78_spill] sm:$0xff] }
 0x4a9   :  { %v16022_v14 = vpop.f32.mrf.mxu0  ;;  %18358 = vst [vmem:[#allocation78_spill] sm:$0xff] %v16044_v10  ;;  %v18365_v10 = vld [vmem:[#allocation133_spill] sm:$0xff] }
 0x4aa   :  { %18347 = vst [vmem:[#allocation50_spill] sm:$0xff] %v16022_v14  ;;  %v18357_v14 = vld [vmem:[#allocation140_spill] sm:$0xff] }
 0x4ab   :  { %v16026_v33 = vpop.f32.mrf.mxu0  ;;  %v3714_v25 = vadd.f32 %v18357_v14, %v18356_v38  ;;  %v18364_v14 = vld [vmem:[#allocation122_spill] sm:$0xff] }
 0x4ac   :  { %18348 = vst [vmem:[#allocation61_spill] sm:$0xff] %v16026_v33  ;;  %v3746_v38 = vadd.f32 %v18364_v14, %v18363_v4  ;;  %v18374_v14 = vld [vmem:[#allocation46_spill] sm:$0xff] }
 0x4ad   :  { %v16028_v8 = vpop.f32.mrf.mxu0  ;;  %v4024_v16 = vadd.f32 %v18360_v24, %v3714_v25  ;;  %v16062_v24 = vpop.f32.mrf.mxu1 }
 0x4ae   :  { %18349 = vst [vmem:[#allocation149_spill] sm:$0xff] %v16028_v8  ;;  %v4919_v8 = vadd.f32 %v10150_v28, %v10110_v27  ;;  %v18367_v27 = vld [vmem:[#allocation13_spill] sm:$0xff]  ;;  %v18368_v28 = vld [vmem:[#allocation130_spill] sm:$0xff] }
 0x4af   :  { %v16032_v57 = vpop.f32.mrf.mxu0  ;;  %v3778_v25 = vadd.f32 %v18368_v28, %v18367_v27  ;;  %v4242_v27 = vadd.f32 %v18374_v14, %v4024_v16  ;;  %v16089_v16 = vpop.f32.mrf.mxu1  ;;  %v4493_v14 = vadd.f32 %v15810_v58, %v15738_v22  ;;  %v4496_v22 = vadd.f32 %v15810_v58, %v15753_v7 }
 0x4b0   :  { %18351 = vst [vmem:[#allocation147_spill] sm:$0xff] %v16032_v57  ;;  %v4911_v57 = vadd.f32 %v4910_v44, %v4677_v63  ;;  %v18372_v63 = vld [vmem:[#allocation138_spill] sm:$0xff]  ;;  %v18373_v44 = vld [vmem:[#allocation145_spill] sm:$0xff]  ;;  %v4930_v7 = vadd.f32 %v15988_v6, %v15972_v47 }
 0x4b1   :  { %v16034_v15 = vpop.f32.mrf.mxu0 }
 0x4b2   :  { %18352 = vst [vmem:[#allocation148_spill] sm:$0xff] %v16034_v15  ;;  %v16052_v15 = vld [vmem:[%s17458_s11] ss:$0 sm:$0xff] }
 0x4b3   :  { %v16038_v40 = vpop.f32.mrf.mxu0 }
 0x4b4   :  { %18354 = vst [vmem:[#allocation156_spill] sm:$0xff] %v16038_v40 }
 0x4b5   :  { %v16040_v36 = vpop.f32.mrf.mxu0 }
 0x4b6   :  { %18355 = vst [vmem:[#allocation157_spill] sm:$0xff] %v16040_v36  ;;  %v18362_v36 = vld [vmem:[#allocation62_spill] sm:$0xff] }
 0x4b7   :  { %v16046_v33 = vpop.f32.mrf.mxu0  ;;  %v3730_v53 = vadd.f32 %v18362_v36, %v18361_v21  ;;  %v18371_v21 = vld [vmem:[#allocation120_spill] sm:$0xff] }
 0x4b8   :  { %18359 = vst [vmem:[#allocation140_spill] sm:$0xff] %v16046_v33  ;;  %v3762_v33 = vadd.f32 %v18366_v49, %v18365_v10  ;;  %v16071_v4 = vadd.f32 %v18372_v63, %v18371_v21  ;;  %v4492_v49 = vadd.f32 %v15810_v58, %v15732_v48  ;;  %v4452_v21 = vadd.f32 %v15742_v61, %v4242_v27 }
 0x4b9   :  { %v10190_v54 = vpop.f32.mrf.mxu0  ;;  %v4028_v10 = vadd.f32 %v18373_v44, %v3730_v53  ;;  %v4490_v53 = vadd.f32 %v15810_v58, %v15735_v43  ;;  %v4935_v48 = vadd.f32 %v15970_v2, %v15962_v45  ;;  %v4927_v61 = vadd.f32 %v15976_v32, %v15966_v12 }
 0x4ba   :  { %v5241_v40 = vadd.f32 %v10190_v54, %v4919_v8  ;;  %v4922_v8 = vadd.f32 %v10151_v52, %v10111_v30 }
 0x4bb   :  { %v5112_v9 = vpop.f32.mrf.mxu0 }
 0x4bc   :  { %v5280_v54 = vadd.f32 %v16052_v15, %v5241_v40  ;;  %v5239_v36 = vadd.f32 %v5112_v9, %v4911_v57  ;;  %v18375_v57 = vld [vmem:[#allocation80_spill] sm:$0xff]  ;;  %v18376_v9 = vld [vmem:[#allocation43_spill] sm:$0xff] }
 0x4bd   :  { %v10191_v28 = vpop.f32.mrf.mxu0  ;;  %v16082_v52 = vadd.f32 %v18376_v9, %v18375_v57 }
 0x4be   :  { %v5312_v3 = vmax.f32 %v5280_v54, 0.0  ;;  %v5278_v30 = vadd.f32 %v16052_v15, %v5239_v36  ;;  %v5242_v40 = vadd.f32 %v10191_v28, %v4922_v8  ;;  %v18377_v36 = vld [vmem:[#allocation83_spill] sm:$0xff]  ;;  %v18378_v28 = vld [vmem:[#allocation146_spill] sm:$0xff] }
 0x4bf   :  { %v5115_v63 = vpop.f32.mrf.mxu0  ;;  %v4032_v44 = vadd.f32 %v18377_v36, %v3746_v38  ;;  %v4246_v43 = vadd.f32 %v18378_v28, %v4028_v10  ;;  %v4491_v38 = vadd.f32 %v15810_v58, %v4452_v21  ;;  %v16108_v10 = vpop.f32.mrf.mxu1 }
 0x4c0   :  { %v5344_v56 = vadd.f32 %v5312_v3, %v4492_v49  ;;  %v5310_v18 = vmax.f32 %v5278_v30, 0.0  ;;  %v5281_v54 = vadd.f32 %v16052_v15, %v5242_v40  ;;  %v5240_v8 = vadd.f32 %v5115_v63, %v4914_v62  ;;  %v18379_v3 = vld [vmem:[#allocation29_spill] sm:$0xff] }
 0x4c1   :  { %v10194_v27 = vpop.f32.mrf.mxu0  ;;  %v16100_v30 = vadd.f32 %v18379_v3, %v3762_v33  ;;  %v16103_v62 = vadd.f32 %v15550_v41, %v3778_v25  ;;  %v4494_v33 = vadd.f32 %v15810_v58, %v15756_v20  ;;  %v4938_v41 = vadd.f32 %v15982_v17, %v15968_v51  ;;  %v16125_v36 = vpop.f32.mrf.mxu1 }
 0x4c2   :  { %v5342_v45 = vadd.f32 %v5310_v18, %v4490_v53  ;;  %v5313_v2 = vmax.f32 %v5281_v54, 0.0  ;;  %v5279_v57 = vadd.f32 %v16052_v15, %v5240_v8  ;;  %v5245_v49 = vadd.f32 %v10194_v27, %v4935_v48 }
 0x4c3   :  { %v5128_v12 = vpop.f32.mrf.mxu0  ;;  %v4951_v8 = vadd.f32 %v15994_v31, %v15974_v55  ;;  %v10535_v31 = vld [vmem:[%s17459_s12 + $0x20] sm:$0xff]  }
 0x4c4   :  { %v16110_v32 = vadd.f32 %v5313_v2, %v4493_v14  ;;  %v5311_v40 = vmax.f32 %v5279_v57, 0.0  ;;  %v5284_v9 = vadd.f32 %v16052_v15, %v5245_v49  ;;  %v5243_v53 = vadd.f32 %v5128_v12, %v4927_v61  ;;  %v18380_v49 = vld [vmem:[#allocation131_spill] sm:$0xff]  ;;  %v16148_v12 = vpop.f32.mrf.mxu1 }
 0x4c5   :  { %v10195_v25 = vpop.f32.mrf.mxu0  ;;  %v5410_v21 = vpack.c.bf16 %v5342_v45, %v5342_v45  ;;  %v5374_v48 = vpack.c.bf16 %v5342_v45, %v18285_v50  ;;  %v5412_v2 = vpack.c.bf16 %v5344_v56, %v5344_v56  ;;  %v4250_v3 = vadd.f32 %v18380_v49, %v4032_v44 }
 0x4c6   :  { %v16121_v63 = vpack.c.bf16 %v16110_v32, %v5344_v56  ;;  %v5343_v18 = vadd.f32 %v5311_v40, %v4491_v38  ;;  %v5316_v54 = vmax.f32 %v5284_v9, 0.0  ;;  %v5282_v20 = vadd.f32 %v16052_v15, %v5243_v53 }
 0x4c7   :  { %v5246_v51 = vadd.f32 %v10195_v25, %v4938_v41  ;;  %10224 = vmatprep.mubr.msk.bf16.mxu1 %vm1838_vm3, %v5410_v21  ;;  %10292 = vmatprep.mubr.msk.bf16.mxu0 %vm1838_vm3, %v5374_v48  ;;  %v5131_v17 = vpop.f32.mrf.mxu0 }
 0x4c8   :  { %v16130_v14 = vpack.c.bf16 %v5343_v18, %v5342_v45  ;;  %v5411_v47 = vpack.c.bf16 %v5343_v18, %v5343_v18  ;;  %v16132_v6 = vadd.f32 %v5316_v54, %v4496_v22  ;;  %v5244_v28 = vadd.f32 %v5131_v17, %v4930_v7 }
 0x4c9   :  { %v5314_v55 = vmax.f32 %v5282_v20, 0.0  ;;  %v5285_v61 = vadd.f32 %v16052_v15, %v5246_v51  ;;  %v10198_v27 = vpop.f32.mrf.mxu0  ;;  %v16138_v57 = vpack.c.bf16 %v5344_v56, %v5343_v18  ;;  %v4943_v45 = vadd.f32 %v16000_v29, %v15978_v11  ;;  %v18382_v51 = vld [vmem:[#allocation96_spill] sm:$0xff] }
 0x4ca   :  { %v5249_v38 = vadd.f32 %v10198_v27, %v4951_v8  ;;  %10225 = vmatmul.mubr.msk.bf16.vlgmr.msra.gmra.mxu1 %vm1838_vm3, %v5411_v47  ;;  %10293 = vmatmul.mubr.msk.bf16.vlgmr.msra.gmra.mxu0 %vm1838_vm3, %v16130_v14  ;;  %v4497_v22 = vadd.f32 %v15810_v58, %v15759_v42  ;;  %v5283_v9 = vadd.f32 %v16052_v15, %v5244_v28 }
 0x4cb   :  { %v16150_v40 = vadd.f32 %v5314_v55, %v4494_v33  ;;  %v5317_v56 = vmax.f32 %v5285_v61, 0.0  ;;  %10357 = vmatpush3.bf16.msra.mxu1 %v15953_v26  ;;  %v5144_v44 = vpop.f32.mrf.mxu0  ;;  %10228 = vmatprep.mubr.msk.bf16.mxu1 %vm1838_vm3, %v5412_v2  ;;  %v4954_v29 = vadd.f32 %v16006_v0, %v15980_v1  ;;  %v16162_v42 = vadd.f32 %v15624_v35, %v16066_v19  ;;  %v18381_v19 = vld [vmem:[#allocation155_spill] sm:$0xff] }
 0x4cc   :  { %v5288_v11 = vadd.f32 %v16052_v15, %v5249_v38  ;;  %v5247_v53 = vadd.f32 %v5144_v44, %v4943_v45  ;;  %10296 = vmatprep.mubr.msk.bf16.mxu0 %vm1838_vm3, %v16138_v57  ;;  %10358 = vmatprep.subr.bf16.mxu1 %v10535_v31  ;;  %v4456_v33 = vadd.f32 %v15763_v59, %v4246_v43  ;;  %v16178_v43 = vpop.f32.mrf.mxu1  ;;  %v5315_v18 = vmax.f32 %v5283_v9, 0.0  ;;  %v18387_v44 = vld [vmem:[#allocation74_spill] sm:$0xff] }
 0x4cd   :  { %v16165_v26 = vadd.f32 %v5317_v56, %v4497_v22  ;;  %v10199_v41 = vpop.f32.mrf.mxu0  ;;  %v16169_v25 = vpack.c.bf16 %v16150_v40, %v16110_v32  ;;  %v4500_v0 = vadd.f32 %v15810_v58, %v15774_v5  ;;  %v4498_v35 = vadd.f32 %v15810_v58, %v15777_v39  ;;  %v18386_v56 = vld [vmem:[#allocation95_spill] sm:$0xff] }
 0x4ce   :  { %v5320_v1 = vmax.f32 %v5288_v11, 0.0  ;;  %v5286_v21 = vadd.f32 %v16052_v15, %v5247_v53  ;;  %v5250_v48 = vadd.f32 %v10199_v41, %v4954_v29  ;;  %v4254_v59 = vadd.f32 %v18381_v19, %v16100_v30  ;;  %v16207_v61 = vpop.f32.mrf.mxu1  ;;  %v18388_v29 = vld [vmem:[#allocation85_spill] sm:$0xff]  ;;  %v18389_v41 = vld [vmem:[#allocation6_spill] sm:$0xff] }
 0x4cf   :  { %v16182_v7 = vpack.c.bf16 %v16165_v26, %v16132_v6  ;;  %v5147_v54 = vpop.f32.mrf.mxu0  ;;  %10359 = vmatpush3.bf16.msra.mxu1 %v10535_v31  ;;  %v4967_v5 = vadd.f32 %v16018_v34, %v15986_v37  ;;  %v5413_v8 = vpack.c.bf16 %v16110_v32, %v16110_v32  ;;  %v4495_v30 = vadd.f32 %v15810_v58, %v4456_v33  ;;  %v18391_v19 = vld [vmem:[#allocation78_spill] sm:$0xff] }
 0x4d0   :  { %v16188_v20 = vadd.f32 %v5320_v1, %v4500_v0  ;;  %v5318_v39 = vmax.f32 %v5286_v21, 0.0  ;;  %v4258_v17 = vadd.f32 %v18382_v51, %v16103_v62  ;;  %v5289_v47 = vadd.f32 %v16052_v15, %v5250_v48 }
 0x4d1   :  { %v10202_v28 = vpop.f32.mrf.mxu0  ;;  %v5414_v31 = vpack.c.bf16 %v16150_v40, %v16150_v40  ;;  %v4959_v34 = vadd.f32 %v16024_v13, %v15990_v60  ;;  %v4048_v62 = vadd.f32 %v15697_v23, %v16071_v4  ;;  %v4501_v55 = vadd.f32 %v15810_v58, %v15780_v46  ;;  %v18383_v13 = vld [vmem:[#allocation150_spill] sm:$0xff]  ;;  %v18384_v60 = vld [vmem:[#allocation151_spill] sm:$0xff]  ;;  %v18385_v46 = vld [vmem:[#allocation88_spill] sm:$0xff] }
 0x4d2   :  { %v16198_v37 = vadd.f32 %v5318_v39, %v4498_v35  ;;  %v5253_v32 = vadd.f32 %v10202_v28, %v4967_v5  ;;  %10229 = vmatmul.mubr.msk.bf16.gmra.mxu1 %vm1838_vm3, %v5413_v8  ;;  %10297 = vmatmul.mubr.msk.bf16.gmra.mxu0 %vm1838_vm3, %v16121_v63  ;;  %v5347_v27 = vadd.f32 %v5315_v18, %v4495_v30  ;;  %v5321_v2 = vmax.f32 %v5289_v47, 0.0  ;;  %v18390_v35 = vld [vmem:[#allocation139_spill] sm:$0xff] }
 0x4d3   :  { %v5160_v49 = vpop.f32.mrf.mxu0  ;;  %10232 = vmatprep.mubr.msk.bf16.mxu1 %vm1838_vm3, %v5414_v31  ;;  %10300 = vmatprep.mubr.msk.bf16.mxu0 %vm1838_vm3, %v16169_v25  ;;  %v4970_v45 = vadd.f32 %v18384_v60, %v18383_v13  ;;  %v4460_v4 = vadd.f32 %v18385_v46, %v4250_v3  ;;  %v4504_v9 = vadd.f32 %v15810_v58, %v18386_v56  ;;  %v16231_v3 = vpop.f32.mrf.mxu1  ;;  %v18396_v56 = vld [vmem:[#allocation154_spill] sm:$0xff] }
 0x4d4   :  { %v5292_v38 = vadd.f32 %v16052_v15, %v5253_v32  ;;  %v5251_v22 = vadd.f32 %v5160_v49, %v4959_v34  ;;  %v16217_v23 = vpack.c.bf16 %v16198_v37, %v16165_v26  ;;  %v4946_v11 = vadd.f32 %v18388_v29, %v18387_v44  ;;  %v18392_v34 = vld [vmem:[#allocation7_spill] sm:$0xff]  ;;  %v18397_v44 = vld [vmem:[#allocation22_spill] sm:$0xff] }
 0x4d5   :  { %v16224_v53 = vadd.f32 %v5321_v2, %v4501_v55  ;;  %v10203_v33 = vpop.f32.mrf.mxu0  ;;  %v4502_v0 = vadd.f32 %v15810_v58, %v18389_v41  ;;  %v4983_v18 = vadd.f32 %v18391_v19, %v18390_v35  ;;  %v16234_v5 = vpack.c.bf16 %v5347_v27, %v16150_v40  ;;  %v18393_v55 = vld [vmem:[#allocation8_spill] sm:$0xff]  ;;  %v18400_v19 = vld [vmem:[#allocation9_spill] sm:$0xff] }
 0x4d6   :  { %v5324_v1 = vmax.f32 %v5292_v38, 0.0  ;;  %v5290_v21 = vadd.f32 %v16052_v15, %v5251_v22  ;;  %v5254_v48 = vadd.f32 %v10203_v33, %v4970_v45  ;;  %v5248_v39 = vadd.f32 %v5147_v54, %v4946_v11  ;;  %v18394_v54 = vld [vmem:[#allocation129_spill] sm:$0xff] }
 0x4d7   :  { %v16238_v8 = vpack.c.bf16 %v16224_v53, %v16188_v20  ;;  %v16240_v30 = vpop.f32.mrf.mxu0  ;;  %v5415_v51 = vpack.c.bf16 %v5347_v27, %v5347_v27  ;;  %v4505_v32 = vadd.f32 %v15810_v58, %v18392_v34  ;;  %v4464_v2 = vadd.f32 %v18393_v55, %v4254_v59  ;;  %v18395_v59 = vld [vmem:[#allocation153_spill] sm:$0xff] }
 0x4d8   :  { %v16242_v47 = vadd.f32 %v5324_v1, %v4504_v9  ;;  %v5322_v28 = vmax.f32 %v5290_v21, 0.0  ;;  %v5293_v31 = vadd.f32 %v16052_v15, %v5254_v48  ;;  %v5416_v49 = vpack.c.bf16 %v16132_v6, %v16132_v6  ;;  %v18399_v1 = vld [vmem:[#allocation144_spill] sm:$0xff] }
 0x4d9   :  { %v10206_v40 = vpop.f32.mrf.mxu0  ;;  %v16251_v13 = vpack.c.bf16 %v16132_v6, %v5347_v27  ;;  %v4975_v60 = vadd.f32 %v16062_v24, %v18394_v54  ;;  %v4262_v46 = vadd.f32 %v18395_v59, %v16162_v42  ;;  %v16263_v9 = vadd.f32 %v18396_v56, %v4048_v62  ;;  %v16265_v6 = vpop.f32.mrf.mxu1  ;;  %v18398_v62 = vld [vmem:[#allocation86_spill] sm:$0xff] }
 0x4da   :  { %v16255_v45 = vadd.f32 %v5322_v28, %v4502_v0  ;;  %v5325_v38 = vmax.f32 %v5293_v31, 0.0  ;;  %v5257_v22 = vadd.f32 %v10206_v40, %v4983_v18  ;;  %10233 = vmatmul.mubr.msk.bf16.gmra.mxu1 %vm1838_vm3, %v5415_v51  ;;  %10301 = vmatmul.mubr.msk.bf16.gmra.mxu0 %vm1838_vm3, %v16234_v5  ;;  %v5287_v27 = vadd.f32 %v16052_v15, %v5248_v39  ;;  %v18401_v39 = vld [vmem:[#allocation142_spill] sm:$0xff] }
 0x4db   :  { %v5176_v24 = vpop.f32.mrf.mxu0  ;;  %10236 = vmatprep.mubr.msk.bf16.mxu1 %vm1838_vm3, %v5416_v49  ;;  %10304 = vmatprep.mubr.msk.bf16.mxu0 %vm1838_vm3, %v16251_v13  ;;  %v4468_v29 = vadd.f32 %v18397_v44, %v4258_v17  ;;  %v16277_v41 = vadd.f32 %v18398_v62, %v16082_v52  ;;  %v4499_v0 = vadd.f32 %v15810_v58, %v4460_v4  ;;  %v16297_v51 = vpop.f32.mrf.mxu1  ;;  %v18403_v54 = vld [vmem:[#allocation14_spill] sm:$0xff] }
 0x4dc   :  { %v16272_v11 = vadd.f32 %v5325_v38, %v4505_v32  ;;  %v5296_v33 = vadd.f32 %v16052_v15, %v5257_v22  ;;  %v5255_v42 = vadd.f32 %v5176_v24, %v4975_v60  ;;  %v4986_v21 = vadd.f32 %v16089_v16, %v18399_v1 }
 0x4dd   :  { %v10207_v48 = vpop.f32.mrf.mxu0  ;;  %v16284_v35 = vpack.c.bf16 %v16255_v45, %v16224_v53  ;;  %v16287_v17 = vadd.f32 %v15810_v58, %v4464_v2  ;;  %v4506_v18 = vadd.f32 %v15810_v58, %v18400_v19  ;;  %v4978_v52 = vadd.f32 %v16108_v10, %v18401_v39  ;;  %v18402_v2 = vld [vmem:[#allocation152_spill] sm:$0xff] }
 0x4de   :  { %v16295_v4 = vpack.c.bf16 %v16272_v11, %v16242_v47  ;;  %v5319_v16 = vmax.f32 %v5287_v27, 0.0  ;;  %v5328_v28 = vmax.f32 %v5296_v33, 0.0  ;;  %v5294_v31 = vadd.f32 %v16052_v15, %v5255_v42  ;;  %v18404_v27 = vld [vmem:[#allocation30_spill] sm:$0xff]  ;;  %v5009_v33 = vpop.f32.mrf.mxu1 }
 0x4df   :  { %v5258_v34 = vadd.f32 %v10207_v48, %v4986_v21  ;;  %v5179_v32 = vpop.f32.mrf.mxu0  ;;  %v4507_v55 = vadd.f32 %v15810_v58, %v4468_v29  ;;  %v4999_v40 = vadd.f32 %v16125_v36, %v18402_v2  ;;  %v5417_v10 = vpack.c.bf16 %v16165_v26, %v16165_v26  ;;  %v18405_v26 = vld [vmem:[#allocation143_spill] sm:$0xff] }
 0x4e0   :  { %v5256_v49 = vadd.f32 %v5179_v32, %v4978_v52  ;;  %v16306_v60 = vadd.f32 %v5328_v28, %v18403_v54  ;;  %v5326_v38 = vmax.f32 %v5294_v31, 0.0  ;;  %v5418_v56 = vpack.c.bf16 %v16198_v37, %v16198_v37  ;;  %v18407_v28 = vld [vmem:[#allocation127_spill] sm:$0xff]  ;;  %v18411_v32 = vld [vmem:[#allocation10_spill] sm:$0xff] }
 0x4e1   :  { %v5297_v22 = vadd.f32 %v16052_v15, %v5258_v34  ;;  %v10210_v59 = vpop.f32.mrf.mxu0  ;;  %v4991_v24 = vadd.f32 %v16148_v12, %v18404_v27  ;;  %v4472_v29 = vadd.f32 %v18405_v26, %v4262_v46  ;;  %v5351_v42 = vadd.f32 %v5319_v16, %v4499_v0  ;;  %v18406_v12 = vld [vmem:[#allocation54_spill] sm:$0xff]  ;;  %v18408_v46 = vld [vmem:[#allocation141_spill] sm:$0xff]  ;;  %v18409_v0 = vld [vmem:[#allocation31_spill] sm:$0xff] }
 0x4e2   :  { %v5295_v44 = vadd.f32 %v16052_v15, %v5256_v49  ;;  %v5261_v36 = vadd.f32 %v10210_v59, %v4999_v40  ;;  %10237 = vmatmul.mubr.msk.bf16.gmra.mxu1 %vm1838_vm3, %v5417_v10  ;;  %10305 = vmatmul.mubr.msk.bf16.gmra.mxu0 %vm1838_vm3, %v16182_v7  ;;  %v16318_v62 = vadd.f32 %v5326_v38, %v4506_v18  ;;  %v18410_v16 = vld [vmem:[#allocation50_spill] sm:$0xff]  ;;  %v10178_v38 = vpop.f32.mrf.mxu1 }
 0x4e3   :  { %v5329_v1 = vmax.f32 %v5297_v22, 0.0  ;;  %v5192_v21 = vpop.f32.mrf.mxu0  ;;  %10240 = vmatprep.mubr.msk.bf16.mxu1 %vm1838_vm3, %v5418_v56  ;;  %10308 = vmatprep.mubr.msk.bf16.mxu0 %vm1838_vm3, %v16217_v23  ;;  %v5002_v48 = vadd.f32 %v16178_v43, %v18406_v12  ;;  %v4962_v31 = vadd.f32 %v18408_v46, %v18407_v28  ;;  %v4994_v18 = vadd.f32 %v16207_v61, %v18409_v0  ;;  %v18413_v12 = vld [vmem:[#allocation61_spill] sm:$0xff] }
 0x4e4   :  { %v5327_v19 = vmax.f32 %v5295_v44, 0.0  ;;  %v5300_v39 = vadd.f32 %v16052_v15, %v5261_v36  ;;  %v5259_v52 = vadd.f32 %v5192_v21, %v4991_v24  ;;  %v5015_v34 = vadd.f32 %v16231_v3, %v18410_v16  ;;  %v18412_v24 = vld [vmem:[#allocation71_spill] sm:$0xff] }
 0x4e5   :  { %v16333_v2 = vadd.f32 %v5329_v1, %v18411_v32  ;;  %v10211_v40 = vpop.f32.mrf.mxu0  ;;  %v16339_v22 = vpack.c.bf16 %v5351_v42, %v16198_v37  ;;  %v5252_v59 = vadd.f32 %v16240_v30, %v4962_v31  ;;  %v5420_v56 = vpack.c.bf16 %v16188_v20, %v16188_v20  ;;  %v18416_v32 = vld [vmem:[#allocation35_spill] sm:$0xff] }
 0x4e6   :  { %v16335_v10 = vadd.f32 %v5327_v19, %v4507_v55  ;;  %v5332_v43 = vmax.f32 %v5300_v39, 0.0  ;;  %v5298_v49 = vadd.f32 %v16052_v15, %v5259_v52  ;;  %v5262_v54 = vadd.f32 %v10211_v40, %v5002_v48  ;;  %v18414_v19 = vld [vmem:[#allocation137_spill] sm:$0xff] }
 0x4e7   :  { %v16344_v61 = vpack.c.bf16 %v16333_v2, %v16306_v60  ;;  %v5195_v3 = vpop.f32.mrf.mxu0  ;;  %v5419_v55 = vpack.c.bf16 %v5351_v42, %v5351_v42  ;;  %v16357_v1 = vpack.c.bf16 %v16188_v20, %v5351_v42  ;;  %v5007_v48 = vadd.f32 %v16265_v6, %v18413_v12  ;;  %v5022_v20 = vpop.f32.mrf.mxu1  ;;  %v18415_v6 = vld [vmem:[#allocation149_spill] sm:$0xff] }
 0x4e8   :  { %v16350_v27 = vpack.c.bf16 %v16335_v10, %v16318_v62  ;;  %v16353_v44 = vadd.f32 %v5332_v43, %v18412_v24  ;;  %v5330_v37 = vmax.f32 %v5298_v49, 0.0  ;;  %v5301_v36 = vadd.f32 %v16052_v15, %v5262_v54  ;;  %v18417_v43 = vld [vmem:[#allocation147_spill] sm:$0xff] }
 0x4e9   :  { %v5260_v30 = vadd.f32 %v5195_v3, %v4994_v18  ;;  %v10214_v26 = vpop.f32.mrf.mxu0  ;;  %v16361_v21 = vpack.c.bf16 %v16306_v60, %v16335_v10  ;;  %v4511_v28 = vadd.f32 %v15810_v58, %v4472_v29  ;;  %v5291_v42 = vadd.f32 %v16052_v15, %v5252_v59  ;;  %v18418_v54 = vld [vmem:[#allocation27_spill] sm:$0xff] }
 0x4ea   :  { %v16366_v39 = vadd.f32 %v5330_v37, %v18414_v19  ;;  %v5265_v52 = vadd.f32 %v10214_v26, %v5015_v34  ;;  %10241 = vmatmul.mubr.msk.bf16.gmra.mxu1 %vm1838_vm3, %v5419_v55  ;;  %10309 = vmatmul.mubr.msk.bf16.gmra.mxu0 %vm1838_vm3, %v16339_v22  ;;  %v5333_v46 = vmax.f32 %v5301_v36, 0.0  ;;  %v5018_v18 = vadd.f32 %v16297_v51, %v18415_v6  ;;  %v18419_v55 = vld [vmem:[#allocation148_spill] sm:$0xff] }
 0x4eb   :  { %v5299_v31 = vadd.f32 %v16052_v15, %v5260_v30  ;;  %v5208_v0 = vpop.f32.mrf.mxu0  ;;  %10244 = vmatprep.mubr.msk.bf16.mxu1 %vm1838_vm3, %v5420_v56  ;;  %10312 = vmatprep.mubr.msk.bf16.mxu0 %vm1838_vm3, %v16357_v1  ;;  %v4476_v40 = vadd.f32 %v18416_v32, %v16263_v9  ;;  %v5010_v49 = vadd.f32 %v5009_v33, %v18417_v43  ;;  %v10179_v30 = vpop.f32.mrf.mxu1  ;;  %v5323_v12 = vmax.f32 %v5291_v42, 0.0  ;;  %v18420_v19 = vld [vmem:[#allocation32_spill] sm:$0xff] }
 0x4ec   :  { %v5304_v16 = vadd.f32 %v16052_v15, %v5265_v52  ;;  %v5263_v34 = vadd.f32 %v5208_v0, %v5007_v48  ;;  %v16382_v29 = vpack.c.bf16 %v16366_v39, %v16333_v2  ;;  %v16388_v59 = vadd.f32 %v5333_v46, %v18418_v54  ;;  %v18421_v0 = vld [vmem:[#allocation156_spill] sm:$0xff]  ;;  %v18423_v54 = vld [vmem:[#allocation121_spill] sm:$0xff] }
 0x4ed   :  { %v5331_v3 = vmax.f32 %v5299_v31, 0.0  ;;  %v10215_v56 = vpop.f32.mrf.mxu0  ;;  %v5031_v24 = vadd.f32 %v10178_v38, %v18419_v55  ;;  %v5421_v26 = vpack.c.bf16 %v16224_v53, %v16224_v53  ;;  %v5023_v6 = vadd.f32 %v5022_v20, %v18421_v0 }
 0x4ee   :  { %v5336_v51 = vmax.f32 %v5304_v16, 0.0  ;;  %v5302_v37 = vadd.f32 %v16052_v15, %v5263_v34  ;;  %v5266_v36 = vadd.f32 %v10215_v56, %v5018_v18  ;;  %v16396_v9 = vpack.c.bf16 %v16388_v59, %v16353_v44  ;;  %v18422_v16 = vld [vmem:[#allocation34_spill] sm:$0xff]  ;;  %v5025_v56 = vpop.f32.mrf.mxu1 }
 0x4ef   :  { %v16398_v33 = vadd.f32 %v5331_v3, %v4511_v28  ;;  %v5211_v48 = vpop.f32.mrf.mxu0  ;;  %v5422_v18 = vpack.c.bf16 %v16255_v45, %v16255_v45  ;;  %v4515_v20 = vadd.f32 %v15810_v58, %v4476_v40  ;;  %v4270_v3 = vadd.f32 %v18423_v54, %v16277_v41  ;;  %v18425_v40 = vld [vmem:[#allocation124_spill] sm:$0xff] }
 0x4f0   :  { %v16401_v52 = vadd.f32 %v5336_v51, %v18420_v19  ;;  %v5334_v38 = vmax.f32 %v5302_v37, 0.0  ;;  %v5305_v46 = vadd.f32 %v16052_v15, %v5266_v36  ;;  %v5264_v31 = vadd.f32 %v5211_v48, %v5010_v49 }
 0x4f1   :  { %v16407_v53 = vpack.c.bf16 %v16398_v33, %v16366_v39  ;;  %v10218_v42 = vpop.f32.mrf.mxu0  ;;  %v16413_v28 = vpack.c.bf16 %v16353_v44, %v16398_v33  ;;  %v5355_v55 = vadd.f32 %v5323_v12, %v16287_v17  ;;  %v4480_v19 = vadd.f32 %v18425_v40, %v4270_v3  ;;  %v18427_v12 = vld [vmem:[#allocation140_spill] sm:$0xff]  ;;  %v18428_v3 = vld [vmem:[#allocation18_spill] sm:$0xff] }
 0x4f2   :  { %v16416_v34 = vadd.f32 %v5334_v38, %v18422_v16  ;;  %v5337_v32 = vmax.f32 %v5305_v46, 0.0  ;;  %v5303_v43 = vadd.f32 %v16052_v15, %v5264_v31  ;;  %v5269_v49 = vadd.f32 %v10218_v42, %v5031_v24  ;;  %10245 = vmatmul.mubr.msk.bf16.gmra.mxu1 %vm1838_vm3, %v5421_v26  ;;  %10313 = vmatmul.mubr.msk.bf16.gmra.mxu0 %vm1838_vm3, %v16238_v8  ;;  %v18424_v24 = vld [vmem:[#allocation36_spill] sm:$0xff]  ;;  %v18426_v38 = vld [vmem:[#allocation157_spill] sm:$0xff] }
 0x4f3   :  { %v5224_v51 = vpop.f32.mrf.mxu0  ;;  %10248 = vmatprep.mubr.msk.bf16.mxu1 %vm1838_vm3, %v5422_v18  ;;  %10316 = vmatprep.mubr.msk.bf16.mxu0 %vm1838_vm3, %v16284_v35  ;;  %v5034_v41 = vadd.f32 %v10179_v30, %v18426_v38  ;;  %v5026_v31 = vadd.f32 %v5025_v56, %v18427_v12 }
 0x4f4   :  { %v16430_v37 = vadd.f32 %v5337_v32, %v18424_v24  ;;  %v5335_v36 = vmax.f32 %v5303_v43, 0.0  ;;  %v5308_v26 = vadd.f32 %v16052_v15, %v5269_v49  ;;  %v5267_v48 = vadd.f32 %v5224_v51, %v5023_v6 }
 0x4f5   :  { %v10219_v46 = vpop.f32.mrf.mxu0  ;;  %v16437_v17 = vpack.c.bf16 %v16416_v34, %v16388_v59  ;;  %v16447_v6 = vpack.c.bf16 %v5355_v55, %v16255_v45  ;;  %v5424_v43 = vpack.c.bf16 %v16242_v47, %v16242_v47  ;;  %v5423_v49 = vpack.c.bf16 %v5355_v55, %v5355_v55 }
 0x4f6   :  { %v16442_v0 = vpack.c.bf16 %v16430_v37, %v16401_v52  ;;  %v16444_v42 = vadd.f32 %v5335_v36, %v4515_v20  ;;  %v5340_v18 = vmax.f32 %v5308_v26, 0.0  ;;  %v5306_v16 = vadd.f32 %v16052_v15, %v5267_v48  ;;  %v18429_v48 = vld [vmem:[#allocation21_spill] sm:$0xff] }
 0x4f7   :  { %v5270_v30 = vadd.f32 %v10219_v46, %v5034_v41  ;;  %v5227_v32 = vpop.f32.mrf.mxu0  ;;  %v16461_v24 = vpack.c.bf16 %v16242_v47, %v5355_v55  ;;  %v4519_v47 = vadd.f32 %v15810_v58, %v4480_v19  ;;  %v18430_v41 = vld [vmem:[#allocation49_spill] sm:$0xff]  ;;  %v5426_v58 = vpack.c.bf16 %v16318_v62, %v16318_v62 }
 0x4f8   :  { %v16454_v54 = vpack.c.bf16 %v16444_v42, %v16416_v34  ;;  %v16457_v56 = vadd.f32 %v5340_v18, %v18428_v3  ;;  %v5268_v20 = vadd.f32 %v5227_v32, %v5026_v31  ;;  %v5338_v51 = vmax.f32 %v5306_v16, 0.0 }
 0x4f9   :  { %v5309_v45 = vadd.f32 %v16052_v15, %v5270_v30  ;;  %v16465_v36 = vpack.c.bf16 %v16401_v52, %v16444_v42  ;;  %v5425_v18 = vpack.c.bf16 %v16272_v11, %v16272_v11  ;;  %v5390_v19 = vpack.c.bf16 %v16318_v62, %v18285_v50 }
 0x4fa   :  { %v5307_v26 = vadd.f32 %v16052_v15, %v5268_v20  ;;  %10249 = vmatmul.mubr.msk.bf16.gmra.mxu1 %vm1838_vm3, %v5423_v49  ;;  %10317 = vmatmul.mubr.msk.bf16.gmra.mxu0 %vm1838_vm3, %v16447_v6  ;;  %v5370_v40 = vadd.f32 %v5338_v51, %v18429_v48  ;;  %v5427_v32 = vpack.c.bf16 %v16335_v10, %v16335_v10 }
 0x4fb   :  { %v5341_v38 = vmax.f32 %v5309_v45, 0.0  ;;  %10252 = vmatprep.mubr.msk.bf16.mxu1 %vm1838_vm3, %v5424_v43  ;;  %10320 = vmatprep.mubr.msk.bf16.mxu0 %vm1838_vm3, %v16461_v24  ;;  %v5428_v43 = vpack.c.bf16 %v16306_v60, %v16306_v60  ;;  %v5429_v62 = vpack.c.bf16 %v16333_v2, %v16333_v2  ;;  %v5430_v49 = vpack.c.bf16 %v16366_v39, %v16366_v39  ;;  %v10536_v2 = vld [vmem:[%s17461_s14] sm:$0xff]  }
 0x4fc   :  { %v5339_v55 = vmax.f32 %v5307_v26, 0.0  ;;  %v16480_v15 = vpack.c.bf16 %v5370_v40, %v16430_v37  ;;  %v5431_v60 = vpack.c.bf16 %v16398_v33, %v16398_v33  ;;  %v5432_v10 = vpack.c.bf16 %v16353_v44, %v16353_v44  ;;  %10424 = vmatprep.subr.bf16.mxu0 %v10536_v2 }
 0x4fd   :  { %v16477_v46 = vadd.f32 %v5341_v38, %v18430_v41  ;;  %10425 = vmatpush3.bf16.msra.mxu0 %v10536_v2  ;;  %v5433_v39 = vpack.c.bf16 %v16388_v59, %v16388_v59  ;;  %v5434_v44 = vpack.c.bf16 %v16416_v34, %v16416_v34  ;;  %v5435_v33 = vpack.c.bf16 %v16444_v42, %v16444_v42 }
 0x4fe   :  { %v5371_v12 = vadd.f32 %v5339_v55, %v4519_v47  ;;  %v5436_v3 = vpack.c.bf16 %v16401_v52, %v16401_v52  ;;  %v5437_v59 = vpack.c.bf16 %v16430_v37, %v16430_v37  ;;  %v5438_v34 = vpack.c.bf16 %v5370_v40, %v5370_v40 }
 0x4ff   :  { %v16484_v31 = vpack.c.bf16 %v16477_v46, %v16457_v56  ;;  %v5440_v42 = vpack.c.bf16 %v16457_v56, %v16457_v56  ;;  %v5441_v37 = vpack.c.bf16 %v16477_v46, %v16477_v46 }
 0x500   :  { %v16488_v16 = vpack.c.bf16 %v5371_v12, %v5370_v40  ;;  %v16491_v30 = vpack.c.bf16 %v16457_v56, %v5371_v12  ;;  %v5439_v52 = vpack.c.bf16 %v5371_v12, %v5371_v12 }
 0x502   :  { %10253 = vmatmul.mubr.msk.bf16.gmra.mxu1 %vm1838_vm3, %v5425_v18  ;;  %10321 = vmatmul.mubr.msk.bf16.gmra.mxu0 %vm1838_vm3, %v16295_v4 }
 0x503   :  { %10256 = vmatprep.mubr.msk.bf16.mxu1 %vm1838_vm3, %v5426_v58  ;;  %10324 = vmatprep.mubr.msk.bf16.mxu0 %vm1838_vm3, %v5390_v19  ;;  %v6242_v58 = vpack.c.bf16 %v18285_v50, %v16477_v46 }
 0x50a   :  { %10257 = vmatmul.mubr.msk.bf16.gmra.mxu1 %vm1838_vm3, %v5427_v32  ;;  %10325 = vmatmul.mubr.msk.bf16.gmra.mxu0 %vm1838_vm3, %v16350_v27 }
 0x50b   :  { %10260 = vmatprep.mubr.msk.bf16.mxu1 %vm1838_vm3, %v5428_v43  ;;  %10328 = vmatprep.mubr.msk.bf16.mxu0 %vm1838_vm3, %v16361_v21 }
 0x512   :  { %10261 = vmatmul.mubr.msk.bf16.gmra.mxu1 %vm1838_vm3, %v5429_v62  ;;  %10329 = vmatmul.mubr.msk.bf16.gmra.mxu0 %vm1838_vm3, %v16344_v61 }
 0x513   :  { %10264 = vmatprep.mubr.msk.bf16.mxu1 %vm1838_vm3, %v5430_v49  ;;  %10332 = vmatprep.mubr.msk.bf16.mxu0 %vm1838_vm3, %v16382_v29 }
 0x51a   :  { %10265 = vmatmul.mubr.msk.bf16.gmra.mxu1 %vm1838_vm3, %v5431_v60  ;;  %10333 = vmatmul.mubr.msk.bf16.gmra.mxu0 %vm1838_vm3, %v16407_v53 }
 0x51b   :  { %10268 = vmatprep.mubr.msk.bf16.mxu1 %vm1838_vm3, %v5432_v10  ;;  %10336 = vmatprep.mubr.msk.bf16.mxu0 %vm1838_vm3, %v16413_v28 }
 0x522   :  { %10269 = vmatmul.mubr.msk.bf16.gmra.mxu1 %vm1838_vm3, %v5433_v39  ;;  %10337 = vmatmul.mubr.msk.bf16.gmra.mxu0 %vm1838_vm3, %v16396_v9 }
 0x523   :  { %10272 = vmatprep.mubr.msk.bf16.mxu1 %vm1838_vm3, %v5434_v44  ;;  %10340 = vmatprep.mubr.msk.bf16.mxu0 %vm1838_vm3, %v16437_v17 }
 0x52a   :  { %10273 = vmatmul.mubr.msk.bf16.gmra.mxu1 %vm1838_vm3, %v5435_v33  ;;  %10341 = vmatmul.mubr.msk.bf16.gmra.mxu0 %vm1838_vm3, %v16454_v54 }
 0x52b   :  { %10276 = vmatprep.mubr.msk.bf16.mxu1 %vm1838_vm3, %v5436_v3  ;;  %10344 = vmatprep.mubr.msk.bf16.mxu0 %vm1838_vm3, %v16465_v36 }
 0x532   :  { %10277 = vmatmul.mubr.msk.bf16.gmra.mxu1 %vm1838_vm3, %v5437_v59  ;;  %10345 = vmatmul.mubr.msk.bf16.gmra.mxu0 %vm1838_vm3, %v16442_v0 }
 0x533   :  { %10280 = vmatprep.mubr.msk.bf16.mxu1 %vm1838_vm3, %v5438_v34  ;;  %10348 = vmatprep.mubr.msk.bf16.mxu0 %vm1838_vm3, %v16480_v15 }
 0x53a   :  { %10281 = vmatmul.mubr.msk.bf16.gmra.mxu1 %vm1838_vm3, %v5439_v52  ;;  %10349 = vmatmul.mubr.msk.bf16.gmra.mxu0 %vm1838_vm3, %v16488_v16 }
 0x53b   :  { %10284 = vmatprep.mubr.msk.bf16.mxu1 %vm1838_vm3, %v5440_v42  ;;  %10352 = vmatprep.mubr.msk.bf16.mxu0 %vm1838_vm3, %v16491_v30 }
 0x542   :  { %10285 = vmatmul.mubr.msk.bf16.gmra.mxu1 %vm1838_vm3, %v5441_v37  ;;  %10353 = vmatmul.mubr.msk.bf16.gmra.mxu0 %vm1838_vm3, %v16484_v31 }
 0x543   :  { %10360 = vmatprep.mubr.msk.bf16.mxu1 %vm1838_vm3, %v16130_v14 }
 0x54a   :  { %10361 = vmatmul.mubr.msk.bf16.vlgmr.msra.gmra.mxu1 %vm1838_vm3, %v16138_v57 }
 0x54b   :  { %10364 = vmatprep.mubr.msk.bf16.mxu1 %vm1838_vm3, %v16121_v63  ;;  %v6241_v63 = vpack.c.bf16 %v18285_v50, %v16272_v11 }
 0x552   :  { %10365 = vmatmul.mubr.msk.bf16.gmra.mxu1 %vm1838_vm3, %v16169_v25 }
 0x553   :  { %10368 = vmatprep.mubr.msk.bf16.mxu1 %vm1838_vm3, %v16234_v5 }
 0x55a   :  { %10369 = vmatmul.mubr.msk.bf16.gmra.mxu1 %vm1838_vm3, %v16251_v13 }
 0x55b   :  { %10372 = vmatprep.mubr.msk.bf16.mxu1 %vm1838_vm3, %v16182_v7 }
 0x562   :  { %10373 = vmatmul.mubr.msk.bf16.gmra.mxu1 %vm1838_vm3, %v16217_v23 }
 0x563   :  { %10376 = vmatprep.mubr.msk.bf16.mxu1 %vm1838_vm3, %v16339_v22 }
 0x56a   :  { %10377 = vmatmul.mubr.msk.bf16.gmra.mxu1 %vm1838_vm3, %v16357_v1 }
 0x56b   :  { %10380 = vmatprep.mubr.msk.bf16.mxu1 %vm1838_vm3, %v16238_v8 }
 0x572   :  { %10381 = vmatmul.mubr.msk.bf16.gmra.mxu1 %vm1838_vm3, %v16284_v35 }
 0x573   :  { %10384 = vmatprep.mubr.msk.bf16.mxu1 %vm1838_vm3, %v16447_v6 }
 0x57a   :  { %10385 = vmatmul.mubr.msk.bf16.gmra.mxu1 %vm1838_vm3, %v16461_v24 }
 0x57b   :  { %10388 = vmatprep.mubr.msk.bf16.mxu1 %vm1838_vm3, %v16295_v4 }
 0x582   :  { %10389 = vmatmul.mubr.msk.bf16.gmra.mxu1 %vm1838_vm3, %v6241_v63 }
 0x583   :  { %10392 = vmatprep.mubr.msk.bf16.mxu1 %vm1838_vm3, %v16350_v27 }
 0x58a   :  { %v16611_v14 = vpop.f32.mrf.mxu1  ;;  %v16613_v57 = vpop.f32.mrf.mxu0  ;;  %10393 = vmatmul.mubr.msk.bf16.gmra.mxu1 %vm1838_vm3, %v16361_v21 }
 0x58b   :  { %10396 = vmatprep.mubr.msk.bf16.mxu1 %vm1838_vm3, %v16344_v61 }
 0x58c   :  { %v16619_v25 = vpop.f32.mrf.mxu1  ;;  %v16621_v7 = vpop.f32.mrf.mxu0 }
 0x58e   :  { %v16623_v23 = vpop.f32.mrf.mxu1  ;;  %v16625_v5 = vpop.f32.mrf.mxu0 }
 0x590   :  { %v16627_v8 = vpop.f32.mrf.mxu1  ;;  %v16635_v11 = vpop.f32.mrf.mxu0 }
 0x592   :  { %v16629_v13 = vpop.f32.mrf.mxu1  ;;  %10397 = vmatmul.mubr.msk.bf16.gmra.mxu1 %vm1838_vm3, %v16382_v29  ;;  %v16641_v22 = vpop.f32.mrf.mxu0 }
 0x593   :  { %10400 = vmatprep.mubr.msk.bf16.mxu1 %vm1838_vm3, %v16407_v53 }
 0x594   :  { %v16637_v35 = vpop.f32.mrf.mxu1  ;;  %v16651_v1 = vpop.f32.mrf.mxu0 }
 0x596   :  { %v16639_v4 = vpop.f32.mrf.mxu1  ;;  %v16657_v53 = vpop.f32.mrf.mxu0 }
 0x598   :  { %v16643_v61 = vpop.f32.mrf.mxu1 }
 0x59a   :  { %v16645_v27 = vpop.f32.mrf.mxu1  ;;  %10401 = vmatmul.mubr.msk.bf16.gmra.mxu1 %vm1838_vm3, %v16413_v28  ;;  %v16667_v28 = vpop.f32.mrf.mxu0 }
 0x59b   :  { %10404 = vmatprep.mubr.msk.bf16.mxu1 %vm1838_vm3, %v16396_v9 }
 0x59c   :  { %v16653_v21 = vpop.f32.mrf.mxu1  ;;  %v16673_v51 = vpop.f32.mrf.mxu0 }
 0x59e   :  { %v16655_v29 = vpop.f32.mrf.mxu1 }
 0x5a0   :  { %v16659_v6 = vpop.f32.mrf.mxu1 }
 0x5a2   :  { %v16661_v56 = vpop.f32.mrf.mxu1  ;;  %10405 = vmatmul.mubr.msk.bf16.gmra.mxu1 %vm1838_vm3, %v16437_v17  ;;  %v16683_v17 = vpop.f32.mrf.mxu0 }
 0x5a3   :  { %10408 = vmatprep.mubr.msk.bf16.mxu1 %vm1838_vm3, %v16454_v54 }
 0x5a4   :  { %v16669_v9 = vpop.f32.mrf.mxu1  ;;  %v16689_v48 = vpop.f32.mrf.mxu0 }
 0x5a6   :  { %v16671_v20 = vpop.f32.mrf.mxu1 }
 0x5a8   :  { %v16675_v45 = vpop.f32.mrf.mxu1 }
 0x5aa   :  { %v16677_v24 = vpop.f32.mrf.mxu1  ;;  %10409 = vmatmul.mubr.msk.bf16.gmra.mxu1 %vm1838_vm3, %v16465_v36  ;;  %v16699_v36 = vpop.f32.mrf.mxu0 }
 0x5ab   :  { %10412 = vmatprep.mubr.msk.bf16.mxu1 %vm1838_vm3, %v16442_v0 }
 0x5ac   :  { %v16685_v54 = vpop.f32.mrf.mxu1  ;;  %v16705_v55 = vpop.f32.mrf.mxu0 }
 0x5ae   :  { %v16687_v26 = vpop.f32.mrf.mxu1 }
 0x5b0   :  { %v16691_v40 = vpop.f32.mrf.mxu1 }
 0x5b2   :  { %v16693_v38 = vpop.f32.mrf.mxu1  ;;  %10413 = vmatmul.mubr.msk.bf16.gmra.mxu1 %vm1838_vm3, %v16480_v15  ;;  %v16715_v15 = vpop.f32.mrf.mxu0 }
 0x5b3   :  { %10416 = vmatprep.mubr.msk.bf16.mxu1 %vm1838_vm3, %v16488_v16 }
 0x5b4   :  { %v16701_v0 = vpop.f32.mrf.mxu1  ;;  %v16723_v19 = vpop.f32.mrf.mxu0 }
 0x5b6   :  { %v16703_v47 = vpop.f32.mrf.mxu1 }
 0x5b8   :  { %v16707_v41 = vpop.f32.mrf.mxu1 }
 0x5ba   :  { %v16709_v12 = vpop.f32.mrf.mxu1  ;;  %10417 = vmatmul.mubr.msk.bf16.gmra.mxu1 %vm1838_vm3, %v16491_v30  ;;  %v16730_v30 = vpop.f32.mrf.mxu0 }
 0x5bb   :  { %10420 = vmatprep.mubr.msk.bf16.mxu1 %vm1838_vm3, %v16484_v31 }
 0x5bc   :  { %v16717_v18 = vpop.f32.mrf.mxu1  ;;  %v16736_v49 = vpop.f32.mrf.mxu0 }
 0x5be   :  { %v16719_v16 = vpop.f32.mrf.mxu1  ;;  %v16742_v50 = vpop.f32.mrf.mxu0 }
 0x5bf   :  { %18431 = vst [vmem:[#allocation135_spill] sm:$0xff] %v16719_v16 }
 0x5c0   :  { %v16725_v32 = vpop.f32.mrf.mxu1  ;;  %v16748_v39 = vpop.f32.mrf.mxu0 }
 0x5c1   :  { %18432 = vst [vmem:[#allocation123_spill] sm:$0xff] %v16725_v32 }
 0x5c2   :  { %v16727_v43 = vpop.f32.mrf.mxu1  ;;  %10421 = vmatmul.mubr.msk.bf16.gmra.mxu1 %vm1838_vm3, %v6242_v58  ;;  %v16754_v3 = vpop.f32.mrf.mxu0 }
 0x5c3   :  { %18433 = vst [vmem:[#allocation62_spill] sm:$0xff] %v16727_v43 }
 0x5c4   :  { %v16732_v31 = vpop.f32.mrf.mxu1  ;;  %v16760_v52 = vpop.f32.mrf.mxu0 }
 0x5c5   :  { %18434 = vst [vmem:[#allocation125_spill] sm:$0xff] %v16732_v31 }
 0x5c6   :  { %v16734_v62 = vpop.f32.mrf.mxu1  ;;  %v16766_v63 = vpop.f32.mrf.mxu0 }
 0x5c7   :  { %18435 = vst [vmem:[#allocation122_spill] sm:$0xff] %v16734_v62 }
 0x5c8   :  { %v16738_v60 = vpop.f32.mrf.mxu1 }
 0x5c9   :  { %18436 = vst [vmem:[#allocation133_spill] sm:$0xff] %v16738_v60 }
 0x5ca   :  { %v16740_v10 = vpop.f32.mrf.mxu1 }
 0x5cb   :  { %18437 = vst [vmem:[#allocation84_spill] sm:$0xff] %v16740_v10 }
 0x5cc   :  { %v16744_v46 = vpop.f32.mrf.mxu1 }
 0x5cd   :  { %18438 = vst [vmem:[#allocation13_spill] sm:$0xff] %v16744_v46 }
 0x5ce   :  { %v16746_v2 = vpop.f32.mrf.mxu1 }
 0x5cf   :  { %18439 = vst [vmem:[#allocation130_spill] sm:$0xff] %v16746_v2 }
 0x5d0   :  { %v16750_v44 = vpop.f32.mrf.mxu1 }
 0x5d1   :  { %18440 = vst [vmem:[#allocation81_spill] sm:$0xff] %v16750_v44  ;;  %v16772_v44 = vpop.f32.mrf.mxu0 }
 0x5d2   :  { %v16752_v33 = vpop.f32.mrf.mxu1 }
 0x5d3   :  { %18441 = vst [vmem:[#allocation134_spill] sm:$0xff] %v16752_v33 }
 0x5d4   :  { %v16756_v59 = vpop.f32.mrf.mxu1 }
 0x5d5   :  { %18442 = vst [vmem:[#allocation120_spill] sm:$0xff] %v16756_v59  ;;  %v16778_v59 = vpop.f32.mrf.mxu0 }
 0x5d6   :  { %v16758_v34 = vpop.f32.mrf.mxu1 }
 0x5d7   :  { %18443 = vst [vmem:[#allocation138_spill] sm:$0xff] %v16758_v34 }
 0x5d8   :  { %v16762_v42 = vpop.f32.mrf.mxu1 }
 0x5d9   :  { %18444 = vst [vmem:[#allocation145_spill] sm:$0xff] %v16762_v42  ;;  %v16784_v42 = vpop.f32.mrf.mxu0 }
 0x5da   :  { %v16764_v37 = vpop.f32.mrf.mxu1 }
 0x5db   :  { %18445 = vst [vmem:[#allocation46_spill] sm:$0xff] %v16764_v37 }
 0x5dc   :  { %v16768_v58 = vpop.f32.mrf.mxu1 }
 0x5dd   :  { %18446 = vst [vmem:[#allocation80_spill] sm:$0xff] %v16768_v58  ;;  %v16790_v58 = vpop.f32.mrf.mxu0 }
 0x5de   :  { %v16770_v2 = vpop.f32.mrf.mxu1 }
 0x5df   :  { %18447 = vst [vmem:[#allocation43_spill] sm:$0xff] %v16770_v2 }
 0x5e0   :  { %v16774_v33 = vpop.f32.mrf.mxu1 }
 0x5e1   :  { %18448 = vst [vmem:[#allocation83_spill] sm:$0xff] %v16774_v33  ;;  %v16796_v33 = vpop.f32.mrf.mxu0 }
 0x5e2   :  { %v16776_v46 = vpop.f32.mrf.mxu1  ;;  %18456 = vst [vmem:[#allocation88_spill] sm:$0xff] %v16796_v33 }
 0x5e3   :  { %18449 = vst [vmem:[#allocation146_spill] sm:$0xff] %v16776_v46 }
 0x5e4   :  { %v16780_v34 = vpop.f32.mrf.mxu1 }
 0x5e5   :  { %18450 = vst [vmem:[#allocation29_spill] sm:$0xff] %v16780_v34  ;;  %v16802_v34 = vpop.f32.mrf.mxu0 }
 0x5e6   :  { %v16782_v10 = vpop.f32.mrf.mxu1  ;;  %18459 = vst [vmem:[#allocation85_spill] sm:$0xff] %v16802_v34 }
 0x5e7   :  { %18451 = vst [vmem:[#allocation131_spill] sm:$0xff] %v16782_v10 }
 0x5e8   :  { %v16786_v37 = vpop.f32.mrf.mxu1 }
 0x5e9   :  { %18452 = vst [vmem:[#allocation155_spill] sm:$0xff] %v16786_v37  ;;  %v16808_v37 = vpop.f32.mrf.mxu0 }
 0x5ea   :  { %v16788_v60 = vpop.f32.mrf.mxu1  ;;  %18462 = vst [vmem:[#allocation78_spill] sm:$0xff] %v16808_v37 }
 0x5eb   :  { %18453 = vst [vmem:[#allocation96_spill] sm:$0xff] %v16788_v60 }
 0x5ec   :  { %v16792_v2 = vpop.f32.mrf.mxu1 }
 0x5ed   :  { %18454 = vst [vmem:[#allocation150_spill] sm:$0xff] %v16792_v2  ;;  %v16814_v2 = vpop.f32.mrf.mxu0 }
 0x5ee   :  { %v16794_v62 = vpop.f32.mrf.mxu1  ;;  %18465 = vst [vmem:[#allocation129_spill] sm:$0xff] %v16814_v2 }
 0x5ef   :  { %18455 = vst [vmem:[#allocation151_spill] sm:$0xff] %v16794_v62 }
 0x5f0   :  { %v16798_v46 = vpop.f32.mrf.mxu1 }
 0x5f1   :  { %18457 = vst [vmem:[#allocation95_spill] sm:$0xff] %v16798_v46  ;;  %v16820_v46 = vpop.f32.mrf.mxu0 }
 0x5f2   :  { %v16800_v31 = vpop.f32.mrf.mxu1  ;;  %18468 = vst [vmem:[#allocation22_spill] sm:$0xff] %v16820_v46  ;;  %v5987_v46 = vadd.f32 %v16621_v7, %v16619_v25 }
 0x5f3   :  { %18458 = vst [vmem:[#allocation74_spill] sm:$0xff] %v16800_v31 }
 0x5f4   :  { %v16804_v10 = vpop.f32.mrf.mxu1 }
 0x5f5   :  { %18460 = vst [vmem:[#allocation6_spill] sm:$0xff] %v16804_v10  ;;  %v16826_v10 = vpop.f32.mrf.mxu0 }
 0x5f6   :  { %v16806_v43 = vpop.f32.mrf.mxu1  ;;  %18471 = vst [vmem:[#allocation9_spill] sm:$0xff] %v16826_v10 }
 0x5f7   :  { %18461 = vst [vmem:[#allocation139_spill] sm:$0xff] %v16806_v43 }
 0x5f8   :  { %v16810_v60 = vpop.f32.mrf.mxu1 }
 0x5f9   :  { %18463 = vst [vmem:[#allocation7_spill] sm:$0xff] %v16810_v60  ;;  %v16832_v60 = vpop.f32.mrf.mxu0 }
 0x5fa   :  { %v16812_v32 = vpop.f32.mrf.mxu1  ;;  %18474 = vst [vmem:[#allocation14_spill] sm:$0xff] %v16832_v60 }
 0x5fb   :  { %18464 = vst [vmem:[#allocation8_spill] sm:$0xff] %v16812_v32  ;;  %v16840_v2 = vpop.f32.mrf.mxu0 }
 0x5fc   :  { %v16816_v62 = vpop.f32.mrf.mxu1  ;;  %18476 = vst [vmem:[#allocation143_spill] sm:$0xff] %v16840_v2 }
 0x5fd   :  { %18466 = vst [vmem:[#allocation153_spill] sm:$0xff] %v16816_v62  ;;  %v5995_v62 = vadd.f32 %v16613_v57, %v16611_v14  ;;  %v5990_v14 = vadd.f32 %v16635_v11, %v16627_v8  ;;  %v16852_v7 = vpop.f32.mrf.mxu0 }
 0x5fe   :  { %v16818_v33 = vpop.f32.mrf.mxu1 }
 0x5ff   :  { %18467 = vst [vmem:[#allocation154_spill] sm:$0xff] %v16818_v33 }
 0x600   :  { %v16822_v31 = vpop.f32.mrf.mxu1 }
 0x601   :  { %18469 = vst [vmem:[#allocation86_spill] sm:$0xff] %v16822_v31 }
 0x602   :  { %v16824_v34 = vpop.f32.mrf.mxu1 }
 0x603   :  { %18470 = vst [vmem:[#allocation144_spill] sm:$0xff] %v16824_v34  ;;  %v5998_v34 = vadd.f32 %v16625_v5, %v16623_v23  ;;  %v6003_v23 = vadd.f32 %v16651_v1, %v16637_v35  ;;  %v6006_v35 = vadd.f32 %v16667_v28, %v16643_v61  ;;  %v6019_v61 = vadd.f32 %v16683_v17, %v16653_v21 }
 0x604   :  { %v16828_v43 = vpop.f32.mrf.mxu1  ;;  %v6022_v21 = vadd.f32 %v16699_v36, %v16659_v6  ;;  %v6035_v6 = vadd.f32 %v16715_v15, %v16669_v9  ;;  %v6038_v9 = vadd.f32 %v16730_v30, %v16675_v45  ;;  %v6051_v45 = vadd.f32 %v16742_v50, %v16685_v54 }
 0x605   :  { %18472 = vst [vmem:[#allocation142_spill] sm:$0xff] %v16828_v43  ;;  %v16845_v43 = vld [vmem:[%s17460_s13] ss:$0 sm:$0xff]  ;;  %v6054_v54 = vadd.f32 %v16754_v3, %v16691_v40  ;;  %v6067_v40 = vadd.f32 %v16766_v63, %v16701_v0  ;;  %v6070_v0 = vadd.f32 %v16778_v59, %v16707_v41  ;;  %v6083_v41 = vadd.f32 %v16790_v58, %v16717_v18  ;;  %v18479_v18 = vld [vmem:[#allocation123_spill] sm:$0xff]  ;;  %v18480_v58 = vld [vmem:[#allocation85_spill] sm:$0xff] }
 0x606   :  { %v16830_v37 = vpop.f32.mrf.mxu1 }
 0x607   :  { %18473 = vst [vmem:[#allocation152_spill] sm:$0xff] %v16830_v37 }
 0x608   :  { %v16834_v32 = vpop.f32.mrf.mxu1 }
 0x609   :  { %18475 = vst [vmem:[#allocation30_spill] sm:$0xff] %v16834_v32 }
 0x60a   :  { %v10362_v33 = vpop.f32.mrf.mxu1 }
 0x60b   :  { %v6557_v31 = vadd.f32 %v10362_v33, %v5995_v62  ;;  %v6011_v33 = vadd.f32 %v16641_v22, %v16629_v13 }
 0x60c   :  { %v6300_v37 = vpop.f32.mrf.mxu1 }
 0x60d   :  { %v6555_v32 = vadd.f32 %v6300_v37, %v5987_v46  ;;  %v6628_v57 = vadd.f32 %v16845_v43, %v6557_v31 }
 0x60e   :  { %v10363_v60 = vpop.f32.mrf.mxu1 }
 0x60f   :  { %v6558_v25 = vadd.f32 %v10363_v60, %v5998_v34  ;;  %v6626_v2 = vadd.f32 %v16845_v43, %v6555_v32  ;;  %v6692_v46 = vmax.f32 %v6628_v57, 0.0  ;;  %v6014_v60 = vadd.f32 %v16657_v53, %v16639_v4  ;;  %v16863_v34 = vpop.f32.mrf.mxu0 }
 0x610   :  { %v6303_v62 = vpop.f32.mrf.mxu1  ;;  %v6027_v4 = vadd.f32 %v16673_v51, %v16645_v27  ;;  %v6030_v27 = vadd.f32 %v16689_v48, %v16655_v29  ;;  %v6043_v29 = vadd.f32 %v16705_v55, %v16661_v56  ;;  %v6046_v56 = vadd.f32 %v16723_v19, %v16671_v20 }
 0x611   :  { %v6629_v10 = vadd.f32 %v16845_v43, %v6558_v25  ;;  %v6556_v16 = vadd.f32 %v6303_v62, %v5990_v14  ;;  %v6690_v22 = vmax.f32 %v6626_v2, 0.0  ;;  %v16868_v57 = vpop.f32.mrf.mxu0  ;;  %v6059_v20 = vadd.f32 %v16736_v49, %v16677_v24 }
 0x612   :  { %v10366_v5 = vpop.f32.mrf.mxu1  ;;  %v6062_v24 = vadd.f32 %v16748_v39, %v16687_v26  ;;  %v6075_v26 = vadd.f32 %v16760_v52, %v16693_v38  ;;  %v6078_v38 = vadd.f32 %v16772_v44, %v16703_v47  ;;  %v6091_v47 = vadd.f32 %v16784_v42, %v16709_v12  ;;  %v18478_v12 = vld [vmem:[#allocation88_spill] sm:$0xff] }
 0x613   :  { %v6693_v8 = vmax.f32 %v6629_v10, 0.0  ;;  %v6627_v11 = vadd.f32 %v16845_v43, %v6556_v16  ;;  %v6561_v31 = vadd.f32 %v10366_v5, %v6011_v33  ;;  %v16881_v51 = vpop.f32.mrf.mxu0 }
 0x614   :  { %v6316_v13 = vpop.f32.mrf.mxu1 }
 0x615   :  { %v6755_v32 = vpack.c.bf16 %v6693_v8, %v6692_v46  ;;  %v6691_v37 = vmax.f32 %v6627_v11, 0.0  ;;  %v6559_v25 = vadd.f32 %v6316_v13, %v6003_v23  ;;  %v6632_v10 = vadd.f32 %v16845_v43, %v6561_v31 }
 0x616   :  { %v10367_v14 = vpop.f32.mrf.mxu1 }
 0x617   :  { %v6754_v1 = vpack.c.bf16 %v6691_v37, %v6690_v22  ;;  %v6562_v16 = vadd.f32 %v10367_v14, %v6014_v60  ;;  %v6630_v53 = vadd.f32 %v16845_v43, %v6559_v25  ;;  %v6696_v23 = vmax.f32 %v6632_v10, 0.0  ;;  %v16886_v14 = vpop.f32.mrf.mxu0 }
 0x618   :  { %v6319_v62 = vpop.f32.mrf.mxu1 }
 0x619   :  { %v6633_v2 = vadd.f32 %v16845_v43, %v6562_v16  ;;  %v6560_v33 = vadd.f32 %v6319_v62, %v6006_v35  ;;  %10426 = vmatprep.mubr.msk.bf16.mxu0 %vm6801_vm5, %v6754_v1  ;;  %v6694_v31 = vmax.f32 %v6630_v53, 0.0  ;;  %v16899_v55 = vpop.f32.mrf.mxu0 }
 0x61a   :  { %v10370_v28 = vpop.f32.mrf.mxu1  ;;  %10427 = vmatmul.mubr.msk.bf16.vlgmr.msra.gmra.mxu0 %vm6801_vm5, %v6755_v32 }
 0x61b   :  { %v6697_v5 = vmax.f32 %v6633_v2, 0.0  ;;  %v6631_v46 = vadd.f32 %v16845_v43, %v6560_v33  ;;  %v6565_v8 = vadd.f32 %v10370_v28, %v6027_v4 }
 0x61c   :  { %v6332_v11 = vpop.f32.mrf.mxu1 }
 0x61d   :  { %v6757_v60 = vpack.c.bf16 %v6697_v5, %v6696_v23  ;;  %v6695_v13 = vmax.f32 %v6631_v46, 0.0  ;;  %v6563_v22 = vadd.f32 %v6332_v11, %v6019_v61  ;;  %v6636_v32 = vadd.f32 %v16845_v43, %v6565_v8 }
 0x61e   :  { %v10371_v37 = vpop.f32.mrf.mxu1 }
 0x61f   :  { %v6756_v17 = vpack.c.bf16 %v6695_v13, %v6694_v31  ;;  %v6566_v25 = vadd.f32 %v10371_v37, %v6030_v27  ;;  %v6634_v48 = vadd.f32 %v16845_v43, %v6563_v22  ;;  %v6700_v16 = vmax.f32 %v6636_v32, 0.0  ;;  %v16904_v27 = vpop.f32.mrf.mxu0 }
 0x620   :  { %v6335_v35 = vpop.f32.mrf.mxu1 }
 0x621   :  { %v6637_v1 = vadd.f32 %v16845_v43, %v6566_v25  ;;  %v6564_v10 = vadd.f32 %v6335_v35, %v6022_v21  ;;  %10430 = vmatprep.mubr.msk.bf16.mxu0 %vm6801_vm5, %v6756_v17  ;;  %v6698_v33 = vmax.f32 %v6634_v48, 0.0  ;;  %v16917_v49 = vpop.f32.mrf.mxu0 }
 0x622   :  { %v10374_v36 = vpop.f32.mrf.mxu1  ;;  %10431 = vmatmul.mubr.msk.bf16.gmra.mxu0 %vm6801_vm5, %v6757_v60 }
 0x623   :  { %v6701_v62 = vmax.f32 %v6637_v1, 0.0  ;;  %v6635_v4 = vadd.f32 %v16845_v43, %v6564_v10  ;;  %v6569_v53 = vadd.f32 %v10374_v36, %v6043_v29 }
 0x624   :  { %v6348_v2 = vpop.f32.mrf.mxu1 }
 0x625   :  { %v6759_v61 = vpack.c.bf16 %v6701_v62, %v6700_v16  ;;  %v6699_v28 = vmax.f32 %v6635_v4, 0.0  ;;  %v6567_v23 = vadd.f32 %v6348_v2, %v6035_v6  ;;  %v6640_v46 = vadd.f32 %v16845_v43, %v6569_v53  ;;  %v16922_v6 = vpop.f32.mrf.mxu0 }
 0x626   :  { %v10375_v5 = vpop.f32.mrf.mxu1 }
 0x627   :  { %v6758_v15 = vpack.c.bf16 %v6699_v28, %v6698_v33  ;;  %v6570_v8 = vadd.f32 %v10375_v5, %v6046_v56  ;;  %v6638_v19 = vadd.f32 %v16845_v43, %v6567_v23  ;;  %v6704_v13 = vmax.f32 %v6640_v46, 0.0  ;;  %v16935_v52 = vpop.f32.mrf.mxu0 }
 0x628   :  { %v6351_v11 = vpop.f32.mrf.mxu1 }
 0x629   :  { %v6641_v31 = vadd.f32 %v16845_v43, %v6570_v8  ;;  %v6568_v60 = vadd.f32 %v6351_v11, %v6038_v9  ;;  %10434 = vmatprep.mubr.msk.bf16.mxu0 %vm6801_vm5, %v6758_v15  ;;  %v6702_v32 = vmax.f32 %v6638_v19, 0.0  ;;  %v16940_v8 = vpop.f32.mrf.mxu0 }
 0x62a   :  { %v10378_v30 = vpop.f32.mrf.mxu1  ;;  %10435 = vmatmul.mubr.msk.bf16.gmra.mxu0 %vm6801_vm5, %v6759_v61 }
 0x62b   :  { %v6705_v22 = vmax.f32 %v6641_v31, 0.0  ;;  %v6639_v37 = vadd.f32 %v16845_v43, %v6568_v60  ;;  %v6573_v21 = vadd.f32 %v10378_v30, %v6059_v20 }
 0x62c   :  { %v6364_v17 = vpop.f32.mrf.mxu1 }
 0x62d   :  { %v6761_v25 = vpack.c.bf16 %v6705_v22, %v6704_v13  ;;  %v6703_v35 = vmax.f32 %v6639_v37, 0.0  ;;  %v6571_v29 = vadd.f32 %v6364_v17, %v6051_v45  ;;  %v6644_v1 = vadd.f32 %v16845_v43, %v6573_v21  ;;  %v18477_v13 = vld [vmem:[#allocation135_spill] sm:$0xff]  ;;  %v16953_v22 = vpop.f32.mrf.mxu0 }
 0x62e   :  { %v10379_v48 = vpop.f32.mrf.mxu1  ;;  %v6094_v42 = vadd.f32 %v18478_v12, %v18477_v13 }
 0x62f   :  { %v6760_v50 = vpack.c.bf16 %v6703_v35, %v6702_v32  ;;  %v6574_v10 = vadd.f32 %v10379_v48, %v6062_v24  ;;  %v6642_v39 = vadd.f32 %v16845_v43, %v6571_v29  ;;  %v6708_v4 = vmax.f32 %v6644_v1, 0.0 }
 0x630   :  { %v6367_v36 = vpop.f32.mrf.mxu1  ;;  %v6086_v35 = vadd.f32 %v18480_v58, %v18479_v18 }
 0x631   :  { %v6645_v16 = vadd.f32 %v16845_v43, %v6574_v10  ;;  %v6572_v62 = vadd.f32 %v6367_v36, %v6054_v54  ;;  %10438 = vmatprep.mubr.msk.bf16.mxu0 %vm6801_vm5, %v6760_v50  ;;  %v6706_v61 = vmax.f32 %v6642_v39, 0.0  ;;  %v16958_v50 = vpop.f32.mrf.mxu0  ;;  %v18481_v10 = vld [vmem:[#allocation62_spill] sm:$0xff] }
 0x632   :  { %v10382_v3 = vpop.f32.mrf.mxu1  ;;  %10439 = vmatmul.mubr.msk.bf16.gmra.mxu0 %vm6801_vm5, %v6761_v25  ;;  %v18482_v36 = vld [vmem:[#allocation78_spill] sm:$0xff] }
 0x633   :  { %v6709_v53 = vmax.f32 %v6645_v16, 0.0  ;;  %v6643_v56 = vadd.f32 %v16845_v43, %v6572_v62  ;;  %v6577_v2 = vadd.f32 %v10382_v3, %v6075_v26  ;;  %v6107_v26 = vadd.f32 %v18482_v36, %v18481_v10  ;;  %v18484_v3 = vld [vmem:[#allocation129_spill] sm:$0xff] }
 0x634   :  { %v6380_v33 = vpop.f32.mrf.mxu1 }
 0x635   :  { %v6763_v28 = vpack.c.bf16 %v6709_v53, %v6708_v4  ;;  %v6707_v23 = vmax.f32 %v6643_v56, 0.0  ;;  %v6575_v5 = vadd.f32 %v6380_v33, %v6067_v40  ;;  %v6648_v15 = vadd.f32 %v16845_v43, %v6577_v2  ;;  %v18483_v40 = vld [vmem:[#allocation125_spill] sm:$0xff] }
 0x636   :  { %v10383_v9 = vpop.f32.mrf.mxu1  ;;  %v6099_v4 = vadd.f32 %v18484_v3, %v18483_v40 }
 0x637   :  { %v6762_v63 = vpack.c.bf16 %v6707_v23, %v6706_v61  ;;  %v6578_v46 = vadd.f32 %v10383_v9, %v6078_v38  ;;  %v6646_v44 = vadd.f32 %v16845_v43, %v6575_v5  ;;  %v6712_v31 = vmax.f32 %v6648_v15, 0.0  ;;  %v18485_v61 = vld [vmem:[#allocation122_spill] sm:$0xff]  ;;  %v16971_v5 = vpop.f32.mrf.mxu0 }
 0x638   :  { %v6383_v11 = vpop.f32.mrf.mxu1 }
 0x639   :  { %v6649_v20 = vadd.f32 %v16845_v43, %v6578_v46  ;;  %v6576_v19 = vadd.f32 %v6383_v11, %v6070_v0  ;;  %10442 = vmatprep.mubr.msk.bf16.mxu0 %vm6801_vm5, %v6762_v63  ;;  %v6710_v21 = vmax.f32 %v6646_v44, 0.0  ;;  %v18488_v44 = vld [vmem:[#allocation9_spill] sm:$0xff] }
 0x63a   :  { %v10386_v59 = vpop.f32.mrf.mxu1  ;;  %10443 = vmatmul.mubr.msk.bf16.gmra.mxu0 %vm6801_vm5, %v6763_v28  ;;  %v18486_v28 = vld [vmem:[#allocation22_spill] sm:$0xff] }
 0x63b   :  { %v6713_v60 = vmax.f32 %v6649_v20, 0.0  ;;  %v6647_v45 = vadd.f32 %v16845_v43, %v6576_v19  ;;  %v6581_v30 = vadd.f32 %v10386_v59, %v6091_v47  ;;  %v6110_v23 = vadd.f32 %v18486_v28, %v18485_v61  ;;  %v18487_v47 = vld [vmem:[#allocation133_spill] sm:$0xff] }
 0x63c   :  { %v6396_v37 = vpop.f32.mrf.mxu1  ;;  %v6102_v20 = vadd.f32 %v18488_v44, %v18487_v47 }
 0x63d   :  { %v6765_v24 = vpack.c.bf16 %v6713_v60, %v6712_v31  ;;  %v6711_v17 = vmax.f32 %v6647_v45, 0.0  ;;  %v6579_v32 = vadd.f32 %v6396_v37, %v6083_v41  ;;  %v6652_v48 = vadd.f32 %v16845_v43, %v6581_v30  ;;  %v16976_v31 = vpop.f32.mrf.mxu0  ;;  %v18489_v45 = vld [vmem:[#allocation84_spill] sm:$0xff]  ;;  %v18490_v30 = vld [vmem:[#allocation14_spill] sm:$0xff] }
 0x63e   :  { %v10387_v25 = vpop.f32.mrf.mxu1  ;;  %v6123_v13 = vadd.f32 %v18490_v30, %v18489_v45 }
 0x63f   :  { %v6764_v29 = vpack.c.bf16 %v6711_v17, %v6710_v21  ;;  %v6582_v54 = vadd.f32 %v10387_v25, %v6094_v42  ;;  %v6650_v39 = vadd.f32 %v16845_v43, %v6579_v32  ;;  %v6716_v56 = vmax.f32 %v6652_v48, 0.0  ;;  %v18491_v21 = vld [vmem:[#allocation13_spill] sm:$0xff] }
 0x640   :  { %v6399_v1 = vpop.f32.mrf.mxu1 }
 0x641   :  { %v6653_v16 = vadd.f32 %v16845_v43, %v6582_v54  ;;  %v6580_v62 = vadd.f32 %v6399_v1, %v6086_v35  ;;  %10446 = vmatprep.mubr.msk.bf16.mxu0 %vm6801_vm5, %v6764_v29  ;;  %v6714_v0 = vmax.f32 %v6650_v39, 0.0  ;;  %v18493_v29 = vld [vmem:[#allocation130_spill] sm:$0xff]  ;;  %v16989_v54 = vpop.f32.mrf.mxu0 }
 0x642   :  { %v10390_v53 = vpop.f32.mrf.mxu1  ;;  %10447 = vmatmul.mubr.msk.bf16.gmra.mxu0 %vm6801_vm5, %v6765_v24  ;;  %v18492_v24 = vld [vmem:[#allocation143_spill] sm:$0xff]  ;;  %v6126_v48 = vadd.f32 %v16852_v7, %v18493_v29 }
 0x643   :  { %v6717_v2 = vmax.f32 %v6653_v16, 0.0  ;;  %v6651_v38 = vadd.f32 %v16845_v43, %v6580_v62  ;;  %v6585_v33 = vadd.f32 %v10390_v53, %v6107_v26  ;;  %v6115_v17 = vadd.f32 %v18492_v24, %v18491_v21  ;;  %v18494_v62 = vld [vmem:[#allocation81_spill] sm:$0xff]  ;;  %v18499_v21 = vld [vmem:[#allocation46_spill] sm:$0xff] }
 0x644   :  { %v6412_v9 = vpop.f32.mrf.mxu1  ;;  %v6118_v40 = vadd.f32 %v16863_v34, %v18494_v62 }
 0x645   :  { %v6767_v63 = vpack.c.bf16 %v6717_v2, %v6716_v56  ;;  %v6715_v15 = vmax.f32 %v6651_v38, 0.0  ;;  %v6583_v46 = vadd.f32 %v6412_v9, %v6099_v4  ;;  %v6656_v41 = vadd.f32 %v16845_v43, %v6585_v33  ;;  %v16994_v56 = vpop.f32.mrf.mxu0  ;;  %v18495_v38 = vld [vmem:[#allocation134_spill] sm:$0xff] }
 0x646   :  { %v10391_v11 = vpop.f32.mrf.mxu1  ;;  %v6139_v7 = vadd.f32 %v16868_v57, %v18495_v38 }
 0x647   :  { %v6766_v19 = vpack.c.bf16 %v6715_v15, %v6714_v0  ;;  %v6586_v59 = vadd.f32 %v10391_v11, %v6110_v23  ;;  %v6654_v12 = vadd.f32 %v16845_v43, %v6583_v46  ;;  %v6720_v25 = vmax.f32 %v6656_v41, 0.0  ;;  %v18496_v23 = vld [vmem:[#allocation120_spill] sm:$0xff]  ;;  %v18497_v11 = vld [vmem:[#allocation138_spill] sm:$0xff]  ;;  %v17007_v47 = vpop.f32.mrf.mxu0 }
 0x648   :  { %v6415_v60 = vpop.f32.mrf.mxu1  ;;  %v6131_v34 = vadd.f32 %v16881_v51, %v18496_v23  ;;  %v6142_v57 = vadd.f32 %v16886_v14, %v18497_v11  ;;  %v18498_v51 = vld [vmem:[#allocation145_spill] sm:$0xff]  ;;  %v6155_v14 = vadd.f32 %v16904_v27, %v18499_v21  ;;  %v18505_v11 = vld [vmem:[#allocation131_spill] sm:$0xff]  ;;  %v18507_v21 = vld [vmem:[#allocation96_spill] sm:$0xff] }
 0x649   :  { %v6657_v42 = vadd.f32 %v16845_v43, %v6586_v59  ;;  %v6584_v37 = vadd.f32 %v6415_v60, %v6102_v20  ;;  %10450 = vmatprep.mubr.msk.bf16.mxu0 %vm6801_vm5, %v6766_v19  ;;  %v6718_v10 = vmax.f32 %v6654_v12, 0.0  ;;  %v6134_v45 = vadd.f32 %v16899_v55, %v18498_v51  ;;  %v18506_v51 = vld [vmem:[#allocation155_spill] sm:$0xff] }
 0x64a   :  { %v10394_v32 = vpop.f32.mrf.mxu1  ;;  %10451 = vmatmul.mubr.msk.bf16.gmra.mxu0 %vm6801_vm5, %v6767_v63 }
 0x64b   :  { %v6721_v18 = vmax.f32 %v6657_v42, 0.0  ;;  %v6655_v58 = vadd.f32 %v16845_v43, %v6584_v37  ;;  %v6589_v35 = vadd.f32 %v10394_v32, %v6123_v13  ;;  %v17012_v42 = vpop.f32.mrf.mxu0 }
 0x64c   :  { %v6428_v1 = vpop.f32.mrf.mxu1 }
 0x64d   :  { %v6769_v36 = vpack.c.bf16 %v6721_v18, %v6720_v25  ;;  %v6719_v26 = vmax.f32 %v6655_v58, 0.0  ;;  %v6587_v39 = vadd.f32 %v6428_v1, %v6115_v17  ;;  %v6660_v4 = vadd.f32 %v16845_v43, %v6589_v35  ;;  %v18500_v25 = vld [vmem:[#allocation80_spill] sm:$0xff]  ;;  %v18501_v1 = vld [vmem:[#allocation43_spill] sm:$0xff] }
 0x64e   :  { %v10395_v16 = vpop.f32.mrf.mxu1  ;;  %v6147_v55 = vadd.f32 %v16917_v49, %v18500_v25  ;;  %v6158_v27 = vadd.f32 %v16922_v6, %v18501_v1  ;;  %v18502_v49 = vld [vmem:[#allocation83_spill] sm:$0xff] }
 0x64f   :  { %v6768_v3 = vpack.c.bf16 %v6719_v26, %v6718_v10  ;;  %v6590_v53 = vadd.f32 %v10395_v16, %v6126_v48  ;;  %v6658_v33 = vadd.f32 %v16845_v43, %v6587_v39  ;;  %v6724_v0 = vmax.f32 %v6660_v4, 0.0  ;;  %v17025_v10 = vpop.f32.mrf.mxu0 }
 0x650   :  { %v6431_v2 = vpop.f32.mrf.mxu1 }
 0x651   :  { %v6661_v61 = vadd.f32 %v16845_v43, %v6590_v53  ;;  %v6588_v28 = vadd.f32 %v6431_v2, %v6118_v40  ;;  %10454 = vmatprep.mubr.msk.bf16.mxu0 %vm6801_vm5, %v6768_v3  ;;  %v6722_v20 = vmax.f32 %v6658_v33, 0.0  ;;  %v6150_v3 = vadd.f32 %v16935_v52, %v18502_v49  ;;  %v17030_v38 = vpop.f32.mrf.mxu0  ;;  %v18503_v33 = vld [vmem:[#allocation146_spill] sm:$0xff] }
 0x652   :  { %v10398_v9 = vpop.f32.mrf.mxu1  ;;  %10455 = vmatmul.mubr.msk.bf16.gmra.mxu0 %vm6801_vm5, %v6769_v36  ;;  %v6171_v6 = vadd.f32 %v16940_v8, %v18503_v33  ;;  %v6174_v8 = vadd.f32 %v16958_v50, %v18505_v11 }
 0x653   :  { %v6725_v63 = vmax.f32 %v6661_v61, 0.0  ;;  %v6659_v15 = vadd.f32 %v16845_v43, %v6588_v28  ;;  %v6593_v46 = vadd.f32 %v10398_v9, %v6139_v7 }
 0x654   :  { %v6444_v44 = vpop.f32.mrf.mxu1 }
 0x655   :  { %v6771_v19 = vpack.c.bf16 %v6725_v63, %v6724_v0  ;;  %v6723_v41 = vmax.f32 %v6659_v15, 0.0  ;;  %v6591_v59 = vadd.f32 %v6444_v44, %v6131_v34  ;;  %v6664_v13 = vadd.f32 %v16845_v43, %v6593_v46  ;;  %v18504_v34 = vld [vmem:[#allocation29_spill] sm:$0xff] }
 0x656   :  { %v10399_v60 = vpop.f32.mrf.mxu1  ;;  %v6163_v52 = vadd.f32 %v16953_v22, %v18504_v34  ;;  %v6166_v22 = vadd.f32 %v16971_v5, %v18506_v51 }
 0x657   :  { %v6770_v30 = vpack.c.bf16 %v6723_v41, %v6722_v20  ;;  %v6594_v12 = vadd.f32 %v10399_v60, %v6142_v57  ;;  %v6662_v24 = vadd.f32 %v16845_v43, %v6591_v59  ;;  %v6728_v58 = vmax.f32 %v6664_v13, 0.0  ;;  %v6197_v57 = vpop.f32.mrf.mxu0 }
 0x658   :  { %v6447_v37 = vpop.f32.mrf.mxu1 }
 0x659   :  { %v6665_v17 = vadd.f32 %v16845_v43, %v6594_v12  ;;  %v6592_v32 = vadd.f32 %v6447_v37, %v6134_v45  ;;  %10458 = vmatprep.mubr.msk.bf16.mxu0 %vm6801_vm5, %v6770_v30  ;;  %v6726_v26 = vmax.f32 %v6662_v24, 0.0  ;;  %v10350_v12 = vpop.f32.mrf.mxu0 }
 0x65a   :  { %v10402_v18 = vpop.f32.mrf.mxu1  ;;  %10459 = vmatmul.mubr.msk.bf16.gmra.mxu0 %vm6801_vm5, %v6771_v19 }
 0x65b   :  { %v6729_v35 = vmax.f32 %v6665_v17, 0.0  ;;  %v6663_v29 = vadd.f32 %v16845_v43, %v6592_v32  ;;  %v6597_v48 = vadd.f32 %v10402_v18, %v6155_v14  ;;  %v6187_v14 = vadd.f32 %v16976_v31, %v18507_v21  ;;  %v18508_v32 = vld [vmem:[#allocation150_spill] sm:$0xff]  ;;  %v18516_v21 = vld [vmem:[#allocation153_spill] sm:$0xff] }
 0x65c   :  { %v6460_v36 = vpop.f32.mrf.mxu1  ;;  %v6179_v25 = vadd.f32 %v16989_v54, %v18508_v32 }
 0x65d   :  { %v6773_v39 = vpack.c.bf16 %v6729_v35, %v6728_v58  ;;  %v6727_v16 = vmax.f32 %v6663_v29, 0.0  ;;  %v6595_v62 = vadd.f32 %v6460_v36, %v6147_v55  ;;  %v6668_v53 = vadd.f32 %v16845_v43, %v6597_v48  ;;  %v18509_v29 = vld [vmem:[#allocation151_spill] sm:$0xff]  ;;  %v6210_v48 = vpop.f32.mrf.mxu0 }
 0x65e   :  { %v10403_v40 = vpop.f32.mrf.mxu1  ;;  %v6190_v31 = vadd.f32 %v16994_v56, %v18509_v29 }
 0x65f   :  { %v6772_v4 = vpack.c.bf16 %v6727_v16, %v6726_v26  ;;  %v6598_v2 = vadd.f32 %v10403_v40, %v6158_v27  ;;  %v6666_v61 = vadd.f32 %v16845_v43, %v6595_v62  ;;  %v6732_v0 = vmax.f32 %v6668_v53, 0.0  ;;  %v18510_v62 = vld [vmem:[#allocation95_spill] sm:$0xff] }
 0x660   :  { %v6463_v7 = vpop.f32.mrf.mxu1  ;;  %v6182_v54 = vadd.f32 %v17007_v47, %v18510_v62  ;;  %v18519_v62 = vld [vmem:[#allocation144_spill] sm:$0xff] }
 0x661   :  { %v6669_v28 = vadd.f32 %v16845_v43, %v6598_v2  ;;  %v6596_v23 = vadd.f32 %v6463_v7, %v6150_v3  ;;  %10462 = vmatprep.mubr.msk.bf16.mxu0 %vm6801_vm5, %v6772_v4  ;;  %v6730_v20 = vmax.f32 %v6666_v61, 0.0  ;;  %v10351_v4 = vpop.f32.mrf.mxu0  ;;  %v18511_v2 = vld [vmem:[#allocation74_spill] sm:$0xff] }
 0x662   :  { %v10406_v9 = vpop.f32.mrf.mxu1  ;;  %10463 = vmatmul.mubr.msk.bf16.gmra.mxu0 %vm6801_vm5, %v6773_v39  ;;  %v6203_v7 = vadd.f32 %v17012_v42, %v18511_v2  ;;  %v18512_v61 = vld [vmem:[#allocation6_spill] sm:$0xff] }
 0x663   :  { %v6733_v63 = vmax.f32 %v6669_v28, 0.0  ;;  %v6667_v15 = vadd.f32 %v16845_v43, %v6596_v23  ;;  %v6601_v46 = vadd.f32 %v10406_v9, %v6171_v6  ;;  %v6195_v28 = vadd.f32 %v17025_v10, %v18512_v61  ;;  %v18521_v61 = vld [vmem:[#allocation152_spill] sm:$0xff] }
 0x664   :  { %v6476_v44 = vpop.f32.mrf.mxu1 }
 0x665   :  { %v6775_v19 = vpack.c.bf16 %v6733_v63, %v6732_v0  ;;  %v6731_v41 = vmax.f32 %v6667_v15, 0.0  ;;  %v6599_v59 = vadd.f32 %v6476_v44, %v6163_v52  ;;  %v6672_v30 = vadd.f32 %v16845_v43, %v6601_v46  ;;  %v18513_v0 = vld [vmem:[#allocation139_spill] sm:$0xff]  ;;  %v6213_v63 = vpop.f32.mrf.mxu0 }
 0x666   :  { %v10407_v60 = vpop.f32.mrf.mxu1  ;;  %v6206_v42 = vadd.f32 %v17030_v38, %v18513_v0 }
 0x667   :  { %v6774_v45 = vpack.c.bf16 %v6731_v41, %v6730_v20  ;;  %v6602_v13 = vadd.f32 %v10407_v60, %v6174_v8  ;;  %v6670_v50 = vadd.f32 %v16845_v43, %v6599_v59  ;;  %v6736_v55 = vmax.f32 %v6672_v30, 0.0  ;;  %v10354_v51 = vpop.f32.mrf.mxu0 }
 0x668   :  { %v6479_v37 = vpop.f32.mrf.mxu1 }
 0x669   :  { %v6673_v24 = vadd.f32 %v16845_v43, %v6602_v13  ;;  %v6600_v17 = vadd.f32 %v6479_v37, %v6166_v22  ;;  %10466 = vmatprep.mubr.msk.bf16.mxu0 %vm6801_vm5, %v6774_v45  ;;  %v6734_v27 = vmax.f32 %v6670_v50, 0.0  ;;  %v18515_v45 = vld [vmem:[#allocation8_spill] sm:$0xff] }
 0x66a   :  { %v10410_v5 = vpop.f32.mrf.mxu1  ;;  %10467 = vmatmul.mubr.msk.bf16.gmra.mxu0 %vm6801_vm5, %v6775_v19  ;;  %v18514_v19 = vld [vmem:[#allocation7_spill] sm:$0xff]  ;;  %v6219_v30 = vadd.f32 %v10350_v12, %v18515_v45  ;;  %v6226_v12 = vpop.f32.mrf.mxu0 }
 0x66b   :  { %v6737_v18 = vmax.f32 %v6673_v24, 0.0  ;;  %v6671_v58 = vadd.f32 %v16845_v43, %v6600_v17  ;;  %v6605_v35 = vadd.f32 %v10410_v5, %v6187_v14  ;;  %v6198_v10 = vadd.f32 %v6197_v57, %v18514_v19 }
 0x66c   :  { %v6492_v1 = vpop.f32.mrf.mxu1  ;;  %v6211_v14 = vadd.f32 %v6210_v48, %v18516_v21 }
 0x66d   :  { %v6777_v36 = vpack.c.bf16 %v6737_v18, %v6736_v55  ;;  %v6735_v26 = vmax.f32 %v6671_v58, 0.0  ;;  %v6603_v39 = vadd.f32 %v6492_v1, %v6179_v25  ;;  %v6676_v49 = vadd.f32 %v16845_v43, %v6605_v35  ;;  %v18517_v25 = vld [vmem:[#allocation154_spill] sm:$0xff] }
 0x66e   :  { %v10411_v16 = vpop.f32.mrf.mxu1  ;;  %v6222_v5 = vadd.f32 %v10351_v4, %v18517_v25  ;;  %v18518_v1 = vld [vmem:[#allocation86_spill] sm:$0xff] }
 0x66f   :  { %v6776_v40 = vpack.c.bf16 %v6735_v26, %v6734_v27  ;;  %v6606_v3 = vadd.f32 %v10411_v16, %v6190_v31  ;;  %v6674_v56 = vadd.f32 %v16845_v43, %v6603_v39  ;;  %v6740_v23 = vmax.f32 %v6676_v49, 0.0  ;;  %v10355_v39 = vpop.f32.mrf.mxu0  ;;  %v18520_v4 = vld [vmem:[#allocation142_spill] sm:$0xff] }
 0x670   :  { %v6495_v53 = vpop.f32.mrf.mxu1  ;;  %v6214_v27 = vadd.f32 %v6213_v63, %v18518_v1  ;;  %v18522_v63 = vld [vmem:[#allocation30_spill] sm:$0xff] }
 0x671   :  { %v6677_v33 = vadd.f32 %v16845_v43, %v6606_v3  ;;  %v6604_v6 = vadd.f32 %v6495_v53, %v6182_v54  ;;  %10470 = vmatprep.mubr.msk.bf16.mxu0 %vm6801_vm5, %v6776_v40  ;;  %v6738_v46 = vmax.f32 %v6674_v56, 0.0  ;;  %v6235_v54 = vadd.f32 %v10354_v51, %v18519_v62  ;;  %v18529_v62 = vld [vmem:[#allocation89_spill] sm:$0xff] }
 0x672   :  { %v10414_v47 = vpop.f32.mrf.mxu1  ;;  %10471 = vmatmul.mubr.msk.bf16.gmra.mxu0 %vm6801_vm5, %v6777_v36  ;;  %v6227_v53 = vadd.f32 %v6226_v12, %v18520_v4 }
 0x673   :  { %v6741_v34 = vmax.f32 %v6677_v33, 0.0  ;;  %v6675_v52 = vadd.f32 %v16845_v43, %v6604_v6  ;;  %v6609_v9 = vadd.f32 %v10414_v47, %v6203_v7  ;;  %v6229_v47 = vpop.f32.mrf.mxu0 }
 0x674   :  { %v6508_v15 = vpop.f32.mrf.mxu1 }
 0x675   :  { %v6779_v11 = vpack.c.bf16 %v6741_v34, %v6740_v23  ;;  %v6739_v8 = vmax.f32 %v6675_v52, 0.0  ;;  %v6607_v44 = vadd.f32 %v6508_v15, %v6195_v28  ;;  %v6680_v59 = vadd.f32 %v16845_v43, %v6609_v9 }
 0x676   :  { %v10415_v20 = vpop.f32.mrf.mxu1  ;;  %v6238_v28 = vadd.f32 %v10355_v39, %v18521_v61  ;;  %v6230_v15 = vadd.f32 %v6229_v47, %v18522_v63  ;;  %v18530_v61 = vld [vmem:[#allocation53_spill] sm:$0xff] }
 0x677   :  { %v6778_v41 = vpack.c.bf16 %v6739_v8, %v6738_v46  ;;  %v6610_v60 = vadd.f32 %v10415_v20, %v6206_v42  ;;  %v6678_v13 = vadd.f32 %v16845_v43, %v6607_v44  ;;  %v6744_v57 = vmax.f32 %v6680_v59, 0.0 }
 0x678   :  { %v6511_v22 = vpop.f32.mrf.mxu1 }
 0x679   :  { %v6681_v38 = vadd.f32 %v16845_v43, %v6610_v60  ;;  %v6608_v37 = vadd.f32 %v6511_v22, %v6198_v10  ;;  %10474 = vmatprep.mubr.msk.bf16.mxu0 %vm6801_vm5, %v6778_v41  ;;  %v6742_v18 = vmax.f32 %v6678_v13, 0.0  ;;  %v8038_v13 = vpop.permute.xlu0 %8037 }
 0x67a   :  { %v10418_v50 = vpop.f32.mrf.mxu1  ;;  %10475 = vmatmul.mubr.msk.bf16.gmra.mxu0 %vm6801_vm5, %v6779_v11 }
 0x67b   :  { %v6745_v24 = vmax.f32 %v6681_v38, 0.0  ;;  %v6679_v17 = vadd.f32 %v16845_v43, %v6608_v37  ;;  %v6613_v32 = vadd.f32 %v10418_v50, %v6219_v30  ;;  %v17103_v38 = vld [vmem:[%s17462_s15] ss:$0 sm:$0xff] }
 0x67c   :  { %v6524_v55 = vpop.f32.mrf.mxu1 }
 0x67d   :  { %v6781_v58 = vpack.c.bf16 %v6745_v24, %v6744_v57  ;;  %v6743_v35 = vmax.f32 %v6679_v17, 0.0  ;;  %v6611_v29 = vadd.f32 %v6524_v55, %v6211_v14  ;;  %v6684_v36 = vadd.f32 %v16845_v43, %v6613_v32  ;;  %v18523_v14 = vld [vmem:[#allocation93_spill] sm:$0xff]  ;;  %v18524_v17 = vld [vmem:[#allocation92_spill] sm:$0xff] }
 0x67e   :  { %v10419_v31 = vpop.f32.mrf.mxu1  ;;  %v8117_v50 = vmul.f32 %v8038_v13, %v18523_v14  ;;  %v8115_v32 = vmul.f32 %v8038_v13, %v18524_v17  ;;  %v18535_v17 = vld [vmem:[#allocation98_spill] sm:$0xff] }
 0x67f   :  { %v6780_v48 = vpack.c.bf16 %v6743_v35, %v6742_v18  ;;  %v6614_v26 = vadd.f32 %v10419_v31, %v6222_v5  ;;  %v6682_v40 = vadd.f32 %v16845_v43, %v6611_v29  ;;  %v6748_v7 = vmax.f32 %v6684_v36, 0.0  ;;  %v18525_v5 = vld [vmem:[#allocation37_spill] sm:$0xff]  ;;  %v18527_v31 = vld [vmem:[#allocation91_spill] sm:$0xff] }
 0x680   :  { %v6527_v16 = vpop.f32.mrf.mxu1  ;;  %v8116_v1 = vmul.f32 %v8038_v13, %v18527_v31 }
 0x681   :  { %v6685_v49 = vadd.f32 %v16845_v43, %v6614_v26  ;;  %v6612_v3 = vadd.f32 %v6527_v16, %v6214_v27  ;;  %10478 = vmatprep.mubr.msk.bf16.mxu0 %vm6801_vm5, %v6780_v48  ;;  %v6746_v34 = vmax.f32 %v6682_v40, 0.0  ;;  %v18528_v16 = vld [vmem:[#allocation57_spill] sm:$0xff] }
 0x682   :  { %v10422_v2 = vpop.f32.mrf.mxu1  ;;  %10479 = vmatmul.mubr.msk.bf16.gmra.mxu0 %vm6801_vm5, %v6781_v58  ;;  %v18526_v58 = vld [vmem:[#allocation94_spill] sm:$0xff] }
 0x683   :  { %v6749_v56 = vmax.f32 %v6685_v49, 0.0  ;;  %v6683_v33 = vadd.f32 %v16845_v43, %v6612_v3  ;;  %v6617_v6 = vadd.f32 %v10422_v2, %v6235_v54  ;;  %v8118_v35 = vmul.f32 %v8038_v13, %v18526_v58 }
 0x684   :  { %v6540_v23 = vpop.f32.mrf.mxu1  ;;  %v8121_v54 = vmul.f32 %v18529_v62, %v18528_v16 }
 0x685   :  { %v6783_v52 = vpack.c.bf16 %v6749_v56, %v6748_v7  ;;  %v6747_v9 = vmax.f32 %v6683_v33, 0.0  ;;  %v6615_v0 = vadd.f32 %v6540_v23, %v6227_v53  ;;  %v6688_v11 = vadd.f32 %v16845_v43, %v6617_v6  ;;  %v17120_v7 = vpop.xlane.xlu1 %7880  ;;  %v18531_v23 = vld [vmem:[#allocation55_spill] sm:$0xff] }
 0x686   :  { %v10423_v42 = vpop.f32.mrf.mxu1 }
 0x687   :  { %v6782_v46 = vpack.c.bf16 %v6747_v9, %v6746_v34  ;;  %v6618_v8 = vadd.f32 %v10423_v42, %v6238_v28  ;;  %v6686_v20 = vadd.f32 %v16845_v43, %v6615_v0  ;;  %v6752_v41 = vmax.f32 %v6688_v11, 0.0  ;;  %v18532_v0 = vld [vmem:[#allocation45_spill] sm:$0xff]  ;;  %v8048_v11 = vpop.permute.xlu0 %8047 }
 0x688   :  { %v6543_v44 = vpop.f32.mrf.mxu1  ;;  %v8119_v28 = vmul.f32 %v18529_v62, %v18530_v61  ;;  %v8122_v34 = vmul.f32 %v18529_v62, %v18531_v23 }
 0x689   :  { %v6689_v19 = vadd.f32 %v16845_v43, %v6618_v8  ;;  %v6616_v10 = vadd.f32 %v6543_v44, %v6230_v15  ;;  %10482 = vmatprep.mubr.msk.bf16.mxu0 %vm6801_vm5, %v6782_v46  ;;  %v6750_v51 = vmax.f32 %v6686_v20, 0.0 }
 0x68a   :  { %10483 = vmatmul.mubr.msk.bf16.gmra.mxu0 %vm6801_vm5, %v6783_v52 }
 0x68b   :  { %v6753_v59 = vmax.f32 %v6689_v19, 0.0  ;;  %v6687_v60 = vadd.f32 %v16845_v43, %v6616_v10 }
 0x68d   :  { %v6785_v22 = vpack.c.bf16 %v6753_v59, %v6752_v41  ;;  %v6751_v45 = vmax.f32 %v6687_v60, 0.0  ;;  %v18533_v41 = vld [vmem:[#allocation51_spill] sm:$0xff] }
 0x68e   :  { %v8120_v59 = vmul.f32 %v18529_v62, %v18533_v41 }
 0x68f   :  { %v6784_v30 = vpack.c.bf16 %v6751_v45, %v6750_v51 }
 0x691   :  { %10486 = vmatprep.mubr.msk.bf16.mxu0 %vm6801_vm5, %v6784_v30  ;;  %v18534_v30 = vld [vmem:[#allocation101_spill] sm:$0xff] }
 0x692   :  { %10487 = vmatmul.mubr.msk.bf16.gmra.mxu0 %vm6801_vm5, %v6785_v22  ;;  %v17136_v22 = vpop.xlane.xlu1 %7883  ;;  %v8125_v13 = vmul.f32 %v8048_v11, %v18534_v30 }
 0x696   :  { %v17151_v16 = vpop.xlane.xlu1 %7886 }
 0x6da   :  { %v10428_v37 = vpop.f32.mrf.mxu0 }
 0x6db   :  { %v6941_v21 = vadd.f32 %v10428_v37, %v17103_v38 }
 0x6dc   :  { %v6932_v43 = vpop.f32.mrf.mxu0 }
 0x6dd   :  { %v8181_v57 = vsub.f32 %v6941_v21, %v8117_v50  ;;  %v6933_v24 = vadd.f32 %v17103_v38, %v6932_v43 }
 0x6de   :  { %v10429_v25 = vpop.f32.mrf.mxu0 }
 0x6df   :  { %v8245_v12 = vmul.f32 %v8181_v57, %v18525_v5  ;;  %v8179_v55 = vsub.f32 %v6933_v24, %v8115_v32  ;;  %v6944_v18 = vadd.f32 %v10429_v25, %v17103_v38  ;;  %v8123_v32 = vmul.f32 %v8048_v11, %v18535_v17 }
 0x6e0   :  { %v6935_v29 = vpop.f32.mrf.mxu0 }
 0x6e1   :  { %v8243_v27 = vmul.f32 %v8179_v55, %v18525_v5  ;;  %v8182_v48 = vsub.f32 %v6944_v18, %v8118_v35  ;;  %v6936_v36 = vadd.f32 %v17103_v38, %v6935_v29  ;;  %v8309_v26 = vmul.f32 %v8245_v12, %v8181_v57  ;;  %v8053_v12 = vpop.permute.xlu0 %8052  ;;  %v18537_v29 = vld [vmem:[#allocation100_spill] sm:$0xff] }
 0x6e2   :  { %v10432_v39 = vpop.f32.mrf.mxu0  ;;  %v8126_v31 = vmul.f32 %v8048_v11, %v18537_v29 }
 0x6e3   :  { %v8246_v40 = vmul.f32 %v8182_v48, %v18525_v5  ;;  %v8180_v49 = vsub.f32 %v6936_v36, %v8116_v1  ;;  %v6957_v3 = vadd.f32 %v10432_v39, %v17103_v38  ;;  %v8377_v4 = vsel %vm346_vm2, %v8309_v26, 0.0 }
 0x6e4   :  { %8378 = vadd.xlane.f32.xlu0 %v8377_v4  ;;  %v6948_v53 = vpop.f32.mrf.mxu0  ;;  %v8307_v2 = vmul.f32 %v8243_v27, %v8179_v55  ;;  %v18536_v55 = vld [vmem:[#allocation38_spill] sm:$0xff] }
 0x6e5   :  { %v8244_v56 = vmul.f32 %v8180_v49, %v18525_v5  ;;  %v8185_v33 = vsub.f32 %v6957_v3, %v8121_v54  ;;  %v6949_v6 = vadd.f32 %v17103_v38, %v6948_v53  ;;  %v8310_v9 = vmul.f32 %v8246_v40, %v8182_v48  ;;  %v18538_v48 = vld [vmem:[#allocation66_spill] sm:$0xff] }
 0x6e6   :  { %v10433_v47 = vpop.f32.mrf.mxu0  ;;  %v8371_v52 = vsel %vm346_vm2, %v8307_v2, 0.0  ;;  %v8124_v36 = vmul.f32 %v8048_v11, %v18538_v48  ;;  %v18539_v4 = vld [vmem:[#allocation110_spill] sm:$0xff]  ;;  %v18545_v48 = vld [vmem:[#allocation75_spill] sm:$0xff] }
 0x6e7   :  { %v8249_v42 = vmul.f32 %v8185_v33, %v18532_v0  ;;  %v8183_v63 = vsub.f32 %v6949_v6, %v8119_v28  ;;  %v6960_v15 = vadd.f32 %v10433_v47, %v17103_v38  ;;  %v8308_v46 = vmul.f32 %v8244_v56, %v8180_v49 }
 0x6e8   :  { %v6951_v8 = vpop.f32.mrf.mxu0  ;;  %8372 = vadd.xlane.f32.xlu0 %v8371_v52  ;;  %v8380_v37 = vsel %vm346_vm2, %v8310_v9, 0.0  ;;  %v8129_v53 = vmul.f32 %v8053_v12, %v18539_v4 }
 0x6e9   :  { %v8247_v44 = vmul.f32 %v8183_v63, %v18532_v0  ;;  %v8186_v20 = vsub.f32 %v6960_v15, %v8122_v34  ;;  %v6952_v19 = vadd.f32 %v17103_v38, %v6951_v8  ;;  %v8374_v10 = vsel %vm346_vm2, %v8308_v46, 0.0 }
 0x6ea   :  { %v10436_v60 = vpop.f32.mrf.mxu0  ;;  %8375 = vadd.xlane.f32.xlu1 %v8374_v10  ;;  %v8313_v51 = vmul.f32 %v8249_v42, %v8185_v33  ;;  %v7890_v42 = vpop.xlane.xlu1 %7889 }
 0x6eb   :  { %v6973_v45 = vadd.f32 %v10436_v60, %v17103_v38  ;;  %v8250_v21 = vmul.f32 %v8186_v20, %v18532_v0  ;;  %v8184_v14 = vsub.f32 %v6952_v19, %v8120_v59  ;;  %v8311_v43 = vmul.f32 %v8247_v44, %v8183_v63  ;;  %v18540_v63 = vld [vmem:[#allocation106_spill] sm:$0xff] }
 0x6ec   :  { %v6964_v50 = vpop.f32.mrf.mxu0  ;;  %8381 = vadd.xlane.f32.xlu0 %v8380_v37  ;;  %v8389_v25 = vsel %vm346_vm2, %v8313_v51, 0.0  ;;  %v8127_v15 = vmul.f32 %v8053_v12, %v18540_v63  ;;  %v18542_v51 = vld [vmem:[#allocation109_spill] sm:$0xff]  ;;  %v7921_v63 = vadd.f32 %v17136_v22, %v17120_v7 }
 0x6ed   :  { %v8189_v57 = vsub.f32 %v6973_v45, %v8125_v13  ;;  %v6965_v24 = vadd.f32 %v17103_v38, %v6964_v50  ;;  %v8248_v1 = vmul.f32 %v8184_v14, %v18532_v0  ;;  %v8383_v26 = vsel %vm346_vm2, %v8311_v43, 0.0  ;;  %v18552_v22 = vld [vmem:[#allocation73_spill] sm:$0xff] }
 0x6ee   :  { %v10437_v5 = vpop.f32.mrf.mxu0  ;;  %8390 = vadd.xlane.f32.xlu1 %v8389_v25  ;;  %v8314_v39 = vmul.f32 %v8250_v21, %v8186_v20  ;;  %v18541_v20 = vld [vmem:[#allocation47_spill] sm:$0xff]  ;;  %v8130_v45 = vmul.f32 %v8053_v12, %v18542_v51  ;;  %v8058_v21 = vpop.permute.xlu1 %8057 }
 0x6ef   :  { %v8253_v18 = vmul.f32 %v8189_v57, %v18536_v55  ;;  %v8187_v58 = vsub.f32 %v6965_v24, %v8123_v32  ;;  %v6976_v35 = vadd.f32 %v10437_v5, %v17103_v38  ;;  %v8312_v47 = vmul.f32 %v8248_v1, %v8184_v14  ;;  %v18543_v24 = vld [vmem:[#allocation105_spill] sm:$0xff]  ;;  %v17173_v25 = vpop.permute.xlu0 %8062 }
 0x6f0   :  { %v6967_v27 = vpop.f32.mrf.mxu0  ;;  %v8392_v9 = vsel %vm346_vm2, %v8314_v39, 0.0  ;;  %v8128_v17 = vmul.f32 %v8053_v12, %v18543_v24  ;;  %v8134_v51 = vmul.f32 %v8058_v21, %v18552_v22  ;;  %v18558_v22 = vld [vmem:[#allocation58_spill] sm:$0xff] }
 0x6f1   :  { %v8251_v62 = vmul.f32 %v8187_v58, %v18536_v55  ;;  %v8190_v54 = vsub.f32 %v6976_v35, %v8126_v31  ;;  %v6968_v40 = vadd.f32 %v17103_v38, %v6967_v27  ;;  %v8317_v49 = vmul.f32 %v8253_v18, %v8189_v57 }
 0x6f2   :  { %v10440_v3 = vpop.f32.mrf.mxu0  ;;  %8384 = vadd.xlane.f32.xlu1 %v8383_v26  ;;  %v8386_v44 = vsel %vm346_vm2, %v8312_v47, 0.0 }
 0x6f3   :  { %v8254_v2 = vmul.f32 %v8190_v54, %v18536_v55  ;;  %v8188_v56 = vsub.f32 %v6968_v40, %v8124_v36  ;;  %v6989_v33 = vadd.f32 %v10440_v3, %v17103_v38  ;;  %v8401_v6 = vsel %vm346_vm2, %v8317_v49, 0.0 }
 0x6f4   :  { %v6980_v61 = vpop.f32.mrf.mxu0  ;;  %8402 = vadd.xlane.f32.xlu0 %v8401_v6  ;;  %v8315_v28 = vmul.f32 %v8251_v62, %v8187_v58  ;;  %v18544_v58 = vld [vmem:[#allocation111_spill] sm:$0xff]  ;;  %v8133_v36 = vmul.f32 %v8058_v21, %v18545_v48  ;;  %v18546_v62 = vld [vmem:[#allocation90_spill] sm:$0xff] }
 0x6f5   :  { %v8252_v23 = vmul.f32 %v8188_v56, %v18536_v55  ;;  %v8193_v34 = vsub.f32 %v6989_v33, %v8129_v53  ;;  %v6981_v52 = vadd.f32 %v17103_v38, %v6980_v61  ;;  %v8318_v11 = vmul.f32 %v8254_v2, %v8190_v54  ;;  %v18547_v53 = vld [vmem:[#allocation39_spill] sm:$0xff] }
 0x6f6   :  { %v10441_v0 = vpop.f32.mrf.mxu0  ;;  %8393 = vadd.xlane.f32.xlu1 %v8392_v9  ;;  %v8395_v46 = vsel %vm346_vm2, %v8315_v28, 0.0  ;;  %v8132_v35 = vmul.f32 %v8058_v21, %v18544_v58  ;;  %v8137_v54 = vmul.f32 %v17173_v25, %v18546_v62  ;;  %v7922_v61 = vadd.f32 %v7890_v42, %v17151_v16  ;;  %v18548_v28 = vld [vmem:[#allocation72_spill] sm:$0xff]  ;;  %v18550_v9 = vld [vmem:[#allocation82_spill] sm:$0xff] }
 0x6f7   :  { %v8257_v19 = vmul.f32 %v8193_v34, %v18541_v20  ;;  %v8191_v10 = vsub.f32 %v6981_v52, %v8127_v15  ;;  %v6992_v41 = vadd.f32 %v10441_v0, %v17103_v38  ;;  %v8316_v59 = vmul.f32 %v8252_v23, %v8188_v56  ;;  %v18551_v15 = vld [vmem:[#allocation11_spill] sm:$0xff] }
 0x6f8   :  { %v6983_v8 = vpop.f32.mrf.mxu0  ;;  %8396 = vadd.xlane.f32.xlu0 %v8395_v46  ;;  %v8404_v30 = vsel %vm346_vm2, %v8318_v11, 0.0  ;;  %v8131_v47 = vmul.f32 %v8058_v21, %v18548_v28  ;;  %v8136_v0 = vmul.f32 %v17173_v25, %v18550_v9  ;;  %v7954_v7 = vmul.f32 0.5, %v7922_v61  ;;  %v18555_v28 = vld [vmem:[#allocation68_spill] sm:$0xff] }
 0x6f9   :  { %v6984_v13 = vadd.f32 %v17103_v38, %v6983_v8  ;;  %v8255_v14 = vmul.f32 %v8191_v10, %v18541_v20  ;;  %v8194_v50 = vsub.f32 %v6992_v41, %v8130_v45  ;;  %v8398_v43 = vsel %vm346_vm2, %v8316_v59, 0.0  ;;  %v18556_v9 = vld [vmem:[#allocation40_spill] sm:$0xff] }
 0x6fa   :  { %v10444_v60 = vpop.f32.mrf.mxu0  ;;  %8387 = vadd.xlane.f32.xlu1 %v8386_v44  ;;  %v8321_v57 = vmul.f32 %v8257_v19, %v8193_v34  ;;  %v18549_v34 = vld [vmem:[#allocation15_spill] sm:$0xff] }
 0x6fb   :  { %v8192_v5 = vsub.f32 %v6984_v13, %v8128_v17  ;;  %v7005_v55 = vadd.f32 %v10444_v60, %v17103_v38  ;;  %v8258_v29 = vmul.f32 %v8194_v50, %v18541_v20  ;;  %v8319_v27 = vmul.f32 %v8255_v14, %v8191_v10 }
 0x6fc   :  { %v6996_v37 = vpop.f32.mrf.mxu0  ;;  %8405 = vadd.xlane.f32.xlu0 %v8404_v30  ;;  %v8413_v1 = vsel %vm346_vm2, %v8321_v57, 0.0  ;;  %v8138_v52 = vmul.f32 %v17173_v25, %v18549_v34  ;;  %v7953_v13 = vmul.f32 0.5, %v7921_v63 }
 0x6fd   :  { %v8256_v40 = vmul.f32 %v8192_v5, %v18541_v20  ;;  %v8197_v49 = vsub.f32 %v7005_v55, %v8133_v36  ;;  %v6997_v3 = vadd.f32 %v17103_v38, %v6996_v37  ;;  %v8407_v33 = vsel %vm346_vm2, %v8319_v27, 0.0 }
 0x6fe   :  { %v10445_v32 = vpop.f32.mrf.mxu0  ;;  %8399 = vadd.xlane.f32.xlu1 %v8398_v43  ;;  %v8322_v6 = vmul.f32 %v8258_v29, %v8194_v50 }
 0x6ff   :  { %v8261_v16 = vmul.f32 %v8197_v49, %v18547_v53  ;;  %v8195_v42 = vsub.f32 %v6997_v3, %v8131_v47  ;;  %v7008_v44 = vadd.f32 %v10445_v32, %v17103_v38  ;;  %v8320_v19 = vmul.f32 %v8256_v40, %v8192_v5 }
 0x700   :  { %v6999_v18 = vpop.f32.mrf.mxu0  ;;  %v8416_v59 = vsel %vm346_vm2, %v8322_v6, 0.0 }
 0x701   :  { %v7000_v31 = vadd.f32 %v17103_v38, %v6999_v18  ;;  %v8259_v50 = vmul.f32 %v8195_v42, %v18547_v53  ;;  %v8198_v43 = vsub.f32 %v7008_v44, %v8134_v51  ;;  %v8410_v24 = vsel %vm346_vm2, %v8320_v19, 0.0 }
 0x702   :  { %v10448_v12 = vpop.f32.mrf.mxu0  ;;  %8414 = vadd.xlane.f32.xlu1 %v8413_v1  ;;  %v8325_v17 = vmul.f32 %v8261_v16, %v8197_v49  ;;  %v7970_v18 = vadd.f32 %v7954_v7, %v7953_v13  ;;  %v18557_v16 = vld [vmem:[#allocation117_spill] sm:$0xff] }
 0x703   :  { %v8196_v26 = vsub.f32 %v7000_v31, %v8132_v35  ;;  %v7021_v39 = vadd.f32 %v10448_v12, %v17103_v38  ;;  %v18553_v35 = vld [vmem:[#allocation77_spill] sm:$0xff]  ;;  %v17212_v31 = vpop.permute.xlu0 %8067  ;;  %v8262_v1 = vmul.f32 %v8198_v43, %v18547_v53  ;;  %v8323_v36 = vmul.f32 %v8259_v50, %v8195_v42 }
 0x704   :  { %v7012_v4 = vpop.f32.mrf.mxu0  ;;  %v8135_v29 = vmul.f32 %v17173_v25, %v18553_v35  ;;  %v8425_v48 = vsel %vm346_vm2, %v8325_v17, 0.0  ;;  %v18554_v25 = vld [vmem:[#allocation28_spill] sm:$0xff]  ;;  %v8141_v47 = vmul.f32 %v17212_v31, %v18555_v28  ;;  %v8142_v42 = vmul.f32 %v17212_v31, %v18557_v16  ;;  %v18563_v28 = vld [vmem:[#allocation59_spill] sm:$0xff] }
 0x705   :  { %v8260_v2 = vmul.f32 %v8196_v26, %v18547_v53  ;;  %v8201_v56 = vsub.f32 %v7021_v39, %v8137_v54  ;;  %v7013_v32 = vadd.f32 %v17103_v38, %v7012_v4  ;;  %v7986_v54 = vmul.f32 0.5, %v7970_v18 }
 0x706   :  { %v10449_v23 = vpop.f32.mrf.mxu0  ;;  %8408 = vadd.xlane.f32.xlu1 %v8407_v33  ;;  %v8139_v49 = vmul.f32 %v17212_v31, %v18554_v25  ;;  %v8326_v53 = vmul.f32 %v8262_v1, %v8198_v43  ;;  %v8419_v33 = vsel %vm346_vm2, %v8323_v36, 0.0 }
 0x707   :  { %v8265_v46 = vmul.f32 %v8201_v56, %v18551_v15  ;;  %v7024_v11 = vadd.f32 %v10449_v23, %v17103_v38  ;;  %v8324_v8 = vmul.f32 %v8260_v2, %v8196_v26  ;;  %v8199_v12 = vsub.f32 %v7013_v32, %v8135_v29  ;;  %v8073_v44 = vpop.permute.xlu0 %8072  ;;  %v18561_v29 = vld [vmem:[#allocation108_spill] sm:$0xff] }
 0x708   :  { %v7015_v20 = vpop.f32.mrf.mxu0  ;;  %v8002_v61 = vmul.f32 0.26666668, %v7986_v54  ;;  %v8145_v51 = vmul.f32 %v8073_v44, %v18558_v22  ;;  %v8146_v1 = vmul.f32 %v8073_v44, %v18561_v29  ;;  %v18562_v54 = vld [vmem:[#allocation56_spill] sm:$0xff] }
 0x709   :  { %v8202_v10 = vsub.f32 %v7024_v11, %v8138_v52  ;;  %v7016_v41 = vadd.f32 %v17103_v38, %v7015_v20  ;;  %v8422_v60 = vsel %vm346_vm2, %v8324_v8, 0.0  ;;  %v8329_v30 = vmul.f32 %v8265_v46, %v8201_v56 }
 0x70a   :  { %v10452_v45 = vpop.f32.mrf.mxu0  ;;  %8417 = vadd.xlane.f32.xlu1 %v8416_v59  ;;  %8423 = vadd.xlane.f32.xlu0 %v8422_v60  ;;  %v8263_v2 = vmul.f32 %v8199_v12, %v18551_v15  ;;  %v8018_v11 = vadd.f32 1e-06, %v8002_v61 }
 0x70b   :  { %v8266_v37 = vmul.f32 %v8202_v10, %v18551_v15  ;;  %v8200_v14 = vsub.f32 %v7016_v41, %v8136_v0  ;;  %v8437_v21 = vsel %vm346_vm2, %v8329_v30, 0.0  ;;  %v7037_v3 = vadd.f32 %v10452_v45, %v17103_v38 }
 0x70c   :  { %v7028_v57 = vpop.f32.mrf.mxu0  ;;  %v8327_v46 = vmul.f32 %v8263_v2, %v8199_v12  ;;  %10575 = vrsqrt.f32 %v8018_v11  ;;  %v18564_v11 = vld [vmem:[#allocation97_spill] sm:$0xff] }
 0x70d   :  { %v8264_v5 = vmul.f32 %v8200_v14, %v18551_v15  ;;  %v8330_v55 = vmul.f32 %v8266_v37, %v8202_v10  ;;  %v7029_v26 = vadd.f32 %v17103_v38, %v7028_v57  ;;  %v8205_v34 = vsub.f32 %v7037_v3, %v8141_v47  ;;  %v18559_v57 = vld [vmem:[#allocation52_spill] sm:$0xff]  ;;  %v8078_v3 = vpop.permute.xlu0 %8077 }
 0x70e   :  { %v10453_v58 = vpop.f32.mrf.mxu0  ;;  %8411 = vadd.xlane.f32.xlu1 %v8410_v24  ;;  %8438 = vadd.xlane.f32.xlu0 %v8437_v21  ;;  %v8428_v15 = vsel %vm346_vm2, %v8326_v53, 0.0  ;;  %v8431_v59 = vsel %vm346_vm2, %v8327_v46, 0.0  ;;  %v8143_v24 = vmul.f32 %v8073_v44, %v18559_v57  ;;  %v8147_v47 = vmul.f32 %v8078_v3, %v18563_v28 }
 0x70f   :  { %v8440_v39 = vsel %vm346_vm2, %v8330_v55, 0.0  ;;  %v8328_v62 = vmul.f32 %v8264_v5, %v8200_v14  ;;  %v8203_v56 = vsub.f32 %v7029_v26, %v8139_v49  ;;  %v7040_v63 = vadd.f32 %v10453_v58, %v17103_v38  ;;  %v18560_v5 = vld [vmem:[#allocation12_spill] sm:$0xff] }
 0x710   :  { %v17215_v27 = vpop.f32.mrf.mxu0  ;;  %v8269_v20 = vmul.f32 %v8205_v34, %v18556_v9  ;;  %v8148_v16 = vmul.f32 %v8078_v3, %v18564_v11 }
 0x711   :  { %v8434_v6 = vsel %vm346_vm2, %v8328_v62, 0.0  ;;  %v8267_v0 = vmul.f32 %v8203_v56, %v18556_v9  ;;  %v8206_v10 = vsub.f32 %v7040_v63, %v8142_v42 }
 0x712   :  { %v10456_v40 = vpop.f32.mrf.mxu0  ;;  %8426 = vadd.xlane.f32.xlu1 %v8425_v48  ;;  %8441 = vadd.xlane.f32.xlu0 %v8440_v39  ;;  %v8333_v30 = vmul.f32 %v8269_v20, %v8205_v34  ;;  %v18565_v20 = vld [vmem:[#allocation41_spill] sm:$0xff] }
 0x713   :  { %v7053_v41 = vadd.f32 %v10456_v40, %v17103_v38  ;;  %v8331_v60 = vmul.f32 %v8267_v0, %v8203_v56  ;;  %v8270_v13 = vmul.f32 %v8206_v10, %v18556_v9  ;;  %v8144_v40 = vmul.f32 %v8073_v44, %v18562_v54 }
 0x714   :  { %v7044_v4 = vpop.f32.mrf.mxu0  ;;  %v8449_v32 = vsel %vm346_vm2, %v8333_v30, 0.0  ;;  %v7032_v30 = vadd.f32 %v17103_v38, %v17215_v27 }
 0x715   :  { %v8209_v37 = vsub.f32 %v7053_v41, %v8145_v51  ;;  %v7045_v14 = vadd.f32 %v17103_v38, %v7044_v4  ;;  %v8443_v50 = vsel %vm346_vm2, %v8331_v60, 0.0  ;;  %v8334_v58 = vmul.f32 %v8270_v13, %v8206_v10  ;;  %v18566_v60 = vld [vmem:[#allocation79_spill] sm:$0xff] }
 0x716   :  { %v10457_v23 = vpop.f32.mrf.mxu0  ;;  %8420 = vadd.xlane.f32.xlu1 %v8419_v33  ;;  %8435 = vadd.xlane.f32.xlu0 %v8434_v6  ;;  %v8150_v22 = vmul.f32 %v8078_v3, %v18566_v60 }
 0x717   :  { %v8273_v21 = vmul.f32 %v8209_v37, %v18560_v5  ;;  %v8207_v55 = vsub.f32 %v7045_v14, %v8143_v24  ;;  %v7056_v18 = vadd.f32 %v10457_v23, %v17103_v38  ;;  %v8452_v39 = vsel %vm346_vm2, %v8334_v58, 0.0  ;;  %v18567_v24 = vld [vmem:[#allocation63_spill] sm:$0xff] }
 0x718   :  { %v7047_v52 = vpop.f32.mrf.mxu0 }
 0x719   :  { %v7048_v48 = vadd.f32 %v17103_v38, %v7047_v52  ;;  %v8271_v12 = vmul.f32 %v8207_v55, %v18560_v5  ;;  %v8210_v26 = vsub.f32 %v7056_v18, %v8146_v1  ;;  %v8337_v62 = vmul.f32 %v8273_v21, %v8209_v37  ;;  %v10576_v49 = vpop.eup %10575  ;;  %v18568_v21 = vld [vmem:[#allocation115_spill] sm:$0xff] }
 0x71a   :  { %v17231_v8 = vpop.f32.mrf.mxu0  ;;  %8429 = vadd.xlane.f32.xlu1 %v8428_v15 }
 0x71b   :  { %v8208_v4 = vsub.f32 %v7048_v48, %v8144_v40  ;;  %v8274_v2 = vmul.f32 %v8210_v26, %v18560_v5  ;;  %v8461_v33 = vsel %vm346_vm2, %v8337_v62, 0.0  ;;  %v8335_v6 = vmul.f32 %v8271_v12, %v8207_v55  ;;  %v8088_v62 = vpop.permute.xlu0 %8087  ;;  %v18570_v40 = vld [vmem:[#allocation102_spill] sm:$0xff] }
 0x71c   :  { %v7060_v19 = vpop.f32.mrf.mxu0  ;;  %v7069_v12 = vadd.f32 %v17231_v8, %v17103_v38 }
 0x71d   :  { %v7061_v56 = vadd.f32 %v17103_v38, %v7060_v19  ;;  %v8272_v23 = vmul.f32 %v8208_v4, %v18560_v5  ;;  %v8455_v63 = vsel %vm346_vm2, %v8335_v6, 0.0  ;;  %v8338_v15 = vmul.f32 %v8274_v2, %v8210_v26  ;;  %v18569_v26 = vld [vmem:[#allocation118_spill] sm:$0xff] }
 0x71e   :  { %v10461_v7 = vpop.f32.mrf.mxu0  ;;  %8432 = vadd.xlane.f32.xlu1 %v8431_v59 }
 0x71f   :  { %v8211_v52 = vsub.f32 %v7061_v56, %v8147_v47  ;;  %v7072_v42 = vadd.f32 %v10461_v7, %v17103_v38  ;;  %v8464_v41 = vsel %vm346_vm2, %v8338_v15, 0.0  ;;  %v8336_v59 = vmul.f32 %v8272_v23, %v8208_v4  ;;  %v18571_v56 = vld [vmem:[#allocation16_spill] sm:$0xff] }
 0x720   :  { %v7063_v45 = vpop.f32.mrf.mxu0 }
 0x721   :  { %v7064_v0 = vadd.f32 %v17103_v38, %v7063_v45  ;;  %v8275_v19 = vmul.f32 %v8211_v52, %v18565_v20  ;;  %v8083_v45 = vpop.permute.xlu1 %8082  ;;  %v8214_v13 = vsub.f32 %v7072_v42, %v8150_v22 }
 0x722   :  { %v17242_v43 = vpop.f32.mrf.mxu0  ;;  %8444 = vadd.xlane.f32.xlu1 %v8443_v50  ;;  %v8458_v50 = vsel %vm346_vm2, %v8336_v59, 0.0  ;;  %v8152_v55 = vmul.f32 %v8083_v45, %v18568_v21 }
 0x723   :  { %v8212_v10 = vsub.f32 %v7064_v0, %v8148_v16  ;;  %v8339_v57 = vmul.f32 %v8275_v19, %v8211_v52  ;;  %v8278_v27 = vmul.f32 %v8214_v13, %v18565_v20  ;;  %v18572_v52 = vld [vmem:[#allocation17_spill] sm:$0xff]  ;;  %v18573_v0 = vld [vmem:[#allocation114_spill] sm:$0xff] }
 0x724   :  { %v17245_v17 = vpop.f32.mrf.mxu0 }
 0x725   :  { %v8276_v7 = vmul.f32 %v8212_v10, %v18565_v20  ;;  %v8467_v48 = vsel %vm346_vm2, %v8339_v57, 0.0  ;;  %v8342_v2 = vmul.f32 %v8278_v27, %v8214_v13  ;;  %v7077_v47 = vadd.f32 %v17103_v38, %v17245_v17  ;;  %v17317_v22 = vpop.permute.xlu1 %8092 }
 0x726   :  { %v10465_v35 = vpop.f32.mrf.mxu0  ;;  %8450 = vadd.xlane.f32.xlu1 %v8449_v32  ;;  %v8140_v32 = vmul.f32 %v17212_v31, %v18567_v24  ;;  %v7085_v17 = vadd.f32 %v17242_v43, %v17103_v38 }
 0x727   :  { %v7088_v29 = vadd.f32 %v10465_v35, %v17103_v38 }
 0x728   :  { %v7079_v36 = vpop.f32.mrf.mxu0  ;;  %v8204_v18 = vsub.f32 %v7032_v30, %v8140_v32 }
 0x729   :  { %v7080_v14 = vadd.f32 %v17103_v38, %v7079_v36  ;;  %v8340_v36 = vmul.f32 %v8276_v7, %v8212_v10 }
 0x72a   :  { %v17255_v25 = vpop.f32.mrf.mxu0  ;;  %8453 = vadd.xlane.f32.xlu1 %v8452_v39  ;;  %v8154_v39 = vmul.f32 %v8083_v45, %v18569_v26  ;;  %v8268_v54 = vmul.f32 %v8204_v18, %v18556_v9  ;;  %v8156_v9 = vmul.f32 %v8088_v62, %v18572_v52 }
 0x72b   :  { %v8216_v1 = vsub.f32 %v7080_v14, %v8152_v55  ;;  %v8470_v28 = vsel %vm346_vm2, %v8340_v36, 0.0  ;;  %v18576_v14 = vld [vmem:[#allocation42_spill] sm:$0xff] }
 0x72c   :  { %v17257_v53 = vpop.f32.mrf.mxu0  ;;  %8112 = vperm.xlu0 %10500, %v10576_v49   ;;  %v8149_v49 = vmul.f32 %v8078_v3, %v18570_v40  ;;  %v8218_v35 = vsub.f32 %v7088_v29, %v8154_v39  ;;  %v8151_v3 = vmul.f32 %v8083_v45, %v18573_v0  ;;  %v8332_v15 = vmul.f32 %v8268_v54, %v8204_v18  ;;  %v18577_v18 = vld [vmem:[#allocation70_spill] sm:$0xff]  ;;  %v18578_v29 = vld [vmem:[#allocation103_spill] sm:$0xff] }
 0x72d   :  { %v7093_v21 = vadd.f32 %v17103_v38, %v17257_v53  ;;  %v8160_v27 = vmul.f32 %v17317_v22, %v18577_v18 }
 0x72e   :  { %v10469_v61 = vpop.f32.mrf.mxu0  ;;  %8462 = vadd.xlane.f32.xlu1 %v8461_v33  ;;  %v8280_v33 = vmul.f32 %v8216_v1, %v18571_v56  ;;  %v8213_v8 = vsub.f32 %v7069_v12, %v8149_v49  ;;  %v8282_v11 = vmul.f32 %v8218_v35, %v18571_v56  ;;  %v8215_v10 = vsub.f32 %v7077_v47, %v8151_v3  ;;  %v18581_v47 = vld [vmem:[#allocation19_spill] sm:$0xff] }
 0x72f   :  { %v8446_v7 = vsel %vm346_vm2, %v8332_v15, 0.0 }
 0x730   :  { %v7095_v34 = vpop.f32.mrf.mxu0  ;;  %v8344_v42 = vmul.f32 %v8280_v33, %v8216_v1  ;;  %v8277_v19 = vmul.f32 %v8213_v8, %v18565_v20  ;;  %v8346_v43 = vmul.f32 %v8282_v11, %v8218_v35  ;;  %v8279_v32 = vmul.f32 %v8215_v10, %v18571_v56  ;;  %v18580_v33 = vld [vmem:[#allocation25_spill] sm:$0xff] }
 0x731   :  { %v7096_v6 = vadd.f32 %v17103_v38, %v7095_v34  ;;  %v8476_v34 = vsel %vm346_vm2, %v8342_v2, 0.0  ;;  %v8157_v1 = vmul.f32 %v8088_v62, %v18578_v29 }
 0x732   :  { %v17266_v46 = vpop.f32.mrf.mxu0  ;;  %8456 = vadd.xlane.f32.xlu1 %v8455_v63  ;;  %v7104_v63 = vadd.f32 %v10469_v61, %v17103_v38  ;;  %v18575_v61 = vld [vmem:[#allocation116_spill] sm:$0xff]  ;;  %v8482_v57 = vsel %vm346_vm2, %v8344_v42, 0.0  ;;  %v8488_v39 = vsel %vm346_vm2, %v8346_v43, 0.0  ;;  %v8343_v35 = vmul.f32 %v8279_v32, %v8215_v10  ;;  %v18584_v10 = vld [vmem:[#allocation69_spill] sm:$0xff] }
 0x733   :  { %v8220_v16 = vsub.f32 %v7096_v6, %v8156_v9  ;;  %v8153_v30 = vmul.f32 %v8083_v45, %v18575_v61  ;;  %v8341_v45 = vmul.f32 %v8277_v19, %v8213_v8  ;;  %v8098_v6 = vpop.permute.xlu0 %8097  ;;  %v18583_v19 = vld [vmem:[#allocation112_spill] sm:$0xff] }
 0x734   :  { %v17270_v44 = vpop.f32.mrf.mxu0  ;;  %v8479_v15 = vsel %vm346_vm2, %v8343_v35, 0.0 }
 0x735   :  { %v8217_v24 = vsub.f32 %v7085_v17, %v8153_v30  ;;  %v7109_v3 = vadd.f32 %v17103_v38, %v17270_v44 }
 0x736   :  { %v17275_v51 = vpop.f32.mrf.mxu0  ;;  %8465 = vadd.xlane.f32.xlu1 %v8464_v41  ;;  %v18574_v41 = vld [vmem:[#allocation67_spill] sm:$0xff] }
 0x737   :  { %v8158_v59 = vmul.f32 %v8088_v62, %v18574_v41  ;;  %v7120_v53 = vadd.f32 %v17275_v51, %v17103_v38  ;;  %v8281_v40 = vmul.f32 %v8217_v24, %v18571_v56  ;;  %v8166_v41 = vmul.f32 %v8098_v6, %v18584_v10  ;;  %v18593_v10 = vld [vmem:[#allocation87_spill] sm:$0xff] }
 0x738   :  { %v7111_v37 = vpop.f32.mrf.mxu0 }
 0x739   :  { %v8222_v13 = vsub.f32 %v7104_v63, %v8158_v59  ;;  %v7112_v20 = vadd.f32 %v17103_v38, %v7111_v37  ;;  %v7101_v37 = vadd.f32 %v17255_v25, %v17103_v38  ;;  %v8473_v25 = vsel %vm346_vm2, %v8341_v45, 0.0 }
 0x73a   :  { %v17284_v5 = vpop.f32.mrf.mxu0  ;;  %8459 = vadd.xlane.f32.xlu1 %v8458_v50  ;;  %v8284_v50 = vmul.f32 %v8220_v16, %v18576_v14  ;;  %v8345_v11 = vmul.f32 %v8281_v40, %v8217_v24 }
 0x73b   :  { %v8286_v12 = vmul.f32 %v8222_v13, %v18576_v14  ;;  %v8224_v26 = vsub.f32 %v7112_v20, %v8160_v27 }
 0x73c   :  { %v17288_v58 = vpop.f32.mrf.mxu0  ;;  %v8348_v54 = vmul.f32 %v8284_v50, %v8220_v16  ;;  %v18582_v16 = vld [vmem:[#allocation64_spill] sm:$0xff] }
 0x73d   :  { %v8350_v8 = vmul.f32 %v8286_v12, %v8222_v13  ;;  %v8288_v52 = vmul.f32 %v8224_v26, %v18581_v47  ;;  %v7117_v13 = vadd.f32 %v17266_v46, %v17103_v38 }
 0x73e   :  { %v17294_v31 = vpop.f32.mrf.mxu0  ;;  %8468 = vadd.xlane.f32.xlu1 %v8467_v48  ;;  %v18579_v48 = vld [vmem:[#allocation99_spill] sm:$0xff]  ;;  %v8494_v56 = vsel %vm346_vm2, %v8348_v54, 0.0  ;;  %v18589_v54 = vld [vmem:[#allocation76_spill] sm:$0xff] }
 0x73f   :  { %v8155_v36 = vmul.f32 %v8088_v62, %v18579_v48  ;;  %v8162_v62 = vmul.f32 %v17317_v22, %v18580_v33  ;;  %v7136_v17 = vadd.f32 %v17294_v31, %v17103_v38  ;;  %v8500_v61 = vsel %vm346_vm2, %v8350_v8, 0.0  ;;  %v8103_v31 = vpop.permute.xlu0 %8102 }
 0x740   :  { %v7127_v4 = vpop.f32.mrf.mxu0  ;;  %v8352_v30 = vmul.f32 %v8288_v52, %v8224_v26  ;;  %v18588_v26 = vld [vmem:[#allocation65_spill] sm:$0xff]  ;;  %v8163_v40 = vmul.f32 %v8098_v6, %v18589_v54 }
 0x741   :  { %v8219_v49 = vsub.f32 %v7093_v21, %v8155_v36  ;;  %v8226_v51 = vsub.f32 %v7120_v53, %v8162_v62  ;;  %v7128_v9 = vadd.f32 %v17103_v38, %v7127_v4  ;;  %v8159_v4 = vmul.f32 %v17317_v22, %v18583_v19  ;;  %v18586_v21 = vld [vmem:[#allocation26_spill] sm:$0xff] }
 0x742   :  { %v17304_v23 = vpop.f32.mrf.mxu0  ;;  %8471 = vadd.xlane.f32.xlu1 %v8470_v28  ;;  %v8221_v28 = vsub.f32 %v7101_v37, %v8157_v1  ;;  %v8230_v24 = vsub.f32 %v7136_v17, %v8166_v41  ;;  %v8506_v46 = vsel %vm346_vm2, %v8352_v30, 0.0  ;;  %v7125_v1 = vadd.f32 %v17103_v38, %v17288_v58  ;;  %v18592_v19 = vld [vmem:[#allocation126_spill] sm:$0xff] }
 0x743   :  { %v8283_v0 = vmul.f32 %v8219_v49, %v18576_v14  ;;  %v8290_v44 = vmul.f32 %v8226_v51, %v18581_v47  ;;  %v7133_v53 = vadd.f32 %v17284_v5, %v17103_v38  ;;  %v8167_v41 = vmul.f32 %v8103_v31, %v18593_v10 }
 0x744   :  { %v17315_v60 = vpop.f32.mrf.mxu0  ;;  %v8285_v42 = vmul.f32 %v8221_v28, %v18576_v14  ;;  %v8485_v14 = vsel %vm346_vm2, %v8345_v11, 0.0  ;;  %v8227_v62 = vsub.f32 %v7125_v1, %v8163_v40 }
 0x745   :  { %v8347_v20 = vmul.f32 %v8283_v0, %v8219_v49  ;;  %v8354_v27 = vmul.f32 %v8290_v44, %v8226_v51  ;;  %v8294_v49 = vmul.f32 %v8230_v24, %v18586_v21  ;;  %v18590_v51 = vld [vmem:[#allocation104_spill] sm:$0xff] }
 0x746   :  { %8477 = vadd.xlane.f32.xlu1 %v8476_v34  ;;  %v17327_v55 = vpop.f32.mrf.mxu0  ;;  %v8164_v34 = vmul.f32 %v8098_v6, %v18582_v16  ;;  %v8349_v32 = vmul.f32 %v8285_v42, %v8221_v28  ;;  %v8170_v52 = vmul.f32 %v8103_v31, %v18590_v51  ;;  %v7141_v16 = vadd.f32 %v17103_v38, %v17315_v60 }
 0x747   :  { %v8491_v36 = vsel %vm346_vm2, %v8347_v20, 0.0  ;;  %v7149_v60 = vadd.f32 %v17304_v23, %v17103_v38 }
 0x748   :  { %v7143_v2 = vpop.f32.mrf.mxu0  ;;  %v8228_v59 = vsub.f32 %v7128_v9, %v8164_v34  ;;  %v8497_v5 = vsel %vm346_vm2, %v8349_v32, 0.0 }
 0x749   :  { %v7144_v18 = vadd.f32 %v17103_v38, %v7143_v2  ;;  %v7152_v2 = vadd.f32 %v17327_v55, %v17103_v38  ;;  %v18591_v55 = vld [vmem:[#allocation20_spill] sm:$0xff] }
 0x74a   :  { %8483 = vadd.xlane.f32.xlu1 %v8482_v57  ;;  %v17349_v63 = vpop.f32.mrf.mxu0  ;;  %v18585_v57 = vld [vmem:[#allocation113_spill] sm:$0xff]  ;;  %v8292_v45 = vmul.f32 %v8228_v59, %v18586_v21 }
 0x74b   :  { %8447 = vadd.xlane.f32.xlu0 %v8446_v7  ;;  %v8223_v7 = vsub.f32 %v7109_v3, %v8159_v4  ;;  %v8161_v43 = vmul.f32 %v17317_v22, %v18585_v57  ;;  %v18587_v22 = vld [vmem:[#allocation107_spill] sm:$0xff]  ;;  %v8234_v0 = vsub.f32 %v7152_v2, %v8170_v52  ;;  %v18594_v57 = vld [vmem:[#allocation136_spill] sm:$0xff]  ;;  %v7165_v40 = vadd.f32 %v17349_v63, %v17103_v38 }
 0x74c   :  { %v17363_v50 = vpop.f32.mrf.mxu0  ;;  %v8168_v12 = vmul.f32 %v8103_v31, %v18587_v22  ;;  %v8356_v35 = vmul.f32 %v8292_v45, %v8228_v59  ;;  %v18598_v2 = vld [vmem:[#allocation132_spill] sm:$0xff] }
 0x74d   :  { %v8225_v37 = vsub.f32 %v7117_v13, %v8161_v43  ;;  %v8287_v29 = vmul.f32 %v8223_v7, %v18581_v47  ;;  %v8298_v59 = vmul.f32 %v8234_v0, %v18591_v55  ;;  %v7157_v1 = vadd.f32 %v17103_v38, %v17363_v50 }
 0x74e   :  { %8489 = vadd.xlane.f32.xlu1 %v8488_v39  ;;  %v10485_v48 = vpop.f32.mrf.mxu0  ;;  %v8165_v39 = vmul.f32 %v8098_v6, %v18588_v26  ;;  %v8232_v58 = vsub.f32 %v7144_v18, %v8168_v12  ;;  %v8108_v6 = vpop.permute.xlu1 %8107  ;;  %v8518_v11 = vsel %vm346_vm2, %v8356_v35, 0.0  ;;  %v18596_v18 = vld [vmem:[#allocation44_spill] sm:$0xff] }
 0x74f   :  { %8474 = vadd.xlane.f32.xlu0 %v8473_v25  ;;  %v8512_v25 = vsel %vm346_vm2, %v8354_v27, 0.0  ;;  %v8289_v33 = vmul.f32 %v8225_v37, %v18581_v47  ;;  %v8351_v8 = vmul.f32 %v8287_v29, %v8223_v7  ;;  %v8291_v47 = vmul.f32 %v8227_v62, %v18586_v21 }
 0x750   :  { %v7159_v28 = vpop.f32.mrf.mxu0  ;;  %v8229_v9 = vsub.f32 %v7133_v53, %v8165_v39  ;;  %v8296_v3 = vmul.f32 %v8232_v58, %v18591_v55  ;;  %v8172_v4 = vmul.f32 %v8108_v6, %v18592_v19  ;;  %v8231_v7 = vsub.f32 %v7141_v16, %v8167_v41 }
 0x751   :  { %v8503_v34 = vsel %vm346_vm2, %v8351_v8, 0.0  ;;  %v8353_v42 = vmul.f32 %v8289_v33, %v8225_v37  ;;  %v8355_v20 = vmul.f32 %v8291_v47, %v8227_v62  ;;  %v8174_v43 = vmul.f32 %v8108_v6, %v18594_v57 }
 0x752   :  { %8495 = vadd.xlane.f32.xlu1 %v8494_v56  ;;  %v8358_v56 = vmul.f32 %v8294_v49, %v8230_v24  ;;  %v8293_v17 = vmul.f32 %v8229_v9, %v18586_v21  ;;  %v8360_v13 = vmul.f32 %v8296_v3, %v8232_v58  ;;  %v18595_v24 = vld [vmem:[#allocation119_spill] sm:$0xff]  ;;  %v8362_v37 = vmul.f32 %v8298_v59, %v8234_v0 }
 0x753   :  { %8480 = vadd.xlane.f32.xlu0 %v8479_v15  ;;  %v7160_v15 = vadd.f32 %v17103_v38, %v7159_v28  ;;  %v8169_v32 = vmul.f32 %v8103_v31, %v18595_v24  ;;  %v8295_v23 = vmul.f32 %v8231_v7, %v18591_v55  ;;  %v8173_v58 = vmul.f32 %v8108_v6, %v18598_v2 }
 0x754   :  { %v8524_v44 = vsel %vm346_vm2, %v8358_v56, 0.0  ;;  %v8357_v21 = vmul.f32 %v8293_v17, %v8229_v9  ;;  %v8530_v27 = vsel %vm346_vm2, %v8360_v13, 0.0  ;;  %v8536_v53 = vsel %vm346_vm2, %v8362_v37, 0.0 }
 0x755   :  { %v8236_v30 = vsub.f32 %v7160_v15, %v8172_v4  ;;  %v8233_v29 = vsub.f32 %v7149_v60, %v8169_v32  ;;  %v8359_v49 = vmul.f32 %v8295_v23, %v8231_v7  ;;  %v8237_v62 = vsub.f32 %v7165_v40, %v8173_v58 }
 0x756   :  { %8501 = vadd.xlane.f32.xlu1 %v8500_v61  ;;  %v7168_v61 = vadd.f32 %v10485_v48, %v17103_v38  ;;  %v8515_v48 = vsel %vm346_vm2, %v8355_v20, 0.0  ;;  %v8521_v26 = vsel %vm346_vm2, %v8357_v21, 0.0 }
 0x757   :  { %8486 = vadd.xlane.f32.xlu0 %v8485_v14  ;;  %v8509_v14 = vsel %vm346_vm2, %v8353_v42, 0.0  ;;  %v8297_v54 = vmul.f32 %v8233_v29, %v18591_v55  ;;  %v8301_v52 = vmul.f32 %v8237_v62, %v18596_v18 }
 0x758   :  { %v8238_v45 = vsub.f32 %v7168_v61, %v8174_v43 }
 0x759   :  { %v8361_v8 = vmul.f32 %v8297_v54, %v8233_v29  ;;  %v10645_v54 = vld [vmem:[%s17462_s15] ss:$0 sm:$0xff]  ;;  %s10671_s15 = smov [#allocation2]  }
 0x75a   :  { %8507 = vadd.xlane.f32.xlu1 %v8506_v46  ;;  %v8300_v46 = vmul.f32 %v8236_v30, %v18596_v18  ;;  %v8302_v31 = vmul.f32 %v8238_v45, %v18596_v18  ;;  %s8681_s0 = sshll.u32 %s10671_s15, 4  ;;  %s8682_s0 = int_to_ptr.vmem [resolvable:$true] %s8681_s0 }
 0x75b   :  { %8492 = vadd.xlane.f32.xlu0 %v8491_v36  ;;  %v18597_v36 = vld [vmem:[#allocation128_spill] sm:$0xff]  ;;  %s10646_s17 = scalar_lea.vmem %s8682_s0, 16  ;;  %s10650_s18 = scalar_lea.vmem %s8682_s0, 32 }
 0x75c   :  { %v8171_v22 = vmul.f32 %v8108_v6, %v18597_v36  ;;  %v8364_v39 = vmul.f32 %v8300_v46, %v8236_v30  ;;  %v8366_v33 = vmul.f32 %v8302_v31, %v8238_v45  ;;  %v8533_v6 = vsel %vm346_vm2, %v8361_v8, 0.0  ;;  %v10488_v45 = vpop.f32.mrf.mxu0  ;;  %p10647_p0 = scmp.ne.s32.totalorder %s8682_s0, %s10646_s17  ;;  %p10651_p1 = scmp.lt.s32.totalorder %s8682_s0, %s8682_s0 }
 0x75d   :  { %v7181_v40 = vadd.f32 %v10645_v54, %v10488_v45  ;;  %p10652_p2 = scmp.lt.s32.totalorder %s10650_s18, %s10646_s17 }
 0x75e   :  { %8513 = vadd.xlane.f32.xlu1 %v8512_v25  ;;  %v8235_v50 = vsub.f32 %v7157_v1, %v8171_v22  ;;  %v8542_v35 = vsel %vm346_vm2, %v8364_v39, 0.0  ;;  %v8548_v63 = vsel %vm346_vm2, %v8366_v33, 0.0  ;;  %v7172_v37 = vpop.f32.mrf.mxu0 }
 0x75f   :  { %8498 = vadd.xlane.f32.xlu0 %v8497_v5  ;;  %v8527_v5 = vsel %vm346_vm2, %v8359_v49, 0.0  ;;  %p10653_p3 = por %p10652_p2, %p10651_p1 }
 0x760   :  { %v8299_v28 = vmul.f32 %v8235_v50, %v18596_v18 }
 0x761   :  { %p10654_p4 = pnand %p10653_p3, %p10647_p0 }
 0x762   :  { %8519 = vadd.xlane.f32.xlu1 %v8518_v11  ;;  %v8363_v56 = vmul.f32 %v8299_v28, %v8235_v50  ;;  %v8365_v11 = vmul.f32 %v8301_v52, %v8237_v62  ;;  %v7173_v50 = vadd.f32 %v10645_v54, %v7172_v37  ;;  %v18600_v62 = vld [vmem:[#allocation60_spill] sm:$0xff] }
 0x763   :  { %8504 = vadd.xlane.f32.xlu0 %v8503_v34 }
 0x764   :  { %v8539_v15 = vsel %vm346_vm2, %v8363_v56, 0.0  ;;  %v8545_v16 = vsel %vm346_vm2, %v8365_v11, 0.0 }
 0x766   :  { %8525 = vadd.xlane.f32.xlu1 %v8524_v44 }
 0x767   :  { %8510 = vadd.xlane.f32.xlu0 %v8509_v14 }
 0x76a   :  { %8531 = vadd.xlane.f32.xlu1 %v8530_v27 }
 0x76b   :  { %8516 = vadd.xlane.f32.xlu0 %v8515_v48  ;;  %v10489_v48 = vpop.f32.mrf.mxu0 }
 0x76d   :  { %v8379_v12 = vpop.xlane.xlu0 %8378 }
 0x76e   :  { %8537 = vadd.xlane.f32.xlu1 %v8536_v53  ;;  %v7175_v53 = vpop.f32.mrf.mxu0 }
 0x76f   :  { %8522 = vadd.xlane.f32.xlu0 %v8521_v26  ;;  %v7176_v49 = vadd.f32 %v10645_v54, %v7175_v53 }
 0x771   :  { %v8373_v25 = vpop.xlane.xlu0 %8372 }
 0x772   :  { %8543 = vadd.xlane.f32.xlu1 %v8542_v35  ;;  %v18599_v35 = vld [vmem:[#allocation33_spill] sm:$0xff] }
 0x773   :  { %v8376_v51 = vpop.xlane.xlu1 %8375  ;;  %8528 = vadd.xlane.f32.xlu0 %v8527_v5  ;;  %v18601_v5 = vld [vmem:[#allocation24_spill] sm:$0xff] }
 0x774   :  { %v8563_v38 = vadd.f32 %v8376_v51, %v8373_v25  ;;  %v7184_v51 = vadd.f32 %v10645_v54, %v10489_v48 }
 0x775   :  { %v8382_v0 = vpop.xlane.xlu0 %8381 }
 0x776   :  { %v8564_v9 = vadd.f32 %v8563_v38, %v8379_v12  ;;  %8549 = vadd.xlane.f32.xlu1 %v8548_v63  ;;  %v18602_v38 = vld [vmem:[#allocation48_spill] sm:$0xff] }
 0x777   :  { %v8391_v55 = vpop.xlane.xlu1 %8390  ;;  %8534 = vadd.xlane.f32.xlu0 %v8533_v6 }
 0x778   :  { %v8565_v3 = vadd.f32 %v8564_v9, %v8382_v0 }
 0x77b   :  { %v8385_v47 = vpop.xlane.xlu1 %8384  ;;  %8540 = vadd.xlane.f32.xlu0 %v8539_v15  ;;  %v18603_v15 = vld [vmem:[#allocation23_spill] sm:$0xff] }
 0x77c   :  { %v8566_v42 = vadd.f32 %v8565_v3, %v8385_v47 }
 0x77d   :  { %v8403_v19 = vpop.xlane.xlu0 %8402 }
 0x77f   :  { %v8394_v34 = vpop.xlane.xlu1 %8393  ;;  %8546 = vadd.xlane.f32.xlu0 %v8545_v16 }
 0x781   :  { %v8397_v59 = vpop.xlane.xlu0 %8396 }
 0x783   :  { %v8388_v4 = vpop.xlane.xlu1 %8387 }
 0x784   :  { %v8567_v17 = vadd.f32 %v8566_v42, %v8388_v4 }
 0x785   :  { %v8406_v7 = vpop.xlane.xlu0 %8405 }
 0x786   :  { %v8568_v10 = vadd.f32 %v8567_v17, %v8391_v55 }
 0x787   :  { %v8400_v41 = vpop.xlane.xlu1 %8399 }
 0x788   :  { %v8569_v44 = vadd.f32 %v8568_v10, %v8394_v34 }
 0x78a   :  { %v8570_v61 = vadd.f32 %v8569_v44, %v8397_v59 }
 0x78b   :  { %v8415_v30 = vpop.xlane.xlu1 %8414 }
 0x78c   :  { %v8571_v13 = vadd.f32 %v8570_v61, %v8400_v41 }
 0x78e   :  { %v8572_v60 = vadd.f32 %v8571_v13, %v8403_v19 }
 0x78f   :  { %v8409_v14 = vpop.xlane.xlu1 %8408 }
 0x790   :  { %v8573_v20 = vadd.f32 %v8572_v60, %v8406_v7 }
 0x792   :  { %v8574_v24 = vadd.f32 %v8573_v20, %v8409_v14 }
 0x793   :  { %v8418_v57 = vpop.xlane.xlu1 %8417  ;;  %v8424_v43 = vpop.xlane.xlu0 %8423 }
 0x797   :  { %v8412_v32 = vpop.xlane.xlu1 %8411  ;;  %v8439_v21 = vpop.xlane.xlu0 %8438 }
 0x798   :  { %v8575_v18 = vadd.f32 %v8574_v24, %v8412_v32 }
 0x79a   :  { %v8576_v46 = vadd.f32 %v8575_v18, %v8415_v30 }
 0x79b   :  { %v8427_v27 = vpop.xlane.xlu1 %8426  ;;  %v8442_v29 = vpop.xlane.xlu0 %8441 }
 0x79c   :  { %v8577_v23 = vadd.f32 %v8576_v46, %v8418_v57 }
 0x79f   :  { %v8421_v1 = vpop.xlane.xlu1 %8420  ;;  %v8436_v31 = vpop.xlane.xlu0 %8435 }
 0x7a0   :  { %v8578_v36 = vadd.f32 %v8577_v23, %v8421_v1 }
 0x7a2   :  { %v8579_v22 = vadd.f32 %v8578_v36, %v8424_v43 }
 0x7a3   :  { %v8430_v12 = vpop.xlane.xlu1 %8429 }
 0x7a4   :  { %v8580_v26 = vadd.f32 %v8579_v22, %v8427_v27 }
 0x7a6   :  { %v8581_v39 = vadd.f32 %v8580_v26, %v8430_v12 }
 0x7a7   :  { %v8433_v2 = vpop.xlane.xlu1 %8432  ;;  %v8113_v58 = vpop.permute.xlu0 %8112 }
 0x7a8   :  { %v8582_v25 = vadd.f32 %v8581_v39, %v8433_v2  ;;  %v8175_v33 = vmul.f32 %v8113_v58, %v18599_v35  ;;  %v8176_v28 = vmul.f32 %v8113_v58, %v18600_v62  ;;  %v8177_v8 = vmul.f32 %v8113_v58, %v18601_v5 }
 0x7a9   :  { %v8178_v63 = vmul.f32 %v8113_v58, %v18602_v38 }
 0x7aa   :  { %v8583_v52 = vadd.f32 %v8582_v25, %v8436_v31  ;;  %v8240_v9 = vsub.f32 %v7176_v49, %v8176_v28  ;;  %v8239_v6 = vsub.f32 %v7173_v50, %v8175_v33  ;;  %v8241_v56 = vsub.f32 %v7181_v40, %v8177_v8 }
 0x7ab   :  { %v8445_v0 = vpop.xlane.xlu1 %8444  ;;  %v8242_v55 = vsub.f32 %v7184_v51, %v8178_v63 }
 0x7ac   :  { %v8584_v3 = vadd.f32 %v8583_v52, %v8439_v21  ;;  %v8304_v11 = vmul.f32 %v8240_v9, %v18603_v15  ;;  %v8303_v47 = vmul.f32 %v8239_v6, %v18603_v15  ;;  %v8305_v16 = vmul.f32 %v8241_v56, %v18603_v15 }
 0x7ad   :  { %v8306_v34 = vmul.f32 %v8242_v55, %v18603_v15 }
 0x7ae   :  { %v8585_v42 = vadd.f32 %v8584_v3, %v8442_v29  ;;  %v8368_v19 = vmul.f32 %v8304_v11, %v8240_v9  ;;  %v8367_v4 = vmul.f32 %v8303_v47, %v8239_v6  ;;  %v8369_v59 = vmul.f32 %v8305_v16, %v8241_v56 }
 0x7af   :  { %v8451_v17 = vpop.xlane.xlu1 %8450  ;;  %v8370_v44 = vmul.f32 %v8306_v34, %v8242_v55 }
 0x7b0   :  { %v8554_v10 = vsel %vm346_vm2, %v8368_v19, 0.0  ;;  %v8551_v41 = vsel %vm346_vm2, %v8367_v4, 0.0  ;;  %v8557_v30 = vsel %vm346_vm2, %v8369_v59, 0.0  ;;  %v8586_v57 = vadd.f32 %v8585_v42, %v8445_v0  ;;  %v18604_v4 = vld [vmem:[#allocation5_spill] sm:$0xff] }
 0x7b1   :  { %8555 = vadd.xlane.f32.xlu1 %v8554_v10  ;;  %8552 = vadd.xlane.f32.xlu0 %v8551_v41  ;;  %v8560_v61 = vsel %vm346_vm2, %v8370_v44, 0.0 }
 0x7b3   :  { %v8454_v13 = vpop.xlane.xlu1 %8453 }
 0x7b5   :  { %8561 = vadd.xlane.f32.xlu1 %v8560_v61  ;;  %8558 = vadd.xlane.f32.xlu0 %v8557_v30 }
 0x7b7   :  { %v8463_v60 = vpop.xlane.xlu1 %8462 }
 0x7bb   :  { %v8457_v7 = vpop.xlane.xlu1 %8456 }
 0x7bf   :  { %v8466_v14 = vpop.xlane.xlu1 %8465 }
 0x7c3   :  { %v8460_v20 = vpop.xlane.xlu1 %8459 }
 0x7c7   :  { %v8469_v43 = vpop.xlane.xlu1 %8468 }
 0x7cb   :  { %v8472_v18 = vpop.xlane.xlu1 %8471 }
 0x7cf   :  { %v8478_v23 = vpop.xlane.xlu1 %8477 }
 0x7d3   :  { %v8484_v31 = vpop.xlane.xlu1 %8483 }
 0x7d4   :  { %v8448_v24 = vpop.xlane.xlu0 %8447 }
 0x7d5   :  { %v8587_v32 = vadd.f32 %v8586_v57, %v8448_v24 }
 0x7d7   :  { %v8588_v21 = vadd.f32 %v8587_v32, %v8451_v17  ;;  %v8490_v54 = vpop.xlane.xlu1 %8489  ;;  %v8663_v17 = vrot.slane %v18604_v4, 4 }
 0x7d8   :  { %v8475_v37 = vpop.xlane.xlu0 %8474 }
 0x7d9   :  { %v8589_v45 = vadd.f32 %v8588_v21, %v8454_v13  ;;  %v8664_v44 = vadd.f32 %v8663_v17, %v18604_v4 }
 0x7db   :  { %v8590_v46 = vadd.f32 %v8589_v45, %v8457_v7  ;;  %v8496_v58 = vpop.xlane.xlu1 %8495  ;;  %v8665_v30 = vrot.slane %v8664_v44, 2 }
 0x7dc   :  { %v8481_v36 = vpop.xlane.xlu0 %8480 }
 0x7dd   :  { %v8591_v27 = vadd.f32 %v8590_v46, %v8460_v20  ;;  %v8666_v7 = vadd.f32 %v8665_v30, %v8664_v44 }
 0x7df   :  { %v8592_v29 = vadd.f32 %v8591_v27, %v8463_v60  ;;  %v8502_v28 = vpop.xlane.xlu1 %8501  ;;  %v8667_v57 = vrot.slane %v8666_v7, 1 }
 0x7e0   :  { %v8487_v26 = vpop.xlane.xlu0 %8486 }
 0x7e1   :  { %v8593_v1 = vadd.f32 %v8592_v29, %v8466_v14  ;;  %v8668_v32 = vadd.f32 %v8667_v57, %v8666_v7 }
 0x7e3   :  { %v8594_v48 = vadd.f32 %v8593_v1, %v8469_v43  ;;  %v8508_v38 = vpop.xlane.xlu1 %8507  ;;  %v8669_v46 = vadd.f32 1e-08, %v8668_v32 }
 0x7e4   :  { %v8493_v49 = vpop.xlane.xlu0 %8492 }
 0x7e5   :  { %v8595_v22 = vadd.f32 %v8594_v48, %v8472_v18 }
 0x7e7   :  { %v8596_v12 = vadd.f32 %v8595_v22, %v8475_v37  ;;  %v8514_v6 = vpop.xlane.xlu1 %8513 }
 0x7e8   :  { %v8499_v33 = vpop.xlane.xlu0 %8498 }
 0x7e9   :  { %v8597_v53 = vadd.f32 %v8596_v12, %v8478_v23  ;;  %v8670_v23 = vmul.f32 16.0, %v8669_v46 }
 0x7eb   :  { %v8598_v39 = vadd.f32 %v8597_v53, %v8481_v36  ;;  %v8520_v3 = vpop.xlane.xlu1 %8519  ;;  %10577 = vrcp.f32 %v8670_v23 }
 0x7ec   :  { %v8505_v8 = vpop.xlane.xlu0 %8504 }
 0x7ed   :  { %v8599_v40 = vadd.f32 %v8598_v39, %v8484_v31 }
 0x7ef   :  { %v8600_v50 = vadd.f32 %v8599_v40, %v8487_v26  ;;  %v8526_v16 = vpop.xlane.xlu1 %8525 }
 0x7f0   :  { %v8511_v52 = vpop.xlane.xlu0 %8510 }
 0x7f1   :  { %v8601_v2 = vadd.f32 %v8600_v50, %v8490_v54 }
 0x7f3   :  { %v8602_v25 = vadd.f32 %v8601_v2, %v8493_v49  ;;  %v8532_v10 = vpop.xlane.xlu1 %8531 }
 0x7f4   :  { %v8517_v0 = vpop.xlane.xlu0 %8516 }
 0x7f5   :  { %v8603_v35 = vadd.f32 %v8602_v25, %v8496_v58 }
 0x7f7   :  { %v8604_v62 = vadd.f32 %v8603_v35, %v8499_v33  ;;  %v8538_v13 = vpop.xlane.xlu1 %8537 }
 0x7f8   :  { %v8523_v11 = vpop.xlane.xlu0 %8522  ;;  %v10578_v50 = vpop.eup %10577 }
 0x7f9   :  { %v8605_v5 = vadd.f32 %v8604_v62, %v8502_v28 }
 0x7fb   :  { %v8606_v51 = vadd.f32 %v8605_v5, %v8505_v8  ;;  %v8544_v43 = vpop.xlane.xlu1 %8543 }
 0x7fc   :  { %v8529_v42 = vpop.xlane.xlu0 %8528 }
 0x7fd   :  { %v8607_v63 = vadd.f32 %v8606_v51, %v8508_v38 }
 0x7ff   :  { %v8608_v9 = vadd.f32 %v8607_v63, %v8511_v52  ;;  %v8550_v18 = vpop.xlane.xlu1 %8549 }
 0x800   :  { %v8535_v59 = vpop.xlane.xlu0 %8534 }
 0x801   :  { %v8609_v56 = vadd.f32 %v8608_v9, %v8514_v6 }
 0x803   :  { %v8610_v55 = vadd.f32 %v8609_v56, %v8517_v0 }
 0x804   :  { %v8541_v14 = vpop.xlane.xlu0 %8540 }
 0x805   :  { %v8611_v15 = vadd.f32 %v8610_v55, %v8520_v3 }
 0x807   :  { %v8612_v47 = vadd.f32 %v8611_v15, %v8523_v11 }
 0x808   :  { %v8547_v21 = vpop.xlane.xlu0 %8546 }
 0x809   :  { %v8613_v34 = vadd.f32 %v8612_v47, %v8526_v16 }
 0x80b   :  { %v8614_v19 = vadd.f32 %v8613_v34, %v8529_v42 }
 0x80d   :  { %v8615_v41 = vadd.f32 %v8614_v19, %v8532_v10 }
 0x80f   :  { %v8616_v61 = vadd.f32 %v8615_v41, %v8535_v59 }
 0x811   :  { %v8617_v60 = vadd.f32 %v8616_v61, %v8538_v13 }
 0x813   :  { %v8618_v20 = vadd.f32 %v8617_v60, %v8541_v14 }
 0x815   :  { %v8619_v24 = vadd.f32 %v8618_v20, %v8544_v43 }
 0x817   :  { %v8620_v45 = vadd.f32 %v8619_v24, %v8547_v21 }
 0x819   :  { %v8621_v27 = vadd.f32 %v8620_v45, %v8550_v18 }
 0x83a   :  { %v8556_v37 = vpop.xlane.xlu1 %8555  ;;  %v8553_v29 = vpop.xlane.xlu0 %8552 }
 0x83b   :  { %v8622_v1 = vadd.f32 %v8621_v27, %v8553_v29 }
 0x83d   :  { %v8623_v48 = vadd.f32 %v8622_v1, %v8556_v37 }
 0x83e   :  { %v8559_v36 = vpop.xlane.xlu0 %8558  ;;  %v8562_v31 = vpop.xlane.xlu1 %8561 }
 0x83f   :  { %v8624_v22 = vadd.f32 %v8623_v48, %v8559_v36 }
 0x841   :  { %v8625_v12 = vadd.f32 %v8624_v22, %v8562_v31 }
 0x843   :  { %v8626_v53 = vrot.slane %v8625_v12, 4 }
 0x845   :  { %v8627_v26 = vadd.f32 %v8626_v53, %v8625_v12 }
 0x847   :  { %v8628_v39 = vrot.slane %v8627_v26, 2 }
 0x849   :  { %v8629_v54 = vadd.f32 %v8628_v39, %v8627_v26 }
 0x84b   :  { %v8630_v40 = vrot.slane %v8629_v54, 1 }
 0x84d   :  { %v8631_v49 = vadd.f32 %v8630_v40, %v8629_v54 }
 0x84f   :  { %v8672_v2 = vmul.f32 %v10578_v50, %v8631_v49 }
 0x851   :  { %8674 = vst.msk [vmem:[#allocation2] sm:$0x1] %vm8673_vm6, %v8672_v2 }
 0x852   :  { %10657 = shalt.err (!%p10654_p4)
}
 0x853   :  { %8684 = dma.vmem_to_hbm [thread:$0]  %s8682_s0, 16, %s17463_s16, [#allocation3]  }
 0x854   :  { %10666 = dma.done.wait [#allocation3], 16  }
 0x855   :  { %10667 = vsyncadd [#allocation3], 4294967280 }
 0x856   :  { %8688 = vsyncpa [#allocation3], 1 }

</bundles_post_ra>
